<compile_context>
chip_gen: v7x
topology: tpu7x:2x2x1
jax: 0.10.0
libtpu: 0.0.40
codegen_flags: <defaults>
</compile_context>

<pallas_src>
import functools
import math

import jax
import jax.numpy as jnp
from jax.experimental import pallas as pl
from jax.experimental.pallas import tpu as pltpu

SIZE = 16          # spatial size of the input (original script used 64); fc1 in-dim = 32*SIZE*SIZE//16
C = 32             # channels for both convs (module requires 32 input channels)
EPS = 1e-5         # BatchNorm eps


# ----------------------------------------------------------------------------
# Single fused kernel: whole network, one invocation, everything VMEM-resident.
# ----------------------------------------------------------------------------
def fused_net_kernel(
    # ---- inputs -------------------------------------------------------------
    x_ref,                                       # (B, H, W, C) NHWC input
    w1_ref, b1_ref, s1_ref, t1_ref,              # conv1: (9C, C), (1,C)x3
    w2_ref, b2_ref,                              # conv2: (9C, C), (1,C)
    fw1_ref, fb1_ref,                            # fc1 (norm2 folded): (512,512), (1,512)
    fw2_ref, fb2_ref,                            # fc2 (norm3 folded): (512,256), (1,256)
    fw3_ref, fb3_ref,                            # fc3 (norm4 folded): (256,2), (1,2)
    # ---- output -------------------------------------------------------------
    o_ref,                                       # (B, 2)
    # ---- VMEM scratch -------------------------------------------------------
    pad1_ref, col1_ref, acc1_ref, row1_ref,
    pad2_ref, col2_ref, acc2_ref, wmax2_ref, flat_t_ref, flat_ref,
    *, B, H, W, Cc):
  H2, W2 = H // 2, W // 2
  H4, W4 = H // 4, W // 4

  # =================== conv block 1: conv3x3 + bias + ReLU + pool + BN =======
  # Zero-pad the NHWC input inside VMEM (no HBM jnp.pad round trip).
  pad1_ref[...] = jnp.zeros_like(pad1_ref)
  pad1_ref[:, 1:H + 1, 1:W + 1, :] = x_ref[...]

  # im2col: 9 shifted views -> (B*H*W, 9*C) patch matrix, then ONE K=288 matmul
  # with the batch folded into M.
  m1 = B * H * W
  for dy in range(3):
    for dx in range(3):
      t = dy * 3 + dx
      col1_ref[:, t * Cc:(t + 1) * Cc] = (
          pad1_ref[:, dy:dy + H, dx:dx + W, :].reshape(m1, Cc))
  a1 = jnp.dot(col1_ref[...], w1_ref[...], preferred_element_type=jnp.float32)
  a1 = jnp.maximum(a1 + b1_ref[...], 0.0)                    # (B*H*W, C)

  # 2x2 max-pool via strided VMEM reads; rows of a1 are ordered (b, h, w).
  acc1_ref[...] = a1.reshape(B * H, W, Cc)                   # rows (b, h)
  row1_ref[...] = jnp.maximum(acc1_ref[pl.ds(0, B * H2, 2), :, :],
                              acc1_ref[pl.ds(1, B * H2, 2), :, :])
  p1 = jnp.maximum(row1_ref[:, pl.ds(0, W2, 2), :],
                   row1_ref[:, pl.ds(1, W2, 2), :])          # (B*H2, W2, C)
  p1 = p1 * s1_ref[...] + t1_ref[...]                        # norm1 (eval)

  # =================== conv block 2 ==========================================
  pad2_ref[...] = jnp.zeros_like(pad2_ref)
  pad2_ref[:, 1:H2 + 1, 1:W2 + 1, :] = p1.reshape(B, H2, W2, Cc)

  m2 = B * H2 * W2
  for dy in range(3):
    for dx in range(3):
      t = dy * 3 + dx
      col2_ref[:, t * Cc:(t + 1) * Cc] = (
          pad2_ref[:, dy:dy + H2, dx:dx + W2, :].reshape(m2, Cc))
  a2 = jnp.dot(col2_ref[...], w2_ref[...], preferred_element_type=jnp.float32)
  a2 = jnp.maximum(a2 + b2_ref[...], 0.0)                    # (B*H2*W2, C)

  # pool + NHWC flatten with 2-D tiles and strided VMEM reads.
  # (norm2 is folded into fc1's weights, so no BN here.)
  acc2_ref[...] = a2                                         # rows (b, h, w)
  wmax2_ref[...] = jnp.maximum(acc2_ref[pl.ds(0, B * H2 * W4, 2), :],
                               acc2_ref[pl.ds(1, B * H2 * W4, 2), :])
  # wmax2 rows ordered (b, h, w4): index = b*H2*W4 + h*W4 + w4
  for w4 in range(W4):
    ev = wmax2_ref[pl.ds(w4, B * H4, 2 * W4), :]             # h even
    od = wmax2_ref[pl.ds(w4 + W4, B * H4, 2 * W4), :]        # h odd
    flat_t_ref[:, w4 * Cc:(w4 + 1) * Cc] = jnp.maximum(ev, od)  # rows (b, h4)
  # flat_t rows (b, h4), lanes (w4, c) -> flat rows b, lanes (h4, w4, c)
  for h4 in range(H4):
    flat_ref[:, h4 * (W4 * Cc):(h4 + 1) * (W4 * Cc)] = (
        flat_t_ref[pl.ds(h4, B, H4), :])

  # =================== fully-connected head (norm3/norm4 folded) =============
  y = jnp.dot(flat_ref[...], fw1_ref[...], preferred_element_type=jnp.float32)
  y = jnp.maximum(y + fb1_ref[...], 0.0)
  y = jnp.dot(y, fw2_ref[...], preferred_element_type=jnp.float32)
  y = jnp.maximum(y + fb2_ref[...], 0.0)
  y = jnp.dot(y, fw3_ref[...], preferred_element_type=jnp.float32) + fb3_ref[...]
  o_ref[...] = 1.0 / (1.0 + jnp.exp(-y))                     # sigmoid


@jax.jit
def net_forward(x_nchw, q):
  """Wrapper: glue only. One small input-layout transpose + one pallas_call."""
  B = x_nchw.shape[0]
  x = jnp.transpose(x_nchw, (0, 2, 3, 1))       # NCHW -> NHWC (one-time, tiny)
  H, W = x.shape[1], x.shape[2]
  H2, W2, H4, W4 = H // 2, W // 2, H // 4, W // 4
  vm = pl.BlockSpec(memory_space=pltpu.MemorySpace.VMEM)
  kernel = functools.partial(fused_net_kernel, B=B, H=H, W=W, Cc=C)
  return pl.pallas_call(
      kernel,
      out_shape=jax.ShapeDtypeStruct((B, 2), jnp.float32),
      in_specs=[vm] * 13,
      out_specs=vm,
      scratch_shapes=[
          pltpu.VMEM((B, H + 2, W + 2, C), jnp.float32),        # pad1
          pltpu.VMEM((B * H * W, 9 * C), jnp.float32),          # col1 (im2col)
          pltpu.VMEM((B * H, W, C), jnp.float32),               # acc1 (conv1 out)
          pltpu.VMEM((B * H2, W, C), jnp.float32),              # row1 (h-pooled)
          pltpu.VMEM((B, H2 + 2, W2 + 2, C), jnp.float32),      # pad2
          pltpu.VMEM((B * H2 * W2, 9 * C), jnp.float32),        # col2 (im2col)
          pltpu.VMEM((B * H2 * W2, C), jnp.float32),            # acc2 (conv2 out)
          pltpu.VMEM((B * H2 * W4, C), jnp.float32),            # wmax2 (w-pooled)
          pltpu.VMEM((B * H4, W4 * C), jnp.float32),            # flat_t
          pltpu.VMEM((B, H4 * W4 * C), jnp.float32),            # flat (fc1 input)
      ],
  )(x,
    q["w1"], q["b1"], q["s1"], q["t1"],
    q["w2"], q["b2"],
    q["fw1"], q["fb1"],
    q["fw2"], q["fb2"],
    q["fw3"], q["fb3"])


# ----------------------------------------------------------------------------
# Parameter init (torch layout) + one-time kernel-layout preparation
# ----------------------------------------------------------------------------
def _uniform(key, shape, bound):
  return jax.random.uniform(key, shape, jnp.float32, -bound, bound)


def _bn(kg, kb, km, kv, n):
  gamma = 1.0 + 0.1 * jax.random.normal(kg, (n,), jnp.float32)
  beta = 0.1 * jax.random.normal(kb, (n,), jnp.float32)
  mean = 0.1 * jax.random.normal(km, (n,), jnp.float32)
  var = 1.0 + 0.1 * jax.random.uniform(kv, (n,), jnp.float32)
  scale = gamma / jnp.sqrt(var + EPS)
  shift = beta - mean * scale
  return scale.reshape(1, n), shift.reshape(1, n)


def init_params(key):
  ks = jax.random.split(key, 26)
  flat = C * SIZE * SIZE // 16
  p = {}
  # convs: PyTorch weight layout (O, I, kh, kw)
  p["conv1_w"] = _uniform(ks[0], (C, C, 3, 3), 1.0 / math.sqrt(C * 9))
  p["conv1_b"] = _uniform(ks[1], (C,), 1.0 / math.sqrt(C * 9))
  p["conv2_w"] = _uniform(ks[2], (C, C, 3, 3), 1.0 / math.sqrt(C * 9))
  p["conv2_b"] = _uniform(ks[3], (C,), 1.0 / math.sqrt(C * 9))
  # linears: PyTorch weight layout (out, in)
  p["fc1_w"] = _uniform(ks[4], (512, flat), 1.0 / math.sqrt(flat))
  p["fc1_b"] = _uniform(ks[5], (512,), 1.0 / math.sqrt(flat))
  p["fc2_w"] = _uniform(ks[6], (256, 512), 1.0 / math.sqrt(512))
  p["fc2_b"] = _uniform(ks[7], (256,), 1.0 / math.sqrt(512))
  p["fc3_w"] = _uniform(ks[8], (2, 256), 1.0 / math.sqrt(256))
  p["fc3_b"] = _uniform(ks[9], (2,), 1.0 / math.sqrt(256))
  # batchnorms (eval scale/shift)
  p["bn1_scale"], p["bn1_shift"] = _bn(ks[10], ks[11], ks[12], ks[13], C)
  p["bn2_scale"], p["bn2_shift"] = _bn(ks[14], ks[15], ks[16], ks[17], C)
  p["bn3_scale"], p["bn3_shift"] = _bn(ks[18], ks[19], ks[20], ks[21], 512)
  p["bn4_scale"], p["bn4_shift"] = _bn(ks[22], ks[23], ks[24], ks[25], 256)
  return p


def prepare_params(p):
  """One-time re-layout of torch-format params into the kernel's format.

  Folds the eval-mode BatchNorms that immediately precede a Linear
  (norm2->fc1, norm3->fc2, norm4->fc3) into that Linear's weight/bias:
      Linear(s*x + t) = x @ (s[:,None]*W) + (t @ W + b)
  """
  h4 = w4 = SIZE // 4
  flat = h4 * w4 * C
  q = {}
  # conv: (O, I, kh, kw) -> (kh, kw, I, O) -> (9*I, O)  [row = tap*C + cin]
  q["w1"] = jnp.transpose(p["conv1_w"], (2, 3, 1, 0)).reshape(9 * C, C)
  q["b1"] = p["conv1_b"].reshape(1, C)
  q["s1"], q["t1"] = p["bn1_scale"], p["bn1_shift"]          # norm1 stays in-kernel
  q["w2"] = jnp.transpose(p["conv2_w"], (2, 3, 1, 0)).reshape(9 * C, C)
  q["b2"] = p["conv2_b"].reshape(1, C)

  # fc1: torch (512, flat) over NCHW flatten -> (flat, 512) with rows permuted
  # to the kernel's NHWC flatten order (h, w, c); then fold norm2.
  fw1 = jnp.transpose(p["fc1_w"].reshape(512, C, h4, w4),
                      (2, 3, 1, 0)).reshape(flat, 512)
  s2 = jnp.tile(p["bn2_scale"].reshape(-1), h4 * w4)          # (flat,), c fastest
  t2 = jnp.tile(p["bn2_shift"].reshape(-1), h4 * w4)
  q["fw1"] = fw1 * s2[:, None]
  q["fb1"] = (p["fc1_b"] + t2 @ fw1).reshape(1, 512)

  # fc2: (512, 256) with norm3 folded.
  fw2 = p["fc2_w"].T
  s3 = p["bn3_scale"].reshape(-1)
  t3 = p["bn3_shift"].reshape(-1)
  q["fw2"] = fw2 * s3[:, None]
  q["fb2"] = (p["fc2_b"] + t3 @ fw2).reshape(1, 256)

  # fc3: (256, 2) with norm4 folded.
  fw3 = p["fc3_w"].T
  s4 = p["bn4_scale"].reshape(-1)
  t4 = p["bn4_shift"].reshape(-1)
  q["fw3"] = fw3 * s4[:, None]
  q["fb3"] = (p["fc3_b"] + t4 @ fw3).reshape(1, 2)
  return q


# ----------------------------------------------------------------------------
# Pure-JAX reference (torch-layout params, HIGHEST precision) for correctness
# ----------------------------------------------------------------------------
def reference_forward(x, p):
  B = x.shape[0]
  hi = jax.lax.Precision.HIGHEST

  def block(x, w, b, scale, shift):
    y = jax.lax.conv_general_dilated(x, w, (1, 1), "SAME",
                                     dimension_numbers=("NCHW", "OIHW", "NCHW"),
                                     precision=hi)
    y = jax.nn.relu(y + b[None, :, None, None])
    y = jax.lax.reduce_window(y, -jnp.inf, jax.lax.max,
                              (1, 1, 2, 2), (1, 1, 2, 2), "VALID")
    return y * scale.reshape(1, -1, 1, 1) + shift.reshape(1, -1, 1, 1)

  x = block(x, p["conv1_w"], p["conv1_b"], p["bn1_scale"], p["bn1_shift"])
  x = block(x, p["conv2_w"], p["conv2_b"], p["bn2_scale"], p["bn2_shift"])
  x = x.reshape(B, -1)
  x = (jax.nn.relu(jnp.dot(x, p["fc1_w"].T, precision=hi) + p["fc1_b"])
       * p["bn3_scale"] + p["bn3_shift"])
  x = (jax.nn.relu(jnp.dot(x, p["fc2_w"].T, precision=hi) + p["fc2_b"])
       * p["bn4_scale"] + p["bn4_shift"])
  return jax.nn.sigmoid(jnp.dot(x, p["fc3_w"].T, precision=hi) + p["fc3_b"])


if __name__ == "__main__":
  key = jax.random.PRNGKey(0)
  pkey, xkey = jax.random.split(key)
  params = init_params(pkey)
  kparams = prepare_params(params)

  B = 2
  x = jax.random.normal(xkey, (B, C, SIZE, SIZE), jnp.float32)

  out = jax.block_until_ready(net_forward(x, kparams))
  assert out.shape == (B, 2), out.shape

  ref = reference_forward(x, params)
  max_err = float(jnp.max(jnp.abs(out - ref)))
  assert max_err < 1e-3, f"kernel/reference mismatch, max abs err = {max_err}"

  print("KERNEL_OK")
</pallas_src>

<mosaic_0001>
module attributes {stable_mosaic.version = 11 : i64} {
  func.func @fused_net_kernel(%arg0: memref<2x16x16x32xf32, #tpu.memory_space<vmem>>, %arg1: memref<288x32xf32, #tpu.memory_space<vmem>>, %arg2: memref<1x32xf32, #tpu.memory_space<vmem>>, %arg3: memref<1x32xf32, #tpu.memory_space<vmem>>, %arg4: memref<1x32xf32, #tpu.memory_space<vmem>>, %arg5: memref<288x32xf32, #tpu.memory_space<vmem>>, %arg6: memref<1x32xf32, #tpu.memory_space<vmem>>, %arg7: memref<512x512xf32, #tpu.memory_space<vmem>>, %arg8: memref<1x512xf32, #tpu.memory_space<vmem>>, %arg9: memref<512x256xf32, #tpu.memory_space<vmem>>, %arg10: memref<1x256xf32, #tpu.memory_space<vmem>>, %arg11: memref<256x2xf32, #tpu.memory_space<vmem>>, %arg12: memref<1x2xf32, #tpu.memory_space<vmem>>, %arg13: memref<2x2xf32, #tpu.memory_space<vmem>>, %arg14: memref<2x18x18x32xf32, #tpu.memory_space<vmem>>, %arg15: memref<512x288xf32, #tpu.memory_space<vmem>>, %arg16: memref<32x16x32xf32, #tpu.memory_space<vmem>>, %arg17: memref<16x16x32xf32, #tpu.memory_space<vmem>>, %arg18: memref<2x10x10x32xf32, #tpu.memory_space<vmem>>, %arg19: memref<128x288xf32, #tpu.memory_space<vmem>>, %arg20: memref<128x32xf32, #tpu.memory_space<vmem>>, %arg21: memref<64x32xf32, #tpu.memory_space<vmem>>, %arg22: memref<8x128xf32, #tpu.memory_space<vmem>>, %arg23: memref<2x512xf32, #tpu.memory_space<vmem>>) attributes {dimension_semantics = [], scalar_prefetch = 0 : i64, scratch_operands = 10 : i64, tpu.core_type = #tpu.core_type<tc>} {
    %cst = arith.constant 0.000000e+00 : f32
    %0 = vector.broadcast %cst : f32 to vector<2x18x18x32xf32>
    %c0 = arith.constant 0 : index
    %c0_0 = arith.constant 0 : index
    %c0_1 = arith.constant 0 : index
    %c0_2 = arith.constant 0 : index
    %1 = vector.load %arg14[%c0, %c0_0, %c0_1, %c0_2] : memref<2x18x18x32xf32, #tpu.memory_space<vmem>>, vector<2x18x18x32xf32>
    tpu.vector_store %arg14[%c0, %c0_0, %c0_1, %c0_2], %0 {strides = array<i32>} : memref<2x18x18x32xf32, #tpu.memory_space<vmem>>, vector<2x18x18x32xf32>,
    %c0_3 = arith.constant 0 : index
    %c0_4 = arith.constant 0 : index
    %c0_5 = arith.constant 0 : index
    %c0_6 = arith.constant 0 : index
    %2 = vector.load %arg0[%c0_3, %c0_4, %c0_5, %c0_6] : memref<2x16x16x32xf32, #tpu.memory_space<vmem>>, vector<2x16x16x32xf32>
    %c0_7 = arith.constant 0 : index
    %c1 = arith.constant 1 : index
    %c1_8 = arith.constant 1 : index
    %c0_9 = arith.constant 0 : index
    %3 = vector.load %arg14[%c0_7, %c1, %c1_8, %c0_9] : memref<2x18x18x32xf32, #tpu.memory_space<vmem>>, vector<2x16x16x32xf32>
    tpu.vector_store %arg14[%c0_7, %c1, %c1_8, %c0_9], %2 {strides = array<i32>} : memref<2x18x18x32xf32, #tpu.memory_space<vmem>>, vector<2x16x16x32xf32>,
    %c0_10 = arith.constant 0 : index
    %c0_11 = arith.constant 0 : index
    %c0_12 = arith.constant 0 : index
    %c0_13 = arith.constant 0 : index
    %4 = vector.load %arg14[%c0_10, %c0_11, %c0_12, %c0_13] : memref<2x18x18x32xf32, #tpu.memory_space<vmem>>, vector<2x16x16x32xf32>
    %5 = vector.shape_cast %4 : vector<2x16x16x32xf32> to vector<512x32xf32>
    %c0_14 = arith.constant 0 : index
    %c0_15 = arith.constant 0 : index
    %6 = vector.load %arg15[%c0_14, %c0_15] : memref<512x288xf32, #tpu.memory_space<vmem>>, vector<512x32xf32>
    tpu.vector_store %arg15[%c0_14, %c0_15], %5 {strides = array<i32>} : memref<512x288xf32, #tpu.memory_space<vmem>>, vector<512x32xf32>,
    %c0_16 = arith.constant 0 : index
    %c0_17 = arith.constant 0 : index
    %c1_18 = arith.constant 1 : index
    %c0_19 = arith.constant 0 : index
    %7 = vector.load %arg14[%c0_16, %c0_17, %c1_18, %c0_19] : memref<2x18x18x32xf32, #tpu.memory_space<vmem>>, vector<2x16x16x32xf32>
    %8 = vector.shape_cast %7 : vector<2x16x16x32xf32> to vector<512x32xf32>
    %c0_20 = arith.constant 0 : index
    %c32 = arith.constant 32 : index
    %9 = vector.load %arg15[%c0_20, %c32] : memref<512x288xf32, #tpu.memory_space<vmem>>, vector<512x32xf32>
    tpu.vector_store %arg15[%c0_20, %c32], %8 {strides = array<i32>} : memref<512x288xf32, #tpu.memory_space<vmem>>, vector<512x32xf32>,
    %c0_21 = arith.constant 0 : index
    %c0_22 = arith.constant 0 : index
    %c2 = arith.constant 2 : index
    %c0_23 = arith.constant 0 : index
    %10 = vector.load %arg14[%c0_21, %c0_22, %c2, %c0_23] : memref<2x18x18x32xf32, #tpu.memory_space<vmem>>, vector<2x16x16x32xf32>
    %11 = vector.shape_cast %10 : vector<2x16x16x32xf32> to vector<512x32xf32>
    %c0_24 = arith.constant 0 : index
    %c64 = arith.constant 64 : index
    %12 = vector.load %arg15[%c0_24, %c64] : memref<512x288xf32, #tpu.memory_space<vmem>>, vector<512x32xf32>
    tpu.vector_store %arg15[%c0_24, %c64], %11 {strides = array<i32>} : memref<512x288xf32, #tpu.memory_space<vmem>>, vector<512x32xf32>,
    %c0_25 = arith.constant 0 : index
    %c1_26 = arith.constant 1 : index
    %c0_27 = arith.constant 0 : index
    %c0_28 = arith.constant 0 : index
    %13 = vector.load %arg14[%c0_25, %c1_26, %c0_27, %c0_28] : memref<2x18x18x32xf32, #tpu.memory_space<vmem>>, vector<2x16x16x32xf32>
    %14 = vector.shape_cast %13 : vector<2x16x16x32xf32> to vector<512x32xf32>
    %c0_29 = arith.constant 0 : index
    %c96 = arith.constant 96 : index
    %15 = vector.load %arg15[%c0_29, %c96] : memref<512x288xf32, #tpu.memory_space<vmem>>, vector<512x32xf32>
    tpu.vector_store %arg15[%c0_29, %c96], %14 {strides = array<i32>} : memref<512x288xf32, #tpu.memory_space<vmem>>, vector<512x32xf32>,
    %c0_30 = arith.constant 0 : index
    %c1_31 = arith.constant 1 : index
    %c1_32 = arith.constant 1 : index
    %c0_33 = arith.constant 0 : index
    %16 = vector.load %arg14[%c0_30, %c1_31, %c1_32, %c0_33] : memref<2x18x18x32xf32, #tpu.memory_space<vmem>>, vector<2x16x16x32xf32>
    %17 = vector.shape_cast %16 : vector<2x16x16x32xf32> to vector<512x32xf32>
    %c0_34 = arith.constant 0 : index
    %c128 = arith.constant 128 : index
    %18 = vector.load %arg15[%c0_34, %c128] : memref<512x288xf32, #tpu.memory_space<vmem>>, vector<512x32xf32>
    tpu.vector_store %arg15[%c0_34, %c128], %17 {strides = array<i32>} : memref<512x288xf32, #tpu.memory_space<vmem>>, vector<512x32xf32>,
    %c0_35 = arith.constant 0 : index
    %c1_36 = arith.constant 1 : index
    %c2_37 = arith.constant 2 : index
    %c0_38 = arith.constant 0 : index
    %19 = vector.load %arg14[%c0_35, %c1_36, %c2_37, %c0_38] : memref<2x18x18x32xf32, #tpu.memory_space<vmem>>, vector<2x16x16x32xf32>
    %20 = vector.shape_cast %19 : vector<2x16x16x32xf32> to vector<512x32xf32>
    %c0_39 = arith.constant 0 : index
    %c160 = arith.constant 160 : index
    %21 = vector.load %arg15[%c0_39, %c160] : memref<512x288xf32, #tpu.memory_space<vmem>>, vector<512x32xf32>
    tpu.vector_store %arg15[%c0_39, %c160], %20 {strides = array<i32>} : memref<512x288xf32, #tpu.memory_space<vmem>>, vector<512x32xf32>,
    %c0_40 = arith.constant 0 : index
    %c2_41 = arith.constant 2 : index
    %c0_42 = arith.constant 0 : index
    %c0_43 = arith.constant 0 : index
    %22 = vector.load %arg14[%c0_40, %c2_41, %c0_42, %c0_43] : memref<2x18x18x32xf32, #tpu.memory_space<vmem>>, vector<2x16x16x32xf32>
    %23 = vector.shape_cast %22 : vector<2x16x16x32xf32> to vector<512x32xf32>
    %c0_44 = arith.constant 0 : index
    %c192 = arith.constant 192 : index
    %24 = vector.load %arg15[%c0_44, %c192] : memref<512x288xf32, #tpu.memory_space<vmem>>, vector<512x32xf32>
    tpu.vector_store %arg15[%c0_44, %c192], %23 {strides = array<i32>} : memref<512x288xf32, #tpu.memory_space<vmem>>, vector<512x32xf32>,
    %c0_45 = arith.constant 0 : index
    %c2_46 = arith.constant 2 : index
    %c1_47 = arith.constant 1 : index
    %c0_48 = arith.constant 0 : index
    %25 = vector.load %arg14[%c0_45, %c2_46, %c1_47, %c0_48] : memref<2x18x18x32xf32, #tpu.memory_space<vmem>>, vector<2x16x16x32xf32>
    %26 = vector.shape_cast %25 : vector<2x16x16x32xf32> to vector<512x32xf32>
    %c0_49 = arith.constant 0 : index
    %c224 = arith.constant 224 : index
    %27 = vector.load %arg15[%c0_49, %c224] : memref<512x288xf32, #tpu.memory_space<vmem>>, vector<512x32xf32>
    tpu.vector_store %arg15[%c0_49, %c224], %26 {strides = array<i32>} : memref<512x288xf32, #tpu.memory_space<vmem>>, vector<512x32xf32>,
    %c0_50 = arith.constant 0 : index
    %c2_51 = arith.constant 2 : index
    %c2_52 = arith.constant 2 : index
    %c0_53 = arith.constant 0 : index
    %28 = vector.load %arg14[%c0_50, %c2_51, %c2_52, %c0_53] : memref<2x18x18x32xf32, #tpu.memory_space<vmem>>, vector<2x16x16x32xf32>
    %29 = vector.shape_cast %28 : vector<2x16x16x32xf32> to vector<512x32xf32>
    %c0_54 = arith.constant 0 : index
    %c256 = arith.constant 256 : index
    %30 = vector.load %arg15[%c0_54, %c256] : memref<512x288xf32, #tpu.memory_space<vmem>>, vector<512x32xf32>
    tpu.vector_store %arg15[%c0_54, %c256], %29 {strides = array<i32>} : memref<512x288xf32, #tpu.memory_space<vmem>>, vector<512x32xf32>,
    %c0_55 = arith.constant 0 : index
    %c0_56 = arith.constant 0 : index
    %31 = vector.load %arg15[%c0_55, %c0_56] : memref<512x288xf32, #tpu.memory_space<vmem>>, vector<512x288xf32>
    %c0_57 = arith.constant 0 : index
    %c0_58 = arith.constant 0 : index
    %32 = vector.load %arg1[%c0_57, %c0_58] : memref<288x32xf32, #tpu.memory_space<vmem>>, vector<288x32xf32>
    %cst_59 = arith.constant dense<0.000000e+00> : vector<512x32xf32>
    %33 = tpu.matmul %31, %32, %cst_59 {dimension_numbers = #tpu.dot_dimension_numbers<[1], [0], [0], [1], [0, 0, 1, 1], [], []>} : vector<512x288xf32>, vector<288x32xf32>, vector<512x32xf32> -> vector<512x32xf32>
    %c0_60 = arith.constant 0 : index
    %c0_61 = arith.constant 0 : index
    %34 = vector.load %arg2[%c0_60, %c0_61] : memref<1x32xf32, #tpu.memory_space<vmem>>, vector<1x32xf32>
    %35 = vector.broadcast %34 : vector<1x32xf32> to vector<512x32xf32>
    %36 = arith.addf %33, %35 : vector<512x32xf32>
    %cst_62 = arith.constant 0.000000e+00 : f32
    %37 = vector.broadcast %cst_62 : f32 to vector<512x32xf32>
    %38 = arith.maximumf %36, %37 : vector<512x32xf32>
    %39 = vector.shape_cast %38 : vector<512x32xf32> to vector<32x16x32xf32>
    %c0_63 = arith.constant 0 : index
    %c0_64 = arith.constant 0 : index
    %c0_65 = arith.constant 0 : index
    %40 = vector.load %arg16[%c0_63, %c0_64, %c0_65] : memref<32x16x32xf32, #tpu.memory_space<vmem>>, vector<32x16x32xf32>
    tpu.vector_store %arg16[%c0_63, %c0_64, %c0_65], %39 {strides = array<i32>} : memref<32x16x32xf32, #tpu.memory_space<vmem>>, vector<32x16x32xf32>,
    %c0_66 = arith.constant 0 : index
    %c0_67 = arith.constant 0 : index
    %c0_68 = arith.constant 0 : index
    %41 = tpu.strided_load %arg16[%c0_66, %c0_67, %c0_68] {strides = array<i32: 2, 1, 1>} : memref<32x16x32xf32, #tpu.memory_space<vmem>>, vector<16x16x32xf32>
    %c1_69 = arith.constant 1 : index
    %c0_70 = arith.constant 0 : index
    %c0_71 = arith.constant 0 : index
    %42 = tpu.strided_load %arg16[%c1_69, %c0_70, %c0_71] {strides = array<i32: 2, 1, 1>} : memref<32x16x32xf32, #tpu.memory_space<vmem>>, vector<16x16x32xf32>
    %43 = arith.maximumf %41, %42 : vector<16x16x32xf32>
    %c0_72 = arith.constant 0 : index
    %c0_73 = arith.constant 0 : index
    %c0_74 = arith.constant 0 : index
    %44 = vector.load %arg17[%c0_72, %c0_73, %c0_74] : memref<16x16x32xf32, #tpu.memory_space<vmem>>, vector<16x16x32xf32>
    tpu.vector_store %arg17[%c0_72, %c0_73, %c0_74], %43 {strides = array<i32>} : memref<16x16x32xf32, #tpu.memory_space<vmem>>, vector<16x16x32xf32>,
    %c0_75 = arith.constant 0 : index
    %c0_76 = arith.constant 0 : index
    %c0_77 = arith.constant 0 : index
    %45 = tpu.strided_load %arg17[%c0_75, %c0_76, %c0_77] {strides = array<i32: 1, 2, 1>} : memref<16x16x32xf32, #tpu.memory_space<vmem>>, vector<16x8x32xf32>
    %c0_78 = arith.constant 0 : index
    %c1_79 = arith.constant 1 : index
    %c0_80 = arith.constant 0 : index
    %46 = tpu.strided_load %arg17[%c0_78, %c1_79, %c0_80] {strides = array<i32: 1, 2, 1>} : memref<16x16x32xf32, #tpu.memory_space<vmem>>, vector<16x8x32xf32>
    %47 = arith.maximumf %45, %46 : vector<16x8x32xf32>
    %c0_81 = arith.constant 0 : index
    %c0_82 = arith.constant 0 : index
    %48 = vector.load %arg3[%c0_81, %c0_82] : memref<1x32xf32, #tpu.memory_space<vmem>>, vector<1x32xf32>
    %49 = vector.shape_cast %48 : vector<1x32xf32> to vector<1x1x32xf32>
    %50 = vector.broadcast %49 : vector<1x1x32xf32> to vector<16x8x32xf32>
    %51 = arith.mulf %47, %50 : vector<16x8x32xf32>
    %c0_83 = arith.constant 0 : index
    %c0_84 = arith.constant 0 : index
    %52 = vector.load %arg4[%c0_83, %c0_84] : memref<1x32xf32, #tpu.memory_space<vmem>>, vector<1x32xf32>
    %53 = vector.shape_cast %52 : vector<1x32xf32> to vector<1x1x32xf32>
    %54 = vector.broadcast %53 : vector<1x1x32xf32> to vector<16x8x32xf32>
    %55 = arith.addf %51, %54 : vector<16x8x32xf32>
    %cst_85 = arith.constant 0.000000e+00 : f32
    %56 = vector.broadcast %cst_85 : f32 to vector<2x10x10x32xf32>
    %c0_86 = arith.constant 0 : index
    %c0_87 = arith.constant 0 : index
    %c0_88 = arith.constant 0 : index
    %c0_89 = arith.constant 0 : index
    %57 = vector.load %arg18[%c0_86, %c0_87, %c0_88, %c0_89] : memref<2x10x10x32xf32, #tpu.memory_space<vmem>>, vector<2x10x10x32xf32>
    tpu.vector_store %arg18[%c0_86, %c0_87, %c0_88, %c0_89], %56 {strides = array<i32>} : memref<2x10x10x32xf32, #tpu.memory_space<vmem>>, vector<2x10x10x32xf32>,
    %58 = vector.shape_cast %55 : vector<16x8x32xf32> to vector<2x8x8x32xf32>
    %c0_90 = arith.constant 0 : index
    %c1_91 = arith.constant 1 : index
    %c1_92 = arith.constant 1 : index
    %c0_93 = arith.constant 0 : index
    %59 = vector.load %arg18[%c0_90, %c1_91, %c1_92, %c0_93] : memref<2x10x10x32xf32, #tpu.memory_space<vmem>>, vector<2x8x8x32xf32>
    tpu.vector_store %arg18[%c0_90, %c1_91, %c1_92, %c0_93], %58 {strides = array<i32>} : memref<2x10x10x32xf32, #tpu.memory_space<vmem>>, vector<2x8x8x32xf32>,
    %c0_94 = arith.constant 0 : index
    %c0_95 = arith.constant 0 : index
    %c0_96 = arith.constant 0 : index
    %c0_97 = arith.constant 0 : index
    %60 = vector.load %arg18[%c0_94, %c0_95, %c0_96, %c0_97] : memref<2x10x10x32xf32, #tpu.memory_space<vmem>>, vector<2x8x8x32xf32>
    %61 = vector.shape_cast %60 : vector<2x8x8x32xf32> to vector<128x32xf32>
    %c0_98 = arith.constant 0 : index
    %c0_99 = arith.constant 0 : index
    %62 = vector.load %arg19[%c0_98, %c0_99] : memref<128x288xf32, #tpu.memory_space<vmem>>, vector<128x32xf32>
    tpu.vector_store %arg19[%c0_98, %c0_99], %61 {strides = array<i32>} : memref<128x288xf32, #tpu.memory_space<vmem>>, vector<128x32xf32>,
    %c0_100 = arith.constant 0 : index
    %c0_101 = arith.constant 0 : index
    %c1_102 = arith.constant 1 : index
    %c0_103 = arith.constant 0 : index
    %63 = vector.load %arg18[%c0_100, %c0_101, %c1_102, %c0_103] : memref<2x10x10x32xf32, #tpu.memory_space<vmem>>, vector<2x8x8x32xf32>
    %64 = vector.shape_cast %63 : vector<2x8x8x32xf32> to vector<128x32xf32>
    %c0_104 = arith.constant 0 : index
    %c32_105 = arith.constant 32 : index
    %65 = vector.load %arg19[%c0_104, %c32_105] : memref<128x288xf32, #tpu.memory_space<vmem>>, vector<128x32xf32>
    tpu.vector_store %arg19[%c0_104, %c32_105], %64 {strides = array<i32>} : memref<128x288xf32, #tpu.memory_space<vmem>>, vector<128x32xf32>,
    %c0_106 = arith.constant 0 : index
    %c0_107 = arith.constant 0 : index
    %c2_108 = arith.constant 2 : index
    %c0_109 = arith.constant 0 : index
    %66 = vector.load %arg18[%c0_106, %c0_107, %c2_108, %c0_109] : memref<2x10x10x32xf32, #tpu.memory_space<vmem>>, vector<2x8x8x32xf32>
    %67 = vector.shape_cast %66 : vector<2x8x8x32xf32> to vector<128x32xf32>
    %c0_110 = arith.constant 0 : index
    %c64_111 = arith.constant 64 : index
    %68 = vector.load %arg19[%c0_110, %c64_111] : memref<128x288xf32, #tpu.memory_space<vmem>>, vector<128x32xf32>
    tpu.vector_store %arg19[%c0_110, %c64_111], %67 {strides = array<i32>} : memref<128x288xf32, #tpu.memory_space<vmem>>, vector<128x32xf32>,
    %c0_112 = arith.constant 0 : index
    %c1_113 = arith.constant 1 : index
    %c0_114 = arith.constant 0 : index
    %c0_115 = arith.constant 0 : index
    %69 = vector.load %arg18[%c0_112, %c1_113, %c0_114, %c0_115] : memref<2x10x10x32xf32, #tpu.memory_space<vmem>>, vector<2x8x8x32xf32>
    %70 = vector.shape_cast %69 : vector<2x8x8x32xf32> to vector<128x32xf32>
    %c0_116 = arith.constant 0 : index
    %c96_117 = arith.constant 96 : index
    %71 = vector.load %arg19[%c0_116, %c96_117] : memref<128x288xf32, #tpu.memory_space<vmem>>, vector<128x32xf32>
    tpu.vector_store %arg19[%c0_116, %c96_117], %70 {strides = array<i32>} : memref<128x288xf32, #tpu.memory_space<vmem>>, vector<128x32xf32>,
    %c0_118 = arith.constant 0 : index
    %c1_119 = arith.constant 1 : index
    %c1_120 = arith.constant 1 : index
    %c0_121 = arith.constant 0 : index
    %72 = vector.load %arg18[%c0_118, %c1_119, %c1_120, %c0_121] : memref<2x10x10x32xf32, #tpu.memory_space<vmem>>, vector<2x8x8x32xf32>
    %73 = vector.shape_cast %72 : vector<2x8x8x32xf32> to vector<128x32xf32>
    %c0_122 = arith.constant 0 : index
    %c128_123 = arith.constant 128 : index
    %74 = vector.load %arg19[%c0_122, %c128_123] : memref<128x288xf32, #tpu.memory_space<vmem>>, vector<128x32xf32>
    tpu.vector_store %arg19[%c0_122, %c128_123], %73 {strides = array<i32>} : memref<128x288xf32, #tpu.memory_space<vmem>>, vector<128x32xf32>,
    %c0_124 = arith.constant 0 : index
    %c1_125 = arith.constant 1 : index
    %c2_126 = arith.constant 2 : index
    %c0_127 = arith.constant 0 : index
    %75 = vector.load %arg18[%c0_124, %c1_125, %c2_126, %c0_127] : memref<2x10x10x32xf32, #tpu.memory_space<vmem>>, vector<2x8x8x32xf32>
    %76 = vector.shape_cast %75 : vector<2x8x8x32xf32> to vector<128x32xf32>
    %c0_128 = arith.constant 0 : index
    %c160_129 = arith.constant 160 : index
    %77 = vector.load %arg19[%c0_128, %c160_129] : memref<128x288xf32, #tpu.memory_space<vmem>>, vector<128x32xf32>
    tpu.vector_store %arg19[%c0_128, %c160_129], %76 {strides = array<i32>} : memref<128x288xf32, #tpu.memory_space<vmem>>, vector<128x32xf32>,
    %c0_130 = arith.constant 0 : index
    %c2_131 = arith.constant 2 : index
    %c0_132 = arith.constant 0 : index
    %c0_133 = arith.constant 0 : index
    %78 = vector.load %arg18[%c0_130, %c2_131, %c0_132, %c0_133] : memref<2x10x10x32xf32, #tpu.memory_space<vmem>>, vector<2x8x8x32xf32>
    %79 = vector.shape_cast %78 : vector<2x8x8x32xf32> to vector<128x32xf32>
    %c0_134 = arith.constant 0 : index
    %c192_135 = arith.constant 192 : index
    %80 = vector.load %arg19[%c0_134, %c192_135] : memref<128x288xf32, #tpu.memory_space<vmem>>, vector<128x32xf32>
    tpu.vector_store %arg19[%c0_134, %c192_135], %79 {strides = array<i32>} : memref<128x288xf32, #tpu.memory_space<vmem>>, vector<128x32xf32>,
    %c0_136 = arith.constant 0 : index
    %c2_137 = arith.constant 2 : index
    %c1_138 = arith.constant 1 : index
    %c0_139 = arith.constant 0 : index
    %81 = vector.load %arg18[%c0_136, %c2_137, %c1_138, %c0_139] : memref<2x10x10x32xf32, #tpu.memory_space<vmem>>, vector<2x8x8x32xf32>
    %82 = vector.shape_cast %81 : vector<2x8x8x32xf32> to vector<128x32xf32>
    %c0_140 = arith.constant 0 : index
    %c224_141 = arith.constant 224 : index
    %83 = vector.load %arg19[%c0_140, %c224_141] : memref<128x288xf32, #tpu.memory_space<vmem>>, vector<128x32xf32>
    tpu.vector_store %arg19[%c0_140, %c224_141], %82 {strides = array<i32>} : memref<128x288xf32, #tpu.memory_space<vmem>>, vector<128x32xf32>,
    %c0_142 = arith.constant 0 : index
    %c2_143 = arith.constant 2 : index
    %c2_144 = arith.constant 2 : index
    %c0_145 = arith.constant 0 : index
    %84 = vector.load %arg18[%c0_142, %c2_143, %c2_144, %c0_145] : memref<2x10x10x32xf32, #tpu.memory_space<vmem>>, vector<2x8x8x32xf32>
    %85 = vector.shape_cast %84 : vector<2x8x8x32xf32> to vector<128x32xf32>
    %c0_146 = arith.constant 0 : index
    %c256_147 = arith.constant 256 : index
    %86 = vector.load %arg19[%c0_146, %c256_147] : memref<128x288xf32, #tpu.memory_space<vmem>>, vector<128x32xf32>
    tpu.vector_store %arg19[%c0_146, %c256_147], %85 {strides = array<i32>} : memref<128x288xf32, #tpu.memory_space<vmem>>, vector<128x32xf32>,
    %c0_148 = arith.constant 0 : index
    %c0_149 = arith.constant 0 : index
    %87 = vector.load %arg19[%c0_148, %c0_149] : memref<128x288xf32, #tpu.memory_space<vmem>>, vector<128x288xf32>
    %c0_150 = arith.constant 0 : index
    %c0_151 = arith.constant 0 : index
    %88 = vector.load %arg5[%c0_150, %c0_151] : memref<288x32xf32, #tpu.memory_space<vmem>>, vector<288x32xf32>
    %cst_152 = arith.constant dense<0.000000e+00> : vector<128x32xf32>
    %89 = tpu.matmul %87, %88, %cst_152 {dimension_numbers = #tpu.dot_dimension_numbers<[1], [0], [0], [1], [0, 0, 1, 1], [], []>} : vector<128x288xf32>, vector<288x32xf32>, vector<128x32xf32> -> vector<128x32xf32>
    %c0_153 = arith.constant 0 : index
    %c0_154 = arith.constant 0 : index
    %90 = vector.load %arg6[%c0_153, %c0_154] : memref<1x32xf32, #tpu.memory_space<vmem>>, vector<1x32xf32>
    %91 = vector.broadcast %90 : vector<1x32xf32> to vector<128x32xf32>
    %92 = arith.addf %89, %91 : vector<128x32xf32>
    %cst_155 = arith.constant 0.000000e+00 : f32
    %93 = vector.broadcast %cst_155 : f32 to vector<128x32xf32>
    %94 = arith.maximumf %92, %93 : vector<128x32xf32>
    %c0_156 = arith.constant 0 : index
    %c0_157 = arith.constant 0 : index
    %95 = vector.load %arg20[%c0_156, %c0_157] : memref<128x32xf32, #tpu.memory_space<vmem>>, vector<128x32xf32>
    tpu.vector_store %arg20[%c0_156, %c0_157], %94 {strides = array<i32>} : memref<128x32xf32, #tpu.memory_space<vmem>>, vector<128x32xf32>,
    %c0_158 = arith.constant 0 : index
    %c0_159 = arith.constant 0 : index
    %96 = tpu.strided_load %arg20[%c0_158, %c0_159] {strides = array<i32: 2, 1>} : memref<128x32xf32, #tpu.memory_space<vmem>>, vector<64x32xf32>
    %c1_160 = arith.constant 1 : index
    %c0_161 = arith.constant 0 : index
    %97 = tpu.strided_load %arg20[%c1_160, %c0_161] {strides = array<i32: 2, 1>} : memref<128x32xf32, #tpu.memory_space<vmem>>, vector<64x32xf32>
    %98 = arith.maximumf %96, %97 : vector<64x32xf32>
    %c0_162 = arith.constant 0 : index
    %c0_163 = arith.constant 0 : index
    %99 = vector.load %arg21[%c0_162, %c0_163] : memref<64x32xf32, #tpu.memory_space<vmem>>, vector<64x32xf32>
    tpu.vector_store %arg21[%c0_162, %c0_163], %98 {strides = array<i32>} : memref<64x32xf32, #tpu.memory_space<vmem>>, vector<64x32xf32>,
    %c0_164 = arith.constant 0 : index
    %c0_165 = arith.constant 0 : index
    %100 = tpu.strided_load %arg21[%c0_164, %c0_165] {strides = array<i32: 8, 1>} : memref<64x32xf32, #tpu.memory_space<vmem>>, vector<8x32xf32>
    %c4 = arith.constant 4 : index
    %c0_166 = arith.constant 0 : index
    %101 = tpu.strided_load %arg21[%c4, %c0_166] {strides = array<i32: 8, 1>} : memref<64x32xf32, #tpu.memory_space<vmem>>, vector<8x32xf32>
    %102 = arith.maximumf %100, %101 : vector<8x32xf32>
    %c0_167 = arith.constant 0 : index
    %c0_168 = arith.constant 0 : index
    %103 = vector.load %arg22[%c0_167, %c0_168] : memref<8x128xf32, #tpu.memory_space<vmem>>, vector<8x32xf32>
    tpu.vector_store %arg22[%c0_167, %c0_168], %102 {strides = array<i32>} : memref<8x128xf32, #tpu.memory_space<vmem>>, vector<8x32xf32>,
    %c1_169 = arith.constant 1 : index
    %c0_170 = arith.constant 0 : index
    %104 = tpu.strided_load %arg21[%c1_169, %c0_170] {strides = array<i32: 8, 1>} : memref<64x32xf32, #tpu.memory_space<vmem>>, vector<8x32xf32>
    %c5 = arith.constant 5 : index
    %c0_171 = arith.constant 0 : index
    %105 = tpu.strided_load %arg21[%c5, %c0_171] {strides = array<i32: 8, 1>} : memref<64x32xf32, #tpu.memory_space<vmem>>, vector<8x32xf32>
    %106 = arith.maximumf %104, %105 : vector<8x32xf32>
    %c0_172 = arith.constant 0 : index
    %c32_173 = arith.constant 32 : index
    %107 = vector.load %arg22[%c0_172, %c32_173] : memref<8x128xf32, #tpu.memory_space<vmem>>, vector<8x32xf32>
    tpu.vector_store %arg22[%c0_172, %c32_173], %106 {strides = array<i32>} : memref<8x128xf32, #tpu.memory_space<vmem>>, vector<8x32xf32>,
    %c2_174 = arith.constant 2 : index
    %c0_175 = arith.constant 0 : index
    %108 = tpu.strided_load %arg21[%c2_174, %c0_175] {strides = array<i32: 8, 1>} : memref<64x32xf32, #tpu.memory_space<vmem>>, vector<8x32xf32>
    %c6 = arith.constant 6 : index
    %c0_176 = arith.constant 0 : index
    %109 = tpu.strided_load %arg21[%c6, %c0_176] {strides = array<i32: 8, 1>} : memref<64x32xf32, #tpu.memory_space<vmem>>, vector<8x32xf32>
    %110 = arith.maximumf %108, %109 : vector<8x32xf32>
    %c0_177 = arith.constant 0 : index
    %c64_178 = arith.constant 64 : index
    %111 = vector.load %arg22[%c0_177, %c64_178] : memref<8x128xf32, #tpu.memory_space<vmem>>, vector<8x32xf32>
    tpu.vector_store %arg22[%c0_177, %c64_178], %110 {strides = array<i32>} : memref<8x128xf32, #tpu.memory_space<vmem>>, vector<8x32xf32>,
    %c3 = arith.constant 3 : index
    %c0_179 = arith.constant 0 : index
    %112 = tpu.strided_load %arg21[%c3, %c0_179] {strides = array<i32: 8, 1>} : memref<64x32xf32, #tpu.memory_space<vmem>>, vector<8x32xf32>
    %c7 = arith.constant 7 : index
    %c0_180 = arith.constant 0 : index
    %113 = tpu.strided_load %arg21[%c7, %c0_180] {strides = array<i32: 8, 1>} : memref<64x32xf32, #tpu.memory_space<vmem>>, vector<8x32xf32>
    %114 = arith.maximumf %112, %113 : vector<8x32xf32>
    %c0_181 = arith.constant 0 : index
    %c96_182 = arith.constant 96 : index
    %115 = vector.load %arg22[%c0_181, %c96_182] : memref<8x128xf32, #tpu.memory_space<vmem>>, vector<8x32xf32>
    tpu.vector_store %arg22[%c0_181, %c96_182], %114 {strides = array<i32>} : memref<8x128xf32, #tpu.memory_space<vmem>>, vector<8x32xf32>,
    %c0_183 = arith.constant 0 : index
    %c0_184 = arith.constant 0 : index
    %116 = tpu.strided_load %arg22[%c0_183, %c0_184] {strides = array<i32: 4, 1>} : memref<8x128xf32, #tpu.memory_space<vmem>>, vector<2x128xf32>
    %c0_185 = arith.constant 0 : index
    %c0_186 = arith.constant 0 : index
    %117 = vector.load %arg23[%c0_185, %c0_186] : memref<2x512xf32, #tpu.memory_space<vmem>>, vector<2x128xf32>
    tpu.vector_store %arg23[%c0_185, %c0_186], %116 {strides = array<i32>} : memref<2x512xf32, #tpu.memory_space<vmem>>, vector<2x128xf32>,
    %c1_187 = arith.constant 1 : index
    %c0_188 = arith.constant 0 : index
    %118 = tpu.strided_load %arg22[%c1_187, %c0_188] {strides = array<i32: 4, 1>} : memref<8x128xf32, #tpu.memory_space<vmem>>, vector<2x128xf32>
    %c0_189 = arith.constant 0 : index
    %c128_190 = arith.constant 128 : index
    %119 = vector.load %arg23[%c0_189, %c128_190] : memref<2x512xf32, #tpu.memory_space<vmem>>, vector<2x128xf32>
    tpu.vector_store %arg23[%c0_189, %c128_190], %118 {strides = array<i32>} : memref<2x512xf32, #tpu.memory_space<vmem>>, vector<2x128xf32>,
    %c2_191 = arith.constant 2 : index
    %c0_192 = arith.constant 0 : index
    %120 = tpu.strided_load %arg22[%c2_191, %c0_192] {strides = array<i32: 4, 1>} : memref<8x128xf32, #tpu.memory_space<vmem>>, vector<2x128xf32>
    %c0_193 = arith.constant 0 : index
    %c256_194 = arith.constant 256 : index
    %121 = vector.load %arg23[%c0_193, %c256_194] : memref<2x512xf32, #tpu.memory_space<vmem>>, vector<2x128xf32>
    tpu.vector_store %arg23[%c0_193, %c256_194], %120 {strides = array<i32>} : memref<2x512xf32, #tpu.memory_space<vmem>>, vector<2x128xf32>,
    %c3_195 = arith.constant 3 : index
    %c0_196 = arith.constant 0 : index
    %122 = tpu.strided_load %arg22[%c3_195, %c0_196] {strides = array<i32: 4, 1>} : memref<8x128xf32, #tpu.memory_space<vmem>>, vector<2x128xf32>
    %c0_197 = arith.constant 0 : index
    %c384 = arith.constant 384 : index
    %123 = vector.load %arg23[%c0_197, %c384] : memref<2x512xf32, #tpu.memory_space<vmem>>, vector<2x128xf32>
    tpu.vector_store %arg23[%c0_197, %c384], %122 {strides = array<i32>} : memref<2x512xf32, #tpu.memory_space<vmem>>, vector<2x128xf32>,
    %c0_198 = arith.constant 0 : index
    %c0_199 = arith.constant 0 : index
    %124 = vector.load %arg23[%c0_198, %c0_199] : memref<2x512xf32, #tpu.memory_space<vmem>>, vector<2x512xf32>
    %c0_200 = arith.constant 0 : index
    %c0_201 = arith.constant 0 : index
    %125 = vector.load %arg7[%c0_200, %c0_201] : memref<512x512xf32, #tpu.memory_space<vmem>>, vector<512x512xf32>
    %cst_202 = arith.constant dense<0.000000e+00> : vector<2x512xf32>
    %126 = tpu.matmul %124, %125, %cst_202 {dimension_numbers = #tpu.dot_dimension_numbers<[1], [0], [0], [1], [0, 0, 1, 1], [], []>} : vector<2x512xf32>, vector<512x512xf32>, vector<2x512xf32> -> vector<2x512xf32>
    %c0_203 = arith.constant 0 : index
    %c0_204 = arith.constant 0 : index
    %127 = vector.load %arg8[%c0_203, %c0_204] : memref<1x512xf32, #tpu.memory_space<vmem>>, vector<1x512xf32>
    %128 = vector.broadcast %127 : vector<1x512xf32> to vector<2x512xf32>
    %129 = arith.addf %126, %128 : vector<2x512xf32>
    %cst_205 = arith.constant 0.000000e+00 : f32
    %130 = vector.broadcast %cst_205 : f32 to vector<2x512xf32>
    %131 = arith.maximumf %129, %130 : vector<2x512xf32>
    %c0_206 = arith.constant 0 : index
    %c0_207 = arith.constant 0 : index
    %132 = vector.load %arg9[%c0_206, %c0_207] : memref<512x256xf32, #tpu.memory_space<vmem>>, vector<512x256xf32>
    %cst_208 = arith.constant dense<0.000000e+00> : vector<2x256xf32>
    %133 = tpu.matmul %131, %132, %cst_208 {dimension_numbers = #tpu.dot_dimension_numbers<[1], [0], [0], [1], [0, 0, 1, 1], [], []>} : vector<2x512xf32>, vector<512x256xf32>, vector<2x256xf32> -> vector<2x256xf32>
    %c0_209 = arith.constant 0 : index
    %c0_210 = arith.constant 0 : index
    %134 = vector.load %arg10[%c0_209, %c0_210] : memref<1x256xf32, #tpu.memory_space<vmem>>, vector<1x256xf32>
    %135 = vector.broadcast %134 : vector<1x256xf32> to vector<2x256xf32>
    %136 = arith.addf %133, %135 : vector<2x256xf32>
    %cst_211 = arith.constant 0.000000e+00 : f32
    %137 = vector.broadcast %cst_211 : f32 to vector<2x256xf32>
    %138 = arith.maximumf %136, %137 : vector<2x256xf32>
    %c0_212 = arith.constant 0 : index
    %c0_213 = arith.constant 0 : index
    %139 = vector.load %arg11[%c0_212, %c0_213] : memref<256x2xf32, #tpu.memory_space<vmem>>, vector<256x2xf32>
    %cst_214 = arith.constant dense<0.000000e+00> : vector<2x2xf32>
    %140 = tpu.matmul %138, %139, %cst_214 {dimension_numbers = #tpu.dot_dimension_numbers<[1], [0], [0], [1], [0, 0, 1, 1], [], []>} : vector<2x256xf32>, vector<256x2xf32>, vector<2x2xf32> -> vector<2x2xf32>
    %c0_215 = arith.constant 0 : index
    %c0_216 = arith.constant 0 : index
    %141 = vector.load %arg12[%c0_215, %c0_216] : memref<1x2xf32, #tpu.memory_space<vmem>>, vector<1x2xf32>
    %142 = vector.broadcast %141 : vector<1x2xf32> to vector<2x2xf32>
    %143 = arith.addf %140, %142 : vector<2x2xf32>
    %cst_217 = arith.constant 0.000000e+00 : f32
    %144 = vector.broadcast %cst_217 : f32 to vector<2x2xf32>
    %145 = arith.subf %144, %143 : vector<2x2xf32>
    %146 = math.exp %145 : vector<2x2xf32>
    %cst_218 = arith.constant 1.000000e+00 : f32
    %147 = vector.broadcast %cst_218 : f32 to vector<2x2xf32>
    %148 = arith.addf %147, %146 : vector<2x2xf32>
    %cst_219 = arith.constant 1.000000e+00 : f32
    %149 = vector.broadcast %cst_219 : f32 to vector<2x2xf32>
    %150 = arith.divf %149, %148 : vector<2x2xf32>
    %c0_220 = arith.constant 0 : index
    %c0_221 = arith.constant 0 : index
    %151 = vector.load %arg13[%c0_220, %c0_221] : memref<2x2xf32, #tpu.memory_space<vmem>>, vector<2x2xf32>
    tpu.vector_store %arg13[%c0_220, %c0_221], %150 {strides = array<i32>} : memref<2x2xf32, #tpu.memory_space<vmem>>, vector<2x2xf32>,
    return
  }
}

</mosaic_0001>

<bundles_post_ra>
// kernel: net_forward.1
= control target key start
LH: loop header
LB: loop body
LE: loop exit
PB: predicated region body
PF: predicated region fallthrough
CT: control target
= control target key end

     0   :  { %18 = vsyncpa [#allocation13], 0  ;;  %s11921_s0 = inlined_call_operand.hbm [shape: f32[2,16,16,32], index: 0, kind: input, shape index: {}]   ;;  %s11922_s1 = inlined_call_operand.vmem [shape: f32[288,32], index: 1, kind: input, shape index: {}]   ;;  %s11923_s2 = inlined_call_operand.vmem [shape: f32[1,32], index: 2, kind: input, shape index: {}]   ;;  %s11924_s3 = inlined_call_operand.vmem [shape: f32[1,32], index: 3, kind: input, shape index: {}]   ;;  %s11925_s4 = inlined_call_operand.vmem [shape: f32[1,32], index: 4, kind: input, shape index: {}]   ;;  %s11926_s5 = inlined_call_operand.vmem [shape: f32[288,32], index: 5, kind: input, shape index: {}]   ;;  %s11927_s6 = inlined_call_operand.vmem [shape: f32[1,32], index: 6, kind: input, shape index: {}]   ;;  %s11928_s7 = inlined_call_operand.hbm [shape: f32[512,512], index: 7, kind: input, shape index: {}]   ;;  %s11929_s8 = inlined_call_operand.vmem [shape: f32[1,512], index: 8, kind: input, shape index: {}]   ;;  %s11930_s9 = inlined_call_operand.vmem [shape: f32[512,256], index: 9, kind: input, shape index: {}]   ;;  %s11931_s10 = inlined_call_operand.vmem [shape: f32[1,256], index: 10, kind: input, shape index: {}]   ;;  %s11932_s11 = inlined_call_operand.vmem [shape: f32[256,2], index: 11, kind: input, shape index: {}]   ;;  %s11933_s12 = inlined_call_operand.vmem [shape: f32[1,2], index: 12, kind: input, shape index: {}]   ;;  %s11934_s13 = inlined_call_operand.hbm [shape: f32[2,2], index: 13, kind: output, shape index: {}]  }
   0x1   :  { %19 = vsyncpa [#allocation16], 0 }
   0x2   :  { %20 = vsyncpa [#allocation14], 0  ;;  %s7936_s25 = smov [#allocation12]   ;;  %s7864_s29 = scalar_lea.hbm %s11921_s0, 8192 }
   0x3   :  { %s26_s26 = sshll.u32 %s7936_s25, 4  ;;  %p7865_p0 = scmp.ne.s32.totalorder %s11921_s0, %s7864_s29  ;;  %s27_s26 = int_to_ptr.vmem [resolvable:$true] %s26_s26 }
   0x4   :  { %p7868_p1 = scmp.lt.u32.totalorder %s7864_s29, %s11921_s0 }
   0x6   :  { %p7870_p2 = pnand %p7868_p1, %p7865_p0 }
   0x8   :  { %7873 = shalt.err (!%p7870_p2)
}
   0x9   :  { %s7874_s17 = scalar_lea.vmem %s27_s26, 8192  ;;  %p7879_p4 = scmp.lt.s32.totalorder %s27_s26, %s27_s26 }
   0xa   :  { %p7875_p3 = scmp.ne.s32.totalorder %s27_s26, %s7874_s17  ;;  %p7880_p5 = scmp.lt.s32.totalorder %s7874_s17, %s7874_s17 }
   0xc   :  { %p7881_p6 = por %p7880_p5, %p7879_p4 }
   0xe   :  { %p7882_p7 = pnand %p7881_p6, %p7875_p3 }
  0x10   :  { %7885 = shalt.err (!%p7882_p7)
}
  0x11   :  { %s7937_s18 = smov 128   ;;  %s7938_s19 = smov 8  }
  0x12   :  { %32 = dma.hbm_to_vmem [thread:$0]  %s11921_s0, 8192, %s27_s26, [#allocation13], %s7937_s18, %s7937_s18, %s7938_s19  }
  0x13   :  { %s7939_s22 = smov [#allocation15]   ;;  %s7886_s27 = scalar_lea.hbm %s11928_s7, 32768 }
  0x14   :  { %s50_s23 = sshll.u32 %s7939_s22, 4  ;;  %p7887_p8 = scmp.ne.s32.totalorder %s11928_s7, %s7886_s27  ;;  %s51_s23 = int_to_ptr.vmem [resolvable:$true] %s50_s23 }
  0x15   :  { %p7890_p9 = scmp.lt.u32.totalorder %s7886_s27, %s11928_s7 }
  0x17   :  { %p7892_p10 = pnand %p7890_p9, %p7887_p8 }
  0x19   :  { %7895 = shalt.err (!%p7892_p10)
}
  0x1a   :  { %s7896_s15 = scalar_lea.vmem %s51_s23, 32768  ;;  %p7901_p12 = scmp.lt.s32.totalorder %s51_s23, %s51_s23 }
  0x1b   :  { %p7897_p11 = scmp.ne.s32.totalorder %s51_s23, %s7896_s15  ;;  %p7902_p13 = scmp.lt.s32.totalorder %s7896_s15, %s7896_s15 }
  0x1d   :  { %p7903_p0 = por %p7902_p13, %p7901_p12 }
  0x1f   :  { %p7904_p1 = pnand %p7903_p0, %p7897_p11 }
  0x21   :  { %7907 = shalt.err (!%p7904_p1)
}
  0x22   :  { %s7940_s0 = smov 512   ;;  %s7941_s26 = smov 32  }
  0x23   :  { %56 = dma.hbm_to_vmem [thread:$0]  %s11928_s7, 32768, %s51_s23, [#allocation16], %s7940_s0, %s7940_s0, %s7941_s26  }
  0x24   :  { %7930 = dma.done.wait [#allocation13], 8192  }
  0x25   :  { %7931 = vsyncadd [#allocation13], 4294959104 }
  0x26   :  { %7932 = dma.done.wait [#allocation16], 32768  }
  0x27   :  { %7933 = vsyncadd [#allocation16], 4294934528  ;;  %vm73_vm0 = vcmask 261120   ;;  %vm76_vm1 = vcmask 254976   ;;  %v7942_v0 = vmov 0.0   ;;  %v7943_v1 = vmov 0.0|0.0  }
  0x28   :  { %74 = vst.msk [vmem:[#allocation2] sm:$0xff] %vm73_vm0, %v7942_v0  ;;  %75 = vst.msk [vmem:[#allocation2 + $0x8] sm:$0xff] %vm73_vm0, %v7942_v0  ;;  %7313 = vmatprep.subr.bf16.mxu0 %v7943_v1  ;;  %v183_v2 = vld [vmem:[#allocation12] sm:$0xff]  ;;  %v184_v3 = vld [vmem:[#allocation12 + $0x8] sm:$0xff]  ;;  %s7944_s7 = smov 64   ;;  %s7945_s17 = smov 96  }
  0x29   :  { %78 = vst.msk [vmem:[#allocation2 + $0x18] sm:$0xff] %vm73_vm0, %v7942_v0  ;;  %79 = vst.msk [vmem:[#allocation2 + $0x20] sm:$0xff] %vm73_vm0, %v7942_v0  ;;  %v185_v4 = vld [vmem:[#allocation12 + $0x10] sm:$0xff]  ;;  %v186_v8 = vld [vmem:[#allocation12 + $0x18] sm:$0xff]  ;;  %vm760_vm2 = vcmask 523520   ;;  %vm1145_vm3 = vcmask 785920  }
  0x2a   :  { %81 = vst.msk [vmem:[#allocation2 + $0x30] sm:$0xff] %vm73_vm0, %v7942_v0  ;;  %82 = vst.msk [vmem:[#allocation2 + $0x38] sm:$0xff] %vm73_vm0, %v7942_v0  ;;  %v187_v9 = vld [vmem:[#allocation12 + $0x20] sm:$0xff]  ;;  %v188_v10 = vld [vmem:[#allocation12 + $0x28] sm:$0xff]  ;;  %vm1530_vm4 = vcmask 1048320   ;;  %vm6871_vm5 = vcmask 9216  }
  0x2b   :  { %84 = vst.msk [vmem:[#allocation2 + $0x48] sm:$0xff] %vm73_vm0, %v7942_v0  ;;  %85 = vst.msk [vmem:[#allocation2 + $0x50] sm:$0xff] %vm73_vm0, %v7942_v0  ;;  %v189_v11 = vld [vmem:[#allocation12 + $0x30] sm:$0xff]  ;;  %v190_v12 = vld [vmem:[#allocation12 + $0x38] sm:$0xff] }
  0x2c   :  { %87 = vst.msk [vmem:[#allocation2 + $0x60] sm:$0xff] %vm73_vm0, %v7942_v0  ;;  %88 = vst.msk [vmem:[#allocation2 + $0x68] sm:$0xff] %vm73_vm0, %v7942_v0  ;;  %v3196_v13 = vld [vmem:[%s11922_s1] sm:$0xff]  ;;  %v3197_v14 = vld [vmem:[%s11922_s1 + $0x8] sm:$0xff] }
  0x2d   :  { %90 = vst.msk [vmem:[#allocation2 + $0x78] sm:$0xff] %vm73_vm0, %v7942_v0  ;;  %91 = vst.msk [vmem:[#allocation2 + $0x80] sm:$0xff] %vm73_vm0, %v7942_v0  ;;  %v191_v15 = vld [vmem:[#allocation12 + $0x40] sm:$0xff]  ;;  %v7314_v16 = vpack.c.bf16 %v3197_v14, %v3196_v13  ;;  %v3199_v18 = vld [vmem:[%s11922_s1 + $0x18] sm:$0xff] }
  0x2e   :  { %93 = vst.msk [vmem:[#allocation2 + $0x90] sm:$0xff] %vm73_vm0, %v7942_v0  ;;  %94 = vst.msk [vmem:[#allocation2 + $0x98] sm:$0xff] %vm73_vm0, %v7942_v0  ;;  %v3198_v17 = vld [vmem:[%s11922_s1 + $0x10] sm:$0xff]  ;;  %v3200_v21 = vld [vmem:[%s11922_s1 + $0x20] sm:$0xff] }
  0x2f   :  { %96 = vst.msk [vmem:[#allocation2 + $0xa8] sm:$0xff] %vm73_vm0, %v7942_v0  ;;  %97 = vst.msk [vmem:[#allocation2 + $0xb0] sm:$0xff] %vm73_vm0, %v7942_v0  ;;  %v825_v5 = vld [vmem:[#allocation2 + $0x2] sm:$0xff]  ;;  %7315 = vmatpush1.bf16.msra.mxu0 %v7314_v16  ;;  %v7317_v20 = vpack.c.bf16 %v3199_v18, %v3198_v17  ;;  %v192_v23 = vld [vmem:[#allocation12 + $0x48] sm:$0xff] }
  0x30   :  { %99 = vst.msk [vmem:[#allocation2 + $0xc0] sm:$0xff] %vm73_vm0, %v7942_v0  ;;  %100 = vst.msk [vmem:[#allocation2 + $0xc8] sm:$0xff] %vm73_vm0, %v7942_v0  ;;  %v440_v6 = vld [vmem:[#allocation2 + $0x1] sm:$0xff]  ;;  %953 = vrot.lane.b32.xlu1 %v825_v5, %s7944_s7  ;;  %7316 = vmatprep.subr.bf16.mxu0 %v7943_v1  ;;  %v3202_v32 = vld [vmem:[%s11922_s1 + $0x30] sm:$0xff] }
  0x31   :  { %102 = vst.msk [vmem:[#allocation2 + $0xd8] sm:$0xff] %vm73_vm0, %v7942_v0  ;;  %103 = vst.msk [vmem:[#allocation2 + $0xe0] sm:$0xff] %vm73_vm0, %v7942_v0  ;;  %568 = vrot.lane.b32.xlu0 %v440_v6, %s7941_s26  ;;  %v3201_v22 = vld [vmem:[%s11922_s1 + $0x28] sm:$0xff]  ;;  %v3203_v33 = vld [vmem:[%s11922_s1 + $0x38] sm:$0xff] }
  0x32   :  { %105 = vst.msk [vmem:[#allocation2 + $0xf0] sm:$0xff] %vm73_vm0, %v7942_v0  ;;  %106 = vst.msk [vmem:[#allocation2 + $0xf8] sm:$0xff] %vm73_vm0, %v7942_v0  ;;  %v7320_v37 = vpack.c.bf16 %v3201_v22, %v3200_v21  ;;  %v3204_v48 = vld [vmem:[%s11922_s1 + $0x40] sm:$0xff]  ;;  %v3205_v49 = vld [vmem:[%s11922_s1 + $0x48] sm:$0xff]  ;;  %v7323_v53 = vpack.c.bf16 %v3203_v33, %v3202_v32 }
  0x33   :  { %108 = vst.msk [vmem:[#allocation2 + $0x108] sm:$0xff] %vm73_vm0, %v7942_v0  ;;  %109 = vst.msk [vmem:[#allocation2 + $0x110] sm:$0xff] %vm73_vm0, %v7942_v0  ;;  %7318 = vmatpush1.bf16.msra.mxu0 %v7317_v20  ;;  %v7326_v59 = vpack.c.bf16 %v3205_v49, %v3204_v48  ;;  %v193_v60 = vld [vmem:[#allocation12 + $0x50] sm:$0xff]  ;;  %v3206_v61 = vld [vmem:[%s11922_s1 + $0x50] sm:$0xff] }
  0x34   :  { %111 = vst.msk [vmem:[#allocation2 + $0x120] sm:$0xff] %vm73_vm0, %v7942_v0  ;;  %112 = vst.msk [vmem:[#allocation2 + $0x128] sm:$0xff] %vm73_vm0, %v7942_v0  ;;  %7319 = vmatprep.subr.bf16.mxu0 %v7943_v1  ;;  %v3207_v62 = vld [vmem:[%s11922_s1 + $0x58] sm:$0xff]  ;;  %v3208_v5 = vld [vmem:[%s11922_s1 + $0x60] sm:$0xff] }
  0x35   :  { %114 = vst.msk [vmem:[#allocation2 + $0x138] sm:$0xff] %vm73_vm0, %v7942_v0  ;;  %115 = vst.msk [vmem:[#allocation2 + $0x140] sm:$0xff] %vm73_vm0, %v7942_v0  ;;  %v3209_v6 = vld [vmem:[%s11922_s1 + $0x68] sm:$0xff]  ;;  %v3211_v14 = vld [vmem:[%s11922_s1 + $0x78] sm:$0xff] }
  0x36   :  { %117 = vst.msk [vmem:[#allocation2 + $0x150] sm:$0xff] %vm73_vm0, %v7942_v0  ;;  %118 = vst.msk [vmem:[#allocation2 + $0x158] sm:$0xff] %vm73_vm0, %v7942_v0  ;;  %v3230_v16 = vld [vmem:[%s11922_s1 + $0x110] sm:$0xff]  ;;  %v3231_v20 = vld [vmem:[%s11922_s1 + $0x118] sm:$0xff] }
  0x37   :  { %120 = vst.msk [vmem:[#allocation2 + $0x168] sm:$0xff] %vm73_vm0, %v7942_v0  ;;  %121 = vst.msk [vmem:[#allocation2 + $0x170] sm:$0xff] %vm73_vm0, %v7942_v0  ;;  %7321 = vmatpush1.bf16.msra.mxu0 %v7320_v37  ;;  %v3214_v48 = vld [vmem:[%s11922_s1 + $0x90] sm:$0xff]  ;;  %v3215_v49 = vld [vmem:[%s11922_s1 + $0x98] sm:$0xff] }
  0x38   :  { %123 = vst.msk [vmem:[#allocation2 + $0x180] sm:$0xff] %vm73_vm0, %v7942_v0  ;;  %124 = vst.msk [vmem:[#allocation2 + $0x188] sm:$0xff] %vm73_vm0, %v7942_v0  ;;  %7322 = vmatprep.subr.bf16.mxu0 %v7943_v1 }
  0x39   :  { %126 = vst.msk [vmem:[#allocation2 + $0x198] sm:$0xff] %vm73_vm0, %v7942_v0  ;;  %127 = vst.msk [vmem:[#allocation2 + $0x1a0] sm:$0xff] %vm73_vm0, %v7942_v0 }
  0x3a   :  { %129 = vst.msk [vmem:[#allocation2 + $0x1b0] sm:$0xff] %vm73_vm0, %v7942_v0  ;;  %130 = vst.msk [vmem:[#allocation2 + $0x1b8] sm:$0xff] %vm73_vm0, %v7942_v0 }
  0x3b   :  { %132 = vst.msk [vmem:[#allocation2 + $0x1c8] sm:$0xff] %vm73_vm0, %v7942_v0  ;;  %133 = vst.msk [vmem:[#allocation2 + $0x1d0] sm:$0xff] %vm73_vm0, %v7942_v0  ;;  %7324 = vmatpush1.bf16.msra.mxu0 %v7323_v53 }
  0x3c   :  { %135 = vst.msk [vmem:[#allocation2 + $0x1e0] sm:$0xff] %vm73_vm0, %v7942_v0  ;;  %136 = vst.msk [vmem:[#allocation2 + $0x1e8] sm:$0xff] %vm73_vm0, %v7942_v0  ;;  %7325 = vmatprep.subr.bf16.mxu0 %v7943_v1 }
  0x3d   :  { %138 = vst.msk [vmem:[#allocation2 + $0x1f8] sm:$0xff] %vm73_vm0, %v7942_v0  ;;  %139 = vst.msk [vmem:[#allocation2 + $0x200] sm:$0xff] %vm73_vm0, %v7942_v0 }
  0x3e   :  { %141 = vst.msk [vmem:[#allocation2 + $0x210] sm:$0xff] %vm73_vm0, %v7942_v0  ;;  %142 = vst.msk [vmem:[#allocation2 + $0x218] sm:$0xff] %vm73_vm0, %v7942_v0 }
  0x3f   :  { %144 = vst.msk [vmem:[#allocation2 + $0x228] sm:$0xff] %vm73_vm0, %v7942_v0  ;;  %145 = vst.msk [vmem:[#allocation2 + $0x230] sm:$0xff] %vm73_vm0, %v7942_v0  ;;  %7327 = vmatpush1.bf16.msra.mxu0 %v7326_v59 }
  0x40   :  { %147 = vst.msk [vmem:[#allocation2 + $0x240] sm:$0xff] %vm73_vm0, %v7942_v0  ;;  %148 = vst.msk [vmem:[#allocation2 + $0x248] sm:$0xff] %vm73_vm0, %v7942_v0  ;;  %7328 = vmatprep.subr.bf16.mxu0 %v7943_v1 }
  0x41   :  { %150 = vst.msk [vmem:[#allocation2 + $0x258] sm:$0xff] %vm73_vm0, %v7942_v0  ;;  %151 = vst.msk [vmem:[#allocation2 + $0x260] sm:$0xff] %vm73_vm0, %v7942_v0 }
  0x42   :  { %153 = vst.msk [vmem:[#allocation2 + $0x270] sm:$0xff] %vm73_vm0, %v7942_v0  ;;  %154 = vst.msk [vmem:[#allocation2 + $0x278] sm:$0xff] %vm73_vm0, %v7942_v0 }
  0x43   :  { %156 = vst.msk [vmem:[#allocation2 + $0x288] sm:$0xff] %vm73_vm0, %v7942_v0  ;;  %157 = vst.msk [vmem:[#allocation2 + $0x290] sm:$0xff] %vm73_vm0, %v7942_v0 }
  0x44   :  { %159 = vst.msk [vmem:[#allocation2 + $0x2a0] sm:$0xff] %vm73_vm0, %v7942_v0  ;;  %160 = vst.msk [vmem:[#allocation2 + $0x2a8] sm:$0xff] %vm73_vm0, %v7942_v0 }
  0x45   :  { %162 = vst.msk [vmem:[#allocation2 + $0x2b8] sm:$0xff] %vm73_vm0, %v7942_v0  ;;  %163 = vst.msk [vmem:[#allocation2 + $0x2c0] sm:$0xff] %vm73_vm0, %v7942_v0 }
  0x46   :  { %165 = vst.msk [vmem:[#allocation2 + $0x2d0] sm:$0xff] %vm73_vm0, %v7942_v0  ;;  %166 = vst.msk [vmem:[#allocation2 + $0x2d8] sm:$0xff] %vm73_vm0, %v7942_v0 }
  0x47   :  { %168 = vst.msk [vmem:[#allocation2 + $0x2e8] sm:$0xff] %vm73_vm0, %v7942_v0  ;;  %169 = vst.msk [vmem:[#allocation2 + $0x2f0] sm:$0xff] %vm73_vm0, %v7942_v0 }
  0x48   :  { %171 = vst.msk [vmem:[#allocation2 + $0x300] sm:$0xff] %vm73_vm0, %v7942_v0  ;;  %172 = vst.msk [vmem:[#allocation2 + $0x308] sm:$0xff] %vm73_vm0, %v7942_v0 }
  0x49   :  { %174 = vst.msk [vmem:[#allocation2 + $0x318] sm:$0xff] %vm73_vm0, %v7942_v0  ;;  %175 = vst.msk [vmem:[#allocation2 + $0x320] sm:$0xff] %vm73_vm0, %v7942_v0 }
  0x4a   :  { %177 = vst.msk [vmem:[#allocation2 + $0x330] sm:$0xff] %vm73_vm0, %v7942_v0  ;;  %178 = vst.msk [vmem:[#allocation2 + $0x338] sm:$0xff] %vm73_vm0, %v7942_v0 }
  0x4b   :  { %180 = vst.msk [vmem:[#allocation2 + $0x348] sm:$0xff] %vm73_vm0, %v7942_v0  ;;  %181 = vst.msk [vmem:[#allocation2 + $0x350] sm:$0xff] %vm73_vm0, %v7942_v0 }
  0x4c   :  { %4583 = vst.msk [vmem:[#allocation6] sm:$0xff] %vm73_vm0, %v7942_v0  ;;  %4585 = vst.msk [vmem:[#allocation6 + $0x10] sm:$0xff] %vm73_vm0, %v7942_v0 }
  0x4d   :  { %4587 = vst.msk [vmem:[#allocation6 + $0x20] sm:$0xff] %vm73_vm0, %v7942_v0  ;;  %4589 = vst.msk [vmem:[#allocation6 + $0x30] sm:$0xff] %vm73_vm0, %v7942_v0 }
  0x4e   :  { %4591 = vst.msk [vmem:[#allocation6 + $0x40] sm:$0xff] %vm73_vm0, %v7942_v0  ;;  %4593 = vst.msk [vmem:[#allocation6 + $0x50] sm:$0xff] %vm73_vm0, %v7942_v0 }
  0x4f   :  { %4595 = vst.msk [vmem:[#allocation6 + $0x60] sm:$0xff] %vm73_vm0, %v7942_v0  ;;  %4597 = vst.msk [vmem:[#allocation6 + $0x70] sm:$0xff] %vm73_vm0, %v7942_v0 }
  0x50   :  { %4599 = vst.msk [vmem:[#allocation6 + $0x80] sm:$0xff] %vm73_vm0, %v7942_v0  ;;  %4601 = vst.msk [vmem:[#allocation6 + $0x90] sm:$0xff] %vm73_vm0, %v7942_v0 }
  0x51   :  { %4603 = vst.msk [vmem:[#allocation6 + $0xa0] sm:$0xff] %vm73_vm0, %v7942_v0  ;;  %4605 = vst.msk [vmem:[#allocation6 + $0xb0] sm:$0xff] %vm73_vm0, %v7942_v0 }
  0x52   :  { %4607 = vst.msk [vmem:[#allocation6 + $0xc0] sm:$0xff] %vm73_vm0, %v7942_v0  ;;  %4609 = vst.msk [vmem:[#allocation6 + $0xd0] sm:$0xff] %vm73_vm0, %v7942_v0 }
  0x53   :  { %4611 = vst.msk [vmem:[#allocation6 + $0xe0] sm:$0xff] %vm73_vm0, %v7942_v0  ;;  %4613 = vst.msk [vmem:[#allocation6 + $0xf0] sm:$0xff] %vm73_vm0, %v7942_v0 }
  0x54   :  { %4615 = vst.msk [vmem:[#allocation6 + $0x100] sm:$0xff] %vm73_vm0, %v7942_v0  ;;  %4617 = vst.msk [vmem:[#allocation6 + $0x110] sm:$0xff] %vm73_vm0, %v7942_v0 }
  0x55   :  { %4619 = vst.msk [vmem:[#allocation6 + $0x120] sm:$0xff] %vm73_vm0, %v7942_v0  ;;  %4621 = vst.msk [vmem:[#allocation6 + $0x130] sm:$0xff] %vm73_vm0, %v7942_v0 }
  0x56   :  { %77 = vst.msk [vmem:[#allocation2 + $0x10] sm:$0x3] %vm76_vm1, %v7942_v0  ;;  %80 = vst.msk [vmem:[#allocation2 + $0x28] sm:$0x3] %vm76_vm1, %v7942_v0 }
  0x57   :  { %83 = vst.msk [vmem:[#allocation2 + $0x40] sm:$0x3] %vm76_vm1, %v7942_v0  ;;  %86 = vst.msk [vmem:[#allocation2 + $0x58] sm:$0x3] %vm76_vm1, %v7942_v0 }
  0x58   :  { %89 = vst.msk [vmem:[#allocation2 + $0x70] sm:$0x3] %vm76_vm1, %v7942_v0  ;;  %92 = vst.msk [vmem:[#allocation2 + $0x88] sm:$0x3] %vm76_vm1, %v7942_v0 }
  0x59   :  { %95 = vst.msk [vmem:[#allocation2 + $0xa0] sm:$0x3] %vm76_vm1, %v7942_v0  ;;  %98 = vst.msk [vmem:[#allocation2 + $0xb8] sm:$0x3] %vm76_vm1, %v7942_v0 }
  0x5a   :  { %101 = vst.msk [vmem:[#allocation2 + $0xd0] sm:$0x3] %vm76_vm1, %v7942_v0  ;;  %104 = vst.msk [vmem:[#allocation2 + $0xe8] sm:$0x3] %vm76_vm1, %v7942_v0 }
  0x5b   :  { %107 = vst.msk [vmem:[#allocation2 + $0x100] sm:$0x3] %vm76_vm1, %v7942_v0  ;;  %110 = vst.msk [vmem:[#allocation2 + $0x118] sm:$0x3] %vm76_vm1, %v7942_v0 }
  0x5c   :  { %113 = vst.msk [vmem:[#allocation2 + $0x130] sm:$0x3] %vm76_vm1, %v7942_v0  ;;  %116 = vst.msk [vmem:[#allocation2 + $0x148] sm:$0x3] %vm76_vm1, %v7942_v0 }
  0x5d   :  { %119 = vst.msk [vmem:[#allocation2 + $0x160] sm:$0x3] %vm76_vm1, %v7942_v0  ;;  %122 = vst.msk [vmem:[#allocation2 + $0x178] sm:$0x3] %vm76_vm1, %v7942_v0  ;;  %v441_v7 = vld [vmem:[#allocation2 + $0x9] sm:$0xff] }
  0x5e   :  { %125 = vst.msk [vmem:[#allocation2 + $0x190] sm:$0x3] %vm76_vm1, %v7942_v0  ;;  %128 = vst.msk [vmem:[#allocation2 + $0x1a8] sm:$0x3] %vm76_vm1, %v7942_v0  ;;  %570 = vrot.lane.b32.xlu1 %v441_v7, %s7941_s26  ;;  %v826_v19 = vld [vmem:[#allocation2 + $0xa] sm:$0xff] }
  0x5f   :  { %131 = vst.msk [vmem:[#allocation2 + $0x1c0] sm:$0x3] %vm76_vm1, %v7942_v0  ;;  %134 = vst.msk [vmem:[#allocation2 + $0x1d8] sm:$0x3] %vm76_vm1, %v7942_v0  ;;  %v195_v7 = vld [vmem:[#allocation12 + $0x60] sm:$0xff] }
  0x60   :  { %137 = vst.msk [vmem:[#allocation2 + $0x1f0] sm:$0x3] %vm76_vm1, %v7942_v0  ;;  %140 = vst.msk [vmem:[#allocation2 + $0x208] sm:$0x3] %vm76_vm1, %v7942_v0 }
  0x61   :  { %143 = vst.msk [vmem:[#allocation2 + $0x220] sm:$0x3] %vm76_vm1, %v7942_v0  ;;  %146 = vst.msk [vmem:[#allocation2 + $0x238] sm:$0x3] %vm76_vm1, %v7942_v0 }
  0x62   :  { %149 = vst.msk [vmem:[#allocation2 + $0x250] sm:$0x3] %vm76_vm1, %v7942_v0  ;;  %152 = vst.msk [vmem:[#allocation2 + $0x268] sm:$0x3] %vm76_vm1, %v7942_v0  ;;  %955 = vrot.lane.b32.xlu1 %v826_v19, %s7944_s7 }
  0x63   :  { %155 = vst.msk [vmem:[#allocation2 + $0x280] sm:$0x3] %vm76_vm1, %v7942_v0  ;;  %158 = vst.msk [vmem:[#allocation2 + $0x298] sm:$0x3] %vm76_vm1, %v7942_v0 }
  0x64   :  { %161 = vst.msk [vmem:[#allocation2 + $0x2b0] sm:$0x3] %vm76_vm1, %v7942_v0  ;;  %164 = vst.msk [vmem:[#allocation2 + $0x2c8] sm:$0x3] %vm76_vm1, %v7942_v0 }
  0x65   :  { %167 = vst.msk [vmem:[#allocation2 + $0x2e0] sm:$0x3] %vm76_vm1, %v7942_v0  ;;  %170 = vst.msk [vmem:[#allocation2 + $0x2f8] sm:$0x3] %vm76_vm1, %v7942_v0 }
  0x66   :  { %173 = vst.msk [vmem:[#allocation2 + $0x310] sm:$0x3] %vm76_vm1, %v7942_v0  ;;  %176 = vst.msk [vmem:[#allocation2 + $0x328] sm:$0x3] %vm76_vm1, %v7942_v0 }
  0x67   :  { %179 = vst.msk [vmem:[#allocation2 + $0x340] sm:$0x3] %vm76_vm1, %v7942_v0  ;;  %182 = vst.msk [vmem:[#allocation2 + $0x358] sm:$0x3] %vm76_vm1, %v7942_v0 }
  0x68   :  { %4584 = vst.msk [vmem:[#allocation6 + $0x8] sm:$0x3] %vm76_vm1, %v7942_v0  ;;  %4586 = vst.msk [vmem:[#allocation6 + $0x18] sm:$0x3] %vm76_vm1, %v7942_v0 }
  0x69   :  { %4588 = vst.msk [vmem:[#allocation6 + $0x28] sm:$0x3] %vm76_vm1, %v7942_v0  ;;  %4590 = vst.msk [vmem:[#allocation6 + $0x38] sm:$0x3] %vm76_vm1, %v7942_v0 }
  0x6a   :  { %4592 = vst.msk [vmem:[#allocation6 + $0x48] sm:$0x3] %vm76_vm1, %v7942_v0  ;;  %4594 = vst.msk [vmem:[#allocation6 + $0x58] sm:$0x3] %vm76_vm1, %v7942_v0 }
  0x6b   :  { %4596 = vst.msk [vmem:[#allocation6 + $0x68] sm:$0x3] %vm76_vm1, %v7942_v0  ;;  %4598 = vst.msk [vmem:[#allocation6 + $0x78] sm:$0x3] %vm76_vm1, %v7942_v0 }
  0x6c   :  { %4600 = vst.msk [vmem:[#allocation6 + $0x88] sm:$0x3] %vm76_vm1, %v7942_v0  ;;  %4602 = vst.msk [vmem:[#allocation6 + $0x98] sm:$0x3] %vm76_vm1, %v7942_v0 }
  0x6d   :  { %4604 = vst.msk [vmem:[#allocation6 + $0xa8] sm:$0x3] %vm76_vm1, %v7942_v0  ;;  %4606 = vst.msk [vmem:[#allocation6 + $0xb8] sm:$0x3] %vm76_vm1, %v7942_v0 }
  0x6e   :  { %4608 = vst.msk [vmem:[#allocation6 + $0xc8] sm:$0x3] %vm76_vm1, %v7942_v0  ;;  %4610 = vst.msk [vmem:[#allocation6 + $0xd8] sm:$0x3] %vm76_vm1, %v7942_v0 }
  0x6f   :  { %4612 = vst.msk [vmem:[#allocation6 + $0xe8] sm:$0x3] %vm76_vm1, %v7942_v0  ;;  %4614 = vst.msk [vmem:[#allocation6 + $0xf8] sm:$0x3] %vm76_vm1, %v7942_v0 }
  0x70   :  { %4616 = vst.msk [vmem:[#allocation6 + $0x108] sm:$0x3] %vm76_vm1, %v7942_v0  ;;  %4618 = vst.msk [vmem:[#allocation6 + $0x118] sm:$0x3] %vm76_vm1, %v7942_v0 }
  0x71   :  { %4620 = vst.msk [vmem:[#allocation6 + $0x128] sm:$0x3] %vm76_vm1, %v7942_v0  ;;  %4622 = vst.msk [vmem:[#allocation6 + $0x138] sm:$0x3] %vm76_vm1, %v7942_v0  ;;  %v194_v0 = vld [vmem:[#allocation12 + $0x58] sm:$0xff] }
  0x72   :  { %248 = vst.msk [vmem:[#allocation2 + $0x19] sm:$0xff] %vm73_vm0, %v183_v2  ;;  %249 = vst.msk [vmem:[#allocation2 + $0x21] sm:$0xff] %vm73_vm0, %v184_v3  ;;  %v312_v2 = vld [vmem:[#allocation2] sm:$0xff]  ;;  %v313_v3 = vld [vmem:[#allocation2 + $0x8] sm:$0xff] }
  0x73   :  { %250 = vst.msk [vmem:[#allocation2 + $0x31] sm:$0xff] %vm73_vm0, %v185_v4  ;;  %251 = vst.msk [vmem:[#allocation2 + $0x39] sm:$0xff] %vm73_vm0, %v186_v8  ;;  %v7329_v4 = vpack.c.bf16 %v3207_v62, %v3206_v61  ;;  %v3228_v8 = vld [vmem:[%s11922_s1 + $0x100] sm:$0xff] }
  0x74   :  { %252 = vst.msk [vmem:[#allocation2 + $0x49] sm:$0xff] %vm73_vm0, %v187_v9  ;;  %253 = vst.msk [vmem:[#allocation2 + $0x51] sm:$0xff] %vm73_vm0, %v188_v10  ;;  %v3229_v9 = vld [vmem:[%s11922_s1 + $0x108] sm:$0xff]  ;;  %v7332_v10 = vpack.c.bf16 %v3209_v6, %v3208_v5  ;;  %v3216_v62 = vld [vmem:[%s11922_s1 + $0xa0] sm:$0xff] }
  0x75   :  { %254 = vst.msk [vmem:[#allocation2 + $0x61] sm:$0xff] %vm73_vm0, %v189_v11  ;;  %255 = vst.msk [vmem:[#allocation2 + $0x69] sm:$0xff] %vm73_vm0, %v190_v12  ;;  %7330 = vmatpush1.bf16.msra.mxu0 %v7329_v4  ;;  %v3210_v11 = vld [vmem:[%s11922_s1 + $0x70] sm:$0xff]  ;;  %v7361_v13 = vpack.c.bf16 %v3229_v9, %v3228_v8 }
  0x76   :  { %256 = vst.msk [vmem:[#allocation2 + $0x79] sm:$0xff] %vm73_vm0, %v191_v15  ;;  %257 = vst.msk [vmem:[#allocation2 + $0x81] sm:$0xff] %vm73_vm0, %v192_v23  ;;  %7331 = vmatprep.subr.bf16.mxu0 %v7943_v1  ;;  %v196_v15 = vld [vmem:[#allocation12 + $0x68] sm:$0xff]  ;;  %v7335_v22 = vpack.c.bf16 %v3211_v14, %v3210_v11  ;;  %v7365_v23 = vpack.c.bf16 %v3231_v20, %v3230_v16  ;;  %v3218_v9 = vld [vmem:[%s11922_s1 + $0xb0] sm:$0xff] }
  0x77   :  { %258 = vst.msk [vmem:[#allocation2 + $0x91] sm:$0xff] %vm73_vm0, %v193_v60  ;;  %259 = vst.msk [vmem:[#allocation2 + $0x99] sm:$0xff] %vm73_vm0, %v194_v0  ;;  %7362 = vmatprep.subr.bf16.mxu1 %v7361_v13  ;;  %v3221_v14 = vld [vmem:[%s11922_s1 + $0xc8] sm:$0xff]  ;;  %v3222_v16 = vld [vmem:[%s11922_s1 + $0xd0] sm:$0xff] }
  0x78   :  { %376 = vst.msk [vmem:[#allocation3] sm:$0xff] %vm73_vm0, %v312_v2  ;;  %377 = vst.msk [vmem:[#allocation3 + $0x18] sm:$0xff] %vm73_vm0, %v313_v3  ;;  %7364 = vmatpush3.bf16.msra.mxu1 %v7361_v13  ;;  %v7341_v2 = vpack.c.bf16 %v3215_v49, %v3214_v48  ;;  %v3220_v13 = vld [vmem:[%s11922_s1 + $0xc0] sm:$0xff]  ;;  %v3223_v20 = vld [vmem:[%s11922_s1 + $0xd8] sm:$0xff] }
  0x79   :  { %v8370_v24 = vld [vmem:[#allocation2 + $0x1a] sm:$0xff]  ;;  %v8417_v38 = vld [vmem:[#allocation2 + $0x22] sm:$0xff]  ;;  %260 = vst.msk [vmem:[#allocation2 + $0xa9] sm:$0xff] %vm73_vm0, %v195_v7  ;;  %261 = vst.msk [vmem:[#allocation2 + $0xb1] sm:$0xff] %vm73_vm0, %v196_v15  ;;  %7333 = vmatpush1.bf16.msra.mxu0 %v7332_v10  ;;  %7366 = vmatprep.subr.bf16.mxu1 %v7365_v23 }
  0x7a   :  { %v8372_v25 = vld [vmem:[#allocation2 + $0x31] sm:$0xff]  ;;  %1851 = vrot.lane.b32.xlu0 %v8370_v24, %s7941_s26  ;;  %v8382_v28 = vld [vmem:[#allocation2 + $0x20] sm:$0xff]  ;;  %7334 = vmatprep.subr.bf16.mxu0 %v7943_v1 }
  0x7b   :  { %v8374_v26 = vld [vmem:[#allocation2 + $0x30] sm:$0xff]  ;;  %v8380_v27 = vld [vmem:[#allocation2 + $0x18] sm:$0xff]  ;;  %1661 = vst.msk [vmem:[#allocation3 + $0x38] sm:$0xff] %vm73_vm0, %v8372_v25  ;;  %379 = vst.msk [vmem:[#allocation3 + $0x48] sm:$0xff] %vm73_vm0, %v8382_v28 }
  0x7c   :  { %380 = vst.msk [vmem:[#allocation3 + $0x60] sm:$0xff] %vm73_vm0, %v8374_v26  ;;  %v8389_v29 = vld [vmem:[#allocation2 + $0x38] sm:$0xff]  ;;  %378 = vst.msk [vmem:[#allocation3 + $0x30] sm:$0xff] %vm73_vm0, %v8380_v27  ;;  %v8407_v35 = vld [vmem:[#allocation2 + $0x48] sm:$0xff]  ;;  %2236 = vrot.lane.b32.xlu1 %v8374_v26, %s7944_s7  ;;  %7368 = vmatpush3.bf16.msra.mxu1 %v7365_v23 }
  0x7d   :  { %v8391_v30 = vld [vmem:[#allocation2 + $0x39] sm:$0xff]  ;;  %v8409_v36 = vld [vmem:[#allocation2 + $0x49] sm:$0xff]  ;;  %381 = vst.msk [vmem:[#allocation3 + $0x78] sm:$0xff] %vm73_vm0, %v8389_v29  ;;  %v8419_v39 = vld [vmem:[#allocation2 + $0x21] sm:$0xff]  ;;  %7336 = vmatpush1.bf16.msra.mxu0 %v7335_v22 }
  0x7e   :  { %v8393_v31 = vld [vmem:[#allocation2 + $0x19] sm:$0xff]  ;;  %1662 = vst.msk [vmem:[#allocation3 + $0x50] sm:$0xff] %vm73_vm0, %v8391_v30  ;;  %v8423_v41 = vld [vmem:[#allocation2 + $0x50] sm:$0xff]  ;;  %1663 = vst.msk [vmem:[#allocation3 + $0x68] sm:$0xff] %vm73_vm0, %v8409_v36  ;;  %2620 = vrot.lane.b32.xlu0 %v8372_v25, %s7945_s17  ;;  %7337 = vmatprep.subr.bf16.mxu0 %v7943_v1 }
  0x7f   :  { %v8405_v34 = vld [vmem:[#allocation2 + $0x32] sm:$0xff]  ;;  %1659 = vst.msk [vmem:[#allocation3 + $0x8] sm:$0xff] %vm73_vm0, %v8393_v31  ;;  %v8421_v40 = vld [vmem:[#allocation2 + $0x3a] sm:$0xff]  ;;  %382 = vst.msk [vmem:[#allocation3 + $0x90] sm:$0xff] %vm73_vm0, %v8407_v35 }
  0x80   :  { %2940 = vst.msk [vmem:[#allocation3 + $0x10] sm:$0xff] %vm73_vm0, %v8405_v34  ;;  %v8434_v42 = vld [vmem:[#allocation2 + $0x51] sm:$0xff]  ;;  %v8438_v44 = vld [vmem:[#allocation2 + $0x60] sm:$0xff]  ;;  %1660 = vst.msk [vmem:[#allocation3 + $0x20] sm:$0xff] %vm73_vm0, %v8419_v39  ;;  %1338 = vrot.lane.b32.xlu1 %v8380_v27, %s7945_s17 }
  0x81   :  { %v8436_v43 = vld [vmem:[#allocation2 + $0x4a] sm:$0xff]  ;;  %2941 = vst.msk [vmem:[#allocation3 + $0x28] sm:$0xff] %vm73_vm0, %v8421_v40  ;;  %383 = vst.msk [vmem:[#allocation3 + $0xa8] sm:$0xff] %vm73_vm0, %v8423_v41  ;;  %v8448_v45 = vld [vmem:[#allocation2 + $0x61] sm:$0xff] }
  0x82   :  { %v8450_v46 = vld [vmem:[#allocation2 + $0x52] sm:$0xff]  ;;  %v8452_v47 = vld [vmem:[#allocation2 + $0x68] sm:$0xff]  ;;  %2942 = vst.msk [vmem:[#allocation3 + $0x40] sm:$0xff] %vm73_vm0, %v8436_v43  ;;  %1664 = vst.msk [vmem:[#allocation3 + $0x80] sm:$0xff] %vm73_vm0, %v8434_v42  ;;  %1853 = vrot.lane.b32.xlu0 %v8417_v38, %s7941_s26 }
  0x83   :  { %384 = vst.msk [vmem:[#allocation3 + $0xc0] sm:$0xff] %vm73_vm0, %v8438_v44  ;;  %v8466_v50 = vld [vmem:[#allocation2 + $0x69] sm:$0xff]  ;;  %v8470_v52 = vld [vmem:[#allocation2 + $0x78] sm:$0xff]  ;;  %2943 = vst.msk [vmem:[#allocation3 + $0x58] sm:$0xff] %vm73_vm0, %v8450_v46 }
  0x84   :  { %v8468_v51 = vld [vmem:[#allocation2 + $0x62] sm:$0xff]  ;;  %1665 = vst.msk [vmem:[#allocation3 + $0x98] sm:$0xff] %vm73_vm0, %v8448_v45  ;;  %385 = vst.msk [vmem:[#allocation3 + $0xd8] sm:$0xff] %vm73_vm0, %v8452_v47  ;;  %v8478_v54 = vld [vmem:[#allocation2 + $0x79] sm:$0xff]  ;;  %1340 = vrot.lane.b32.xlu1 %v8382_v28, %s7945_s17 }
  0x85   :  { %v8480_v55 = vld [vmem:[#allocation2 + $0x6a] sm:$0xff]  ;;  %v8483_v56 = vld [vmem:[#allocation2 + $0x80] sm:$0xff]  ;;  %2944 = vst.msk [vmem:[#allocation3 + $0x70] sm:$0xff] %vm73_vm0, %v8468_v51  ;;  %1666 = vst.msk [vmem:[#allocation3 + $0xb0] sm:$0xff] %vm73_vm0, %v8466_v50 }
  0x86   :  { %386 = vst.msk [vmem:[#allocation3 + $0xf0] sm:$0xff] %vm73_vm0, %v8470_v52  ;;  %v8493_v57 = vld [vmem:[#allocation2 + $0x81] sm:$0xff]  ;;  %2945 = vst.msk [vmem:[#allocation3 + $0x88] sm:$0xff] %vm73_vm0, %v8480_v55  ;;  %2238 = vrot.lane.b32.xlu0 %v8389_v29, %s7944_s7  ;;  %v8549_v12 = vld [vmem:[#allocation2 + $0x91] sm:$0xff] }
  0x87   :  { %1667 = vst.msk [vmem:[#allocation3 + $0xc8] sm:$0xff] %vm73_vm0, %v8478_v54  ;;  %387 = vst.msk [vmem:[#allocation3 + $0x108] sm:$0xff] %vm73_vm0, %v8483_v56  ;;  %v8503_v58 = vld [vmem:[#allocation2 + $0x7a] sm:$0xff]  ;;  %v8517_v63 = vld [vmem:[#allocation2 + $0x82] sm:$0xff] }
  0x88   :  { %1668 = vst.msk [vmem:[#allocation3 + $0xe0] sm:$0xff] %vm73_vm0, %v8493_v57  ;;  %2946 = vst.msk [vmem:[#allocation3 + $0xa0] sm:$0xff] %vm73_vm0, %v8503_v58  ;;  %572 = vrot.lane.b32.xlu1 %v8393_v31, %s7941_s26  ;;  %v8562_v17 = vld [vmem:[#allocation2 + $0x99] sm:$0xff]  ;;  %v3006_v21 = vld [vmem:[#allocation3 + $0x10] sm:$0xff] }
  0x89   :  { %2947 = vst.msk [vmem:[#allocation3 + $0xb8] sm:$0xff] %vm73_vm0, %v8517_v63  ;;  %1669 = vst.msk [vmem:[#allocation3 + $0xf8] sm:$0xff] %vm73_vm0, %v8549_v12  ;;  %v8564_v18 = vld [vmem:[#allocation2 + $0x92] sm:$0xff]  ;;  %v8569_v19 = vld [vmem:[#allocation2 + $0x9a] sm:$0xff]  ;;  %7185 = vmatprep.mubr.msk.f32.mxu1 %vm73_vm0, %v3006_v21 }
  0x8a   :  { %2622 = vrot.lane.b32.xlu0 %v8391_v30, %s7945_s17  ;;  %2948 = vst.msk [vmem:[#allocation3 + $0xd0] sm:$0xff] %vm73_vm0, %v8564_v18  ;;  %1670 = vst.msk [vmem:[#allocation3 + $0x110] sm:$0xff] %vm73_vm0, %v8562_v17  ;;  %v198_v27 = vld [vmem:[#allocation12 + $0x78] sm:$0xff]  ;;  %v3212_v28 = vld [vmem:[%s11922_s1 + $0x80] sm:$0xff] }
  0x8b   :  { %2949 = vst.msk [vmem:[#allocation3 + $0xe8] sm:$0xff] %vm73_vm0, %v8569_v19  ;;  %v3213_v31 = vld [vmem:[%s11922_s1 + $0x88] sm:$0xff]  ;;  %263 = vst.msk [vmem:[#allocation2 + $0xc9] sm:$0xff] %vm73_vm0, %v198_v27  ;;  %v3012_v53 = vld [vmem:[#allocation3 + $0x40] sm:$0xff] }
  0x8c   :  { %957 = vrot.lane.b32.xlu1 %v8370_v24, %s7944_s7  ;;  %v197_v24 = vld [vmem:[#allocation12 + $0x70] sm:$0xff]  ;;  %v8588_v32 = vld [vmem:[#allocation2 + $0xa9] sm:$0xff]  ;;  %v7338_v37 = vpack.c.bf16 %v3213_v31, %v3212_v28  ;;  %v8607_v60 = vld [vmem:[#allocation2 + $0xb1] sm:$0xff] }
  0x8d   :  { %262 = vst.msk [vmem:[#allocation2 + $0xc1] sm:$0xff] %vm73_vm0, %v197_v24  ;;  %1671 = vst.msk [vmem:[#allocation3 + $0x128] sm:$0xff] %vm73_vm0, %v8588_v32  ;;  %v3009_v33 = vld [vmem:[#allocation3 + $0x28] sm:$0xff]  ;;  %v8605_v59 = vld [vmem:[#allocation2 + $0xb0] sm:$0xff] }
  0x8e   :  { %1855 = vrot.lane.b32.xlu0 %v8405_v34, %s7941_s26  ;;  %7186 = vmatmul.mubr.msk.f32.vlgmr.msra.gmra.mrb[0].mxu1 %vm73_vm0, %v3009_v33  ;;  %v8614_v61 = vld [vmem:[#allocation2 + $0xb2] sm:$0xff]  ;;  %1672 = vst.msk [vmem:[#allocation3 + $0x140] sm:$0xff] %vm73_vm0, %v8607_v60  ;;  %391 = vst.msk [vmem:[#allocation3 + $0x168] sm:$0xff] %vm73_vm0, %v8605_v59  ;;  %v3224_v23 = vld [vmem:[%s11922_s1 + $0xe0] sm:$0xff] }
  0x8f   :  { %7188 = vmatprep.mubr.msk.f32.mxu1 %vm73_vm0, %v3012_v53  ;;  %v3015_v0 = vld [vmem:[#allocation3 + $0x58] sm:$0xff]  ;;  %2951 = vst.msk [vmem:[#allocation3 + $0x118] sm:$0xff] %vm73_vm0, %v8614_v61  ;;  %7339 = vmatpush1.bf16.msra.mxu0 %v7338_v37  ;;  %v199_v7 = vld [vmem:[#allocation12 + $0x80] sm:$0xff]  ;;  %v3225_v24 = vld [vmem:[%s11922_s1 + $0xe8] sm:$0xff] }
  0x90   :  { %1342 = vrot.lane.b32.xlu1 %v8374_v26, %s7945_s17  ;;  %v8609_v26 = vld [vmem:[#allocation2 + $0xaa] sm:$0xff]  ;;  %7340 = vmatprep.subr.bf16.mxu0 %v7943_v1  ;;  %264 = vst.msk [vmem:[#allocation2 + $0xd9] sm:$0xff] %vm73_vm0, %v199_v7  ;;  %v3219_v10 = vld [vmem:[%s11922_s1 + $0xb8] sm:$0xff]  ;;  %v7356_v31 = vpack.c.bf16 %v3225_v24, %v3224_v23  ;;  %v201_v53 = vld [vmem:[#allocation12 + $0x90] sm:$0xff] }
  0x91   :  { %2950 = vst.msk [vmem:[#allocation3 + $0x100] sm:$0xff] %vm73_vm0, %v8609_v26  ;;  %v200_v22 = vld [vmem:[#allocation12 + $0x88] sm:$0xff]  ;;  %v3018_v27 = vld [vmem:[#allocation3 + $0x70] sm:$0xff]  ;;  %266 = vst.msk [vmem:[#allocation2 + $0xf1] sm:$0xff] %vm73_vm0, %v201_v53 }
  0x92   :  { %2240 = vrot.lane.b32.xlu0 %v8407_v35, %s7944_s7  ;;  %v8640_v6 = vld [vmem:[#allocation2 + $0xc9] sm:$0xff]  ;;  %7189 = vmatmul.mubr.msk.f32.gmra.mrb[2].mxu1 %vm73_vm0, %v3015_v0  ;;  %265 = vst.msk [vmem:[#allocation2 + $0xe1] sm:$0xff] %vm73_vm0, %v200_v22  ;;  %v3227_v37 = vld [vmem:[%s11922_s1 + $0xf8] sm:$0xff] }
  0x93   :  { %1674 = vst.msk [vmem:[#allocation3 + $0x170] sm:$0xff] %vm73_vm0, %v8640_v6  ;;  %7342 = vmatpush1.bf16.msra.mxu0 %v7341_v2  ;;  %v8709_v28 = vld [vmem:[#allocation2 + $0xca] sm:$0xff]  ;;  %7191 = vmatprep.mubr.msk.f32.mxu1 %vm73_vm0, %v3018_v27 }
  0x94   :  { %574 = vrot.lane.b32.xlu1 %v8419_v39, %s7941_s26  ;;  %v8630_v3 = vld [vmem:[#allocation2 + $0xc0] sm:$0xff]  ;;  %v8634_v5 = vld [vmem:[#allocation2 + $0xc8] sm:$0xff]  ;;  %7343 = vmatprep.subr.bf16.mxu0 %v7943_v1  ;;  %2953 = vst.msk [vmem:[#allocation3 + $0x148] sm:$0xff] %vm73_vm0, %v8709_v28  ;;  %v3226_v33 = vld [vmem:[%s11922_s1 + $0xf0] sm:$0xff] }
  0x95   :  { %v8632_v4 = vld [vmem:[#allocation2 + $0xc1] sm:$0xff]  ;;  %392 = vst.msk [vmem:[#allocation3 + $0x180] sm:$0xff] %vm73_vm0, %v8630_v3  ;;  %393 = vst.msk [vmem:[#allocation3 + $0x198] sm:$0xff] %vm73_vm0, %v8634_v5  ;;  %v3030_v7 = vld [vmem:[#allocation3 + $0xd0] sm:$0xff] }
  0x96   :  { %2624 = vrot.lane.b32.xlu0 %v8409_v36, %s7945_s17  ;;  %v3217_v39 = vld [vmem:[%s11922_s1 + $0xa8] sm:$0xff]  ;;  %1673 = vst.msk [vmem:[#allocation3 + $0x158] sm:$0xff] %vm73_vm0, %v8632_v4  ;;  %v3039_v23 = vld [vmem:[#allocation3 + $0x118] sm:$0xff]  ;;  %v324_v27 = vld [vmem:[#allocation2 + $0x90] sm:$0xff] }
  0x97   :  { %v7344_v8 = vpack.c.bf16 %v3217_v39, %v3216_v62  ;;  %v8663_v11 = vld [vmem:[#allocation2 + $0xc2] sm:$0xff]  ;;  %v8678_v15 = vld [vmem:[#allocation2 + $0xd8] sm:$0xff]  ;;  %v203_v39 = vld [vmem:[#allocation12 + $0xa0] sm:$0xff]  ;;  %388 = vst.msk [vmem:[#allocation3 + $0x120] sm:$0xff] %vm73_vm0, %v324_v27 }
  0x98   :  { %959 = vrot.lane.b32.xlu1 %v8417_v38, %s7944_s7  ;;  %2952 = vst.msk [vmem:[#allocation3 + $0x130] sm:$0xff] %vm73_vm0, %v8663_v11  ;;  %v7347_v38 = vpack.c.bf16 %v3219_v10, %v3218_v9  ;;  %394 = vst.msk [vmem:[#allocation3 + $0x1b0] sm:$0xff] %vm73_vm0, %v8678_v15  ;;  %v8693_v21 = vld [vmem:[#allocation2 + $0xd9] sm:$0xff]  ;;  %v202_v62 = vld [vmem:[#allocation12 + $0x98] sm:$0xff] }
  0x99   :  { %7345 = vmatpush1.bf16.msra.mxu0 %v7344_v8  ;;  %1675 = vst.msk [vmem:[#allocation3 + $0x188] sm:$0xff] %vm73_vm0, %v8693_v21  ;;  %v8726_v48 = vld [vmem:[#allocation2 + $0xe0] sm:$0xff]  ;;  %267 = vst.msk [vmem:[#allocation2 + $0xf9] sm:$0xff] %vm73_vm0, %v202_v62 }
  0x9a   :  { %1857 = vrot.lane.b32.xlu0 %v8421_v40, %s7941_s26  ;;  %7346 = vmatprep.subr.bf16.mxu0 %v7943_v1  ;;  %395 = vst.msk [vmem:[#allocation3 + $0x1c8] sm:$0xff] %vm73_vm0, %v8726_v48  ;;  %v8735_v49 = vld [vmem:[#allocation2 + $0xe1] sm:$0xff]  ;;  %268 = vst.msk [vmem:[#allocation2 + $0x109] sm:$0xff] %vm73_vm0, %v203_v39  ;;  %v325_v39 = vld [vmem:[#allocation2 + $0x98] sm:$0xff] }
  0x9b   :  { %1676 = vst.msk [vmem:[#allocation3 + $0x1a0] sm:$0xff] %vm73_vm0, %v8735_v49  ;;  %v8769_v0 = vld [vmem:[#allocation2 + $0xe2] sm:$0xff]  ;;  %389 = vst.msk [vmem:[#allocation3 + $0x138] sm:$0xff] %vm73_vm0, %v325_v39 }
  0x9c   :  { %1344 = vrot.lane.b32.xlu1 %v8389_v29, %s7945_s17  ;;  %v7350_v29 = vpack.c.bf16 %v3221_v14, %v3220_v13  ;;  %2955 = vst.msk [vmem:[#allocation3 + $0x178] sm:$0xff] %vm73_vm0, %v8769_v0  ;;  %v205_v9 = vld [vmem:[#allocation12 + $0xb0] sm:$0xff] }
  0x9d   :  { %7348 = vmatpush1.bf16.msra.mxu0 %v7347_v38  ;;  %270 = vst.msk [vmem:[#allocation2 + $0x121] sm:$0xff] %vm73_vm0, %v205_v9  ;;  %v3036_v22 = vld [vmem:[#allocation3 + $0x100] sm:$0xff] }
  0x9e   :  { %2242 = vrot.lane.b32.xlu0 %v8423_v41, %s7944_s7  ;;  %7349 = vmatprep.subr.bf16.mxu0 %v7943_v1 }
  0xa0   :  { %576 = vrot.lane.b32.xlu1 %v8372_v25, %s7941_s26  ;;  %v7353_v25 = vpack.c.bf16 %v3223_v20, %v3222_v16  ;;  %v8779_v2 = vld [vmem:[#allocation2 + $0xf8] sm:$0xff]  ;;  %v206_v16 = vld [vmem:[#allocation12 + $0xb8] sm:$0xff] }
  0xa1   :  { %7351 = vmatpush1.bf16.msra.mxu0 %v7350_v29  ;;  %397 = vst.msk [vmem:[#allocation3 + $0x1f8] sm:$0xff] %vm73_vm0, %v8779_v2  ;;  %v8817_v8 = vld [vmem:[#allocation2 + $0xfa] sm:$0xff]  ;;  %271 = vst.msk [vmem:[#allocation2 + $0x129] sm:$0xff] %vm73_vm0, %v206_v16  ;;  %v326_v16 = vld [vmem:[#allocation2 + $0xa8] sm:$0xff] }
  0xa2   :  { %2626 = vrot.lane.b32.xlu0 %v8434_v42, %s7945_s17  ;;  %7352 = vmatprep.subr.bf16.mxu0 %v7943_v1  ;;  %2957 = vst.msk [vmem:[#allocation3 + $0x1a8] sm:$0xff] %vm73_vm0, %v8817_v8  ;;  %v954_v10 = vpop.permute.xlu1 %953  ;;  %390 = vst.msk [vmem:[#allocation3 + $0x150] sm:$0xff] %vm73_vm0, %v326_v16 }
  0xa3   :  { %v3051_v39 = vld [vmem:[#allocation3 + $0x178] sm:$0xff] }
  0xa4   :  { %961 = vrot.lane.b32.xlu1 %v8405_v34, %s7944_s7  ;;  %v3021_v34 = vld [vmem:[#allocation3 + $0x88] sm:$0xff] }
  0xa5   :  { %7192 = vmatmul.mubr.msk.f32.gmra.mrb[4].mxu1 %vm73_vm0, %v3021_v34  ;;  %7354 = vmatpush1.bf16.msra.mxu0 %v7353_v25  ;;  %v8857_v29 = vld [vmem:[#allocation2 + $0x121] sm:$0xff] }
  0xa6   :  { %1859 = vrot.lane.b32.xlu0 %v8436_v43, %s7941_s26  ;;  %7355 = vmatprep.subr.bf16.mxu0 %v7943_v1  ;;  %1681 = vst.msk [vmem:[#allocation3 + $0x218] sm:$0xff] %vm73_vm0, %v8857_v29 }
  0xa8   :  { %1346 = vrot.lane.b32.xlu1 %v8407_v35, %s7945_s17  ;;  %v7359_v35 = vpack.c.bf16 %v3227_v37, %v3226_v33  ;;  %v8888_v33 = vld [vmem:[#allocation2 + $0x129] sm:$0xff] }
  0xa9   :  { %7357 = vmatpush1.bf16.msra.mxu0 %v7356_v31  ;;  %v207_v37 = vld [vmem:[#allocation12 + $0xc0] sm:$0xff]  ;;  %1682 = vst.msk [vmem:[#allocation3 + $0x230] sm:$0xff] %vm73_vm0, %v8888_v33 }
  0xaa   :  { %2244 = vrot.lane.b32.xlu0 %v8438_v44, %s7944_s7  ;;  %7358 = vmatprep.subr.bf16.mxu0 %v7943_v1  ;;  %v8752_v1 = vld [vmem:[#allocation2 + $0xf0] sm:$0xff]  ;;  %272 = vst.msk [vmem:[#allocation2 + $0x139] sm:$0xff] %vm73_vm0, %v207_v37 }
  0xab   :  { %396 = vst.msk [vmem:[#allocation3 + $0x1e0] sm:$0xff] %vm73_vm0, %v8752_v1 }
  0xac   :  { %578 = vrot.lane.b32.xlu1 %v8391_v30, %s7941_s26  ;;  %v8744_v30 = vld [vmem:[#allocation2 + $0xda] sm:$0xff] }
  0xad   :  { %7360 = vmatpush1.bf16.msra.mxu0 %v7359_v35  ;;  %2954 = vst.msk [vmem:[#allocation3 + $0x160] sm:$0xff] %vm73_vm0, %v8744_v30 }
  0xae   :  { %2628 = vrot.lane.b32.xlu0 %v8448_v45, %s7945_s17 }
  0xb0   :  { %963 = vrot.lane.b32.xlu1 %v8421_v40, %s7944_s7  ;;  %v8760_v40 = vld [vmem:[#allocation2 + $0xf1] sm:$0xff] }
  0xb1   :  { %1677 = vst.msk [vmem:[#allocation3 + $0x1b8] sm:$0xff] %vm73_vm0, %v8760_v40  ;;  %v8916_v9 = vld [vmem:[#allocation2 + $0x139] sm:$0xff] }
  0xb2   :  { %1861 = vrot.lane.b32.xlu0 %v8450_v46, %s7941_s26  ;;  %1683 = vst.msk [vmem:[#allocation3 + $0x248] sm:$0xff] %vm73_vm0, %v8916_v9 }
  0xb4   :  { %1348 = vrot.lane.b32.xlu1 %v8423_v41, %s7945_s17  ;;  %v3024_v41 = vld [vmem:[#allocation3 + $0xa0] sm:$0xff] }
  0xb5   :  { %7194 = vmatprep.mubr.msk.f32.mxu1 %vm73_vm0, %v3024_v41  ;;  %v8899_v41 = vld [vmem:[#allocation2 + $0x122] sm:$0xff] }
  0xb6   :  { %2246 = vrot.lane.b32.xlu0 %v8452_v47, %s7944_s7  ;;  %2960 = vst.msk [vmem:[#allocation3 + $0x1f0] sm:$0xff] %vm73_vm0, %v8899_v41 }
  0xb8   :  { %580 = vrot.lane.b32.xlu1 %v8409_v36, %s7941_s26  ;;  %v3027_v36 = vld [vmem:[#allocation3 + $0xb8] sm:$0xff] }
  0xb9   :  { %7195 = vmatmul.mubr.msk.f32.gmra.mrb[6].mxu1 %vm73_vm0, %v3027_v36 }
  0xba   :  { %2630 = vrot.lane.b32.xlu0 %v8466_v50, %s7945_s17  ;;  %7197 = vmatprep.mubr.msk.f32.mxu1 %vm73_vm0, %v3030_v7 }
  0xbc   :  { %965 = vrot.lane.b32.xlu1 %v8436_v43, %s7944_s7  ;;  %v8787_v43 = vld [vmem:[#allocation2 + $0xf9] sm:$0xff] }
  0xbd   :  { %1678 = vst.msk [vmem:[#allocation3 + $0x1d0] sm:$0xff] %vm73_vm0, %v8787_v43 }
  0xbe   :  { %1863 = vrot.lane.b32.xlu0 %v8468_v51, %s7941_s26 }
  0xc0   :  { %1350 = vrot.lane.b32.xlu1 %v8438_v44, %s7945_s17  ;;  %v8796_v44 = vld [vmem:[#allocation2 + $0xf2] sm:$0xff] }
  0xc1   :  { %2956 = vst.msk [vmem:[#allocation3 + $0x190] sm:$0xff] %vm73_vm0, %v8796_v44 }
  0xc2   :  { %2248 = vrot.lane.b32.xlu0 %v8470_v52, %s7944_s7 }
  0xc4   :  { %582 = vrot.lane.b32.xlu1 %v8434_v42, %s7941_s26  ;;  %v8808_v42 = vld [vmem:[#allocation2 + $0x109] sm:$0xff] }
  0xc5   :  { %1679 = vst.msk [vmem:[#allocation3 + $0x1e8] sm:$0xff] %vm73_vm0, %v8808_v42 }
  0xc6   :  { %2632 = vrot.lane.b32.xlu0 %v8478_v54, %s7945_s17 }
  0xc8   :  { %967 = vrot.lane.b32.xlu1 %v8450_v46, %s7944_s7  ;;  %v204_v46 = vld [vmem:[#allocation12 + $0xa8] sm:$0xff] }
  0xc9   :  { %269 = vst.msk [vmem:[#allocation2 + $0x111] sm:$0xff] %vm73_vm0, %v204_v46 }
  0xca   :  { %1865 = vrot.lane.b32.xlu0 %v8480_v55, %s7941_s26 }
  0xcc   :  { %1352 = vrot.lane.b32.xlu1 %v8452_v47, %s7945_s17  ;;  %v2116_v47 = vld [vmem:[#allocation2 + $0x90] sm:$0xff] }
  0xce   :  { %2250 = vrot.lane.b32.xlu0 %v8483_v56, %s7944_s7 }
  0xd0   :  { %584 = vrot.lane.b32.xlu1 %v8448_v45, %s7941_s26  ;;  %v3033_v45 = vld [vmem:[#allocation3 + $0xe8] sm:$0xff]  ;;  %v8869_v25 = vld [vmem:[#allocation2 + $0x112] sm:$0xff] }
  0xd1   :  { %7198 = vmatmul.mubr.msk.f32.gmra.mrb[8].mxu1 %vm73_vm0, %v3033_v45  ;;  %v8841_v38 = vld [vmem:[#allocation2 + $0x10a] sm:$0xff]  ;;  %2959 = vst.msk [vmem:[#allocation3 + $0x1d8] sm:$0xff] %vm73_vm0, %v8869_v25 }
  0xd2   :  { %2634 = vrot.lane.b32.xlu0 %v8493_v57, %s7945_s17  ;;  %2958 = vst.msk [vmem:[#allocation3 + $0x1c0] sm:$0xff] %vm73_vm0, %v8841_v38  ;;  %7200 = vmatprep.mubr.msk.f32.mxu1 %vm73_vm0, %v3036_v22 }
  0xd4   :  { %969 = vrot.lane.b32.xlu1 %v8468_v51, %s7944_s7  ;;  %v8830_v51 = vld [vmem:[#allocation2 + $0x111] sm:$0xff] }
  0xd5   :  { %1680 = vst.msk [vmem:[#allocation3 + $0x200] sm:$0xff] %vm73_vm0, %v8830_v51  ;;  %7201 = vmatmul.mubr.msk.f32.gmra.mrb[10].mxu1 %vm73_vm0, %v3039_v23 }
  0xd6   :  { %1867 = vrot.lane.b32.xlu0 %v8503_v58, %s7941_s26 }
  0xd8   :  { %1354 = vrot.lane.b32.xlu1 %v8470_v52, %s7945_s17  ;;  %v8839_v52 = vld [vmem:[#allocation2 + $0x98] sm:$0xff] }
  0xda   :  { %2252 = vrot.lane.b32.xlu0 %v2116_v47, %s7944_s7 }
  0xdc   :  { %586 = vrot.lane.b32.xlu1 %v8466_v50, %s7941_s26  ;;  %v569_v50 = vpop.permute.xlu0 %568 }
  0xdd   :  { %761 = vst.msk [vmem:[#allocation3] sm:$0xff] %vm760_vm2, %v569_v50  ;;  %v3042_v50 = vld [vmem:[#allocation3 + $0x130] sm:$0xff] }
  0xde   :  { %2636 = vrot.lane.b32.xlu0 %v8549_v12, %s7945_s17  ;;  %1146 = vst.msk [vmem:[#allocation3] sm:$0xff] %vm1145_vm3, %v954_v10  ;;  %7203 = vmatprep.mubr.msk.f32.mxu1 %vm73_vm0, %v3042_v50 }
  0xe0   :  { %971 = vrot.lane.b32.xlu1 %v8480_v55, %s7944_s7  ;;  %v571_v55 = vpop.permute.xlu1 %570 }
  0xe1   :  { %762 = vst.msk [vmem:[#allocation3 + $0x18] sm:$0xff] %vm760_vm2, %v571_v55  ;;  %v8927_v55 = vld [vmem:[#allocation2 + $0x12a] sm:$0xff] }
  0xe2   :  { %1869 = vrot.lane.b32.xlu0 %v8517_v63, %s7941_s26  ;;  %2961 = vst.msk [vmem:[#allocation3 + $0x208] sm:$0xff] %vm73_vm0, %v8927_v55 }
  0xe4   :  { %1356 = vrot.lane.b32.xlu1 %v8483_v56, %s7945_s17  ;;  %v956_v14 = vpop.permute.xlu1 %955 }
  0xe5   :  { %1147 = vst.msk [vmem:[#allocation3 + $0x18] sm:$0xff] %vm1145_vm3, %v956_v14 }
  0xe6   :  { %2254 = vrot.lane.b32.xlu0 %v8839_v52, %s7944_s7 }
  0xe8   :  { %588 = vrot.lane.b32.xlu1 %v8478_v54, %s7941_s26  ;;  %v8867_v54 = vld [vmem:[#allocation2 + $0xa8] sm:$0xff] }
  0xea   :  { %2638 = vrot.lane.b32.xlu0 %v8562_v17, %s7945_s17 }
  0xec   :  { %v1852_v13 = vpop.permute.xlu0 %1851  ;;  %973 = vrot.lane.b32.xlu1 %v8503_v58, %s7944_s7 }
  0xed   :  { %2043 = vst.msk [vmem:[#allocation3 + $0x8] sm:$0xff] %vm760_vm2, %v1852_v13  ;;  %v3045_v13 = vld [vmem:[#allocation3 + $0x148] sm:$0xff] }
  0xee   :  { %1871 = vrot.lane.b32.xlu0 %v8564_v18, %s7941_s26  ;;  %v2237_v20 = vpop.permute.xlu1 %2236  ;;  %7204 = vmatmul.mubr.msk.f32.gmra.mrb[12].mxu1 %vm73_vm0, %v3045_v13 }
  0xef   :  { %2428 = vst.msk [vmem:[#allocation3 + $0x8] sm:$0xff] %vm1145_vm3, %v2237_v20 }
  0xf0   :  { %v2621_v56 = vpop.permute.xlu0 %2620  ;;  %1358 = vrot.lane.b32.xlu1 %v2116_v47, %s7945_s17 }
  0xf1   :  { %2812 = vst.msk [vmem:[#allocation3 + $0x8] sm:$0xff] %vm1530_vm4, %v2621_v56 }
  0xf2   :  { %2256 = vrot.lane.b32.xlu0 %v8867_v54, %s7944_s7  ;;  %v1339_v24 = vpop.permute.xlu1 %1338 }
  0xf3   :  { %1531 = vst.msk [vmem:[#allocation3] sm:$0xff] %vm1530_vm4, %v1339_v24 }
  0xf4   :  { %v1854_v58 = vpop.permute.xlu0 %1853  ;;  %590 = vrot.lane.b32.xlu1 %v8493_v57, %s7941_s26 }
  0xf5   :  { %2044 = vst.msk [vmem:[#allocation3 + $0x20] sm:$0xff] %vm760_vm2, %v1854_v58  ;;  %v209_v58 = vld [vmem:[#allocation12 + $0xd0] sm:$0xff] }
  0xf6   :  { %2640 = vrot.lane.b32.xlu0 %v8588_v32, %s7945_s17  ;;  %v1341_v31 = vpop.permute.xlu1 %1340  ;;  %274 = vst.msk [vmem:[#allocation2 + $0x151] sm:$0xff] %vm73_vm0, %v209_v58 }
  0xf7   :  { %1532 = vst.msk [vmem:[#allocation3 + $0x18] sm:$0xff] %vm1530_vm4, %v1341_v31 }
  0xf8   :  { %v2239_v34 = vpop.permute.xlu0 %2238  ;;  %v3005_v35 = vld [vmem:[#allocation3 + $0x8] sm:$0xff]  ;;  %975 = vrot.lane.b32.xlu1 %v8517_v63, %s7944_s7 }
  0xf9   :  { %2429 = vst.msk [vmem:[#allocation3 + $0x20] sm:$0xff] %vm1145_vm3, %v2239_v34  ;;  %3495 = vmatprep.mubr.f32.mxu0 %v3005_v35 }
  0xfa   :  { %1873 = vrot.lane.b32.xlu0 %v8569_v19, %s7941_s26  ;;  %v573_v53 = vpop.permute.xlu1 %572  ;;  %v3004_v62 = vld [vmem:[#allocation3] sm:$0xff] }
  0xfb   :  { %763 = vst.msk [vmem:[#allocation3 + $0x30] sm:$0xff] %vm760_vm2, %v573_v53  ;;  %3496 = vmatmul.mubr.f32.vlgmr.msra.gmra.mrb[0].mxu0 %v3004_v62  ;;  %v210_v53 = vld [vmem:[#allocation12 + $0xd8] sm:$0xff] }
  0xfc   :  { %v2623_v57 = vpop.permute.xlu0 %2622  ;;  %1360 = vrot.lane.b32.xlu1 %v8839_v52, %s7945_s17  ;;  %v208_v52 = vld [vmem:[#allocation12 + $0xc8] sm:$0xff]  ;;  %275 = vst.msk [vmem:[#allocation2 + $0x159] sm:$0xff] %vm73_vm0, %v210_v53 }
  0xfd   :  { %2813 = vst.msk [vmem:[#allocation3 + $0x20] sm:$0xff] %vm1530_vm4, %v2623_v57 }
  0xfe   :  { %2258 = vrot.lane.b32.xlu0 %v8605_v59, %s7944_s7  ;;  %v958_v36 = vpop.permute.xlu1 %957  ;;  %v3007_v46 = vld [vmem:[#allocation3 + $0x18] sm:$0xff]  ;;  %273 = vst.msk [vmem:[#allocation2 + $0x141] sm:$0xff] %vm73_vm0, %v208_v52 }
  0xff   :  { %1148 = vst.msk [vmem:[#allocation3 + $0x30] sm:$0xff] %vm1145_vm3, %v958_v36 }
 0x100   :  { %v1856_v63 = vpop.permute.xlu0 %1855  ;;  %592 = vrot.lane.b32.xlu1 %v8549_v12, %s7941_s26 }
 0x101   :  { %2045 = vst.msk [vmem:[#allocation3 + $0x38] sm:$0xff] %vm760_vm2, %v1856_v63  ;;  %v3048_v63 = vld [vmem:[#allocation3 + $0x160] sm:$0xff] }
 0x102   :  { %2642 = vrot.lane.b32.xlu0 %v8607_v60, %s7945_s17  ;;  %v1343_v45 = vpop.permute.xlu1 %1342  ;;  %7206 = vmatprep.mubr.msk.f32.mxu1 %vm73_vm0, %v3048_v63 }
 0x103   :  { %1533 = vst.msk [vmem:[#allocation3 + $0x30] sm:$0xff] %vm1530_vm4, %v1343_v45  ;;  %7207 = vmatmul.mubr.msk.f32.gmra.mrb[14].mxu1 %vm73_vm0, %v3051_v39  ;;  %v9002_v52 = vld [vmem:[#allocation2 + $0x159] sm:$0xff] }
 0x104   :  { %v2241_v47 = vpop.permute.xlu0 %2240  ;;  %v3008_v7 = vld [vmem:[#allocation3 + $0x20] sm:$0xff]  ;;  %977 = vrot.lane.b32.xlu1 %v8564_v18, %s7944_s7  ;;  %1686 = vst.msk [vmem:[#allocation3 + $0x290] sm:$0xff] %vm73_vm0, %v9002_v52  ;;  %v9013_v50 = vld [vmem:[#allocation2 + $0x152] sm:$0xff] }
 0x105   :  { %2430 = vst.msk [vmem:[#allocation3 + $0x38] sm:$0xff] %vm1145_vm3, %v2241_v47  ;;  %3500 = vmatprep.mubr.f32.mxu0 %v3008_v7  ;;  %v8946_v23 = vld [vmem:[#allocation2 + $0x141] sm:$0xff] }
 0x106   :  { %1875 = vrot.lane.b32.xlu0 %v8609_v26, %s7941_s26  ;;  %3501 = vmatmul.mubr.f32.gmra.mrb[2].mxu0 %v3007_v46  ;;  %v575_v10 = vpop.permute.xlu1 %574  ;;  %1684 = vst.msk [vmem:[#allocation3 + $0x260] sm:$0xff] %vm73_vm0, %v8946_v23  ;;  %v8957_v27 = vld [vmem:[#allocation2 + $0x13a] sm:$0xff]  ;;  %v8984_v36 = vld [vmem:[#allocation2 + $0x142] sm:$0xff]  ;;  %2964 = vst.msk [vmem:[#allocation3 + $0x250] sm:$0xff] %vm73_vm0, %v9013_v50 }
 0x107   :  { %764 = vst.msk [vmem:[#allocation3 + $0x48] sm:$0xff] %vm760_vm2, %v575_v10  ;;  %v9040_v58 = vld [vmem:[#allocation2 + $0x15a] sm:$0xff] }
 0x108   :  { %v2625_v12 = vpop.permute.xlu0 %2624  ;;  %1362 = vrot.lane.b32.xlu1 %v8867_v54, %s7945_s17  ;;  %2962 = vst.msk [vmem:[#allocation3 + $0x220] sm:$0xff] %vm73_vm0, %v8957_v27  ;;  %2963 = vst.msk [vmem:[#allocation3 + $0x238] sm:$0xff] %vm73_vm0, %v8984_v36 }
 0x109   :  { %2814 = vst.msk [vmem:[#allocation3 + $0x38] sm:$0xff] %vm1530_vm4, %v2625_v12  ;;  %v211_v12 = vld [vmem:[#allocation12 + $0xe0] sm:$0xff] }
 0x10a   :  { %2260 = vrot.lane.b32.xlu0 %v8630_v3, %s7944_s7  ;;  %v960_v14 = vpop.permute.xlu1 %959  ;;  %v3010_v56 = vld [vmem:[#allocation3 + $0x30] sm:$0xff]  ;;  %276 = vst.msk [vmem:[#allocation2 + $0x169] sm:$0xff] %vm73_vm0, %v211_v12  ;;  %2965 = vst.msk [vmem:[#allocation3 + $0x268] sm:$0xff] %vm73_vm0, %v9040_v58 }
 0x10b   :  { %1149 = vst.msk [vmem:[#allocation3 + $0x48] sm:$0xff] %vm1145_vm3, %v960_v14 }
 0x10c   :  { %v1858_v18 = vpop.permute.xlu0 %1857  ;;  %594 = vrot.lane.b32.xlu1 %v8562_v17, %s7941_s26 }
 0x10d   :  { %2046 = vst.msk [vmem:[#allocation3 + $0x50] sm:$0xff] %vm760_vm2, %v1858_v18 }
 0x10e   :  { %2644 = vrot.lane.b32.xlu0 %v8632_v4, %s7945_s17  ;;  %v1345_v22 = vpop.permute.xlu1 %1344 }
 0x10f   :  { %1534 = vst.msk [vmem:[#allocation3 + $0x48] sm:$0xff] %vm1530_vm4, %v1345_v22  ;;  %v3054_v22 = vld [vmem:[#allocation3 + $0x190] sm:$0xff] }
 0x110   :  { %v2243_v20 = vpop.permute.xlu0 %2242  ;;  %v3011_v54 = vld [vmem:[#allocation3 + $0x38] sm:$0xff]  ;;  %979 = vrot.lane.b32.xlu1 %v8569_v19, %s7944_s7  ;;  %7209 = vmatprep.mubr.msk.f32.mxu1 %vm73_vm0, %v3054_v22 }
 0x111   :  { %2431 = vst.msk [vmem:[#allocation3 + $0x50] sm:$0xff] %vm1145_vm3, %v2243_v20  ;;  %3505 = vmatprep.mubr.f32.mxu0 %v3011_v54  ;;  %v212_v20 = vld [vmem:[#allocation12 + $0xe8] sm:$0xff] }
 0x112   :  { %1877 = vrot.lane.b32.xlu0 %v8614_v61, %s7941_s26  ;;  %3506 = vmatmul.mubr.f32.gmra.mrb[4].mxu0 %v3010_v56  ;;  %v577_v24 = vpop.permute.xlu1 %576  ;;  %277 = vst.msk [vmem:[#allocation2 + $0x171] sm:$0xff] %vm73_vm0, %v212_v20 }
 0x113   :  { %765 = vst.msk [vmem:[#allocation3 + $0x60] sm:$0xff] %vm760_vm2, %v577_v24 }
 0x114   :  { %v2627_v17 = vpop.permute.xlu0 %2626  ;;  %1364 = vrot.lane.b32.xlu1 %v8605_v59, %s7945_s17  ;;  %v8973_v59 = vld [vmem:[#allocation2 + $0x151] sm:$0xff] }
 0x115   :  { %2815 = vst.msk [vmem:[#allocation3 + $0x50] sm:$0xff] %vm1530_vm4, %v2627_v17  ;;  %v3057_v17 = vld [vmem:[#allocation3 + $0x1a8] sm:$0xff] }
 0x116   :  { %2262 = vrot.lane.b32.xlu0 %v8634_v5, %s7944_s7  ;;  %v962_v19 = vpop.permute.xlu1 %961  ;;  %v3013_v31 = vld [vmem:[#allocation3 + $0x48] sm:$0xff]  ;;  %1685 = vst.msk [vmem:[#allocation3 + $0x278] sm:$0xff] %vm73_vm0, %v8973_v59  ;;  %7210 = vmatmul.mubr.msk.f32.gmra.mrb[16].mxu1 %vm73_vm0, %v3057_v17 }
 0x117   :  { %1150 = vst.msk [vmem:[#allocation3 + $0x60] sm:$0xff] %vm1145_vm3, %v962_v19 }
 0x118   :  { %v1860_v34 = vpop.permute.xlu0 %1859  ;;  %596 = vrot.lane.b32.xlu1 %v8588_v32, %s7941_s26 }
 0x119   :  { %2047 = vst.msk [vmem:[#allocation3 + $0x68] sm:$0xff] %vm760_vm2, %v1860_v34  ;;  %v9069_v53 = vld [vmem:[#allocation2 + $0x16a] sm:$0xff] }
 0x11a   :  { %2646 = vrot.lane.b32.xlu0 %v8640_v6, %s7945_s17  ;;  %v1347_v57 = vpop.permute.xlu1 %1346  ;;  %2966 = vst.msk [vmem:[#allocation3 + $0x280] sm:$0xff] %vm73_vm0, %v9069_v53 }
 0x11b   :  { %1535 = vst.msk [vmem:[#allocation3 + $0x60] sm:$0xff] %vm1530_vm4, %v1347_v57 }
 0x11c   :  { %v2245_v37 = vpop.permute.xlu0 %2244  ;;  %v3014_v35 = vld [vmem:[#allocation3 + $0x50] sm:$0xff]  ;;  %981 = vrot.lane.b32.xlu1 %v8609_v26, %s7944_s7 }
 0x11d   :  { %2432 = vst.msk [vmem:[#allocation3 + $0x68] sm:$0xff] %vm1145_vm3, %v2245_v37  ;;  %3510 = vmatprep.mubr.f32.mxu0 %v3014_v35  ;;  %v9058_v37 = vld [vmem:[#allocation2 + $0x171] sm:$0xff]  ;;  %v213_v35 = vld [vmem:[#allocation12 + $0xf0] sm:$0xff] }
 0x11e   :  { %1879 = vrot.lane.b32.xlu0 %v8663_v11, %s7941_s26  ;;  %3511 = vmatmul.mubr.f32.gmra.mrb[6].mxu0 %v3013_v31  ;;  %v579_v62 = vpop.permute.xlu1 %578  ;;  %278 = vst.msk [vmem:[#allocation2 + $0x181] sm:$0xff] %vm73_vm0, %v213_v35  ;;  %1688 = vst.msk [vmem:[#allocation3 + $0x2c0] sm:$0xff] %vm73_vm0, %v9058_v37 }
 0x11f   :  { %766 = vst.msk [vmem:[#allocation3 + $0x78] sm:$0xff] %vm760_vm2, %v579_v62 }
 0x120   :  { %v2629_v32 = vpop.permute.xlu0 %2628  ;;  %1366 = vrot.lane.b32.xlu1 %v8630_v3, %s7945_s17 }
 0x121   :  { %2816 = vst.msk [vmem:[#allocation3 + $0x68] sm:$0xff] %vm1530_vm4, %v2629_v32 }
 0x122   :  { %2264 = vrot.lane.b32.xlu0 %v8678_v15, %s7944_s7  ;;  %v964_v46 = vpop.permute.xlu1 %963  ;;  %v3016_v47 = vld [vmem:[#allocation3 + $0x60] sm:$0xff] }
 0x123   :  { %1151 = vst.msk [vmem:[#allocation3 + $0x78] sm:$0xff] %vm1145_vm3, %v964_v46 }
 0x124   :  { %v1862_v26 = vpop.permute.xlu0 %1861  ;;  %598 = vrot.lane.b32.xlu1 %v8607_v60, %s7941_s26 }
 0x125   :  { %2048 = vst.msk [vmem:[#allocation3 + $0x80] sm:$0xff] %vm760_vm2, %v1862_v26 }
 0x126   :  { %2648 = vrot.lane.b32.xlu0 %v8693_v21, %s7945_s17  ;;  %v1349_v3 = vpop.permute.xlu1 %1348 }
 0x127   :  { %1536 = vst.msk [vmem:[#allocation3 + $0x78] sm:$0xff] %vm1530_vm4, %v1349_v3  ;;  %v3063_v3 = vld [vmem:[#allocation3 + $0x1d8] sm:$0xff] }
 0x128   :  { %v2247_v7 = vpop.permute.xlu0 %2246  ;;  %v3017_v45 = vld [vmem:[#allocation3 + $0x68] sm:$0xff]  ;;  %983 = vrot.lane.b32.xlu1 %v8614_v61, %s7944_s7 }
 0x129   :  { %2433 = vst.msk [vmem:[#allocation3 + $0x80] sm:$0xff] %vm1145_vm3, %v2247_v7  ;;  %3515 = vmatprep.mubr.f32.mxu0 %v3017_v45  ;;  %v3060_v7 = vld [vmem:[#allocation3 + $0x1c0] sm:$0xff]  ;;  %v9094_v45 = vld [vmem:[#allocation2 + $0x172] sm:$0xff] }
 0x12a   :  { %1881 = vrot.lane.b32.xlu0 %v8709_v28, %s7941_s26  ;;  %3516 = vmatmul.mubr.f32.gmra.mrb[8].mxu0 %v3016_v47  ;;  %v581_v10 = vpop.permute.xlu1 %580  ;;  %2967 = vst.msk [vmem:[#allocation3 + $0x298] sm:$0xff] %vm73_vm0, %v9094_v45 }
 0x12b   :  { %767 = vst.msk [vmem:[#allocation3 + $0x90] sm:$0xff] %vm760_vm2, %v581_v10  ;;  %7212 = vmatprep.mubr.msk.f32.mxu1 %vm73_vm0, %v3060_v7 }
 0x12c   :  { %v2631_v60 = vpop.permute.xlu0 %2630  ;;  %1368 = vrot.lane.b32.xlu1 %v8634_v5, %s7945_s17  ;;  %v9029_v5 = vld [vmem:[#allocation2 + $0x169] sm:$0xff]  ;;  %7213 = vmatmul.mubr.msk.f32.gmra.mrb[18].mxu1 %vm73_vm0, %v3063_v3 }
 0x12d   :  { %2817 = vst.msk [vmem:[#allocation3 + $0x80] sm:$0xff] %vm1530_vm4, %v2631_v60 }
 0x12e   :  { %2266 = vrot.lane.b32.xlu0 %v8726_v48, %s7944_s7  ;;  %v966_v61 = vpop.permute.xlu1 %965  ;;  %v3019_v18 = vld [vmem:[#allocation3 + $0x78] sm:$0xff]  ;;  %1687 = vst.msk [vmem:[#allocation3 + $0x2a8] sm:$0xff] %vm73_vm0, %v9029_v5 }
 0x12f   :  { %1152 = vst.msk [vmem:[#allocation3 + $0x90] sm:$0xff] %vm1145_vm3, %v966_v61 }
 0x130   :  { %v1864_v13 = vpop.permute.xlu0 %1863  ;;  %600 = vrot.lane.b32.xlu1 %v8632_v4, %s7941_s26 }
 0x131   :  { %2049 = vst.msk [vmem:[#allocation3 + $0x98] sm:$0xff] %vm760_vm2, %v1864_v13 }
 0x132   :  { %2650 = vrot.lane.b32.xlu0 %v8735_v49, %s7945_s17  ;;  %v1351_v56 = vpop.permute.xlu1 %1350 }
 0x133   :  { %1537 = vst.msk [vmem:[#allocation3 + $0x90] sm:$0xff] %vm1530_vm4, %v1351_v56 }
 0x134   :  { %v2249_v14 = vpop.permute.xlu0 %2248  ;;  %v3020_v16 = vld [vmem:[#allocation3 + $0x80] sm:$0xff]  ;;  %985 = vrot.lane.b32.xlu1 %v8663_v11, %s7944_s7 }
 0x135   :  { %2434 = vst.msk [vmem:[#allocation3 + $0x98] sm:$0xff] %vm1145_vm3, %v2249_v14  ;;  %3520 = vmatprep.mubr.f32.mxu0 %v3020_v16 }
 0x136   :  { %1883 = vrot.lane.b32.xlu0 %v8744_v30, %s7941_s26  ;;  %3521 = vmatmul.mubr.f32.gmra.mrb[10].mxu0 %v3019_v18  ;;  %v583_v54 = vpop.permute.xlu1 %582 }
 0x137   :  { %768 = vst.msk [vmem:[#allocation3 + $0xa8] sm:$0xff] %vm760_vm2, %v583_v54 }
 0x138   :  { %v2633_v4 = vpop.permute.xlu0 %2632  ;;  %1370 = vrot.lane.b32.xlu1 %v8678_v15, %s7945_s17 }
 0x139   :  { %2818 = vst.msk [vmem:[#allocation3 + $0x98] sm:$0xff] %vm1530_vm4, %v2633_v4 }
 0x13a   :  { %2268 = vrot.lane.b32.xlu0 %v8752_v1, %s7944_s7  ;;  %v968_v24 = vpop.permute.xlu1 %967  ;;  %v3022_v34 = vld [vmem:[#allocation3 + $0x90] sm:$0xff] }
 0x13b   :  { %1153 = vst.msk [vmem:[#allocation3 + $0xa8] sm:$0xff] %vm1145_vm3, %v968_v24  ;;  %v3066_v24 = vld [vmem:[#allocation3 + $0x1f0] sm:$0xff] }
 0x13c   :  { %v1866_v11 = vpop.permute.xlu0 %1865  ;;  %602 = vrot.lane.b32.xlu1 %v8640_v6, %s7941_s26  ;;  %7215 = vmatprep.mubr.msk.f32.mxu1 %vm73_vm0, %v3066_v24 }
 0x13d   :  { %2050 = vst.msk [vmem:[#allocation3 + $0xb0] sm:$0xff] %vm760_vm2, %v1866_v11 }
 0x13e   :  { %2652 = vrot.lane.b32.xlu0 %v8760_v40, %s7945_s17  ;;  %v1353_v15 = vpop.permute.xlu1 %1352 }
 0x13f   :  { %1538 = vst.msk [vmem:[#allocation3 + $0xa8] sm:$0xff] %vm1530_vm4, %v1353_v15 }
 0x140   :  { %v2251_v19 = vpop.permute.xlu0 %2250  ;;  %v3023_v31 = vld [vmem:[#allocation3 + $0x98] sm:$0xff]  ;;  %987 = vrot.lane.b32.xlu1 %v8709_v28, %s7944_s7 }
 0x141   :  { %2435 = vst.msk [vmem:[#allocation3 + $0xb0] sm:$0xff] %vm1145_vm3, %v2251_v19  ;;  %3525 = vmatprep.mubr.f32.mxu0 %v3023_v31 }
 0x142   :  { %1885 = vrot.lane.b32.xlu0 %v8769_v0, %s7941_s26  ;;  %3526 = vmatmul.mubr.f32.gmra.mrb[12].mxu0 %v3022_v34  ;;  %v585_v57 = vpop.permute.xlu1 %584 }
 0x143   :  { %769 = vst.msk [vmem:[#allocation3 + $0xc0] sm:$0xff] %vm760_vm2, %v585_v57 }
 0x144   :  { %v2635_v6 = vpop.permute.xlu0 %2634  ;;  %1372 = vrot.lane.b32.xlu1 %v8726_v48, %s7945_s17  ;;  %v214_v48 = vld [vmem:[#allocation12 + $0xf8] sm:$0xff] }
 0x145   :  { %2819 = vst.msk [vmem:[#allocation3 + $0xb0] sm:$0xff] %vm1530_vm4, %v2635_v6  ;;  %v215_v6 = vld [vmem:[#allocation12 + $0x100] sm:$0xff] }
 0x146   :  { %2270 = vrot.lane.b32.xlu0 %v8779_v2, %s7944_s7  ;;  %v970_v28 = vpop.permute.xlu1 %969  ;;  %v3025_v62 = vld [vmem:[#allocation3 + $0xa8] sm:$0xff]  ;;  %279 = vst.msk [vmem:[#allocation2 + $0x189] sm:$0xff] %vm73_vm0, %v214_v48  ;;  %280 = vst.msk [vmem:[#allocation2 + $0x1c9] sm:$0xff] %vm73_vm0, %v215_v6  ;;  %v217_v48 = vld [vmem:[#allocation12 + $0x110] sm:$0xff] }
 0x147   :  { %1154 = vst.msk [vmem:[#allocation3 + $0xc0] sm:$0xff] %vm1145_vm3, %v970_v28 }
 0x148   :  { %v1868_v32 = vpop.permute.xlu0 %1867  ;;  %604 = vrot.lane.b32.xlu1 %v8693_v21, %s7941_s26  ;;  %v9091_v21 = vld [vmem:[#allocation2 + $0x108] sm:$0xff]  ;;  %282 = vst.msk [vmem:[#allocation2 + $0x1e1] sm:$0xff] %vm73_vm0, %v217_v48 }
 0x149   :  { %2051 = vst.msk [vmem:[#allocation3 + $0xc8] sm:$0xff] %vm760_vm2, %v1868_v32  ;;  %v216_v32 = vld [vmem:[#allocation12 + $0x108] sm:$0xff] }
 0x14a   :  { %2654 = vrot.lane.b32.xlu0 %v8787_v43, %s7945_s17  ;;  %v1355_v26 = vpop.permute.xlu1 %1354  ;;  %281 = vst.msk [vmem:[#allocation2 + $0x1d1] sm:$0xff] %vm73_vm0, %v216_v32 }
 0x14b   :  { %1539 = vst.msk [vmem:[#allocation3 + $0xc0] sm:$0xff] %vm1530_vm4, %v1355_v26 }
 0x14c   :  { %v2253_v63 = vpop.permute.xlu0 %2252  ;;  %v3026_v39 = vld [vmem:[#allocation3 + $0xb0] sm:$0xff]  ;;  %989 = vrot.lane.b32.xlu1 %v8744_v30, %s7944_s7 }
 0x14d   :  { %2436 = vst.msk [vmem:[#allocation3 + $0xc8] sm:$0xff] %vm1145_vm3, %v2253_v63  ;;  %3530 = vmatprep.mubr.f32.mxu0 %v3026_v39  ;;  %v9112_v61 = vld [vmem:[#allocation2 + $0x189] sm:$0xff] }
 0x14e   :  { %1887 = vrot.lane.b32.xlu0 %v8796_v44, %s7941_s26  ;;  %3531 = vmatmul.mubr.f32.gmra.mrb[14].mxu0 %v3025_v62  ;;  %v587_v47 = vpop.permute.xlu1 %586  ;;  %1690 = vst.msk [vmem:[#allocation3 + $0x2f0] sm:$0xff] %vm73_vm0, %v9112_v61  ;;  %v9124_v16 = vld [vmem:[#allocation2 + $0x182] sm:$0xff]  ;;  %v9150_v34 = vld [vmem:[#allocation2 + $0x18a] sm:$0xff] }
 0x14f   :  { %770 = vst.msk [vmem:[#allocation3 + $0xd8] sm:$0xff] %vm760_vm2, %v587_v47  ;;  %v334_v39 = vld [vmem:[#allocation2 + $0x108] sm:$0xff] }
 0x150   :  { %v2637_v46 = vpop.permute.xlu0 %2636  ;;  %1374 = vrot.lane.b32.xlu1 %v8752_v1, %s7945_s17  ;;  %2968 = vst.msk [vmem:[#allocation3 + $0x2b0] sm:$0xff] %vm73_vm0, %v9124_v16  ;;  %2969 = vst.msk [vmem:[#allocation3 + $0x2c8] sm:$0xff] %vm73_vm0, %v9150_v34 }
 0x151   :  { %2820 = vst.msk [vmem:[#allocation3 + $0xc8] sm:$0xff] %vm1530_vm4, %v2637_v46 }
 0x152   :  { %2272 = vrot.lane.b32.xlu0 %v9091_v21, %s7944_s7  ;;  %v972_v12 = vpop.permute.xlu1 %971  ;;  %v3028_v60 = vld [vmem:[#allocation3 + $0xc0] sm:$0xff]  ;;  %398 = vst.msk [vmem:[#allocation3 + $0x210] sm:$0xff] %vm73_vm0, %v334_v39 }
 0x153   :  { %1155 = vst.msk [vmem:[#allocation3 + $0xd8] sm:$0xff] %vm1145_vm3, %v972_v12  ;;  %v335_v12 = vld [vmem:[#allocation2 + $0x110] sm:$0xff] }
 0x154   :  { %v1870_v30 = vpop.permute.xlu0 %1869  ;;  %606 = vrot.lane.b32.xlu1 %v8735_v49, %s7941_s26  ;;  %v9121_v49 = vld [vmem:[#allocation2 + $0x110] sm:$0xff]  ;;  %399 = vst.msk [vmem:[#allocation3 + $0x228] sm:$0xff] %vm73_vm0, %v335_v12 }
 0x155   :  { %2052 = vst.msk [vmem:[#allocation3 + $0xe0] sm:$0xff] %vm760_vm2, %v1870_v30 }
 0x156   :  { %2656 = vrot.lane.b32.xlu0 %v8808_v42, %s7945_s17  ;;  %v1357_v1 = vpop.permute.xlu1 %1356 }
 0x157   :  { %1540 = vst.msk [vmem:[#allocation3 + $0xd8] sm:$0xff] %vm1530_vm4, %v1357_v1  ;;  %v9211_v1 = vld [vmem:[#allocation2 + $0x138] sm:$0xff] }
 0x158   :  { %v2255_v10 = vpop.permute.xlu0 %2254  ;;  %v3029_v13 = vld [vmem:[#allocation3 + $0xc8] sm:$0xff]  ;;  %991 = vrot.lane.b32.xlu1 %v8769_v0, %s7944_s7 }
 0x159   :  { %2437 = vst.msk [vmem:[#allocation3 + $0xe0] sm:$0xff] %vm1145_vm3, %v2255_v10  ;;  %3535 = vmatprep.mubr.f32.mxu0 %v3029_v13  ;;  %v9199_v10 = vld [vmem:[#allocation2 + $0x1e1] sm:$0xff] }
 0x15a   :  { %1889 = vrot.lane.b32.xlu0 %v8817_v8, %s7941_s26  ;;  %3536 = vmatmul.mubr.f32.gmra.mrb[16].mxu0 %v3028_v60  ;;  %v589_v14 = vpop.permute.xlu1 %588  ;;  %v218_v13 = vld [vmem:[#allocation12 + $0x118] sm:$0xff]  ;;  %1693 = vst.msk [vmem:[#allocation3 + $0x338] sm:$0xff] %vm73_vm0, %v9199_v10 }
 0x15b   :  { %771 = vst.msk [vmem:[#allocation3 + $0xf0] sm:$0xff] %vm760_vm2, %v589_v14 }
 0x15c   :  { %v2639_v18 = vpop.permute.xlu0 %2638  ;;  %1376 = vrot.lane.b32.xlu1 %v8779_v2, %s7945_s17  ;;  %v9145_v2 = vld [vmem:[#allocation2 + $0x120] sm:$0xff]  ;;  %283 = vst.msk [vmem:[#allocation2 + $0x1e9] sm:$0xff] %vm73_vm0, %v218_v13 }
 0x15d   :  { %2821 = vst.msk [vmem:[#allocation3 + $0xe0] sm:$0xff] %vm1530_vm4, %v2639_v18 }
 0x15e   :  { %2274 = vrot.lane.b32.xlu0 %v9121_v49, %s7944_s7  ;;  %v974_v56 = vpop.permute.xlu1 %973  ;;  %v3031_v20 = vld [vmem:[#allocation3 + $0xd8] sm:$0xff] }
 0x15f   :  { %1156 = vst.msk [vmem:[#allocation3 + $0xf0] sm:$0xff] %vm1145_vm3, %v974_v56  ;;  %v3075_v56 = vld [vmem:[#allocation3 + $0x238] sm:$0xff] }
 0x160   :  { %v1872_v0 = vpop.permute.xlu0 %1871  ;;  %608 = vrot.lane.b32.xlu1 %v8760_v40, %s7941_s26 }
 0x161   :  { %2053 = vst.msk [vmem:[#allocation3 + $0xf8] sm:$0xff] %vm760_vm2, %v1872_v0  ;;  %v9148_v11 = vpop.f32.mrb[0].mxu1  ;;  %v3072_v0 = vld [vmem:[#allocation3 + $0x220] sm:$0xff] }
 0x162   :  { %2658 = vrot.lane.b32.xlu0 %v8830_v51, %s7945_s17  ;;  %v1359_v22 = vpop.permute.xlu1 %1358  ;;  %v9155_v19 = vpop.f32.mrb[1].mxu1 }
 0x163   :  { %1541 = vst.msk [vmem:[#allocation3 + $0xf0] sm:$0xff] %vm1530_vm4, %v1359_v22  ;;  %v9235_v24 = vld [vmem:[#allocation2 + $0x1e9] sm:$0xff] }
 0x164   :  { %v2257_v4 = vpop.permute.xlu0 %2256  ;;  %v3032_v54 = vld [vmem:[#allocation3 + $0xe0] sm:$0xff]  ;;  %993 = vrot.lane.b32.xlu1 %v8796_v44, %s7944_s7  ;;  %v3069_v44 = vld [vmem:[#allocation3 + $0x208] sm:$0xff]  ;;  %1694 = vst.msk [vmem:[#allocation3 + $0x350] sm:$0xff] %vm73_vm0, %v9235_v24 }
 0x165   :  { %2438 = vst.msk [vmem:[#allocation3 + $0xf8] sm:$0xff] %vm1145_vm3, %v2257_v4  ;;  %3540 = vmatprep.mubr.f32.mxu0 %v3032_v54  ;;  %7216 = vmatmul.mubr.msk.f32.gmra.mrb[20].mxu1 %vm73_vm0, %v3069_v44  ;;  %v9164_v35 = vpop.f32.mrb[2].mxu1  ;;  %v9227_v4 = vld [vmem:[#allocation2 + $0x1d0] sm:$0xff]  ;;  %v9252_v32 = vld [vmem:[#allocation2 + $0x1e2] sm:$0xff] }
 0x166   :  { %1891 = vrot.lane.b32.xlu0 %v8841_v38, %s7941_s26  ;;  %3541 = vmatmul.mubr.f32.gmra.mrb[18].mxu0 %v3031_v20  ;;  %v591_v40 = vpop.permute.xlu1 %590  ;;  %v9169_v57 = vpop.f32.mrb[3].mxu1  ;;  %411 = vst.msk [vmem:[#allocation3 + $0x348] sm:$0xff] %vm73_vm0, %v9227_v4  ;;  %v219_v44 = vld [vmem:[#allocation12 + $0x120] sm:$0xff]  ;;  %2972 = vst.msk [vmem:[#allocation3 + $0x310] sm:$0xff] %vm73_vm0, %v9252_v32 }
 0x167   :  { %772 = vst.msk [vmem:[#allocation3 + $0x108] sm:$0xff] %vm760_vm2, %v591_v40  ;;  %7218 = vmatprep.mubr.msk.f32.mxu1 %vm73_vm0, %v3072_v0  ;;  %v338_v0 = vld [vmem:[#allocation2 + $0x138] sm:$0xff] }
 0x168   :  { %v2641_v17 = vpop.permute.xlu0 %2640  ;;  %1378 = vrot.lane.b32.xlu1 %v9091_v21, %s7945_s17  ;;  %284 = vst.msk [vmem:[#allocation2 + $0x1f9] sm:$0xff] %vm73_vm0, %v219_v44  ;;  %402 = vst.msk [vmem:[#allocation3 + $0x270] sm:$0xff] %vm73_vm0, %v338_v0 }
 0x169   :  { %2822 = vst.msk [vmem:[#allocation3 + $0xf8] sm:$0xff] %vm1530_vm4, %v2641_v17  ;;  %7219 = vmatmul.mubr.msk.f32.gmra.mrb[22].mxu1 %vm73_vm0, %v3075_v56  ;;  %v336_v17 = vld [vmem:[#allocation2 + $0x120] sm:$0xff] }
 0x16a   :  { %2276 = vrot.lane.b32.xlu0 %v9145_v2, %s7944_s7  ;;  %v976_v15 = vpop.permute.xlu1 %975  ;;  %v3034_v28 = vld [vmem:[#allocation3 + $0xf0] sm:$0xff]  ;;  %400 = vst.msk [vmem:[#allocation3 + $0x240] sm:$0xff] %vm73_vm0, %v336_v17 }
 0x16b   :  { %1157 = vst.msk [vmem:[#allocation3 + $0x108] sm:$0xff] %vm1145_vm3, %v976_v15 }
 0x16c   :  { %v1874_v31 = vpop.permute.xlu0 %1873  ;;  %610 = vrot.lane.b32.xlu1 %v8787_v43, %s7941_s26  ;;  %v9183_v43 = vld [vmem:[#allocation2 + $0x128] sm:$0xff] }
 0x16d   :  { %2054 = vst.msk [vmem:[#allocation3 + $0x110] sm:$0xff] %vm760_vm2, %v1874_v31  ;;  %v9247_v31 = vld [vmem:[#allocation2 + $0x140] sm:$0xff] }
 0x16e   :  { %2660 = vrot.lane.b32.xlu0 %v8857_v29, %s7945_s17  ;;  %v1361_v26 = vpop.permute.xlu1 %1360 }
 0x16f   :  { %1542 = vst.msk [vmem:[#allocation3 + $0x108] sm:$0xff] %vm1530_vm4, %v1361_v26  ;;  %v337_v26 = vld [vmem:[#allocation2 + $0x128] sm:$0xff] }
 0x170   :  { %v2259_v62 = vpop.permute.xlu0 %2258  ;;  %v3035_v63 = vld [vmem:[#allocation3 + $0xf8] sm:$0xff]  ;;  %995 = vrot.lane.b32.xlu1 %v8817_v8, %s7944_s7  ;;  %401 = vst.msk [vmem:[#allocation3 + $0x258] sm:$0xff] %vm73_vm0, %v337_v26  ;;  %v3084_v26 = vld [vmem:[#allocation3 + $0x280] sm:$0xff] }
 0x171   :  { %2439 = vst.msk [vmem:[#allocation3 + $0x110] sm:$0xff] %vm1145_vm3, %v2259_v62  ;;  %3545 = vmatprep.mubr.f32.mxu0 %v3035_v63 }
 0x172   :  { %1893 = vrot.lane.b32.xlu0 %v8869_v25, %s7941_s26  ;;  %3546 = vmatmul.mubr.f32.gmra.mrb[20].mxu0 %v3034_v28  ;;  %v593_v46 = vpop.permute.xlu1 %592 }
 0x173   :  { %773 = vst.msk [vmem:[#allocation3 + $0x120] sm:$0xff] %vm760_vm2, %v593_v46  ;;  %v9279_v46 = vld [vmem:[#allocation2 + $0x150] sm:$0xff] }
 0x174   :  { %v2643_v21 = vpop.permute.xlu0 %2642  ;;  %1380 = vrot.lane.b32.xlu1 %v9121_v49, %s7945_s17 }
 0x175   :  { %2823 = vst.msk [vmem:[#allocation3 + $0x110] sm:$0xff] %vm1530_vm4, %v2643_v21 }
 0x176   :  { %2278 = vrot.lane.b32.xlu0 %v9183_v43, %s7944_s7  ;;  %v978_v7 = vpop.permute.xlu1 %977  ;;  %v3037_v8 = vld [vmem:[#allocation3 + $0x108] sm:$0xff] }
 0x177   :  { %1158 = vst.msk [vmem:[#allocation3 + $0x120] sm:$0xff] %vm1145_vm3, %v978_v7 }
 0x178   :  { %v1876_v47 = vpop.permute.xlu0 %1875  ;;  %612 = vrot.lane.b32.xlu1 %v8808_v42, %s7941_s26  ;;  %v9204_v42 = vpop.f32.mrb[4].mxu1 }
 0x179   :  { %2055 = vst.msk [vmem:[#allocation3 + $0x128] sm:$0xff] %vm760_vm2, %v1876_v47  ;;  %v9213_v49 = vpop.f32.mrb[5].mxu1 }
 0x17a   :  { %2662 = vrot.lane.b32.xlu0 %v8888_v33, %s7945_s17  ;;  %v1363_v60 = vpop.permute.xlu1 %1362 }
 0x17b   :  { %1543 = vst.msk [vmem:[#allocation3 + $0x120] sm:$0xff] %vm1530_vm4, %v1363_v60 }
 0x17c   :  { %v2261_v3 = vpop.permute.xlu0 %2260  ;;  %v3038_v30 = vld [vmem:[#allocation3 + $0x110] sm:$0xff]  ;;  %997 = vrot.lane.b32.xlu1 %v8841_v38, %s7944_s7 }
 0x17d   :  { %2440 = vst.msk [vmem:[#allocation3 + $0x128] sm:$0xff] %vm1145_vm3, %v2261_v3  ;;  %3550 = vmatprep.mubr.f32.mxu0 %v3038_v30  ;;  %v3078_v3 = vld [vmem:[#allocation3 + $0x250] sm:$0xff] }
 0x17e   :  { %1895 = vrot.lane.b32.xlu0 %v8899_v41, %s7941_s26  ;;  %3551 = vmatmul.mubr.f32.gmra.mrb[22].mxu0 %v3037_v8  ;;  %v595_v14 = vpop.permute.xlu1 %594  ;;  %v9286_v30 = vld [vmem:[#allocation2 + $0x1ea] sm:$0xff] }
 0x17f   :  { %774 = vst.msk [vmem:[#allocation3 + $0x138] sm:$0xff] %vm760_vm2, %v595_v14  ;;  %7221 = vmatprep.mubr.msk.f32.mxu1 %vm73_vm0, %v3078_v3 }
 0x180   :  { %v2645_v18 = vpop.permute.xlu0 %2644  ;;  %1382 = vrot.lane.b32.xlu1 %v9145_v2, %s7945_s17  ;;  %2973 = vst.msk [vmem:[#allocation3 + $0x328] sm:$0xff] %vm73_vm0, %v9286_v30 }
 0x181   :  { %2824 = vst.msk [vmem:[#allocation3 + $0x128] sm:$0xff] %vm1530_vm4, %v2645_v18 }
 0x182   :  { %2280 = vrot.lane.b32.xlu0 %v9211_v1, %s7944_s7  ;;  %v980_v20 = vpop.permute.xlu1 %979  ;;  %v3040_v54 = vld [vmem:[#allocation3 + $0x120] sm:$0xff] }
 0x183   :  { %1159 = vst.msk [vmem:[#allocation3 + $0x138] sm:$0xff] %vm1145_vm3, %v980_v20 }
 0x184   :  { %v1878_v38 = vpop.permute.xlu0 %1877  ;;  %614 = vrot.lane.b32.xlu1 %v8830_v51, %s7941_s26  ;;  %v9240_v51 = vld [vmem:[#allocation2 + $0x1c9] sm:$0xff] }
 0x185   :  { %2056 = vst.msk [vmem:[#allocation3 + $0x140] sm:$0xff] %vm760_vm2, %v1878_v38  ;;  %v221_v38 = vld [vmem:[#allocation12 + $0x130] sm:$0xff] }
 0x186   :  { %2664 = vrot.lane.b32.xlu0 %v8916_v9, %s7945_s17  ;;  %v1365_v40 = vpop.permute.xlu1 %1364  ;;  %1691 = vst.msk [vmem:[#allocation3 + $0x308] sm:$0xff] %vm73_vm0, %v9240_v51  ;;  %286 = vst.msk [vmem:[#allocation2 + $0x211] sm:$0xff] %vm73_vm0, %v221_v38 }
 0x187   :  { %1544 = vst.msk [vmem:[#allocation3 + $0x138] sm:$0xff] %vm1530_vm4, %v1365_v40 }
 0x188   :  { %v2263_v22 = vpop.permute.xlu0 %2262  ;;  %v3041_v2 = vld [vmem:[#allocation3 + $0x128] sm:$0xff]  ;;  %999 = vrot.lane.b32.xlu1 %v8869_v25, %s7944_s7 }
 0x189   :  { %2441 = vst.msk [vmem:[#allocation3 + $0x140] sm:$0xff] %vm1145_vm3, %v2263_v22  ;;  %3555 = vmatprep.mubr.f32.mxu0 %v3041_v2 }
 0x18a   :  { %1897 = vrot.lane.b32.xlu0 %v8927_v55, %s7941_s26  ;;  %3556 = vmatmul.mubr.f32.gmra.mrb[24].mxu0 %v3040_v54  ;;  %v597_v6 = vpop.permute.xlu1 %596 }
 0x18b   :  { %775 = vst.msk [vmem:[#allocation3 + $0x150] sm:$0xff] %vm760_vm2, %v597_v6 }
 0x18c   :  { %v2647_v15 = vpop.permute.xlu0 %2646  ;;  %1384 = vrot.lane.b32.xlu1 %v9183_v43, %s7945_s17  ;;  %v220_v43 = vld [vmem:[#allocation12 + $0x128] sm:$0xff]  ;;  %v9272_v21 = vpop.f32.mrb[6].mxu1 }
 0x18d   :  { %2825 = vst.msk [vmem:[#allocation3 + $0x140] sm:$0xff] %vm1530_vm4, %v2647_v15  ;;  %v9281_v47 = vpop.f32.mrb[7].mxu1  ;;  %v339_v15 = vld [vmem:[#allocation2 + $0x140] sm:$0xff] }
 0x18e   :  { %2282 = vrot.lane.b32.xlu0 %v9247_v31, %s7944_s7  ;;  %v982_v28 = vpop.permute.xlu1 %981  ;;  %v3043_v62 = vld [vmem:[#allocation3 + $0x138] sm:$0xff]  ;;  %285 = vst.msk [vmem:[#allocation2 + $0x201] sm:$0xff] %vm73_vm0, %v220_v43  ;;  %403 = vst.msk [vmem:[#allocation3 + $0x288] sm:$0xff] %vm73_vm0, %v339_v15 }
 0x18f   :  { %1160 = vst.msk [vmem:[#allocation3 + $0x150] sm:$0xff] %vm1145_vm3, %v982_v28  ;;  %v9347_v28 = vld [vmem:[#allocation2 + $0x168] sm:$0xff]  ;;  %v3087_v43 = vld [vmem:[#allocation3 + $0x298] sm:$0xff] }
 0x190   :  { %v1880_v25 = vpop.permute.xlu0 %1879  ;;  %616 = vrot.lane.b32.xlu1 %v8857_v29, %s7941_s26  ;;  %v9274_v29 = vld [vmem:[#allocation2 + $0x1d1] sm:$0xff] }
 0x191   :  { %2057 = vst.msk [vmem:[#allocation3 + $0x158] sm:$0xff] %vm760_vm2, %v1880_v25  ;;  %v222_v25 = vld [vmem:[#allocation12 + $0x138] sm:$0xff] }
 0x192   :  { %2666 = vrot.lane.b32.xlu0 %v8946_v23, %s7945_s17  ;;  %v1367_v48 = vpop.permute.xlu1 %1366  ;;  %1692 = vst.msk [vmem:[#allocation3 + $0x320] sm:$0xff] %vm73_vm0, %v9274_v29  ;;  %287 = vst.msk [vmem:[#allocation2 + $0x219] sm:$0xff] %vm73_vm0, %v222_v25 }
 0x193   :  { %1545 = vst.msk [vmem:[#allocation3 + $0x150] sm:$0xff] %vm1530_vm4, %v1367_v48 }
 0x194   :  { %v2265_v63 = vpop.permute.xlu0 %2264  ;;  %v3044_v39 = vld [vmem:[#allocation3 + $0x140] sm:$0xff]  ;;  %1001 = vrot.lane.b32.xlu1 %v8899_v41, %s7944_s7  ;;  %v3081_v41 = vld [vmem:[#allocation3 + $0x268] sm:$0xff] }
 0x195   :  { %2442 = vst.msk [vmem:[#allocation3 + $0x158] sm:$0xff] %vm1145_vm3, %v2265_v63  ;;  %3560 = vmatprep.mubr.f32.mxu0 %v3044_v39  ;;  %7222 = vmatmul.mubr.msk.f32.gmra.mrb[24].mxu1 %vm73_vm0, %v3081_v41  ;;  %v9305_v56 = vld [vmem:[#allocation2 + $0x201] sm:$0xff] }
 0x196   :  { %1899 = vrot.lane.b32.xlu0 %v8957_v27, %s7941_s26  ;;  %3561 = vmatmul.mubr.f32.gmra.mrb[26].mxu0 %v3043_v62  ;;  %v599_v8 = vpop.permute.xlu1 %598  ;;  %1696 = vst.msk [vmem:[#allocation3 + $0x380] sm:$0xff] %vm73_vm0, %v9305_v56  ;;  %v9318_v22 = vld [vmem:[#allocation2 + $0x1fa] sm:$0xff]  ;;  %v9352_v48 = vld [vmem:[#allocation2 + $0x202] sm:$0xff] }
 0x197   :  { %776 = vst.msk [vmem:[#allocation3 + $0x168] sm:$0xff] %vm760_vm2, %v599_v8  ;;  %7224 = vmatprep.mubr.msk.f32.mxu1 %vm73_vm0, %v3084_v26 }
 0x198   :  { %v2649_v7 = vpop.permute.xlu0 %2648  ;;  %1386 = vrot.lane.b32.xlu1 %v9211_v1, %s7945_s17  ;;  %2974 = vst.msk [vmem:[#allocation3 + $0x340] sm:$0xff] %vm73_vm0, %v9318_v22  ;;  %2975 = vst.msk [vmem:[#allocation3 + $0x358] sm:$0xff] %vm73_vm0, %v9352_v48 }
 0x199   :  { %2826 = vst.msk [vmem:[#allocation3 + $0x158] sm:$0xff] %vm1530_vm4, %v2649_v7  ;;  %7225 = vmatmul.mubr.msk.f32.gmra.mrb[26].mxu1 %vm73_vm0, %v3087_v43  ;;  %v9384_v0 = vld [vmem:[#allocation2 + $0x212] sm:$0xff]  ;;  %v9414_v25 = vld [vmem:[#allocation2 + $0x21a] sm:$0xff] }
 0x19a   :  { %2284 = vrot.lane.b32.xlu0 %v9279_v46, %s7944_s7  ;;  %v984_v60 = vpop.permute.xlu1 %983  ;;  %v3046_v13 = vld [vmem:[#allocation3 + $0x150] sm:$0xff]  ;;  %2976 = vst.msk [vmem:[#allocation3 + $0x370] sm:$0xff] %vm73_vm0, %v9384_v0  ;;  %2977 = vst.msk [vmem:[#allocation3 + $0x388] sm:$0xff] %vm73_vm0, %v9414_v25 }
 0x19b   :  { %1161 = vst.msk [vmem:[#allocation3 + $0x168] sm:$0xff] %vm1145_vm3, %v984_v60  ;;  %v9371_v60 = vld [vmem:[#allocation2 + $0x219] sm:$0xff] }
 0x19c   :  { %v1882_v12 = vpop.permute.xlu0 %1881  ;;  %618 = vrot.lane.b32.xlu1 %v8888_v33, %s7941_s26  ;;  %v9315_v33 = vld [vmem:[#allocation2 + $0x158] sm:$0xff]  ;;  %1698 = vst.msk [vmem:[#allocation3 + $0x3b0] sm:$0xff] %vm73_vm0, %v9371_v60 }
 0x19d   :  { %2058 = vst.msk [vmem:[#allocation3 + $0x170] sm:$0xff] %vm760_vm2, %v1882_v12  ;;  %v340_v12 = vld [vmem:[#allocation2 + $0x150] sm:$0xff] }
 0x19e   :  { %2668 = vrot.lane.b32.xlu0 %v8973_v59, %s7945_s17  ;;  %v1369_v1 = vpop.permute.xlu1 %1368  ;;  %404 = vst.msk [vmem:[#allocation3 + $0x2a0] sm:$0xff] %vm73_vm0, %v340_v12 }
 0x19f   :  { %1546 = vst.msk [vmem:[#allocation3 + $0x168] sm:$0xff] %vm1530_vm4, %v1369_v1 }
 0x1a0   :  { %v2267_v18 = vpop.permute.xlu0 %2266  ;;  %v3047_v14 = vld [vmem:[#allocation3 + $0x158] sm:$0xff]  ;;  %1003 = vrot.lane.b32.xlu1 %v8927_v55, %s7944_s7 }
 0x1a1   :  { %2443 = vst.msk [vmem:[#allocation3 + $0x170] sm:$0xff] %vm1145_vm3, %v2267_v18  ;;  %3565 = vmatprep.mubr.f32.mxu0 %v3047_v14 }
 0x1a2   :  { %1901 = vrot.lane.b32.xlu0 %v8984_v36, %s7941_s26  ;;  %3566 = vmatmul.mubr.f32.gmra.mrb[28].mxu0 %v3046_v13  ;;  %v601_v54 = vpop.permute.xlu1 %600  ;;  %v223_v13 = vld [vmem:[#allocation12 + $0x140] sm:$0xff] }
 0x1a3   :  { %777 = vst.msk [vmem:[#allocation3 + $0x180] sm:$0xff] %vm760_vm2, %v601_v54 }
 0x1a4   :  { %v2651_v20 = vpop.permute.xlu0 %2650  ;;  %1388 = vrot.lane.b32.xlu1 %v9247_v31, %s7945_s17  ;;  %v9335_v31 = vld [vmem:[#allocation2 + $0x211] sm:$0xff]  ;;  %288 = vst.msk [vmem:[#allocation2 + $0x229] sm:$0xff] %vm73_vm0, %v223_v13 }
 0x1a5   :  { %2827 = vst.msk [vmem:[#allocation3 + $0x170] sm:$0xff] %vm1530_vm4, %v2651_v20 }
 0x1a6   :  { %2286 = vrot.lane.b32.xlu0 %v9315_v33, %s7944_s7  ;;  %v986_v2 = vpop.permute.xlu1 %985  ;;  %v3049_v17 = vld [vmem:[#allocation3 + $0x168] sm:$0xff]  ;;  %1697 = vst.msk [vmem:[#allocation3 + $0x398] sm:$0xff] %vm73_vm0, %v9335_v31 }
 0x1a7   :  { %1162 = vst.msk [vmem:[#allocation3 + $0x180] sm:$0xff] %vm1145_vm3, %v986_v2 }
 0x1a8   :  { %v1884_v55 = vpop.permute.xlu0 %1883  ;;  %620 = vrot.lane.b32.xlu1 %v8916_v9, %s7941_s26  ;;  %v9340_v9 = vpop.f32.mrb[8].mxu1 }
 0x1a9   :  { %2059 = vst.msk [vmem:[#allocation3 + $0x188] sm:$0xff] %vm760_vm2, %v1884_v55  ;;  %v9349_v62 = vpop.f32.mrb[9].mxu1  ;;  %v341_v55 = vld [vmem:[#allocation2 + $0x158] sm:$0xff] }
 0x1aa   :  { %2670 = vrot.lane.b32.xlu0 %v9002_v52, %s7945_s17  ;;  %v1371_v6 = vpop.permute.xlu1 %1370  ;;  %405 = vst.msk [vmem:[#allocation3 + $0x2b8] sm:$0xff] %vm73_vm0, %v341_v55 }
 0x1ab   :  { %1547 = vst.msk [vmem:[#allocation3 + $0x180] sm:$0xff] %vm1530_vm4, %v1371_v6  ;;  %v3090_v6 = vld [vmem:[#allocation3 + $0x2b0] sm:$0xff] }
 0x1ac   :  { %v2269_v40 = vpop.permute.xlu0 %2268  ;;  %v3050_v44 = vld [vmem:[#allocation3 + $0x170] sm:$0xff]  ;;  %1005 = vrot.lane.b32.xlu1 %v8957_v27, %s7944_s7  ;;  %7227 = vmatprep.mubr.msk.f32.mxu1 %vm73_vm0, %v3090_v6 }
 0x1ad   :  { %2444 = vst.msk [vmem:[#allocation3 + $0x188] sm:$0xff] %vm1145_vm3, %v2269_v40  ;;  %3570 = vmatprep.mubr.f32.mxu0 %v3050_v44 }
 0x1ae   :  { %1903 = vrot.lane.b32.xlu0 %v9013_v50, %s7941_s26  ;;  %3571 = vmatmul.mubr.f32.gmra.mrb[30].mxu0 %v3049_v17  ;;  %v603_v39 = vpop.permute.xlu1 %602  ;;  %v9404_v17 = vpop.f32.mrb[10].mxu1 }
 0x1af   :  { %778 = vst.msk [vmem:[#allocation3 + $0x198] sm:$0xff] %vm760_vm2, %v603_v39  ;;  %v9411_v40 = vpop.f32.mrb[11].mxu1 }
 0x1b0   :  { %v2653_v63 = vpop.permute.xlu0 %2652  ;;  %1390 = vrot.lane.b32.xlu1 %v9279_v46, %s7945_s17 }
 0x1b1   :  { %2828 = vst.msk [vmem:[#allocation3 + $0x188] sm:$0xff] %vm1530_vm4, %v2653_v63  ;;  %v3093_v63 = vld [vmem:[#allocation3 + $0x2c8] sm:$0xff] }
 0x1b2   :  { %2288 = vrot.lane.b32.xlu0 %v9347_v28, %s7944_s7  ;;  %v988_v7 = vpop.permute.xlu1 %987  ;;  %v3052_v8 = vld [vmem:[#allocation3 + $0x180] sm:$0xff]  ;;  %7228 = vmatmul.mubr.msk.f32.gmra.mrb[28].mxu1 %vm73_vm0, %v3093_v63 }
 0x1b3   :  { %1163 = vst.msk [vmem:[#allocation3 + $0x198] sm:$0xff] %vm1145_vm3, %v988_v7 }
 0x1b4   :  { %v1886_v27 = vpop.permute.xlu0 %1885  ;;  %622 = vrot.lane.b32.xlu1 %v8946_v23, %s7941_s26  ;;  %v9381_v23 = vld [vmem:[#allocation2 + $0x170] sm:$0xff] }
 0x1b5   :  { %2060 = vst.msk [vmem:[#allocation3 + $0x1a0] sm:$0xff] %vm760_vm2, %v1886_v27  ;;  %v9433_v27 = vld [vmem:[%s11923_s2] ss:$0 sm:$0xff] }
 0x1b6   :  { %2672 = vrot.lane.b32.xlu0 %v9029_v5, %s7945_s17  ;;  %v1373_v46 = vpop.permute.xlu1 %1372 }
 0x1b7   :  { %1548 = vst.msk [vmem:[#allocation3 + $0x198] sm:$0xff] %vm1530_vm4, %v1373_v46  ;;  %v225_v46 = vld [vmem:[#allocation12 + $0x150] sm:$0xff] }
 0x1b8   :  { %v2271_v3 = vpop.permute.xlu0 %2270  ;;  %v3053_v41 = vld [vmem:[#allocation3 + $0x188] sm:$0xff]  ;;  %1007 = vrot.lane.b32.xlu1 %v8984_v36, %s7944_s7  ;;  %290 = vst.msk [vmem:[#allocation2 + $0x241] sm:$0xff] %vm73_vm0, %v225_v46 }
 0x1b9   :  { %2445 = vst.msk [vmem:[#allocation3 + $0x1a0] sm:$0xff] %vm1145_vm3, %v2271_v3  ;;  %3575 = vmatprep.mubr.f32.mxu0 %v3053_v41  ;;  %v342_v3 = vld [vmem:[#allocation2 + $0x168] sm:$0xff] }
 0x1ba   :  { %1905 = vrot.lane.b32.xlu0 %v9040_v58, %s7941_s26  ;;  %3576 = vmatmul.mubr.f32.gmra.mrb[32].mxu0 %v3052_v8  ;;  %v605_v14 = vpop.permute.xlu1 %604  ;;  %406 = vst.msk [vmem:[#allocation3 + $0x2d0] sm:$0xff] %vm73_vm0, %v342_v3 }
 0x1bb   :  { %779 = vst.msk [vmem:[#allocation3 + $0x1b0] sm:$0xff] %vm760_vm2, %v605_v14  ;;  %v9449_v14 = vld [vmem:[#allocation2 + $0x188] sm:$0xff] }
 0x1bc   :  { %v2655_v18 = vpop.permute.xlu0 %2654  ;;  %1392 = vrot.lane.b32.xlu1 %v9315_v33, %s7945_s17  ;;  %v224_v33 = vld [vmem:[#allocation12 + $0x148] sm:$0xff] }
 0x1bd   :  { %2829 = vst.msk [vmem:[#allocation3 + $0x1a0] sm:$0xff] %vm1530_vm4, %v2655_v18 }
 0x1be   :  { %2290 = vrot.lane.b32.xlu0 %v9381_v23, %s7944_s7  ;;  %v990_v1 = vpop.permute.xlu1 %989  ;;  %v3055_v38 = vld [vmem:[#allocation3 + $0x198] sm:$0xff]  ;;  %289 = vst.msk [vmem:[#allocation2 + $0x231] sm:$0xff] %vm73_vm0, %v224_v33 }
 0x1bf   :  { %1164 = vst.msk [vmem:[#allocation3 + $0x1b0] sm:$0xff] %vm1145_vm3, %v990_v1 }
 0x1c0   :  { %v1888_v36 = vpop.permute.xlu0 %1887  ;;  %624 = vrot.lane.b32.xlu1 %v8973_v59, %s7941_s26  ;;  %v9409_v59 = vld [vmem:[#allocation2 + $0x180] sm:$0xff] }
 0x1c1   :  { %2061 = vst.msk [vmem:[#allocation3 + $0x1b8] sm:$0xff] %vm760_vm2, %v1888_v36 }
 0x1c2   :  { %2674 = vrot.lane.b32.xlu0 %v9058_v37, %s7945_s17  ;;  %v1375_v2 = vpop.permute.xlu1 %1374 }
 0x1c3   :  { %1549 = vst.msk [vmem:[#allocation3 + $0x1b0] sm:$0xff] %vm1530_vm4, %v1375_v2  ;;  %v2906_v2 = vld [vmem:[#allocation2 + $0x19a] sm:$0xff] }
 0x1c4   :  { %v2273_v20 = vpop.permute.xlu0 %2272  ;;  %v3056_v54 = vld [vmem:[#allocation3 + $0x1a0] sm:$0xff]  ;;  %1009 = vrot.lane.b32.xlu1 %v9013_v50, %s7944_s7  ;;  %2970 = vst.msk [vmem:[#allocation3 + $0x2e0] sm:$0xff] %vm73_vm0, %v2906_v2 }
 0x1c5   :  { %2446 = vst.msk [vmem:[#allocation3 + $0x1b8] sm:$0xff] %vm1145_vm3, %v2273_v20  ;;  %3580 = vmatprep.mubr.f32.mxu0 %v3056_v54  ;;  %v2520_v50 = vld [vmem:[#allocation2 + $0x181] sm:$0xff]  ;;  %v9453_v20 = vld [vmem:[#allocation2 + $0x22a] sm:$0xff] }
 0x1c6   :  { %1907 = vrot.lane.b32.xlu0 %v9069_v53, %s7941_s26  ;;  %3581 = vmatmul.mubr.f32.gmra.mrb[34].mxu0 %v3055_v38  ;;  %v607_v15 = vpop.permute.xlu1 %606  ;;  %2978 = vst.msk [vmem:[#allocation3 + $0x3a0] sm:$0xff] %vm73_vm0, %v9453_v20 }
 0x1c7   :  { %780 = vst.msk [vmem:[#allocation3 + $0x1c8] sm:$0xff] %vm760_vm2, %v607_v15  ;;  %v2907_v15 = vld [vmem:[#allocation2 + $0x1a2] sm:$0xff] }
 0x1c8   :  { %v2657_v44 = vpop.permute.xlu0 %2656  ;;  %1394 = vrot.lane.b32.xlu1 %v9347_v28, %s7945_s17  ;;  %v1625_v28 = vld [vmem:[#allocation2 + $0x181] sm:$0xff]  ;;  %2971 = vst.msk [vmem:[#allocation3 + $0x2f8] sm:$0xff] %vm73_vm0, %v2907_v15 }
 0x1c9   :  { %2830 = vst.msk [vmem:[#allocation3 + $0x1b8] sm:$0xff] %vm1530_vm4, %v2657_v44 }
 0x1ca   :  { %2292 = vrot.lane.b32.xlu0 %v9409_v59, %s7944_s7  ;;  %v992_v26 = vpop.permute.xlu1 %991  ;;  %v3058_v43 = vld [vmem:[#allocation3 + $0x1b0] sm:$0xff]  ;;  %1689 = vst.msk [vmem:[#allocation3 + $0x2d8] sm:$0xff] %vm73_vm0, %v1625_v28 }
 0x1cb   :  { %1165 = vst.msk [vmem:[#allocation3 + $0x1c8] sm:$0xff] %vm1145_vm3, %v992_v26  ;;  %v3096_v3 = vld [vmem:[#allocation3 + $0x2e0] sm:$0xff] }
 0x1cc   :  { %v1890_v39 = vpop.permute.xlu0 %1889  ;;  %626 = vrot.lane.b32.xlu1 %v9002_v52, %s7941_s26  ;;  %v9438_v52 = vld [vmem:[#allocation2 + $0x231] sm:$0xff]  ;;  %7230 = vmatprep.mubr.msk.f32.mxu1 %vm73_vm0, %v3096_v3 }
 0x1cd   :  { %2062 = vst.msk [vmem:[#allocation3 + $0x1d0] sm:$0xff] %vm760_vm2, %v1890_v39  ;;  %v343_v39 = vld [vmem:[#allocation2 + $0x170] sm:$0xff] }
 0x1ce   :  { %2676 = vrot.lane.b32.xlu0 %v2520_v50, %s7945_s17  ;;  %v1377_v41 = vpop.permute.xlu1 %1376  ;;  %v3497_v12 = vpop.f32.mrb[0].mxu0  ;;  %1700 = vst.msk [vmem:[#allocation3 + $0x3e0] sm:$0xff] %vm73_vm0, %v9438_v52  ;;  %407 = vst.msk [vmem:[#allocation3 + $0x2e8] sm:$0xff] %vm73_vm0, %v343_v39 }
 0x1cf   :  { %1550 = vst.msk [vmem:[#allocation3 + $0x1c8] sm:$0xff] %vm1530_vm4, %v1377_v41  ;;  %v3498_v13 = vadd.f32 %v9433_v27, %v3497_v12  ;;  %v3499_v18 = vpop.f32.mrb[1].mxu0  ;;  %v9491_v41 = vld [vmem:[#allocation2 + $0x232] sm:$0xff] }
 0x1d0   :  { %v2275_v7 = vpop.permute.xlu0 %2274  ;;  %v3059_v8 = vld [vmem:[#allocation3 + $0x1b8] sm:$0xff]  ;;  %1011 = vrot.lane.b32.xlu1 %v9040_v58, %s7944_s7  ;;  %2979 = vst.msk [vmem:[#allocation3 + $0x3b8] sm:$0xff] %vm73_vm0, %v9491_v41 }
 0x1d1   :  { %2447 = vst.msk [vmem:[#allocation3 + $0x1d0] sm:$0xff] %vm1145_vm3, %v2275_v7  ;;  %3585 = vmatprep.mubr.f32.mxu0 %v3059_v8  ;;  %v3883_v1 = vadd.f32 %v9155_v19, %v3498_v13  ;;  %v3099_v12 = vld [vmem:[#allocation3 + $0x2f8] sm:$0xff] }
 0x1d2   :  { %1909 = vrot.lane.b32.xlu0 %v9094_v45, %s7941_s26  ;;  %3586 = vmatmul.mubr.f32.gmra.mrb[36].mxu0 %v3058_v43  ;;  %v609_v38 = vpop.permute.xlu1 %608  ;;  %v226_v43 = vld [vmem:[#allocation12 + $0x158] sm:$0xff] }
 0x1d3   :  { %781 = vst.msk [vmem:[#allocation3 + $0x1e0] sm:$0xff] %vm760_vm2, %v609_v38  ;;  %v4201_v54 = vmax.f32 %v3883_v1, 0.0  ;;  %7231 = vmatmul.mubr.msk.f32.gmra.mrb[30].mxu1 %vm73_vm0, %v3099_v12 }
 0x1d4   :  { %v2659_v36 = vpop.permute.xlu0 %2658  ;;  %1396 = vrot.lane.b32.xlu1 %v9381_v23, %s7945_s17  ;;  %291 = vst.msk [vmem:[#allocation2 + $0x249] sm:$0xff] %vm73_vm0, %v226_v43  ;;  %v9534_v43 = vld [vmem:[#allocation2 + $0x1ca] sm:$0xff] }
 0x1d5   :  { %2831 = vst.msk [vmem:[#allocation3 + $0x1d0] sm:$0xff] %vm1530_vm4, %v2659_v36 }
 0x1d6   :  { %2294 = vrot.lane.b32.xlu0 %v9449_v14, %s7944_s7  ;;  %4265 = vst.msk [vmem:[#allocation4] sm:$0xff] %vm73_vm0, %v4201_v54  ;;  %v994_v19 = vpop.permute.xlu1 %993  ;;  %v3061_v23 = vld [vmem:[#allocation3 + $0x1c8] sm:$0xff] }
 0x1d7   :  { %1166 = vst.msk [vmem:[#allocation3 + $0x1e0] sm:$0xff] %vm1145_vm3, %v994_v19  ;;  %v344_v19 = vld [vmem:[#allocation2 + $0x1b0] sm:$0xff] }
 0x1d8   :  { %v1892_v58 = vpop.permute.xlu0 %1891  ;;  %628 = vrot.lane.b32.xlu1 %v9029_v5, %s7941_s26  ;;  %v9480_v5 = vpop.f32.mrb[12].mxu1  ;;  %408 = vst.msk [vmem:[#allocation3 + $0x300] sm:$0xff] %vm73_vm0, %v344_v19  ;;  %v3102_v19 = vld [vmem:[#allocation3 + $0x310] sm:$0xff] }
 0x1d9   :  { %2063 = vst.msk [vmem:[#allocation3 + $0x1e8] sm:$0xff] %vm760_vm2, %v1892_v58  ;;  %v3502_v55 = vpop.f32.mrb[2].mxu0  ;;  %v9487_v7 = vpop.f32.mrb[13].mxu1  ;;  %7233 = vmatprep.mubr.msk.f32.mxu1 %vm73_vm0, %v3102_v19 }
 0x1da   :  { %v3503_v33 = vadd.f32 %v9433_v27, %v3502_v55  ;;  %2678 = vrot.lane.b32.xlu0 %v9112_v61, %s7945_s17  ;;  %v3504_v44 = vpop.f32.mrb[3].mxu0  ;;  %v1379_v26 = vpop.permute.xlu1 %1378  ;;  %v9475_v61 = vld [vmem:[#allocation2 + $0x241] sm:$0xff] }
 0x1db   :  { %1551 = vst.msk [vmem:[#allocation3 + $0x1e0] sm:$0xff] %vm1530_vm4, %v1379_v26  ;;  %v9510_v2 = vld [vmem:[#allocation2 + $0x249] sm:$0xff] }
 0x1dc   :  { %v3888_v6 = vadd.f32 %v9148_v11, %v3503_v33  ;;  %v2277_v63 = vpop.permute.xlu0 %2276  ;;  %v3062_v50 = vld [vmem:[#allocation3 + $0x1d0] sm:$0xff]  ;;  %1701 = vst.msk [vmem:[#allocation3 + $0x3f8] sm:$0xff] %vm73_vm0, %v9475_v61  ;;  %1013 = vrot.lane.b32.xlu1 %v9069_v53, %s7944_s7  ;;  %v2138_v11 = vld [vmem:[#allocation2 + $0x198] sm:$0xff]  ;;  %1702 = vst.msk [vmem:[#allocation3 + $0x410] sm:$0xff] %vm73_vm0, %v9510_v2 }
 0x1dd   :  { %2448 = vst.msk [vmem:[#allocation3 + $0x1e8] sm:$0xff] %vm1145_vm3, %v2277_v63  ;;  %3590 = vmatprep.mubr.f32.mxu0 %v3062_v50  ;;  %v2522_v53 = vld [vmem:[#allocation2 + $0x199] sm:$0xff]  ;;  %v227_v33 = vld [vmem:[#allocation12 + $0x160] sm:$0xff] }
 0x1de   :  { %v4202_v28 = vmax.f32 %v3888_v6, 0.0  ;;  %1911 = vrot.lane.b32.xlu0 %v9124_v16, %s7941_s26  ;;  %3591 = vmatmul.mubr.f32.gmra.mrb[38].mxu0 %v3061_v23  ;;  %v611_v16 = vpop.permute.xlu1 %610  ;;  %292 = vst.msk [vmem:[#allocation2 + $0x259] sm:$0xff] %vm73_vm0, %v227_v33  ;;  %v9522_v23 = vld [vmem:[#allocation2 + $0x242] sm:$0xff]  ;;  %v472_v6 = vld [vmem:[#allocation2 + $0x1b1] sm:$0xff] }
 0x1df   :  { %782 = vst.msk [vmem:[#allocation3 + $0x1f8] sm:$0xff] %vm760_vm2, %v611_v16  ;;  %v3105_v33 = vld [vmem:[#allocation3 + $0x328] sm:$0xff] }
 0x1e0   :  { %4266 = vst.msk [vmem:[#allocation4 + $0x8] sm:$0xff] %vm73_vm0, %v4202_v28  ;;  %v2661_v8 = vpop.permute.xlu0 %2660  ;;  %1398 = vrot.lane.b32.xlu1 %v9409_v59, %s7945_s17  ;;  %2980 = vst.msk [vmem:[#allocation3 + $0x3d0] sm:$0xff] %vm73_vm0, %v9522_v23  ;;  %v4329_v28 = vld [vmem:[#allocation4] sm:$0xff]  ;;  %7234 = vmatmul.mubr.msk.f32.gmra.mrb[32].mxu1 %vm73_vm0, %v3105_v33 }
 0x1e1   :  { %2832 = vst.msk [vmem:[#allocation3 + $0x1e8] sm:$0xff] %vm1530_vm4, %v2661_v8 }
 0x1e2   :  { %2296 = vrot.lane.b32.xlu0 %v2138_v11, %s7944_s7  ;;  %v996_v13 = vpop.permute.xlu1 %995  ;;  %v3064_v38 = vld [vmem:[#allocation3 + $0x1e0] sm:$0xff] }
 0x1e3   :  { %1167 = vst.msk [vmem:[#allocation3 + $0x1f8] sm:$0xff] %vm1145_vm3, %v996_v13 }
 0x1e4   :  { %v1894_v46 = vpop.permute.xlu0 %1893  ;;  %630 = vrot.lane.b32.xlu1 %v9058_v37, %s7941_s26  ;;  %v2139_v37 = vld [vmem:[#allocation2 + $0x1a0] sm:$0xff] }
 0x1e5   :  { %2064 = vst.msk [vmem:[#allocation3 + $0x200] sm:$0xff] %vm760_vm2, %v1894_v46  ;;  %v3507_v18 = vpop.f32.mrb[4].mxu0  ;;  %v345_v46 = vld [vmem:[#allocation2 + $0x1b8] sm:$0xff] }
 0x1e6   :  { %v3508_v36 = vadd.f32 %v9433_v27, %v3507_v18  ;;  %2680 = vrot.lane.b32.xlu0 %v2522_v53, %s7945_s17  ;;  %v3509_v1 = vpop.f32.mrb[5].mxu0  ;;  %v1381_v55 = vpop.permute.xlu1 %1380  ;;  %v857_v53 = vld [vmem:[#allocation2 + $0x1b2] sm:$0xff]  ;;  %409 = vst.msk [vmem:[#allocation3 + $0x318] sm:$0xff] %vm73_vm0, %v345_v46 }
 0x1e7   :  { %1552 = vst.msk [vmem:[#allocation3 + $0x1f8] sm:$0xff] %vm1530_vm4, %v1381_v55  ;;  %v228_v18 = vld [vmem:[#allocation12 + $0x168] sm:$0xff]  ;;  %v9548_v1 = vld [vmem:[#allocation2 + $0x1e0] sm:$0xff]  ;;  %v9554_v55 = vld [vmem:[#allocation2 + $0x24a] sm:$0xff] }
 0x1e8   :  { %v3893_v59 = vadd.f32 %v9169_v57, %v3508_v36  ;;  %v2279_v54 = vpop.permute.xlu0 %2278  ;;  %v3065_v58 = vld [vmem:[#allocation3 + $0x1e8] sm:$0xff]  ;;  %1015 = vrot.lane.b32.xlu1 %v9094_v45, %s7944_s7  ;;  %293 = vst.msk [vmem:[#allocation2 + $0x261] sm:$0xff] %vm73_vm0, %v228_v18  ;;  %2981 = vst.msk [vmem:[#allocation3 + $0x3e8] sm:$0xff] %vm73_vm0, %v9554_v55 }
 0x1e9   :  { %2449 = vst.msk [vmem:[#allocation3 + $0x200] sm:$0xff] %vm1145_vm3, %v2279_v54  ;;  %3595 = vmatprep.mubr.f32.mxu0 %v3065_v58  ;;  %v2523_v45 = vld [vmem:[#allocation2 + $0x1a1] sm:$0xff] }
 0x1ea   :  { %v4203_v44 = vmax.f32 %v3893_v59, 0.0  ;;  %1913 = vrot.lane.b32.xlu0 %v9150_v34, %s7941_s26  ;;  %3596 = vmatmul.mubr.f32.gmra.mrb[40].mxu0 %v3064_v38  ;;  %v613_v15 = vpop.permute.xlu1 %612  ;;  %v1242_v54 = vld [vmem:[#allocation2 + $0x1c8] sm:$0xff] }
 0x1eb   :  { %783 = vst.msk [vmem:[#allocation3 + $0x210] sm:$0xff] %vm760_vm2, %v613_v15 }
 0x1ec   :  { %4267 = vst.msk [vmem:[#allocation4 + $0x10] sm:$0xff] %vm73_vm0, %v4203_v44  ;;  %v2663_v57 = vpop.permute.xlu0 %2662  ;;  %1400 = vrot.lane.b32.xlu1 %v9449_v14, %s7945_s17 }
 0x1ed   :  { %2833 = vst.msk [vmem:[#allocation3 + $0x200] sm:$0xff] %vm1530_vm4, %v2663_v57 }
 0x1ee   :  { %2298 = vrot.lane.b32.xlu0 %v2139_v37, %s7944_s7  ;;  %v998_v63 = vpop.permute.xlu1 %997  ;;  %v3067_v14 = vld [vmem:[#allocation3 + $0x1f8] sm:$0xff] }
 0x1ef   :  { %1168 = vst.msk [vmem:[#allocation3 + $0x210] sm:$0xff] %vm1145_vm3, %v998_v63  ;;  %v473_v37 = vld [vmem:[#allocation2 + $0x1b9] sm:$0xff]  ;;  %v4330_v63 = vld [vmem:[#allocation4 + $0x8] sm:$0xff] }
 0x1f0   :  { %v1896_v34 = vpop.permute.xlu0 %1895  ;;  %632 = vrot.lane.b32.xlu1 %v472_v6, %s7941_s26  ;;  %v9569_v6 = vld [vmem:[#allocation2 + $0x1d2] sm:$0xff] }
 0x1f1   :  { %2065 = vst.msk [vmem:[#allocation3 + $0x218] sm:$0xff] %vm760_vm2, %v1896_v34  ;;  %v3512_v50 = vpop.f32.mrb[6].mxu0 }
 0x1f2   :  { %v3513_v39 = vadd.f32 %v9433_v27, %v3512_v50  ;;  %2682 = vrot.lane.b32.xlu0 %v2523_v45, %s7945_s17  ;;  %v3514_v26 = vpop.f32.mrb[7].mxu0  ;;  %v1383_v13 = vpop.permute.xlu1 %1382 }
 0x1f3   :  { %v4362_v11 = vld [vmem:[#allocation4 + $0x10] sm:$0xff]  ;;  %1553 = vst.msk [vmem:[#allocation3 + $0x210] sm:$0xff] %vm1530_vm4, %v1383_v13 }
 0x1f4   :  { %v4394_v8 = vmax.f32 %v4329_v28, %v4362_v11  ;;  %v3898_v16 = vadd.f32 %v9164_v35, %v3513_v39  ;;  %v2281_v3 = vpop.permute.xlu0 %2280  ;;  %v3068_v12 = vld [vmem:[#allocation3 + $0x200] sm:$0xff]  ;;  %v9544_v35 = vpop.f32.mrb[14].mxu1  ;;  %1017 = vrot.lane.b32.xlu1 %v857_v53, %s7944_s7 }
 0x1f5   :  { %2450 = vst.msk [vmem:[#allocation3 + $0x218] sm:$0xff] %vm1145_vm3, %v2281_v3  ;;  %3600 = vmatprep.mubr.f32.mxu0 %v3068_v12  ;;  %v9550_v38 = vpop.f32.mrb[15].mxu1  ;;  %v9575_v12 = vld [vmem:[#allocation2 + $0x261] sm:$0xff] }
 0x1f6   :  { %4426 = vst.msk [vmem:[#allocation5] sm:$0xff] %vm73_vm0, %v4394_v8  ;;  %v4204_v36 = vmax.f32 %v3898_v16, 0.0  ;;  %1915 = vrot.lane.b32.xlu0 %v9534_v43, %s7941_s26  ;;  %3601 = vmatmul.mubr.f32.gmra.mrb[42].mxu0 %v3067_v14  ;;  %v615_v58 = vpop.permute.xlu1 %614  ;;  %v858_v8 = vld [vmem:[#allocation2 + $0x1ba] sm:$0xff]  ;;  %v346_v16 = vld [vmem:[#allocation2 + $0x1c8] sm:$0xff]  ;;  %1704 = vst.msk [vmem:[#allocation3 + $0x440] sm:$0xff] %vm73_vm0, %v9575_v12 }
 0x1f7   :  { %784 = vst.msk [vmem:[#allocation3 + $0x228] sm:$0xff] %vm760_vm2, %v615_v58  ;;  %v229_v53 = vld [vmem:[#allocation12 + $0x170] sm:$0xff] }
 0x1f8   :  { %4268 = vst.msk [vmem:[#allocation4 + $0x18] sm:$0xff] %vm73_vm0, %v4204_v36  ;;  %v2665_v59 = vpop.permute.xlu0 %2664  ;;  %1402 = vrot.lane.b32.xlu1 %v1242_v54, %s7945_s17  ;;  %410 = vst.msk [vmem:[#allocation3 + $0x330] sm:$0xff] %vm73_vm0, %v346_v16  ;;  %v9589_v36 = vld [vmem:[#allocation2 + $0x25a] sm:$0xff] }
 0x1f9   :  { %2834 = vst.msk [vmem:[#allocation3 + $0x218] sm:$0xff] %vm1530_vm4, %v2665_v59 }
 0x1fa   :  { %2300 = vrot.lane.b32.xlu0 %v9548_v1, %s7944_s7  ;;  %v1000_v57 = vpop.permute.xlu1 %999  ;;  %v3070_v39 = vld [vmem:[#allocation3 + $0x210] sm:$0xff]  ;;  %294 = vst.msk [vmem:[#allocation2 + $0x271] sm:$0xff] %vm73_vm0, %v229_v53  ;;  %2982 = vst.msk [vmem:[#allocation3 + $0x400] sm:$0xff] %vm73_vm0, %v9589_v36 }
 0x1fb   :  { %1169 = vst.msk [vmem:[#allocation3 + $0x228] sm:$0xff] %vm1145_vm3, %v1000_v57  ;;  %v9606_v57 = vld [vmem:[%s11924_s3] ss:$0 sm:$0xff] }
 0x1fc   :  { %v1898_v44 = vpop.permute.xlu0 %1897  ;;  %634 = vrot.lane.b32.xlu1 %v473_v37, %s7941_s26 }
 0x1fd   :  { %2066 = vst.msk [vmem:[#allocation3 + $0x230] sm:$0xff] %vm760_vm2, %v1898_v44  ;;  %v3517_v15 = vpop.f32.mrb[8].mxu0 }
 0x1fe   :  { %v3518_v45 = vadd.f32 %v9433_v27, %v3517_v15  ;;  %2684 = vrot.lane.b32.xlu0 %v9199_v10, %s7945_s17  ;;  %v3519_v34 = vpop.f32.mrb[9].mxu0  ;;  %v1385_v3 = vpop.permute.xlu1 %1384 }
 0x1ff   :  { %v4363_v50 = vld [vmem:[#allocation4 + $0x18] sm:$0xff]  ;;  %1554 = vst.msk [vmem:[#allocation3 + $0x228] sm:$0xff] %vm1530_vm4, %v1385_v3 }
 0x200   :  { %v4395_v26 = vmax.f32 %v4330_v63, %v4363_v50  ;;  %v3903_v28 = vadd.f32 %v9213_v49, %v3518_v45  ;;  %v2283_v11 = vpop.permute.xlu0 %2282  ;;  %v3071_v14 = vld [vmem:[#allocation3 + $0x218] sm:$0xff]  ;;  %1019 = vrot.lane.b32.xlu1 %v858_v8, %s7944_s7  ;;  %v9585_v49 = vld [vmem:[#allocation2 + $0x1e8] sm:$0xff]  ;;  %v9614_v50 = vld [vmem:[%s11925_s4] ss:$0 sm:$0xff] }
 0x201   :  { %2451 = vst.msk [vmem:[#allocation3 + $0x230] sm:$0xff] %vm1145_vm3, %v2283_v11  ;;  %3605 = vmatprep.mubr.f32.mxu0 %v3071_v14  ;;  %v9630_v14 = vld [vmem:[#allocation2 + $0x1f8] sm:$0xff] }
 0x202   :  { %4427 = vst.msk [vmem:[#allocation5 + $0x8] sm:$0xff] %vm73_vm0, %v4395_v26  ;;  %v4205_v46 = vmax.f32 %v3903_v28, 0.0  ;;  %1917 = vrot.lane.b32.xlu0 %v9569_v6, %s7941_s26  ;;  %3606 = vmatmul.mubr.f32.gmra.mrb[44].mxu0 %v3070_v39  ;;  %v617_v18 = vpop.permute.xlu1 %616  ;;  %v9617_v26 = vld [vmem:[#allocation2 + $0x271] sm:$0xff]  ;;  %v230_v28 = vld [vmem:[#allocation12 + $0x178] sm:$0xff] }
 0x203   :  { %785 = vst.msk [vmem:[#allocation3 + $0x240] sm:$0xff] %vm760_vm2, %v617_v18  ;;  %v9648_v18 = vld [vmem:[#allocation2 + $0x1f9] sm:$0xff] }
 0x204   :  { %4269 = vst.msk [vmem:[#allocation4 + $0x20] sm:$0xff] %vm73_vm0, %v4205_v46  ;;  %v2667_v13 = vpop.permute.xlu0 %2666  ;;  %1404 = vrot.lane.b32.xlu1 %v9227_v4, %s7945_s17  ;;  %295 = vst.msk [vmem:[#allocation2 + $0x279] sm:$0xff] %vm73_vm0, %v230_v28  ;;  %v3108_v46 = vld [vmem:[#allocation3 + $0x340] sm:$0xff] }
 0x205   :  { %2835 = vst.msk [vmem:[#allocation3 + $0x230] sm:$0xff] %vm1530_vm4, %v2667_v13  ;;  %v9637_v13 = vld [vmem:[#allocation2 + $0x262] sm:$0xff]  ;;  %7236 = vmatprep.mubr.msk.f32.mxu1 %vm73_vm0, %v3108_v46 }
 0x206   :  { %2302 = vrot.lane.b32.xlu0 %v9585_v49, %s7944_s7  ;;  %v1002_v54 = vpop.permute.xlu1 %1001  ;;  %v3073_v4 = vld [vmem:[#allocation3 + $0x228] sm:$0xff]  ;;  %1705 = vst.msk [vmem:[#allocation3 + $0x458] sm:$0xff] %vm73_vm0, %v9617_v26  ;;  %2983 = vst.msk [vmem:[#allocation3 + $0x418] sm:$0xff] %vm73_vm0, %v9637_v13 }
 0x207   :  { %1170 = vst.msk [vmem:[#allocation3 + $0x240] sm:$0xff] %vm1145_vm3, %v1002_v54 }
 0x208   :  { %v1900_v59 = vpop.permute.xlu0 %1899  ;;  %636 = vrot.lane.b32.xlu1 %v9240_v51, %s7941_s26 }
 0x209   :  { %2067 = vst.msk [vmem:[#allocation3 + $0x248] sm:$0xff] %vm760_vm2, %v1900_v59  ;;  %v3522_v58 = vpop.f32.mrb[10].mxu0  ;;  %v4458_v19 = vld [vmem:[#allocation5] ss:$2 sm:$0xff]  ;;  %v4490_v37 = vld [vmem:[#allocation5 + $0x1] ss:$2 sm:$0xff] }
 0x20a   :  { %v3523_v33 = vadd.f32 %v9433_v27, %v3522_v58  ;;  %2686 = vrot.lane.b32.xlu0 %v9235_v24, %s7945_s17  ;;  %v3524_v44 = vpop.f32.mrb[11].mxu0  ;;  %v4521_v15 = vmax.f32 %v4458_v19, %v4490_v37  ;;  %v1387_v39 = vpop.permute.xlu1 %1386 }
 0x20b   :  { %1555 = vst.msk [vmem:[#allocation3 + $0x240] sm:$0xff] %vm1530_vm4, %v1387_v39  ;;  %v1631_v44 = vld [vmem:[#allocation2 + $0x1f9] sm:$0xff]  ;;  %v231_v39 = vld [vmem:[#allocation12 + $0x180] sm:$0xff] }
 0x20c   :  { %v3908_v45 = vadd.f32 %v9204_v42, %v3523_v33  ;;  %v2285_v34 = vpop.permute.xlu0 %2284  ;;  %v3074_v63 = vld [vmem:[#allocation3 + $0x230] sm:$0xff]  ;;  %v4544_v51 = vmul.f32 %v9606_v57, %v4521_v15  ;;  %v9623_v42 = vpop.f32.mrb[16].mxu1  ;;  %1021 = vrot.lane.b32.xlu1 %v9534_v43, %s7944_s7  ;;  %v3111_v43 = vld [vmem:[#allocation3 + $0x358] sm:$0xff]  ;;  %1695 = vst.msk [vmem:[#allocation3 + $0x368] sm:$0xff] %vm73_vm0, %v1631_v44  ;;  %296 = vst.msk [vmem:[#allocation2 + $0x289] sm:$0xff] %vm73_vm0, %v231_v39 }
 0x20d   :  { %2452 = vst.msk [vmem:[#allocation3 + $0x248] sm:$0xff] %vm1145_vm3, %v2285_v34  ;;  %3610 = vmatprep.mubr.f32.mxu0 %v3074_v63  ;;  %v9632_v8 = vpop.f32.mrb[17].mxu1  ;;  %7237 = vmatmul.mubr.msk.f32.gmra.mrb[34].mxu1 %vm73_vm0, %v3111_v43  ;;  %v9662_v63 = vld [vmem:[#allocation2 + $0x279] sm:$0xff] }
 0x20e   :  { %v4206_v11 = vmax.f32 %v3908_v45, 0.0  ;;  %1919 = vrot.lane.b32.xlu0 %v9252_v32, %s7941_s26  ;;  %3611 = vmatmul.mubr.f32.gmra.mrb[46].mxu0 %v3073_v4  ;;  %v4567_v16 = vadd.f32 %v9614_v50, %v4544_v51  ;;  %v619_v53 = vpop.permute.xlu1 %618  ;;  %v348_v45 = vld [vmem:[#allocation2 + $0x1e0] sm:$0xff]  ;;  %1706 = vst.msk [vmem:[#allocation3 + $0x470] sm:$0xff] %vm73_vm0, %v9662_v63 }
 0x20f   :  { %786 = vst.msk [vmem:[#allocation3 + $0x258] sm:$0xff] %vm760_vm2, %v619_v53  ;;  %v9674_v51 = vld [vmem:[#allocation2 + $0x200] sm:$0xff] }
 0x210   :  { %4270 = vst.msk [vmem:[#allocation4 + $0x28] sm:$0xff] %vm73_vm0, %v4206_v11  ;;  %v2669_v3 = vpop.permute.xlu0 %2668  ;;  %4624 = vst.msk [vmem:[#allocation6 + $0x11] sm:$0xff] %vm73_vm0, %v4567_v16  ;;  %1406 = vrot.lane.b32.xlu1 %v9548_v1, %s7945_s17 }
 0x211   :  { %2836 = vst.msk [vmem:[#allocation3 + $0x248] sm:$0xff] %vm1530_vm4, %v2669_v3  ;;  %v9681_v3 = vld [vmem:[#allocation2 + $0x272] sm:$0xff] }
 0x212   :  { %2304 = vrot.lane.b32.xlu0 %v9630_v14, %s7944_s7  ;;  %v1004_v54 = vpop.permute.xlu1 %1003  ;;  %v3076_v1 = vld [vmem:[#allocation3 + $0x240] sm:$0xff]  ;;  %412 = vst.msk [vmem:[#allocation3 + $0x360] sm:$0xff] %vm73_vm0, %v348_v45  ;;  %2984 = vst.msk [vmem:[#allocation3 + $0x430] sm:$0xff] %vm73_vm0, %v9681_v3 }
 0x213   :  { %1171 = vst.msk [vmem:[#allocation3 + $0x258] sm:$0xff] %vm1145_vm3, %v1004_v54  ;;  %v4331_v54 = vld [vmem:[#allocation4 + $0x20] sm:$0xff] }
 0x214   :  { %v1902_v59 = vpop.permute.xlu0 %1901  ;;  %638 = vrot.lane.b32.xlu1 %v9274_v29, %s7941_s26 }
 0x215   :  { %2068 = vst.msk [vmem:[#allocation3 + $0x260] sm:$0xff] %vm760_vm2, %v1902_v59  ;;  %v3527_v58 = vpop.f32.mrb[12].mxu0 }
 0x216   :  { %v3528_v19 = vadd.f32 %v9433_v27, %v3527_v58  ;;  %2688 = vrot.lane.b32.xlu0 %v9648_v18, %s7945_s17  ;;  %v3529_v33 = vpop.f32.mrb[13].mxu0  ;;  %v1389_v34 = vpop.permute.xlu1 %1388 }
 0x217   :  { %1556 = vst.msk [vmem:[#allocation3 + $0x258] sm:$0xff] %vm1530_vm4, %v1389_v34  ;;  %v9670_v29 = vld [vmem:[#allocation6 + $0x11] sm:$0xff] }
 0x218   :  { %v3913_v37 = vadd.f32 %v9281_v47, %v3528_v19  ;;  %v2287_v4 = vpop.permute.xlu0 %2286  ;;  %v3077_v15 = vld [vmem:[#allocation3 + $0x248] sm:$0xff]  ;;  %v4641_v47 = vld [vmem:[#allocation6 + $0x10] sm:$0xff]  ;;  %1023 = vrot.lane.b32.xlu1 %v9569_v6, %s7944_s7  ;;  %4976 = vst.msk [vmem:[#allocation7 + $0x8] sm:$0xff] %vm73_vm0, %v9670_v29 }
 0x219   :  { %2453 = vst.msk [vmem:[#allocation3 + $0x260] sm:$0xff] %vm1145_vm3, %v2287_v4  ;;  %3615 = vmatprep.mubr.f32.mxu0 %v3077_v15  ;;  %v232_v15 = vld [vmem:[#allocation12 + $0x188] sm:$0xff] }
 0x21a   :  { %v4207_v28 = vmax.f32 %v3913_v37, 0.0  ;;  %1921 = vrot.lane.b32.xlu0 %v9286_v30, %s7941_s26  ;;  %3616 = vmatmul.mubr.f32.gmra.mrb[48].mxu0 %v3076_v1  ;;  %4657 = vst.msk [vmem:[#allocation7 + $0x18] sm:$0xff] %vm73_vm0, %v4641_v47  ;;  %v621_v16 = vpop.permute.xlu1 %620  ;;  %v349_v37 = vld [vmem:[#allocation2 + $0x1e8] sm:$0xff]  ;;  %297 = vst.msk [vmem:[#allocation2 + $0x291] sm:$0xff] %vm73_vm0, %v232_v15  ;;  %v3114_v47 = vld [vmem:[#allocation3 + $0x370] sm:$0xff] }
 0x21b   :  { %787 = vst.msk [vmem:[#allocation3 + $0x270] sm:$0xff] %vm760_vm2, %v621_v16  ;;  %7239 = vmatprep.mubr.msk.f32.mxu1 %vm73_vm0, %v3114_v47 }
 0x21c   :  { %4271 = vst.msk [vmem:[#allocation4 + $0x30] sm:$0xff] %vm73_vm0, %v4207_v28  ;;  %v2671_v11 = vpop.permute.xlu0 %2670  ;;  %1408 = vrot.lane.b32.xlu1 %v9585_v49, %s7945_s17  ;;  %413 = vst.msk [vmem:[#allocation3 + $0x378] sm:$0xff] %vm73_vm0, %v349_v37 }
 0x21d   :  { %2837 = vst.msk [vmem:[#allocation3 + $0x260] sm:$0xff] %vm1530_vm4, %v2671_v11  ;;  %v9715_v11 = vld [vmem:[#allocation2 + $0x27a] sm:$0xff] }
 0x21e   :  { %2306 = vrot.lane.b32.xlu0 %v9674_v51, %s7944_s7  ;;  %v1006_v53 = vpop.permute.xlu1 %1005  ;;  %v3079_v19 = vld [vmem:[#allocation3 + $0x258] sm:$0xff]  ;;  %2985 = vst.msk [vmem:[#allocation3 + $0x448] sm:$0xff] %vm73_vm0, %v9715_v11 }
 0x21f   :  { %1172 = vst.msk [vmem:[#allocation3 + $0x270] sm:$0xff] %vm1145_vm3, %v1006_v53 }
 0x220   :  { %v1904_v6 = vpop.permute.xlu0 %1903  ;;  %640 = vrot.lane.b32.xlu1 %v9199_v10, %s7941_s26  ;;  %v9704_v10 = vpop.f32.mrb[18].mxu1 }
 0x221   :  { %2069 = vst.msk [vmem:[#allocation3 + $0x278] sm:$0xff] %vm760_vm2, %v1904_v6  ;;  %v3532_v46 = vpop.f32.mrb[14].mxu0  ;;  %v9711_v34 = vpop.f32.mrb[19].mxu1  ;;  %v9736_v37 = vld [vmem:[#allocation2 + $0x291] sm:$0xff] }
 0x222   :  { %v3533_v43 = vadd.f32 %v9433_v27, %v3532_v46  ;;  %2690 = vrot.lane.b32.xlu0 %v9305_v56, %s7945_s17  ;;  %v3534_v59 = vpop.f32.mrb[15].mxu0  ;;  %v1391_v4 = vpop.permute.xlu1 %1390  ;;  %1708 = vst.msk [vmem:[#allocation3 + $0x4a0] sm:$0xff] %vm73_vm0, %v9736_v37 }
 0x223   :  { %v4364_v58 = vld [vmem:[#allocation4 + $0x30] sm:$0xff]  ;;  %1557 = vst.msk [vmem:[#allocation3 + $0x270] sm:$0xff] %vm1530_vm4, %v1391_v4  ;;  %v4332_v59 = vld [vmem:[#allocation4 + $0x28] sm:$0xff]  ;;  %v233_v4 = vld [vmem:[#allocation12 + $0x190] sm:$0xff] }
 0x224   :  { %v4396_v49 = vmax.f32 %v4331_v54, %v4364_v58  ;;  %v3918_v33 = vadd.f32 %v9272_v21, %v3533_v43  ;;  %v2289_v1 = vpop.permute.xlu0 %2288  ;;  %v3080_v44 = vld [vmem:[#allocation3 + $0x260] sm:$0xff]  ;;  %1025 = vrot.lane.b32.xlu1 %v9252_v32, %s7944_s7  ;;  %v9709_v21 = vld [vmem:[#allocation2 + $0x210] sm:$0xff]  ;;  %v3117_v32 = vld [vmem:[#allocation3 + $0x388] sm:$0xff]  ;;  %298 = vst.msk [vmem:[#allocation2 + $0x2a1] sm:$0xff] %vm73_vm0, %v233_v4 }
 0x225   :  { %2454 = vst.msk [vmem:[#allocation3 + $0x278] sm:$0xff] %vm1145_vm3, %v2289_v1  ;;  %3620 = vmatprep.mubr.f32.mxu0 %v3080_v44  ;;  %7240 = vmatmul.mubr.msk.f32.gmra.mrb[36].mxu1 %vm73_vm0, %v3117_v32  ;;  %v350_v1 = vld [vmem:[#allocation2 + $0x1f8] sm:$0xff] }
 0x226   :  { %4428 = vst.msk [vmem:[#allocation5 + $0x10] sm:$0xff] %vm73_vm0, %v4396_v49  ;;  %v4208_v45 = vmax.f32 %v3918_v33, 0.0  ;;  %1923 = vrot.lane.b32.xlu0 %v9318_v22, %s7941_s26  ;;  %3621 = vmatmul.mubr.f32.gmra.mrb[50].mxu0 %v3079_v19  ;;  %v623_v28 = vpop.permute.xlu1 %622  ;;  %414 = vst.msk [vmem:[#allocation3 + $0x390] sm:$0xff] %vm73_vm0, %v350_v1 }
 0x227   :  { %788 = vst.msk [vmem:[#allocation3 + $0x288] sm:$0xff] %vm760_vm2, %v623_v28 }
 0x228   :  { %4272 = vst.msk [vmem:[#allocation4 + $0x38] sm:$0xff] %vm73_vm0, %v4208_v45  ;;  %v2673_v39 = vpop.permute.xlu0 %2672  ;;  %1410 = vrot.lane.b32.xlu1 %v9630_v14, %s7945_s17 }
 0x229   :  { %2838 = vst.msk [vmem:[#allocation3 + $0x278] sm:$0xff] %vm1530_vm4, %v2673_v39  ;;  %v9751_v39 = vld [vmem:[#allocation2 + $0x28a] sm:$0xff] }
 0x22a   :  { %2308 = vrot.lane.b32.xlu0 %v9709_v21, %s7944_s7  ;;  %v1008_v6 = vpop.permute.xlu1 %1007  ;;  %v3082_v14 = vld [vmem:[#allocation3 + $0x270] sm:$0xff]  ;;  %2986 = vst.msk [vmem:[#allocation3 + $0x460] sm:$0xff] %vm73_vm0, %v9751_v39 }
 0x22b   :  { %1173 = vst.msk [vmem:[#allocation3 + $0x288] sm:$0xff] %vm1145_vm3, %v1008_v6 }
 0x22c   :  { %v1906_v16 = vpop.permute.xlu0 %1905  ;;  %642 = vrot.lane.b32.xlu1 %v9235_v24, %s7941_s26  ;;  %v9747_v24 = vld [vmem:[#allocation2 + $0x218] sm:$0xff] }
 0x22d   :  { %2070 = vst.msk [vmem:[#allocation3 + $0x290] sm:$0xff] %vm760_vm2, %v1906_v16  ;;  %v3537_v53 = vpop.f32.mrb[16].mxu0 }
 0x22e   :  { %v3538_v46 = vadd.f32 %v9433_v27, %v3537_v53  ;;  %2692 = vrot.lane.b32.xlu0 %v9335_v31, %s7945_s17  ;;  %v3539_v43 = vpop.f32.mrb[17].mxu0  ;;  %v1393_v44 = vpop.permute.xlu1 %1392 }
 0x22f   :  { %v4365_v54 = vld [vmem:[#allocation4 + $0x38] sm:$0xff]  ;;  %1558 = vst.msk [vmem:[#allocation3 + $0x288] sm:$0xff] %vm1530_vm4, %v1393_v44 }
 0x230   :  { %v4397_v58 = vmax.f32 %v4332_v59, %v4365_v54  ;;  %v3923_v19 = vadd.f32 %v9349_v62, %v3538_v46  ;;  %v2291_v49 = vpop.permute.xlu0 %2290  ;;  %v3083_v33 = vld [vmem:[#allocation3 + $0x278] sm:$0xff]  ;;  %1027 = vrot.lane.b32.xlu1 %v9286_v30, %s7944_s7 }
 0x231   :  { %2455 = vst.msk [vmem:[#allocation3 + $0x290] sm:$0xff] %vm1145_vm3, %v2291_v49  ;;  %3625 = vmatprep.mubr.f32.mxu0 %v3083_v33  ;;  %v234_v49 = vld [vmem:[#allocation12 + $0x198] sm:$0xff] }
 0x232   :  { %4429 = vst.msk [vmem:[#allocation5 + $0x18] sm:$0xff] %vm73_vm0, %v4397_v58  ;;  %v4209_v15 = vmax.f32 %v3923_v19, 0.0  ;;  %1925 = vrot.lane.b32.xlu0 %v9352_v48, %s7941_s26  ;;  %3626 = vmatmul.mubr.f32.gmra.mrb[52].mxu0 %v3082_v14  ;;  %v625_v45 = vpop.permute.xlu1 %624  ;;  %v351_v14 = vld [vmem:[#allocation2 + $0x200] sm:$0xff]  ;;  %299 = vst.msk [vmem:[#allocation2 + $0x2a9] sm:$0xff] %vm73_vm0, %v234_v49  ;;  %v235_v49 = vld [vmem:[#allocation12 + $0x1a0] sm:$0xff] }
 0x233   :  { %789 = vst.msk [vmem:[#allocation3 + $0x2a0] sm:$0xff] %vm760_vm2, %v625_v45  ;;  %v9770_v19 = vld [vmem:[#allocation2 + $0x2a1] sm:$0xff] }
 0x234   :  { %4273 = vst.msk [vmem:[#allocation4 + $0x40] sm:$0xff] %vm73_vm0, %v4209_v15  ;;  %v2675_v62 = vpop.permute.xlu0 %2674  ;;  %1412 = vrot.lane.b32.xlu1 %v9674_v51, %s7945_s17  ;;  %415 = vst.msk [vmem:[#allocation3 + $0x3a8] sm:$0xff] %vm73_vm0, %v351_v14  ;;  %v3120_v45 = vld [vmem:[#allocation3 + $0x3a0] sm:$0xff] }
 0x235   :  { %2839 = vst.msk [vmem:[#allocation3 + $0x290] sm:$0xff] %vm1530_vm4, %v2675_v62  ;;  %7242 = vmatprep.mubr.msk.f32.mxu1 %vm73_vm0, %v3120_v45 }
 0x236   :  { %2310 = vrot.lane.b32.xlu0 %v9747_v24, %s7944_s7  ;;  %v1010_v28 = vpop.permute.xlu1 %1009  ;;  %v3085_v46 = vld [vmem:[#allocation3 + $0x288] sm:$0xff]  ;;  %1709 = vst.msk [vmem:[#allocation3 + $0x4b8] sm:$0xff] %vm73_vm0, %v9770_v19  ;;  %300 = vst.msk [vmem:[#allocation2 + $0x2b9] sm:$0xff] %vm73_vm0, %v235_v49 }
 0x237   :  { %1174 = vst.msk [vmem:[#allocation3 + $0x2a0] sm:$0xff] %vm1145_vm3, %v1010_v28  ;;  %v9801_v28 = vld [vmem:[#allocation2 + $0x229] sm:$0xff] }
 0x238   :  { %v1908_v30 = vpop.permute.xlu0 %1907  ;;  %644 = vrot.lane.b32.xlu1 %v9648_v18, %s7941_s26  ;;  %v9783_v18 = vld [vmem:[#allocation2 + $0x228] sm:$0xff] }
 0x239   :  { %2071 = vst.msk [vmem:[#allocation3 + $0x2a8] sm:$0xff] %vm760_vm2, %v1908_v30  ;;  %v3542_v47 = vpop.f32.mrb[18].mxu0  ;;  %v4460_v32 = vld [vmem:[#allocation5 + $0x10] ss:$2 sm:$0xff]  ;;  %v4492_v53 = vld [vmem:[#allocation5 + $0x11] ss:$2 sm:$0xff] }
 0x23a   :  { %v3543_v16 = vadd.f32 %v9433_v27, %v3542_v47  ;;  %2694 = vrot.lane.b32.xlu0 %v9371_v60, %s7945_s17  ;;  %v3544_v6 = vpop.f32.mrb[19].mxu0  ;;  %v4522_v51 = vmax.f32 %v4460_v32, %v4492_v53  ;;  %v1395_v58 = vpop.permute.xlu1 %1394  ;;  %v9790_v30 = vld [vmem:[#allocation2 + $0x292] sm:$0xff]  ;;  %v9832_v45 = vld [vmem:[#allocation2 + $0x2a2] sm:$0xff] }
 0x23b   :  { %1559 = vst.msk [vmem:[#allocation3 + $0x2a0] sm:$0xff] %vm1530_vm4, %v1395_v58  ;;  %v9815_v58 = vld [vmem:[#allocation2 + $0x2a9] sm:$0xff] }
 0x23c   :  { %v3928_v43 = vadd.f32 %v9340_v9, %v3543_v16  ;;  %v2293_v59 = vpop.permute.xlu0 %2292  ;;  %v3086_v54 = vld [vmem:[#allocation3 + $0x290] sm:$0xff]  ;;  %v4545_v33 = vmul.f32 %v9606_v57, %v4522_v51  ;;  %v9776_v9 = vpop.f32.mrb[20].mxu1  ;;  %1029 = vrot.lane.b32.xlu1 %v9318_v22, %s7944_s7  ;;  %v3123_v22 = vld [vmem:[#allocation3 + $0x3b8] sm:$0xff]  ;;  %2987 = vst.msk [vmem:[#allocation3 + $0x478] sm:$0xff] %vm73_vm0, %v9790_v30  ;;  %1710 = vst.msk [vmem:[#allocation3 + $0x4d0] sm:$0xff] %vm73_vm0, %v9815_v58 }
 0x23d   :  { %2456 = vst.msk [vmem:[#allocation3 + $0x2a8] sm:$0xff] %vm1145_vm3, %v2293_v59  ;;  %3630 = vmatprep.mubr.f32.mxu0 %v3086_v54  ;;  %v9785_v44 = vpop.f32.mrb[21].mxu1  ;;  %7243 = vmatmul.mubr.msk.f32.gmra.mrb[38].mxu1 %vm73_vm0, %v3123_v22  ;;  %v352_v54 = vld [vmem:[#allocation2 + $0x210] sm:$0xff] }
 0x23e   :  { %v4210_v1 = vmax.f32 %v3928_v43, 0.0  ;;  %1927 = vrot.lane.b32.xlu0 %v9384_v0, %s7941_s26  ;;  %3631 = vmatmul.mubr.f32.gmra.mrb[54].mxu0 %v3085_v46  ;;  %v4568_v4 = vadd.f32 %v9614_v50, %v4545_v33  ;;  %v627_v62 = vpop.permute.xlu1 %626  ;;  %v1635_v46 = vld [vmem:[#allocation2 + $0x229] sm:$0xff]  ;;  %416 = vst.msk [vmem:[#allocation3 + $0x3c0] sm:$0xff] %vm73_vm0, %v352_v54  ;;  %2988 = vst.msk [vmem:[#allocation3 + $0x490] sm:$0xff] %vm73_vm0, %v9832_v45 }
 0x23f   :  { %790 = vst.msk [vmem:[#allocation3 + $0x2b8] sm:$0xff] %vm760_vm2, %v627_v62 }
 0x240   :  { %4274 = vst.msk [vmem:[#allocation4 + $0x48] sm:$0xff] %vm73_vm0, %v4210_v1  ;;  %v2677_v15 = vpop.permute.xlu0 %2676  ;;  %4625 = vst.msk [vmem:[#allocation6 + $0x21] sm:$0xff] %vm73_vm0, %v4568_v4  ;;  %1414 = vrot.lane.b32.xlu1 %v9709_v21, %s7945_s17  ;;  %v9825_v1 = vld [vmem:[#allocation2 + $0x230] sm:$0xff] }
 0x241   :  { %2840 = vst.msk [vmem:[#allocation3 + $0x2a8] sm:$0xff] %vm1530_vm4, %v2677_v15 }
 0x242   :  { %2312 = vrot.lane.b32.xlu0 %v9783_v18, %s7944_s7  ;;  %v1012_v32 = vpop.permute.xlu1 %1011  ;;  %v3088_v21 = vld [vmem:[#allocation3 + $0x2a0] sm:$0xff]  ;;  %1699 = vst.msk [vmem:[#allocation3 + $0x3c8] sm:$0xff] %vm73_vm0, %v1635_v46 }
 0x243   :  { %1175 = vst.msk [vmem:[#allocation3 + $0x2b8] sm:$0xff] %vm1145_vm3, %v1012_v32 }
 0x244   :  { %v1910_v47 = vpop.permute.xlu0 %1909  ;;  %646 = vrot.lane.b32.xlu1 %v9305_v56, %s7941_s26 }
 0x245   :  { %2072 = vst.msk [vmem:[#allocation3 + $0x2c0] sm:$0xff] %vm760_vm2, %v1910_v47  ;;  %v3547_v16 = vpop.f32.mrb[20].mxu0 }
 0x246   :  { %v3548_v6 = vadd.f32 %v9433_v27, %v3547_v16  ;;  %2696 = vrot.lane.b32.xlu0 %v9801_v28, %s7945_s17  ;;  %v3549_v53 = vpop.f32.mrb[21].mxu0  ;;  %v1397_v14 = vpop.permute.xlu1 %1396 }
 0x247   :  { %1560 = vst.msk [vmem:[#allocation3 + $0x2b8] sm:$0xff] %vm1530_vm4, %v1397_v14  ;;  %v4961_v56 = vld [vmem:[#allocation6 + $0x21] sm:$0xff] }
 0x248   :  { %v3933_v51 = vadd.f32 %v9411_v40, %v3548_v6  ;;  %v2295_v43 = vpop.permute.xlu0 %2294  ;;  %v3089_v59 = vld [vmem:[#allocation3 + $0x2a8] sm:$0xff]  ;;  %v4642_v40 = vld [vmem:[#allocation6 + $0x20] sm:$0xff]  ;;  %1031 = vrot.lane.b32.xlu1 %v9352_v48, %s7944_s7  ;;  %4977 = vst.msk [vmem:[#allocation7 + $0x20] sm:$0xff] %vm73_vm0, %v4961_v56 }
 0x249   :  { %2457 = vst.msk [vmem:[#allocation3 + $0x2c0] sm:$0xff] %vm1145_vm3, %v2295_v43  ;;  %3635 = vmatprep.mubr.f32.mxu0 %v3089_v59  ;;  %v5281_v4 = vld [vmem:[#allocation6 + $0x22] sm:$0xff]  ;;  %v353_v59 = vld [vmem:[#allocation2 + $0x218] sm:$0xff] }
 0x24a   :  { %v4211_v33 = vmax.f32 %v3933_v51, 0.0  ;;  %1929 = vrot.lane.b32.xlu0 %v9414_v25, %s7941_s26  ;;  %3636 = vmatmul.mubr.f32.gmra.mrb[56].mxu0 %v3088_v21  ;;  %4658 = vst.msk [vmem:[#allocation7 + $0x30] sm:$0xff] %vm73_vm0, %v4642_v40  ;;  %5297 = vst.msk [vmem:[#allocation7 + $0x10] sm:$0xff] %vm73_vm0, %v5281_v4  ;;  %v629_v62 = vpop.permute.xlu1 %628  ;;  %v4333_v6 = vld [vmem:[#allocation4 + $0x40] sm:$0xff]  ;;  %v3126_v40 = vld [vmem:[#allocation3 + $0x3d0] sm:$0xff] }
 0x24b   :  { %791 = vst.msk [vmem:[#allocation3 + $0x2d0] sm:$0xff] %vm760_vm2, %v629_v62  ;;  %v9866_v4 = vld [vmem:[#allocation2 + $0x2aa] sm:$0xff]  ;;  %7245 = vmatprep.mubr.msk.f32.mxu1 %vm73_vm0, %v3126_v40 }
 0x24c   :  { %4275 = vst.msk [vmem:[#allocation4 + $0x50] sm:$0xff] %vm73_vm0, %v4211_v33  ;;  %v2679_v15 = vpop.permute.xlu0 %2678  ;;  %1416 = vrot.lane.b32.xlu1 %v9747_v24, %s7945_s17  ;;  %417 = vst.msk [vmem:[#allocation3 + $0x3d8] sm:$0xff] %vm73_vm0, %v353_v59 }
 0x24d   :  { %2841 = vst.msk [vmem:[#allocation3 + $0x2c0] sm:$0xff] %vm1530_vm4, %v2679_v15 }
 0x24e   :  { %2314 = vrot.lane.b32.xlu0 %v9825_v1, %s7944_s7  ;;  %v1014_v22 = vpop.permute.xlu1 %1013  ;;  %v3091_v21 = vld [vmem:[#allocation3 + $0x2b8] sm:$0xff]  ;;  %2989 = vst.msk [vmem:[#allocation3 + $0x4a8] sm:$0xff] %vm73_vm0, %v9866_v4 }
 0x24f   :  { %1176 = vst.msk [vmem:[#allocation3 + $0x2d0] sm:$0xff] %vm1145_vm3, %v1014_v22  ;;  %v9882_v22 = vld [vmem:[%s11923_s2] ss:$0 sm:$0xff] }
 0x250   :  { %v1912_v48 = vpop.permute.xlu0 %1911  ;;  %648 = vrot.lane.b32.xlu1 %v9335_v31, %s7941_s26  ;;  %v9855_v31 = vpop.f32.mrb[22].mxu1 }
 0x251   :  { %2073 = vst.msk [vmem:[#allocation3 + $0x2d8] sm:$0xff] %vm760_vm2, %v1912_v48  ;;  %v3552_v47 = vpop.f32.mrb[22].mxu0  ;;  %v9862_v49 = vpop.f32.mrb[23].mxu1 }
 0x252   :  { %v3553_v32 = vadd.f32 %v9433_v27, %v3552_v47  ;;  %2698 = vrot.lane.b32.xlu0 %v9438_v52, %s7945_s17  ;;  %v3554_v16 = vpop.f32.mrb[23].mxu0  ;;  %v1399_v54 = vpop.permute.xlu1 %1398  ;;  %v236_v27 = vld [vmem:[#allocation12 + $0x1a8] sm:$0xff] }
 0x253   :  { %v4366_v53 = vld [vmem:[#allocation4 + $0x50] sm:$0xff]  ;;  %1561 = vst.msk [vmem:[#allocation3 + $0x2d0] sm:$0xff] %vm1530_vm4, %v1399_v54  ;;  %v237_v54 = vld [vmem:[#allocation12 + $0x1b0] sm:$0xff] }
 0x254   :  { %v4398_v24 = vmax.f32 %v4333_v6, %v4366_v53  ;;  %v3938_v46 = vadd.f32 %v9404_v17, %v3553_v32  ;;  %v2297_v51 = vpop.permute.xlu0 %2296  ;;  %v3092_v43 = vld [vmem:[#allocation3 + $0x2c0] sm:$0xff]  ;;  %301 = vst.msk [vmem:[#allocation2 + $0x2c1] sm:$0xff] %vm73_vm0, %v236_v27  ;;  %1033 = vrot.lane.b32.xlu1 %v9384_v0, %s7944_s7  ;;  %v3129_v0 = vld [vmem:[#allocation3 + $0x3e8] sm:$0xff]  ;;  %302 = vst.msk [vmem:[#allocation2 + $0x2d1] sm:$0xff] %vm73_vm0, %v237_v54 }
 0x255   :  { %2458 = vst.msk [vmem:[#allocation3 + $0x2d8] sm:$0xff] %vm1145_vm3, %v2297_v51  ;;  %3640 = vmatprep.mubr.f32.mxu0 %v3092_v43  ;;  %v9860_v17 = vld [vmem:[#allocation2 + $0x240] sm:$0xff]  ;;  %7246 = vmatmul.mubr.msk.f32.gmra.mrb[40].mxu1 %vm73_vm0, %v3129_v0  ;;  %v4334_v32 = vld [vmem:[#allocation4 + $0x48] sm:$0xff] }
 0x256   :  { %4430 = vst.msk [vmem:[#allocation5 + $0x20] sm:$0xff] %vm73_vm0, %v4398_v24  ;;  %v4212_v14 = vmax.f32 %v3938_v46, 0.0  ;;  %1931 = vrot.lane.b32.xlu0 %v9453_v20, %s7941_s26  ;;  %3641 = vmatmul.mubr.f32.gmra.mrb[58].mxu0 %v3091_v21  ;;  %v631_v56 = vpop.permute.xlu1 %630  ;;  %v354_v51 = vld [vmem:[#allocation2 + $0x228] sm:$0xff] }
 0x257   :  { %792 = vst.msk [vmem:[#allocation3 + $0x2e8] sm:$0xff] %vm760_vm2, %v631_v56 }
 0x258   :  { %4276 = vst.msk [vmem:[#allocation4 + $0x58] sm:$0xff] %vm73_vm0, %v4212_v14  ;;  %v2681_v33 = vpop.permute.xlu0 %2680  ;;  %1418 = vrot.lane.b32.xlu1 %v9783_v18, %s7945_s17  ;;  %418 = vst.msk [vmem:[#allocation3 + $0x3f0] sm:$0xff] %vm73_vm0, %v354_v51 }
 0x259   :  { %2842 = vst.msk [vmem:[#allocation3 + $0x2d8] sm:$0xff] %vm1530_vm4, %v2681_v33 }
 0x25a   :  { %2316 = vrot.lane.b32.xlu0 %v9860_v17, %s7944_s7  ;;  %v1016_v62 = vpop.permute.xlu1 %1015  ;;  %v3094_v6 = vld [vmem:[#allocation3 + $0x2d0] sm:$0xff] }
 0x25b   :  { %1177 = vst.msk [vmem:[#allocation3 + $0x2e8] sm:$0xff] %vm1145_vm3, %v1016_v62  ;;  %v9892_v59 = vld [vmem:[#allocation2 + $0x2c1] sm:$0xff] }
 0x25c   :  { %v1914_v15 = vpop.permute.xlu0 %1913  ;;  %650 = vrot.lane.b32.xlu1 %v9371_v60, %s7941_s26  ;;  %1712 = vst.msk [vmem:[#allocation3 + $0x500] sm:$0xff] %vm73_vm0, %v9892_v59  ;;  %v9903_v60 = vld [vmem:[#allocation2 + $0x248] sm:$0xff]  ;;  %v9907_v33 = vld [vmem:[#allocation2 + $0x2ba] sm:$0xff] }
 0x25d   :  { %2074 = vst.msk [vmem:[#allocation3 + $0x2f0] sm:$0xff] %vm760_vm2, %v1914_v15  ;;  %v3557_v48 = vpop.f32.mrb[24].mxu0 }
 0x25e   :  { %v3558_v47 = vadd.f32 %v9882_v22, %v3557_v48  ;;  %2700 = vrot.lane.b32.xlu0 %v9475_v61, %s7945_s17  ;;  %v3559_v18 = vpop.f32.mrb[25].mxu0  ;;  %v1401_v43 = vpop.permute.xlu1 %1400  ;;  %2990 = vst.msk [vmem:[#allocation3 + $0x4c0] sm:$0xff] %vm73_vm0, %v9907_v33 }
 0x25f   :  { %v4367_v16 = vld [vmem:[#allocation4 + $0x58] sm:$0xff]  ;;  %1562 = vst.msk [vmem:[#allocation3 + $0x2e8] sm:$0xff] %vm1530_vm4, %v1401_v43 }
 0x260   :  { %v4399_v53 = vmax.f32 %v4334_v32, %v4367_v16  ;;  %v3943_v21 = vadd.f32 %v9487_v7, %v3558_v47  ;;  %v2299_v24 = vpop.permute.xlu0 %2298  ;;  %v3095_v46 = vld [vmem:[#allocation3 + $0x2d8] sm:$0xff]  ;;  %1035 = vrot.lane.b32.xlu1 %v9414_v25, %s7944_s7 }
 0x261   :  { %2459 = vst.msk [vmem:[#allocation3 + $0x2f0] sm:$0xff] %vm1145_vm3, %v2299_v24  ;;  %3645 = vmatprep.mubr.f32.mxu0 %v3095_v46  ;;  %v238_v24 = vld [vmem:[#allocation12 + $0x1b8] sm:$0xff] }
 0x262   :  { %4431 = vst.msk [vmem:[#allocation5 + $0x28] sm:$0xff] %vm73_vm0, %v4399_v53  ;;  %v4213_v27 = vmax.f32 %v3943_v21, 0.0  ;;  %1933 = vrot.lane.b32.xlu0 %v9491_v41, %s7941_s26  ;;  %3646 = vmatmul.mubr.f32.gmra.mrb[60].mxu0 %v3094_v6  ;;  %v633_v14 = vpop.permute.xlu1 %632  ;;  %v355_v6 = vld [vmem:[#allocation2 + $0x230] sm:$0xff]  ;;  %303 = vst.msk [vmem:[#allocation2 + $0x2d9] sm:$0xff] %vm73_vm0, %v238_v24  ;;  %v9981_v24 = vld [vmem:[#allocation2 + $0x260] sm:$0xff] }
 0x263   :  { %793 = vst.msk [vmem:[#allocation3 + $0x300] sm:$0xff] %vm760_vm2, %v633_v14  ;;  %v9926_v21 = vld [vmem:[#allocation2 + $0x2d1] sm:$0xff]  ;;  %v9946_v14 = vld [vmem:[#allocation2 + $0x2c2] sm:$0xff] }
 0x264   :  { %4277 = vst.msk [vmem:[#allocation4 + $0x60] sm:$0xff] %vm73_vm0, %v4213_v27  ;;  %v2683_v7 = vpop.permute.xlu0 %2682  ;;  %1420 = vrot.lane.b32.xlu1 %v9825_v1, %s7945_s17  ;;  %419 = vst.msk [vmem:[#allocation3 + $0x408] sm:$0xff] %vm73_vm0, %v355_v6  ;;  %v239_v6 = vld [vmem:[#allocation12 + $0x1c0] sm:$0xff] }
 0x265   :  { %2843 = vst.msk [vmem:[#allocation3 + $0x2f0] sm:$0xff] %vm1530_vm4, %v2683_v7  ;;  %v3132_v7 = vld [vmem:[#allocation3 + $0x400] sm:$0xff] }
 0x266   :  { %2318 = vrot.lane.b32.xlu0 %v9903_v60, %s7944_s7  ;;  %v1018_v56 = vpop.permute.xlu1 %1017  ;;  %v3097_v47 = vld [vmem:[#allocation3 + $0x2e8] sm:$0xff]  ;;  %1713 = vst.msk [vmem:[#allocation3 + $0x518] sm:$0xff] %vm73_vm0, %v9926_v21  ;;  %7248 = vmatprep.mubr.msk.f32.mxu1 %vm73_vm0, %v3132_v7  ;;  %2991 = vst.msk [vmem:[#allocation3 + $0x4d8] sm:$0xff] %vm73_vm0, %v9946_v14 }
 0x267   :  { %1178 = vst.msk [vmem:[#allocation3 + $0x300] sm:$0xff] %vm1145_vm3, %v1018_v56 }
 0x268   :  { %v1916_v25 = vpop.permute.xlu0 %1915  ;;  %652 = vrot.lane.b32.xlu1 %v9801_v28, %s7941_s26  ;;  %v9939_v28 = vld [vmem:[#allocation2 + $0x258] sm:$0xff]  ;;  %304 = vst.msk [vmem:[#allocation2 + $0x2e9] sm:$0xff] %vm73_vm0, %v239_v6 }
 0x269   :  { %2075 = vst.msk [vmem:[#allocation3 + $0x308] sm:$0xff] %vm760_vm2, %v1916_v25  ;;  %v3562_v40 = vpop.f32.mrb[26].mxu0  ;;  %v4462_v0 = vld [vmem:[#allocation5 + $0x20] ss:$2 sm:$0xff]  ;;  %v4494_v48 = vld [vmem:[#allocation5 + $0x21] ss:$2 sm:$0xff] }
 0x26a   :  { %v3563_v15 = vadd.f32 %v9882_v22, %v3562_v40  ;;  %2702 = vrot.lane.b32.xlu0 %v9510_v2, %s7945_s17  ;;  %v3564_v62 = vpop.f32.mrb[27].mxu0  ;;  %v4523_v1 = vmax.f32 %v4462_v0, %v4494_v48  ;;  %v1403_v53 = vpop.permute.xlu1 %1402 }
 0x26b   :  { %1563 = vst.msk [vmem:[#allocation3 + $0x300] sm:$0xff] %vm1530_vm4, %v1403_v53  ;;  %v1639_v62 = vld [vmem:[#allocation2 + $0x259] sm:$0xff] }
 0x26c   :  { %v3948_v18 = vadd.f32 %v9480_v5, %v3563_v15  ;;  %v2301_v32 = vpop.permute.xlu0 %2300  ;;  %v3098_v16 = vld [vmem:[#allocation3 + $0x2f0] sm:$0xff]  ;;  %v4546_v46 = vmul.f32 %v9606_v57, %v4523_v1  ;;  %v9932_v5 = vpop.f32.mrb[24].mxu1  ;;  %1037 = vrot.lane.b32.xlu1 %v9453_v20, %s7944_s7  ;;  %v3135_v20 = vld [vmem:[#allocation3 + $0x418] sm:$0xff]  ;;  %1703 = vst.msk [vmem:[#allocation3 + $0x428] sm:$0xff] %vm73_vm0, %v1639_v62 }
 0x26d   :  { %2460 = vst.msk [vmem:[#allocation3 + $0x308] sm:$0xff] %vm1145_vm3, %v2301_v32  ;;  %3650 = vmatprep.mubr.f32.mxu0 %v3098_v16  ;;  %v9941_v57 = vpop.f32.mrb[25].mxu1  ;;  %7249 = vmatmul.mubr.msk.f32.gmra.mrb[42].mxu1 %vm73_vm0, %v3135_v20  ;;  %v9971_v16 = vld [vmem:[#allocation2 + $0x2d9] sm:$0xff] }
 0x26e   :  { %v4214_v51 = vmax.f32 %v3948_v18, 0.0  ;;  %1935 = vrot.lane.b32.xlu0 %v9522_v23, %s7941_s26  ;;  %3651 = vmatmul.mubr.f32.gmra.mrb[62].mxu0 %v3097_v47  ;;  %v4569_v43 = vadd.f32 %v9614_v50, %v4546_v46  ;;  %v635_v27 = vpop.permute.xlu1 %634  ;;  %v9957_v50 = vld [vmem:[#allocation2 + $0x259] sm:$0xff]  ;;  %1714 = vst.msk [vmem:[#allocation3 + $0x530] sm:$0xff] %vm73_vm0, %v9971_v16 }
 0x26f   :  { %794 = vst.msk [vmem:[#allocation3 + $0x318] sm:$0xff] %vm760_vm2, %v635_v27  ;;  %v356_v18 = vld [vmem:[#allocation2 + $0x240] sm:$0xff] }
 0x270   :  { %4278 = vst.msk [vmem:[#allocation4 + $0x68] sm:$0xff] %vm73_vm0, %v4214_v51  ;;  %v2685_v54 = vpop.permute.xlu0 %2684  ;;  %4626 = vst.msk [vmem:[#allocation6 + $0x31] sm:$0xff] %vm73_vm0, %v4569_v43  ;;  %1422 = vrot.lane.b32.xlu1 %v9860_v17, %s7945_s17 }
 0x271   :  { %2844 = vst.msk [vmem:[#allocation3 + $0x308] sm:$0xff] %vm1530_vm4, %v2685_v54  ;;  %v9988_v54 = vld [vmem:[#allocation2 + $0x2d2] sm:$0xff] }
 0x272   :  { %2320 = vrot.lane.b32.xlu0 %v9939_v28, %s7944_s7  ;;  %v1020_v56 = vpop.permute.xlu1 %1019  ;;  %v3100_v17 = vld [vmem:[#allocation3 + $0x300] sm:$0xff]  ;;  %420 = vst.msk [vmem:[#allocation3 + $0x420] sm:$0xff] %vm73_vm0, %v356_v18  ;;  %2992 = vst.msk [vmem:[#allocation3 + $0x4f0] sm:$0xff] %vm73_vm0, %v9988_v54 }
 0x273   :  { %1179 = vst.msk [vmem:[#allocation3 + $0x318] sm:$0xff] %vm1145_vm3, %v1020_v56  ;;  %v4335_v56 = vld [vmem:[#allocation4 + $0x60] sm:$0xff] }
 0x274   :  { %v1918_v25 = vpop.permute.xlu0 %1917  ;;  %654 = vrot.lane.b32.xlu1 %v9438_v52, %s7941_s26 }
 0x275   :  { %2076 = vst.msk [vmem:[#allocation3 + $0x320] sm:$0xff] %vm760_vm2, %v1918_v25  ;;  %v3567_v40 = vpop.f32.mrb[28].mxu0 }
 0x276   :  { %v3568_v0 = vadd.f32 %v9882_v22, %v3567_v40  ;;  %2704 = vrot.lane.b32.xlu0 %v9957_v50, %s7945_s17  ;;  %v3569_v15 = vpop.f32.mrb[29].mxu0  ;;  %v1405_v32 = vpop.permute.xlu1 %1404 }
 0x277   :  { %1564 = vst.msk [vmem:[#allocation3 + $0x318] sm:$0xff] %vm1530_vm4, %v1405_v32  ;;  %v4962_v52 = vld [vmem:[#allocation6 + $0x31] sm:$0xff] }
 0x278   :  { %v3953_v48 = vadd.f32 %v9550_v38, %v3568_v0  ;;  %v2303_v47 = vpop.permute.xlu0 %2302  ;;  %v3101_v1 = vld [vmem:[#allocation3 + $0x308] sm:$0xff]  ;;  %v4643_v38 = vld [vmem:[#allocation6 + $0x30] sm:$0xff]  ;;  %1039 = vrot.lane.b32.xlu1 %v9491_v41, %s7944_s7  ;;  %4978 = vst.msk [vmem:[#allocation7 + $0x38] sm:$0xff] %vm73_vm0, %v4962_v52 }
 0x279   :  { %2461 = vst.msk [vmem:[#allocation3 + $0x320] sm:$0xff] %vm1145_vm3, %v2303_v47  ;;  %3655 = vmatprep.mubr.f32.mxu0 %v3101_v1  ;;  %v5282_v46 = vld [vmem:[#allocation6 + $0x32] sm:$0xff] }
 0x27a   :  { %v4215_v53 = vmax.f32 %v3953_v48, 0.0  ;;  %1937 = vrot.lane.b32.xlu0 %v9554_v55, %s7941_s26  ;;  %3656 = vmatmul.mubr.f32.gmra.mrb[64].mxu0 %v3100_v17  ;;  %4659 = vst.msk [vmem:[#allocation7 + $0x48] sm:$0xff] %vm73_vm0, %v4643_v38  ;;  %5298 = vst.msk [vmem:[#allocation7 + $0x28] sm:$0xff] %vm73_vm0, %v5282_v46  ;;  %v637_v43 = vpop.permute.xlu1 %636  ;;  %v357_v48 = vld [vmem:[#allocation2 + $0x248] sm:$0xff]  ;;  %v240_v1 = vld [vmem:[#allocation12 + $0x1c8] sm:$0xff] }
 0x27b   :  { %795 = vst.msk [vmem:[#allocation3 + $0x330] sm:$0xff] %vm760_vm2, %v637_v43  ;;  %v3138_v52 = vld [vmem:[#allocation3 + $0x430] sm:$0xff]  ;;  %v10022_v38 = vld [vmem:[#allocation2 + $0x2da] sm:$0xff] }
 0x27c   :  { %4279 = vst.msk [vmem:[#allocation4 + $0x70] sm:$0xff] %vm73_vm0, %v4215_v53  ;;  %v2687_v51 = vpop.permute.xlu0 %2686  ;;  %1424 = vrot.lane.b32.xlu1 %v9903_v60, %s7945_s17  ;;  %421 = vst.msk [vmem:[#allocation3 + $0x438] sm:$0xff] %vm73_vm0, %v357_v48  ;;  %7251 = vmatprep.mubr.msk.f32.mxu1 %vm73_vm0, %v3138_v52 }
 0x27d   :  { %2845 = vst.msk [vmem:[#allocation3 + $0x320] sm:$0xff] %vm1530_vm4, %v2687_v51 }
 0x27e   :  { %2322 = vrot.lane.b32.xlu0 %v9981_v24, %s7944_s7  ;;  %v1022_v27 = vpop.permute.xlu1 %1021  ;;  %v3103_v0 = vld [vmem:[#allocation3 + $0x318] sm:$0xff]  ;;  %305 = vst.msk [vmem:[#allocation2 + $0x2f1] sm:$0xff] %vm73_vm0, %v240_v1  ;;  %2993 = vst.msk [vmem:[#allocation3 + $0x508] sm:$0xff] %vm73_vm0, %v10022_v38 }
 0x27f   :  { %1180 = vst.msk [vmem:[#allocation3 + $0x330] sm:$0xff] %vm1145_vm3, %v1022_v27 }
 0x280   :  { %v1920_v41 = vpop.permute.xlu0 %1919  ;;  %656 = vrot.lane.b32.xlu1 %v9475_v61, %s7941_s26  ;;  %v10011_v61 = vpop.f32.mrb[26].mxu1 }
 0x281   :  { %2077 = vst.msk [vmem:[#allocation3 + $0x338] sm:$0xff] %vm760_vm2, %v1920_v41  ;;  %v3572_v7 = vpop.f32.mrb[30].mxu0  ;;  %v10018_v32 = vpop.f32.mrb[27].mxu1 }
 0x282   :  { %v3573_v20 = vadd.f32 %v9882_v22, %v3572_v7  ;;  %2706 = vrot.lane.b32.xlu0 %v9575_v12, %s7945_s17  ;;  %v3574_v25 = vpop.f32.mrb[31].mxu0  ;;  %v1407_v47 = vpop.permute.xlu1 %1406  ;;  %v4336_v7 = vld [vmem:[#allocation4 + $0x68] sm:$0xff] }
 0x283   :  { %v4368_v40 = vld [vmem:[#allocation4 + $0x70] sm:$0xff]  ;;  %1565 = vst.msk [vmem:[#allocation3 + $0x330] sm:$0xff] %vm1530_vm4, %v1407_v47 }
 0x284   :  { %v4400_v60 = vmax.f32 %v4335_v56, %v4368_v40  ;;  %v3958_v15 = vadd.f32 %v9544_v35, %v3573_v20  ;;  %v2305_v17 = vpop.permute.xlu0 %2304  ;;  %v3104_v62 = vld [vmem:[#allocation3 + $0x320] sm:$0xff]  ;;  %1041 = vrot.lane.b32.xlu1 %v9522_v23, %s7944_s7  ;;  %v10016_v35 = vld [vmem:[#allocation2 + $0x270] sm:$0xff]  ;;  %v3141_v23 = vld [vmem:[#allocation3 + $0x448] sm:$0xff] }
 0x285   :  { %2462 = vst.msk [vmem:[#allocation3 + $0x338] sm:$0xff] %vm1145_vm3, %v2305_v17  ;;  %3660 = vmatprep.mubr.f32.mxu0 %v3104_v62  ;;  %7252 = vmatmul.mubr.msk.f32.gmra.mrb[44].mxu1 %vm73_vm0, %v3141_v23  ;;  %v241_v17 = vld [vmem:[#allocation12 + $0x1d0] sm:$0xff]  ;;  %v10054_v47 = vld [vmem:[#allocation2 + $0x2ea] sm:$0xff] }
 0x286   :  { %4432 = vst.msk [vmem:[#allocation5 + $0x30] sm:$0xff] %vm73_vm0, %v4400_v60  ;;  %v4216_v18 = vmax.f32 %v3958_v15, 0.0  ;;  %1939 = vrot.lane.b32.xlu0 %v9589_v36, %s7941_s26  ;;  %3661 = vmatmul.mubr.f32.gmra.mrb[66].mxu0 %v3103_v0  ;;  %v639_v53 = vpop.permute.xlu1 %638  ;;  %v358_v60 = vld [vmem:[#allocation2 + $0x258] sm:$0xff]  ;;  %306 = vst.msk [vmem:[#allocation2 + $0x301] sm:$0xff] %vm73_vm0, %v241_v17 }
 0x287   :  { %796 = vst.msk [vmem:[#allocation3 + $0x348] sm:$0xff] %vm760_vm2, %v639_v53 }
 0x288   :  { %4280 = vst.msk [vmem:[#allocation4 + $0x78] sm:$0xff] %vm73_vm0, %v4216_v18  ;;  %v2689_v6 = vpop.permute.xlu0 %2688  ;;  %1426 = vrot.lane.b32.xlu1 %v9939_v28, %s7945_s17  ;;  %422 = vst.msk [vmem:[#allocation3 + $0x450] sm:$0xff] %vm73_vm0, %v358_v60 }
 0x289   :  { %2846 = vst.msk [vmem:[#allocation3 + $0x338] sm:$0xff] %vm1530_vm4, %v2689_v6 }
 0x28a   :  { %2324 = vrot.lane.b32.xlu0 %v10016_v35, %s7944_s7  ;;  %v1024_v51 = vpop.permute.xlu1 %1023  ;;  %v3106_v28 = vld [vmem:[#allocation3 + $0x330] sm:$0xff]  ;;  %2994 = vst.msk [vmem:[#allocation3 + $0x520] sm:$0xff] %vm73_vm0, %v10054_v47 }
 0x28b   :  { %1181 = vst.msk [vmem:[#allocation3 + $0x348] sm:$0xff] %vm1145_vm3, %v1024_v51 }
 0x28c   :  { %v1922_v46 = vpop.permute.xlu0 %1921  ;;  %658 = vrot.lane.b32.xlu1 %v9510_v2, %s7941_s26  ;;  %v10050_v2 = vld [vmem:[#allocation2 + $0x278] sm:$0xff] }
 0x28d   :  { %2078 = vst.msk [vmem:[#allocation3 + $0x350] sm:$0xff] %vm760_vm2, %v1922_v46  ;;  %v3577_v43 = vpop.f32.mrb[32].mxu0 }
 0x28e   :  { %v3578_v41 = vadd.f32 %v9882_v22, %v3577_v43  ;;  %2708 = vrot.lane.b32.xlu0 %v9617_v26, %s7945_s17  ;;  %v3579_v27 = vpop.f32.mrb[33].mxu0  ;;  %v1409_v15 = vpop.permute.xlu1 %1408 }
 0x28f   :  { %v4369_v20 = vld [vmem:[#allocation4 + $0x78] sm:$0xff]  ;;  %1566 = vst.msk [vmem:[#allocation3 + $0x348] sm:$0xff] %vm1530_vm4, %v1409_v15  ;;  %v359_v27 = vld [vmem:[#allocation2 + $0x260] sm:$0xff] }
 0x290   :  { %v4401_v25 = vmax.f32 %v4336_v7, %v4369_v20  ;;  %v3963_v56 = vadd.f32 %v9632_v8, %v3578_v41  ;;  %v2307_v40 = vpop.permute.xlu0 %2306  ;;  %v3107_v0 = vld [vmem:[#allocation3 + $0x338] sm:$0xff]  ;;  %1043 = vrot.lane.b32.xlu1 %v9554_v55, %s7944_s7  ;;  %423 = vst.msk [vmem:[#allocation3 + $0x468] sm:$0xff] %vm73_vm0, %v359_v27  ;;  %v242_v20 = vld [vmem:[#allocation12 + $0x1d8] sm:$0xff] }
 0x291   :  { %2463 = vst.msk [vmem:[#allocation3 + $0x350] sm:$0xff] %vm1145_vm3, %v2307_v40  ;;  %3665 = vmatprep.mubr.f32.mxu0 %v3107_v0  ;;  %v10094_v0 = vld [vmem:[%s11925_s4] ss:$0 sm:$0xff] }
 0x292   :  { %4433 = vst.msk [vmem:[#allocation5 + $0x38] sm:$0xff] %vm73_vm0, %v4401_v25  ;;  %v4217_v62 = vmax.f32 %v3963_v56, 0.0  ;;  %1941 = vrot.lane.b32.xlu0 %v9637_v13, %s7941_s26  ;;  %3666 = vmatmul.mubr.f32.gmra.mrb[68].mxu0 %v3106_v28  ;;  %v641_v48 = vpop.permute.xlu1 %640  ;;  %v10076_v28 = vld [vmem:[%s11924_s3] ss:$0 sm:$0xff]  ;;  %307 = vst.msk [vmem:[#allocation2 + $0x309] sm:$0xff] %vm73_vm0, %v242_v20  ;;  %v10087_v56 = vld [vmem:[#allocation2 + $0x288] sm:$0xff] }
 0x293   :  { %797 = vst.msk [vmem:[#allocation3 + $0x360] sm:$0xff] %vm760_vm2, %v641_v48  ;;  %v10110_v48 = vld [vmem:[#allocation2 + $0x289] sm:$0xff] }
 0x294   :  { %4281 = vst.msk [vmem:[#allocation4 + $0x80] sm:$0xff] %vm73_vm0, %v4217_v62  ;;  %v2691_v8 = vpop.permute.xlu0 %2690  ;;  %1428 = vrot.lane.b32.xlu1 %v9981_v24, %s7945_s17  ;;  %v3144_v62 = vld [vmem:[#allocation3 + $0x460] sm:$0xff] }
 0x295   :  { %2847 = vst.msk [vmem:[#allocation3 + $0x350] sm:$0xff] %vm1530_vm4, %v2691_v8  ;;  %v10099_v8 = vld [vmem:[#allocation2 + $0x2f2] sm:$0xff]  ;;  %7254 = vmatprep.mubr.msk.f32.mxu1 %vm73_vm0, %v3144_v62 }
 0x296   :  { %2326 = vrot.lane.b32.xlu0 %v10050_v2, %s7944_s7  ;;  %v1026_v1 = vpop.permute.xlu1 %1025  ;;  %v3109_v46 = vld [vmem:[#allocation3 + $0x348] sm:$0xff]  ;;  %2995 = vst.msk [vmem:[#allocation3 + $0x538] sm:$0xff] %vm73_vm0, %v10099_v8 }
 0x297   :  { %1182 = vst.msk [vmem:[#allocation3 + $0x360] sm:$0xff] %vm1145_vm3, %v1026_v1 }
 0x298   :  { %v1924_v55 = vpop.permute.xlu0 %1923  ;;  %660 = vrot.lane.b32.xlu1 %v9957_v50, %s7941_s26 }
 0x299   :  { %2079 = vst.msk [vmem:[#allocation3 + $0x368] sm:$0xff] %vm760_vm2, %v1924_v55  ;;  %v3582_v18 = vpop.f32.mrb[34].mxu0  ;;  %v4464_v6 = vld [vmem:[#allocation5 + $0x30] ss:$2 sm:$0xff]  ;;  %v4496_v23 = vld [vmem:[#allocation5 + $0x31] ss:$2 sm:$0xff] }
 0x29a   :  { %v3583_v53 = vadd.f32 %v9882_v22, %v3582_v18  ;;  %2710 = vrot.lane.b32.xlu0 %v9662_v63, %s7945_s17  ;;  %v3584_v52 = vpop.f32.mrb[35].mxu0  ;;  %v4524_v24 = vmax.f32 %v4464_v6, %v4496_v23  ;;  %v1411_v7 = vpop.permute.xlu1 %1410 }
 0x29b   :  { %1567 = vst.msk [vmem:[#allocation3 + $0x360] sm:$0xff] %vm1530_vm4, %v1411_v7  ;;  %v1643_v52 = vld [vmem:[#allocation2 + $0x289] sm:$0xff] }
 0x29c   :  { %v3968_v51 = vadd.f32 %v9623_v42, %v3583_v53  ;;  %v2309_v43 = vpop.permute.xlu0 %2308  ;;  %v3110_v41 = vld [vmem:[#allocation3 + $0x350] sm:$0xff]  ;;  %v4547_v50 = vmul.f32 %v10076_v28, %v4524_v24  ;;  %v10082_v42 = vpop.f32.mrb[28].mxu1  ;;  %1045 = vrot.lane.b32.xlu1 %v9589_v36, %s7944_s7  ;;  %v3147_v36 = vld [vmem:[#allocation3 + $0x478] sm:$0xff]  ;;  %1707 = vst.msk [vmem:[#allocation3 + $0x488] sm:$0xff] %vm73_vm0, %v1643_v52 }
 0x29d   :  { %2464 = vst.msk [vmem:[#allocation3 + $0x368] sm:$0xff] %vm1145_vm3, %v2309_v43  ;;  %3670 = vmatprep.mubr.f32.mxu0 %v3110_v41  ;;  %v10089_v40 = vpop.f32.mrb[29].mxu1  ;;  %7255 = vmatmul.mubr.msk.f32.gmra.mrb[46].mxu1 %vm73_vm0, %v3147_v36  ;;  %v243_v41 = vld [vmem:[#allocation12 + $0x1e0] sm:$0xff]  ;;  %v361_v52 = vld [vmem:[#allocation2 + $0x278] sm:$0xff] }
 0x29e   :  { %v4218_v25 = vmax.f32 %v3968_v51, 0.0  ;;  %1943 = vrot.lane.b32.xlu0 %v9681_v3, %s7941_s26  ;;  %3671 = vmatmul.mubr.f32.gmra.mrb[70].mxu0 %v3109_v46  ;;  %v4570_v60 = vadd.f32 %v10094_v0, %v4547_v50  ;;  %v643_v17 = vpop.permute.xlu1 %642  ;;  %v360_v51 = vld [vmem:[#allocation2 + $0x270] sm:$0xff]  ;;  %308 = vst.msk [vmem:[#allocation2 + $0x319] sm:$0xff] %vm73_vm0, %v243_v41  ;;  %425 = vst.msk [vmem:[#allocation3 + $0x498] sm:$0xff] %vm73_vm0, %v361_v52 }
 0x29f   :  { %798 = vst.msk [vmem:[#allocation3 + $0x378] sm:$0xff] %vm760_vm2, %v643_v17  ;;  %v10130_v7 = vld [vmem:[#allocation2 + $0x290] sm:$0xff] }
 0x2a0   :  { %4282 = vst.msk [vmem:[#allocation4 + $0x88] sm:$0xff] %vm73_vm0, %v4218_v25  ;;  %v2693_v15 = vpop.permute.xlu0 %2692  ;;  %4627 = vst.msk [vmem:[#allocation6 + $0x41] sm:$0xff] %vm73_vm0, %v4570_v60  ;;  %1430 = vrot.lane.b32.xlu1 %v10016_v35, %s7945_s17  ;;  %v10137_v60 = vld [vmem:[#allocation2 + $0x302] sm:$0xff] }
 0x2a1   :  { %2848 = vst.msk [vmem:[#allocation3 + $0x368] sm:$0xff] %vm1530_vm4, %v2693_v15 }
 0x2a2   :  { %2328 = vrot.lane.b32.xlu0 %v10087_v56, %s7944_s7  ;;  %v1028_v1 = vpop.permute.xlu1 %1027  ;;  %v3112_v35 = vld [vmem:[#allocation3 + $0x360] sm:$0xff]  ;;  %424 = vst.msk [vmem:[#allocation3 + $0x480] sm:$0xff] %vm73_vm0, %v360_v51  ;;  %2996 = vst.msk [vmem:[#allocation3 + $0x550] sm:$0xff] %vm73_vm0, %v10137_v60 }
 0x2a3   :  { %1183 = vst.msk [vmem:[#allocation3 + $0x378] sm:$0xff] %vm1145_vm3, %v1028_v1 }
 0x2a4   :  { %v1926_v55 = vpop.permute.xlu0 %1925  ;;  %662 = vrot.lane.b32.xlu1 %v9575_v12, %s7941_s26 }
 0x2a5   :  { %2080 = vst.msk [vmem:[#allocation3 + $0x380] sm:$0xff] %vm760_vm2, %v1926_v55  ;;  %v3587_v18 = vpop.f32.mrb[36].mxu0  ;;  %v4337_v55 = vld [vmem:[#allocation4 + $0x80] sm:$0xff] }
 0x2a6   :  { %v3588_v6 = vadd.f32 %v9882_v22, %v3587_v18  ;;  %2712 = vrot.lane.b32.xlu0 %v10110_v48, %s7945_s17  ;;  %v3589_v53 = vpop.f32.mrb[37].mxu0  ;;  %v1413_v43 = vpop.permute.xlu1 %1412 }
 0x2a7   :  { %1568 = vst.msk [vmem:[#allocation3 + $0x378] sm:$0xff] %vm1530_vm4, %v1413_v43  ;;  %v4963_v12 = vld [vmem:[#allocation6 + $0x41] sm:$0xff] }
 0x2a8   :  { %v3973_v23 = vadd.f32 %v9711_v34, %v3588_v6  ;;  %v2311_v46 = vpop.permute.xlu0 %2310  ;;  %v3113_v24 = vld [vmem:[#allocation3 + $0x368] sm:$0xff]  ;;  %v4644_v34 = vld [vmem:[#allocation6 + $0x40] sm:$0xff]  ;;  %1047 = vrot.lane.b32.xlu1 %v9637_v13, %s7944_s7  ;;  %4979 = vst.msk [vmem:[#allocation7 + $0x50] sm:$0xff] %vm73_vm0, %v4963_v12 }
 0x2a9   :  { %2465 = vst.msk [vmem:[#allocation3 + $0x380] sm:$0xff] %vm1145_vm3, %v2311_v46  ;;  %3675 = vmatprep.mubr.f32.mxu0 %v3113_v24  ;;  %v5283_v20 = vld [vmem:[#allocation6 + $0x42] sm:$0xff]  ;;  %v244_v46 = vld [vmem:[#allocation12 + $0x1e8] sm:$0xff]  ;;  %v10171_v12 = vld [vmem:[#allocation2 + $0x30a] sm:$0xff] }
 0x2aa   :  { %v4219_v27 = vmax.f32 %v3973_v23, 0.0  ;;  %1945 = vrot.lane.b32.xlu0 %v9715_v11, %s7941_s26  ;;  %3676 = vmatmul.mubr.f32.gmra.mrb[72].mxu0 %v3112_v35  ;;  %4660 = vst.msk [vmem:[#allocation7 + $0x60] sm:$0xff] %vm73_vm0, %v4644_v34  ;;  %5299 = vst.msk [vmem:[#allocation7 + $0x40] sm:$0xff] %vm73_vm0, %v5283_v20  ;;  %v645_v25 = vpop.permute.xlu1 %644 }
 0x2ab   :  { %799 = vst.msk [vmem:[#allocation3 + $0x390] sm:$0xff] %vm760_vm2, %v645_v25 }
 0x2ac   :  { %4283 = vst.msk [vmem:[#allocation4 + $0x90] sm:$0xff] %vm73_vm0, %v4219_v27  ;;  %v2695_v50 = vpop.permute.xlu0 %2694  ;;  %1432 = vrot.lane.b32.xlu1 %v10050_v2, %s7945_s17  ;;  %309 = vst.msk [vmem:[#allocation2 + $0x321] sm:$0xff] %vm73_vm0, %v244_v46  ;;  %v3150_v27 = vld [vmem:[#allocation3 + $0x490] sm:$0xff] }
 0x2ad   :  { %2849 = vst.msk [vmem:[#allocation3 + $0x380] sm:$0xff] %vm1530_vm4, %v2695_v50  ;;  %7257 = vmatprep.mubr.msk.f32.mxu1 %vm73_vm0, %v3150_v27 }
 0x2ae   :  { %2330 = vrot.lane.b32.xlu0 %v10130_v7, %s7944_s7  ;;  %v1030_v15 = vpop.permute.xlu1 %1029  ;;  %v3115_v18 = vld [vmem:[#allocation3 + $0x378] sm:$0xff]  ;;  %2997 = vst.msk [vmem:[#allocation3 + $0x568] sm:$0xff] %vm73_vm0, %v10171_v12 }
 0x2af   :  { %1184 = vst.msk [vmem:[#allocation3 + $0x390] sm:$0xff] %vm1145_vm3, %v1030_v15  ;;  %v4338_v15 = vld [vmem:[#allocation4 + $0x88] sm:$0xff] }
 0x2b0   :  { %v1928_v13 = vpop.permute.xlu0 %1927  ;;  %664 = vrot.lane.b32.xlu1 %v9617_v26, %s7941_s26  ;;  %v10160_v26 = vpop.f32.mrb[30].mxu1 }
 0x2b1   :  { %2081 = vst.msk [vmem:[#allocation3 + $0x398] sm:$0xff] %vm760_vm2, %v1928_v13  ;;  %v3592_v17 = vpop.f32.mrb[38].mxu0  ;;  %v10167_v51 = vpop.f32.mrb[31].mxu1 }
 0x2b2   :  { %v3593_v62 = vadd.f32 %v9882_v22, %v3592_v17  ;;  %2714 = vrot.lane.b32.xlu0 %v9736_v37, %s7945_s17  ;;  %v3594_v36 = vpop.f32.mrb[39].mxu0  ;;  %v1415_v23 = vpop.permute.xlu1 %1414 }
 0x2b3   :  { %v4370_v1 = vld [vmem:[#allocation4 + $0x90] sm:$0xff]  ;;  %1569 = vst.msk [vmem:[#allocation3 + $0x390] sm:$0xff] %vm1530_vm4, %v1415_v23  ;;  %v10203_v52 = vld [vmem:[#allocation2 + $0x31a] sm:$0xff] }
 0x2b4   :  { %v4402_v2 = vmax.f32 %v4337_v55, %v4370_v1  ;;  %v3978_v6 = vadd.f32 %v9704_v10, %v3593_v62  ;;  %v2313_v53 = vpop.permute.xlu0 %2312  ;;  %v3116_v35 = vld [vmem:[#allocation3 + $0x380] sm:$0xff]  ;;  %1049 = vrot.lane.b32.xlu1 %v9681_v3, %s7944_s7  ;;  %v3153_v3 = vld [vmem:[#allocation3 + $0x4a8] sm:$0xff]  ;;  %2998 = vst.msk [vmem:[#allocation3 + $0x580] sm:$0xff] %vm73_vm0, %v10203_v52 }
 0x2b5   :  { %2466 = vst.msk [vmem:[#allocation3 + $0x398] sm:$0xff] %vm1145_vm3, %v2313_v53  ;;  %3680 = vmatprep.mubr.f32.mxu0 %v3116_v35  ;;  %v10165_v10 = vld [vmem:[#allocation2 + $0x2a0] sm:$0xff]  ;;  %7258 = vmatmul.mubr.msk.f32.gmra.mrb[48].mxu1 %vm73_vm0, %v3153_v3 }
 0x2b6   :  { %4434 = vst.msk [vmem:[#allocation5 + $0x40] sm:$0xff] %vm73_vm0, %v4402_v2  ;;  %v4220_v24 = vmax.f32 %v3978_v6, 0.0  ;;  %1947 = vrot.lane.b32.xlu0 %v9751_v39, %s7941_s26  ;;  %3681 = vmatmul.mubr.f32.gmra.mrb[74].mxu0 %v3115_v18  ;;  %v647_v41 = vpop.permute.xlu1 %646  ;;  %v362_v18 = vld [vmem:[#allocation2 + $0x288] sm:$0xff]  ;;  %v245_v6 = vld [vmem:[#allocation12 + $0x1f0] sm:$0xff] }
 0x2b7   :  { %800 = vst.msk [vmem:[#allocation3 + $0x3a8] sm:$0xff] %vm760_vm2, %v647_v41 }
 0x2b8   :  { %4284 = vst.msk [vmem:[#allocation4 + $0x98] sm:$0xff] %vm73_vm0, %v4220_v24  ;;  %v2697_v43 = vpop.permute.xlu0 %2696  ;;  %1434 = vrot.lane.b32.xlu1 %v10087_v56, %s7945_s17  ;;  %426 = vst.msk [vmem:[#allocation3 + $0x4b0] sm:$0xff] %vm73_vm0, %v362_v18  ;;  %v3156_v18 = vld [vmem:[#allocation3 + $0x4c0] sm:$0xff] }
 0x2b9   :  { %2850 = vst.msk [vmem:[#allocation3 + $0x398] sm:$0xff] %vm1530_vm4, %v2697_v43  ;;  %7260 = vmatprep.mubr.msk.f32.mxu1 %vm73_vm0, %v3156_v18 }
 0x2ba   :  { %2332 = vrot.lane.b32.xlu0 %v10165_v10, %s7944_s7  ;;  %v1032_v20 = vpop.permute.xlu1 %1031  ;;  %v3118_v56 = vld [vmem:[#allocation3 + $0x390] sm:$0xff]  ;;  %310 = vst.msk [vmem:[#allocation2 + $0x331] sm:$0xff] %vm73_vm0, %v245_v6  ;;  %v10249_v6 = vld [vmem:[#allocation2 + $0x2b9] sm:$0xff] }
 0x2bb   :  { %1185 = vst.msk [vmem:[#allocation3 + $0x3a8] sm:$0xff] %vm1145_vm3, %v1032_v20 }
 0x2bc   :  { %v1930_v34 = vpop.permute.xlu0 %1929  ;;  %666 = vrot.lane.b32.xlu1 %v9662_v63, %s7941_s26  ;;  %v10199_v63 = vld [vmem:[#allocation2 + $0x2a8] sm:$0xff] }
 0x2bd   :  { %2082 = vst.msk [vmem:[#allocation3 + $0x3b0] sm:$0xff] %vm760_vm2, %v1930_v34  ;;  %v3597_v50 = vpop.f32.mrb[40].mxu0 }
 0x2be   :  { %v3598_v25 = vadd.f32 %v9882_v22, %v3597_v50  ;;  %2716 = vrot.lane.b32.xlu0 %v9770_v19, %s7945_s17  ;;  %v3599_v13 = vpop.f32.mrb[41].mxu0  ;;  %v1417_v2 = vpop.permute.xlu1 %1416 }
 0x2bf   :  { %v4371_v17 = vld [vmem:[#allocation4 + $0x98] sm:$0xff]  ;;  %1570 = vst.msk [vmem:[#allocation3 + $0x3a8] sm:$0xff] %vm1530_vm4, %v1417_v2  ;;  %v10238_v2 = vld [vmem:[#allocation2 + $0x322] sm:$0xff] }
 0x2c0   :  { %v4403_v62 = vmax.f32 %v4338_v15, %v4371_v17  ;;  %v3983_v36 = vadd.f32 %v9785_v44, %v3598_v25  ;;  %v2315_v55 = vpop.permute.xlu0 %2314  ;;  %v3119_v1 = vld [vmem:[#allocation3 + $0x398] sm:$0xff]  ;;  %1051 = vrot.lane.b32.xlu1 %v9715_v11, %s7944_s7  ;;  %v363_v25 = vld [vmem:[#allocation2 + $0x290] sm:$0xff]  ;;  %v246_v15 = vld [vmem:[#allocation12 + $0x1f8] sm:$0xff]  ;;  %2999 = vst.msk [vmem:[#allocation3 + $0x598] sm:$0xff] %vm73_vm0, %v10238_v2 }
 0x2c1   :  { %2467 = vst.msk [vmem:[#allocation3 + $0x3b0] sm:$0xff] %vm1145_vm3, %v2315_v55  ;;  %3685 = vmatprep.mubr.f32.mxu0 %v3119_v1 }
 0x2c2   :  { %4435 = vst.msk [vmem:[#allocation5 + $0x48] sm:$0xff] %vm73_vm0, %v4403_v62  ;;  %v4221_v53 = vmax.f32 %v3983_v36, 0.0  ;;  %1949 = vrot.lane.b32.xlu0 %v9790_v30, %s7941_s26  ;;  %3686 = vmatmul.mubr.f32.gmra.mrb[76].mxu0 %v3118_v56  ;;  %v649_v35 = vpop.permute.xlu1 %648  ;;  %427 = vst.msk [vmem:[#allocation3 + $0x4c8] sm:$0xff] %vm73_vm0, %v363_v25 }
 0x2c3   :  { %801 = vst.msk [vmem:[#allocation3 + $0x3c0] sm:$0xff] %vm760_vm2, %v649_v35 }
 0x2c4   :  { %4285 = vst.msk [vmem:[#allocation4 + $0xa0] sm:$0xff] %vm73_vm0, %v4221_v53  ;;  %v2699_v44 = vpop.permute.xlu0 %2698  ;;  %1436 = vrot.lane.b32.xlu1 %v10130_v7, %s7945_s17  ;;  %311 = vst.msk [vmem:[#allocation2 + $0x339] sm:$0xff] %vm73_vm0, %v246_v15 }
 0x2c5   :  { %2851 = vst.msk [vmem:[#allocation3 + $0x3b0] sm:$0xff] %vm1530_vm4, %v2699_v44 }
 0x2c6   :  { %2334 = vrot.lane.b32.xlu0 %v10199_v63, %s7944_s7  ;;  %v1034_v23 = vpop.permute.xlu1 %1033  ;;  %v3121_v3 = vld [vmem:[#allocation3 + $0x3a8] sm:$0xff] }
 0x2c7   :  { %1186 = vst.msk [vmem:[#allocation3 + $0x3c0] sm:$0xff] %vm1145_vm3, %v1034_v23 }
 0x2c8   :  { %v1932_v11 = vpop.permute.xlu0 %1931  ;;  %668 = vrot.lane.b32.xlu1 %v10110_v48, %s7941_s26  ;;  %v10231_v48 = vld [vmem:[#allocation2 + $0x2b8] sm:$0xff] }
 0x2c9   :  { %2083 = vst.msk [vmem:[#allocation3 + $0x3c8] sm:$0xff] %vm760_vm2, %v1932_v11  ;;  %v3602_v46 = vpop.f32.mrb[42].mxu0  ;;  %v4466_v24 = vld [vmem:[#allocation5 + $0x40] ss:$2 sm:$0xff]  ;;  %v4498_v27 = vld [vmem:[#allocation5 + $0x41] ss:$2 sm:$0xff] }
 0x2ca   :  { %v3603_v43 = vadd.f32 %v9882_v22, %v3602_v46  ;;  %2718 = vrot.lane.b32.xlu0 %v9815_v58, %s7945_s17  ;;  %v3604_v41 = vpop.f32.mrb[43].mxu0  ;;  %v4525_v7 = vmax.f32 %v4466_v24, %v4498_v27  ;;  %v1419_v13 = vpop.permute.xlu1 %1418  ;;  %v1647_v46 = vld [vmem:[#allocation2 + $0x2b9] sm:$0xff] }
 0x2cb   :  { %1571 = vst.msk [vmem:[#allocation3 + $0x3c0] sm:$0xff] %vm1530_vm4, %v1419_v13  ;;  %v364_v27 = vld [vmem:[#allocation2 + $0x2a0] sm:$0xff]  ;;  %v10278_v13 = vld [vmem:[#allocation2 + $0x332] sm:$0xff] }
 0x2cc   :  { %v3988_v34 = vadd.f32 %v9776_v9, %v3603_v43  ;;  %v2317_v20 = vpop.permute.xlu0 %2316  ;;  %v3122_v50 = vld [vmem:[#allocation3 + $0x3b0] sm:$0xff]  ;;  %v4548_v17 = vmul.f32 %v10076_v28, %v4525_v7  ;;  %v10226_v9 = vpop.f32.mrb[32].mxu1  ;;  %1053 = vrot.lane.b32.xlu1 %v9751_v39, %s7944_s7  ;;  %v3159_v39 = vld [vmem:[#allocation3 + $0x4d8] sm:$0xff]  ;;  %1711 = vst.msk [vmem:[#allocation3 + $0x4e8] sm:$0xff] %vm73_vm0, %v1647_v46  ;;  %428 = vst.msk [vmem:[#allocation3 + $0x4e0] sm:$0xff] %vm73_vm0, %v364_v27 }
 0x2cd   :  { %2468 = vst.msk [vmem:[#allocation3 + $0x3c8] sm:$0xff] %vm1145_vm3, %v2317_v20  ;;  %3690 = vmatprep.mubr.f32.mxu0 %v3122_v50  ;;  %v10233_v62 = vpop.f32.mrb[33].mxu1  ;;  %7261 = vmatmul.mubr.msk.f32.gmra.mrb[50].mxu1 %vm73_vm0, %v3159_v39  ;;  %v10272_v20 = vld [vmem:[#allocation2 + $0x2c0] sm:$0xff] }
 0x2ce   :  { %v4222_v56 = vmax.f32 %v3988_v34, 0.0  ;;  %1951 = vrot.lane.b32.xlu0 %v9832_v45, %s7941_s26  ;;  %3691 = vmatmul.mubr.f32.gmra.mrb[78].mxu0 %v3121_v3  ;;  %v4571_v36 = vadd.f32 %v10094_v0, %v4548_v17  ;;  %v651_v1 = vpop.permute.xlu1 %650  ;;  %3000 = vst.msk [vmem:[#allocation3 + $0x5b0] sm:$0xff] %vm73_vm0, %v10278_v13 }
 0x2cf   :  { %802 = vst.msk [vmem:[#allocation3 + $0x3d8] sm:$0xff] %vm760_vm2, %v651_v1 }
 0x2d0   :  { %4286 = vst.msk [vmem:[#allocation4 + $0xa8] sm:$0xff] %vm73_vm0, %v4222_v56  ;;  %v2701_v55 = vpop.permute.xlu0 %2700  ;;  %4628 = vst.msk [vmem:[#allocation6 + $0x51] sm:$0xff] %vm73_vm0, %v4571_v36  ;;  %1438 = vrot.lane.b32.xlu1 %v10165_v10, %s7945_s17 }
 0x2d1   :  { %2852 = vst.msk [vmem:[#allocation3 + $0x3c8] sm:$0xff] %vm1530_vm4, %v2701_v55  ;;  %v4339_v55 = vld [vmem:[#allocation4 + $0xa0] sm:$0xff] }
 0x2d2   :  { %2336 = vrot.lane.b32.xlu0 %v10231_v48, %s7944_s7  ;;  %v1036_v44 = vpop.permute.xlu1 %1035  ;;  %v3124_v10 = vld [vmem:[#allocation3 + $0x3c0] sm:$0xff] }
 0x2d3   :  { %1187 = vst.msk [vmem:[#allocation3 + $0x3d8] sm:$0xff] %vm1145_vm3, %v1036_v44 }
 0x2d4   :  { %v1934_v53 = vpop.permute.xlu0 %1933  ;;  %670 = vrot.lane.b32.xlu1 %v9736_v37, %s7941_s26 }
 0x2d5   :  { %2084 = vst.msk [vmem:[#allocation3 + $0x3e0] sm:$0xff] %vm760_vm2, %v1934_v53  ;;  %v3607_v35 = vpop.f32.mrb[44].mxu0 }
 0x2d6   :  { %v3608_v11 = vadd.f32 %v9882_v22, %v3607_v35  ;;  %2720 = vrot.lane.b32.xlu0 %v10249_v6, %s7945_s17  ;;  %v3609_v23 = vpop.f32.mrb[45].mxu0  ;;  %v1421_v3 = vpop.permute.xlu1 %1420  ;;  %v365_v35 = vld [vmem:[#allocation2 + $0x2a8] sm:$0xff] }
 0x2d7   :  { %v10263_v7 = vld [vmem:[#allocation6 + $0x51] sm:$0xff]  ;;  %1572 = vst.msk [vmem:[#allocation3 + $0x3d8] sm:$0xff] %vm1530_vm4, %v1421_v3 }
 0x2d8   :  { %v3993_v24 = vadd.f32 %v9862_v49, %v3608_v11  ;;  %v2319_v43 = vpop.permute.xlu0 %2318  ;;  %v3125_v41 = vld [vmem:[#allocation3 + $0x3c8] sm:$0xff]  ;;  %4980 = vst.msk [vmem:[#allocation7 + $0x68] sm:$0xff] %vm73_vm0, %v10263_v7  ;;  %v4645_v37 = vld [vmem:[#allocation6 + $0x50] sm:$0xff]  ;;  %1055 = vrot.lane.b32.xlu1 %v9790_v30, %s7944_s7  ;;  %429 = vst.msk [vmem:[#allocation3 + $0x4f8] sm:$0xff] %vm73_vm0, %v365_v35 }
 0x2d9   :  { %2469 = vst.msk [vmem:[#allocation3 + $0x3e0] sm:$0xff] %vm1145_vm3, %v2319_v43  ;;  %3695 = vmatprep.mubr.f32.mxu0 %v3125_v41  ;;  %v5284_v49 = vld [vmem:[#allocation6 + $0x52] sm:$0xff]  ;;  %v10311_v43 = vld [vmem:[#allocation2 + $0x33a] sm:$0xff] }
 0x2da   :  { %v4223_v34 = vmax.f32 %v3993_v24, 0.0  ;;  %1953 = vrot.lane.b32.xlu0 %v9866_v4, %s7941_s26  ;;  %3696 = vmatmul.mubr.f32.gmra.mrb[80].mxu0 %v3124_v10  ;;  %4661 = vst.msk [vmem:[#allocation7 + $0x78] sm:$0xff] %vm73_vm0, %v4645_v37  ;;  %5300 = vst.msk [vmem:[#allocation7 + $0x58] sm:$0xff] %vm73_vm0, %v5284_v49  ;;  %v653_v25 = vpop.permute.xlu1 %652  ;;  %v3162_v24 = vld [vmem:[#allocation3 + $0x4f0] sm:$0xff]  ;;  %v4340_v49 = vld [vmem:[#allocation4 + $0xa8] sm:$0xff] }
 0x2db   :  { %803 = vst.msk [vmem:[#allocation3 + $0x3f0] sm:$0xff] %vm760_vm2, %v653_v25  ;;  %7263 = vmatprep.mubr.msk.f32.mxu1 %vm73_vm0, %v3162_v24 }
 0x2dc   :  { %4287 = vst.msk [vmem:[#allocation4 + $0xb0] sm:$0xff] %vm73_vm0, %v4223_v34  ;;  %v2703_v50 = vpop.permute.xlu0 %2702  ;;  %1440 = vrot.lane.b32.xlu1 %v10199_v63, %s7945_s17  ;;  %3001 = vst.msk [vmem:[#allocation3 + $0x5c8] sm:$0xff] %vm73_vm0, %v10311_v43  ;;  %v10327_v34 = vld [vmem:[%s11923_s2] ss:$0 sm:$0xff] }
 0x2dd   :  { %2853 = vst.msk [vmem:[#allocation3 + $0x3e0] sm:$0xff] %vm1530_vm4, %v2703_v50 }
 0x2de   :  { %2338 = vrot.lane.b32.xlu0 %v10272_v20, %s7944_s7  ;;  %v1038_v15 = vpop.permute.xlu1 %1037  ;;  %v3127_v18 = vld [vmem:[#allocation3 + $0x3d8] sm:$0xff] }
 0x2df   :  { %1188 = vst.msk [vmem:[#allocation3 + $0x3f0] sm:$0xff] %vm1145_vm3, %v1038_v15 }
 0x2e0   :  { %v1936_v30 = vpop.permute.xlu0 %1935  ;;  %672 = vrot.lane.b32.xlu1 %v9770_v19, %s7941_s26  ;;  %v10301_v19 = vpop.f32.mrb[34].mxu1 }
 0x2e1   :  { %2085 = vst.msk [vmem:[#allocation3 + $0x3f8] sm:$0xff] %vm760_vm2, %v1936_v30  ;;  %v3612_v17 = vpop.f32.mrb[46].mxu0  ;;  %v10307_v23 = vpop.f32.mrb[35].mxu1 }
 0x2e2   :  { %v3613_v56 = vadd.f32 %v9882_v22, %v3612_v17  ;;  %2722 = vrot.lane.b32.xlu0 %v9892_v59, %s7945_s17  ;;  %v3614_v36 = vpop.f32.mrb[47].mxu0  ;;  %v1423_v11 = vpop.permute.xlu1 %1422 }
 0x2e3   :  { %v4372_v1 = vld [vmem:[#allocation4 + $0xb0] sm:$0xff]  ;;  %1573 = vst.msk [vmem:[#allocation3 + $0x3f0] sm:$0xff] %vm1530_vm4, %v1423_v11  ;;  %v366_v36 = vld [vmem:[#allocation2 + $0x2b8] sm:$0xff] }
 0x2e4   :  { %v4404_v63 = vmax.f32 %v4339_v55, %v4372_v1  ;;  %v3998_v39 = vadd.f32 %v9855_v31, %v3613_v56  ;;  %v2321_v53 = vpop.permute.xlu0 %2320  ;;  %v3128_v44 = vld [vmem:[#allocation3 + $0x3e0] sm:$0xff]  ;;  %1057 = vrot.lane.b32.xlu1 %v9832_v45, %s7944_s7  ;;  %v10305_v31 = vld [vmem:[#allocation2 + $0x2d0] sm:$0xff]  ;;  %v3165_v45 = vld [vmem:[#allocation3 + $0x508] sm:$0xff]  ;;  %430 = vst.msk [vmem:[#allocation3 + $0x510] sm:$0xff] %vm73_vm0, %v366_v36 }
 0x2e5   :  { %2470 = vst.msk [vmem:[#allocation3 + $0x3f8] sm:$0xff] %vm1145_vm3, %v2321_v53  ;;  %3700 = vmatprep.mubr.f32.mxu0 %v3128_v44  ;;  %7264 = vmatmul.mubr.msk.f32.gmra.mrb[52].mxu1 %vm73_vm0, %v3165_v45 }
 0x2e6   :  { %4436 = vst.msk [vmem:[#allocation5 + $0x50] sm:$0xff] %vm73_vm0, %v4404_v63  ;;  %v4224_v22 = vmax.f32 %v3998_v39, 0.0  ;;  %1955 = vrot.lane.b32.xlu0 %v9907_v33, %s7941_s26  ;;  %3701 = vmatmul.mubr.f32.gmra.mrb[82].mxu0 %v3127_v18  ;;  %v655_v46 = vpop.permute.xlu1 %654 }
 0x2e7   :  { %804 = vst.msk [vmem:[#allocation3 + $0x408] sm:$0xff] %vm760_vm2, %v655_v46 }
 0x2e8   :  { %4288 = vst.msk [vmem:[#allocation4 + $0xb8] sm:$0xff] %vm73_vm0, %v4224_v22  ;;  %v2705_v10 = vpop.permute.xlu0 %2704  ;;  %1442 = vrot.lane.b32.xlu1 %v10231_v48, %s7945_s17 }
 0x2e9   :  { %2854 = vst.msk [vmem:[#allocation3 + $0x3f8] sm:$0xff] %vm1530_vm4, %v2705_v10 }
 0x2ea   :  { %2340 = vrot.lane.b32.xlu0 %v10305_v31, %s7944_s7  ;;  %v1040_v27 = vpop.permute.xlu1 %1039  ;;  %v3130_v25 = vld [vmem:[#allocation3 + $0x3f0] sm:$0xff] }
 0x2eb   :  { %1189 = vst.msk [vmem:[#allocation3 + $0x408] sm:$0xff] %vm1145_vm3, %v1040_v27  ;;  %v367_v27 = vld [vmem:[#allocation2 + $0x2c0] sm:$0xff] }
 0x2ec   :  { %v1938_v41 = vpop.permute.xlu0 %1937  ;;  %674 = vrot.lane.b32.xlu1 %v9815_v58, %s7941_s26  ;;  %v10343_v58 = vld [vmem:[#allocation2 + $0x2d8] sm:$0xff]  ;;  %431 = vst.msk [vmem:[#allocation3 + $0x528] sm:$0xff] %vm73_vm0, %v367_v27 }
 0x2ed   :  { %2086 = vst.msk [vmem:[#allocation3 + $0x410] sm:$0xff] %vm760_vm2, %v1938_v41  ;;  %v3617_v3 = vpop.f32.mrb[48].mxu0 }
 0x2ee   :  { %v3618_v37 = vadd.f32 %v10327_v34, %v3617_v3  ;;  %2724 = vrot.lane.b32.xlu0 %v9926_v21, %s7945_s17  ;;  %v3619_v48 = vpop.f32.mrb[49].mxu0  ;;  %v1425_v55 = vpop.permute.xlu1 %1424 }
 0x2ef   :  { %v4373_v50 = vld [vmem:[#allocation4 + $0xb8] sm:$0xff]  ;;  %1574 = vst.msk [vmem:[#allocation3 + $0x408] sm:$0xff] %vm1530_vm4, %v1425_v55 }
 0x2f0   :  { %v4405_v30 = vmax.f32 %v4340_v49, %v4373_v50  ;;  %v4003_v15 = vadd.f32 %v9941_v57, %v3618_v37  ;;  %v2323_v17 = vpop.permute.xlu0 %2322  ;;  %v3131_v56 = vld [vmem:[#allocation3 + $0x3f8] sm:$0xff]  ;;  %1059 = vrot.lane.b32.xlu1 %v9866_v4, %s7944_s7 }
 0x2f1   :  { %2471 = vst.msk [vmem:[#allocation3 + $0x410] sm:$0xff] %vm1145_vm3, %v2323_v17  ;;  %3705 = vmatprep.mubr.f32.mxu0 %v3131_v56  ;;  %v3171_v56 = vld [vmem:[#allocation3 + $0x538] sm:$0xff] }
 0x2f2   :  { %4437 = vst.msk [vmem:[#allocation5 + $0x58] sm:$0xff] %vm73_vm0, %v4405_v30  ;;  %v4225_v1 = vmax.f32 %v4003_v15, 0.0  ;;  %1957 = vrot.lane.b32.xlu0 %v9946_v14, %s7941_s26  ;;  %3706 = vmatmul.mubr.f32.gmra.mrb[84].mxu0 %v3130_v25  ;;  %v657_v18 = vpop.permute.xlu1 %656  ;;  %v3168_v30 = vld [vmem:[#allocation3 + $0x520] sm:$0xff] }
 0x2f3   :  { %805 = vst.msk [vmem:[#allocation3 + $0x420] sm:$0xff] %vm760_vm2, %v657_v18  ;;  %7266 = vmatprep.mubr.msk.f32.mxu1 %vm73_vm0, %v3168_v30 }
 0x2f4   :  { %4289 = vst.msk [vmem:[#allocation4 + $0xc0] sm:$0xff] %vm73_vm0, %v4225_v1  ;;  %v2707_v57 = vpop.permute.xlu0 %2706  ;;  %1444 = vrot.lane.b32.xlu1 %v10272_v20, %s7945_s17  ;;  %7267 = vmatmul.mubr.msk.f32.gmra.mrb[54].mxu1 %vm73_vm0, %v3171_v56 }
 0x2f5   :  { %2855 = vst.msk [vmem:[#allocation3 + $0x410] sm:$0xff] %vm1530_vm4, %v2707_v57 }
 0x2f6   :  { %2342 = vrot.lane.b32.xlu0 %v10343_v58, %s7944_s7  ;;  %v1042_v4 = vpop.permute.xlu1 %1041  ;;  %v3133_v20 = vld [vmem:[#allocation3 + $0x408] sm:$0xff] }
 0x2f7   :  { %1190 = vst.msk [vmem:[#allocation3 + $0x420] sm:$0xff] %vm1145_vm3, %v1042_v4 }
 0x2f8   :  { %v1940_v63 = vpop.permute.xlu0 %1939  ;;  %676 = vrot.lane.b32.xlu1 %v10249_v6, %s7941_s26  ;;  %v10369_v6 = vld [vmem:[#allocation2 + $0x2e8] sm:$0xff]  ;;  %v10372_v48 = vpop.f32.mrb[36].mxu1 }
 0x2f9   :  { %2087 = vst.msk [vmem:[#allocation3 + $0x428] sm:$0xff] %vm760_vm2, %v1940_v63  ;;  %v3622_v39 = vpop.f32.mrb[50].mxu0  ;;  %v4468_v53 = vld [vmem:[#allocation5 + $0x50] ss:$2 sm:$0xff]  ;;  %v4500_v44 = vld [vmem:[#allocation5 + $0x51] ss:$2 sm:$0xff] }
 0x2fa   :  { %v3623_v35 = vadd.f32 %v10327_v34, %v3622_v39  ;;  %2726 = vrot.lane.b32.xlu0 %v9971_v16, %s7945_s17  ;;  %v3624_v11 = vpop.f32.mrb[51].mxu0  ;;  %v4526_v22 = vmax.f32 %v4468_v53, %v4500_v44  ;;  %v1427_v41 = vpop.permute.xlu1 %1426 }
 0x2fb   :  { %1575 = vst.msk [vmem:[#allocation3 + $0x420] sm:$0xff] %vm1530_vm4, %v1427_v41  ;;  %v10376_v50 = vpop.f32.mrb[37].mxu1  ;;  %v4341_v41 = vld [vmem:[#allocation4 + $0xc0] sm:$0xff] }
 0x2fc   :  { %v4008_v10 = vadd.f32 %v9932_v5, %v3623_v35  ;;  %v2325_v46 = vpop.permute.xlu0 %2324  ;;  %v3134_v24 = vld [vmem:[#allocation3 + $0x410] sm:$0xff]  ;;  %v4549_v45 = vmul.f32 %v10076_v28, %v4526_v22  ;;  %1061 = vrot.lane.b32.xlu1 %v9907_v33, %s7944_s7 }
 0x2fd   :  { %2472 = vst.msk [vmem:[#allocation3 + $0x428] sm:$0xff] %vm1145_vm3, %v2325_v46  ;;  %3710 = vmatprep.mubr.f32.mxu0 %v3134_v24  ;;  %v10383_v33 = vld [vmem:[#allocation2 + $0x2e9] sm:$0xff] }
 0x2fe   :  { %v4226_v3 = vmax.f32 %v4008_v10, 0.0  ;;  %1959 = vrot.lane.b32.xlu0 %v9988_v54, %s7941_s26  ;;  %3711 = vmatmul.mubr.f32.gmra.mrb[86].mxu0 %v3133_v20  ;;  %v4572_v5 = vadd.f32 %v10094_v0, %v4549_v45  ;;  %v659_v49 = vpop.permute.xlu1 %658  ;;  %v368_v35 = vld [vmem:[#allocation2 + $0x2d0] sm:$0xff] }
 0x2ff   :  { %806 = vst.msk [vmem:[#allocation3 + $0x438] sm:$0xff] %vm760_vm2, %v659_v49 }
 0x300   :  { %4290 = vst.msk [vmem:[#allocation4 + $0xc8] sm:$0xff] %vm73_vm0, %v4226_v3  ;;  %v2709_v37 = vpop.permute.xlu0 %2708  ;;  %4629 = vst.msk [vmem:[#allocation6 + $0x61] sm:$0xff] %vm73_vm0, %v4572_v5  ;;  %1446 = vrot.lane.b32.xlu1 %v10305_v31, %s7945_s17 }
 0x301   :  { %2856 = vst.msk [vmem:[#allocation3 + $0x428] sm:$0xff] %vm1530_vm4, %v2709_v37 }
 0x302   :  { %2344 = vrot.lane.b32.xlu0 %v10369_v6, %s7944_s7  ;;  %v1044_v15 = vpop.permute.xlu1 %1043  ;;  %v3136_v31 = vld [vmem:[#allocation3 + $0x420] sm:$0xff]  ;;  %432 = vst.msk [vmem:[#allocation3 + $0x540] sm:$0xff] %vm73_vm0, %v368_v35 }
 0x303   :  { %1191 = vst.msk [vmem:[#allocation3 + $0x438] sm:$0xff] %vm1145_vm3, %v1044_v15  ;;  %v369_v15 = vld [vmem:[#allocation2 + $0x2d8] sm:$0xff] }
 0x304   :  { %v1942_v25 = vpop.permute.xlu0 %1941  ;;  %678 = vrot.lane.b32.xlu1 %v9892_v59, %s7941_s26  ;;  %v1651_v59 = vld [vmem:[#allocation2 + $0x2e9] sm:$0xff]  ;;  %433 = vst.msk [vmem:[#allocation3 + $0x558] sm:$0xff] %vm73_vm0, %v369_v15 }
 0x305   :  { %2088 = vst.msk [vmem:[#allocation3 + $0x440] sm:$0xff] %vm760_vm2, %v1942_v25  ;;  %v3627_v17 = vpop.f32.mrb[52].mxu0 }
 0x306   :  { %v3628_v36 = vadd.f32 %v10327_v34, %v3627_v17  ;;  %2728 = vrot.lane.b32.xlu0 %v10383_v33, %s7945_s17  ;;  %v3629_v55 = vpop.f32.mrb[53].mxu0  ;;  %v1429_v39 = vpop.permute.xlu1 %1428  ;;  %1715 = vst.msk [vmem:[#allocation3 + $0x548] sm:$0xff] %vm73_vm0, %v1651_v59 }
 0x307   :  { %v10394_v1 = vld [vmem:[#allocation6 + $0x61] sm:$0xff]  ;;  %1576 = vst.msk [vmem:[#allocation3 + $0x438] sm:$0xff] %vm1530_vm4, %v1429_v39 }
 0x308   :  { %v4013_v57 = vadd.f32 %v10018_v32, %v3628_v36  ;;  %v2327_v18 = vpop.permute.xlu0 %2326  ;;  %v3137_v63 = vld [vmem:[#allocation3 + $0x428] sm:$0xff]  ;;  %4981 = vst.msk [vmem:[#allocation7 + $0x80] sm:$0xff] %vm73_vm0, %v10394_v1  ;;  %v4646_v4 = vld [vmem:[#allocation6 + $0x60] sm:$0xff]  ;;  %1063 = vrot.lane.b32.xlu1 %v9946_v14, %s7944_s7  ;;  %v10407_v32 = vld [vmem:[#allocation2 + $0x2f0] sm:$0xff] }
 0x309   :  { %2473 = vst.msk [vmem:[#allocation3 + $0x440] sm:$0xff] %vm1145_vm3, %v2327_v18  ;;  %3715 = vmatprep.mubr.f32.mxu0 %v3137_v63  ;;  %v5285_v53 = vld [vmem:[#allocation6 + $0x62] sm:$0xff]  ;;  %v10418_v14 = vld [vmem:[#allocation2 + $0x2f1] sm:$0xff] }
 0x30a   :  { %4662 = vst.msk [vmem:[#allocation7 + $0x90] sm:$0xff] %vm73_vm0, %v4646_v4  ;;  %v4227_v44 = vmax.f32 %v4013_v57, 0.0  ;;  %1961 = vrot.lane.b32.xlu0 %v10022_v38, %s7941_s26  ;;  %3716 = vmatmul.mubr.f32.gmra.mrb[88].mxu0 %v3136_v31  ;;  %5301 = vst.msk [vmem:[#allocation7 + $0x70] sm:$0xff] %vm73_vm0, %v5285_v53  ;;  %v661_v22 = vpop.permute.xlu1 %660  ;;  %v3174_v57 = vld [vmem:[#allocation3 + $0x550] sm:$0xff]  ;;  %v3177_v4 = vld [vmem:[#allocation3 + $0x568] sm:$0xff] }
 0x30b   :  { %807 = vst.msk [vmem:[#allocation3 + $0x450] sm:$0xff] %vm760_vm2, %v661_v22  ;;  %7269 = vmatprep.mubr.msk.f32.mxu1 %vm73_vm0, %v3174_v57 }
 0x30c   :  { %4291 = vst.msk [vmem:[#allocation4 + $0xd0] sm:$0xff] %vm73_vm0, %v4227_v44  ;;  %v2711_v11 = vpop.permute.xlu0 %2710  ;;  %1448 = vrot.lane.b32.xlu1 %v10343_v58, %s7945_s17  ;;  %7270 = vmatmul.mubr.msk.f32.gmra.mrb[56].mxu1 %vm73_vm0, %v3177_v4 }
 0x30d   :  { %2857 = vst.msk [vmem:[#allocation3 + $0x440] sm:$0xff] %vm1530_vm4, %v2711_v11 }
 0x30e   :  { %2346 = vrot.lane.b32.xlu0 %v10407_v32, %s7944_s7  ;;  %v1046_v10 = vpop.permute.xlu1 %1045  ;;  %v3139_v58 = vld [vmem:[#allocation3 + $0x438] sm:$0xff] }
 0x30f   :  { %1192 = vst.msk [vmem:[#allocation3 + $0x450] sm:$0xff] %vm1145_vm3, %v1046_v10 }
 0x310   :  { %v1944_v20 = vpop.permute.xlu0 %1943  ;;  %680 = vrot.lane.b32.xlu1 %v9926_v21, %s7941_s26  ;;  %v1652_v21 = vld [vmem:[#allocation2 + $0x2f1] sm:$0xff]  ;;  %v10438_v17 = vpop.f32.mrb[38].mxu1 }
 0x311   :  { %2089 = vst.msk [vmem:[#allocation3 + $0x458] sm:$0xff] %vm760_vm2, %v1944_v20  ;;  %v3632_v46 = vpop.f32.mrb[54].mxu0  ;;  %v10442_v36 = vpop.f32.mrb[39].mxu1 }
 0x312   :  { %v3633_v24 = vadd.f32 %v10327_v34, %v3632_v46  ;;  %2730 = vrot.lane.b32.xlu0 %v10418_v14, %s7945_s17  ;;  %v3634_v45 = vpop.f32.mrb[55].mxu0  ;;  %v1431_v25 = vpop.permute.xlu1 %1430  ;;  %1716 = vst.msk [vmem:[#allocation3 + $0x560] sm:$0xff] %vm73_vm0, %v1652_v21 }
 0x313   :  { %v4374_v27 = vld [vmem:[#allocation4 + $0xd0] sm:$0xff]  ;;  %1577 = vst.msk [vmem:[#allocation3 + $0x450] sm:$0xff] %vm1530_vm4, %v1431_v25 }
 0x314   :  { %v4406_v3 = vmax.f32 %v4341_v41, %v4374_v27  ;;  %v4018_v5 = vadd.f32 %v10011_v61, %v3633_v24  ;;  %v2329_v37 = vpop.permute.xlu0 %2328  ;;  %v3140_v49 = vld [vmem:[#allocation3 + $0x440] sm:$0xff]  ;;  %1065 = vrot.lane.b32.xlu1 %v9988_v54, %s7944_s7  ;;  %v370_v24 = vld [vmem:[#allocation2 + $0x2e8] sm:$0xff] }
 0x315   :  { %2474 = vst.msk [vmem:[#allocation3 + $0x458] sm:$0xff] %vm1145_vm3, %v2329_v37  ;;  %3720 = vmatprep.mubr.f32.mxu0 %v3140_v49  ;;  %v10435_v61 = vld [vmem:[#allocation2 + $0x300] sm:$0xff] }
 0x316   :  { %4438 = vst.msk [vmem:[#allocation5 + $0x60] sm:$0xff] %vm73_vm0, %v4406_v3  ;;  %v4228_v30 = vmax.f32 %v4018_v5, 0.0  ;;  %1963 = vrot.lane.b32.xlu0 %v10054_v47, %s7941_s26  ;;  %3721 = vmatmul.mubr.f32.gmra.mrb[90].mxu0 %v3139_v58  ;;  %v663_v55 = vpop.permute.xlu1 %662  ;;  %v10450_v54 = vld [vmem:[#allocation2 + $0x301] sm:$0xff]  ;;  %434 = vst.msk [vmem:[#allocation3 + $0x570] sm:$0xff] %vm73_vm0, %v370_v24 }
 0x317   :  { %808 = vst.msk [vmem:[#allocation3 + $0x468] sm:$0xff] %vm760_vm2, %v663_v55 }
 0x318   :  { %4292 = vst.msk [vmem:[#allocation4 + $0xd8] sm:$0xff] %vm73_vm0, %v4228_v30  ;;  %v2713_v56 = vpop.permute.xlu0 %2712  ;;  %1450 = vrot.lane.b32.xlu1 %v10369_v6, %s7945_s17  ;;  %v4342_v6 = vld [vmem:[#allocation4 + $0xc8] sm:$0xff] }
 0x319   :  { %2858 = vst.msk [vmem:[#allocation3 + $0x458] sm:$0xff] %vm1530_vm4, %v2713_v56 }
 0x31a   :  { %2348 = vrot.lane.b32.xlu0 %v10435_v61, %s7944_s7  ;;  %v1048_v18 = vpop.permute.xlu1 %1047  ;;  %v3142_v59 = vld [vmem:[#allocation3 + $0x450] sm:$0xff] }
 0x31b   :  { %1193 = vst.msk [vmem:[#allocation3 + $0x468] sm:$0xff] %vm1145_vm3, %v1048_v18  ;;  %v1654_v18 = vld [vmem:[#allocation2 + $0x309] sm:$0xff] }
 0x31c   :  { %v1946_v31 = vpop.permute.xlu0 %1945  ;;  %682 = vrot.lane.b32.xlu1 %v9971_v16, %s7941_s26  ;;  %v1653_v16 = vld [vmem:[#allocation2 + $0x301] sm:$0xff]  ;;  %1718 = vst.msk [vmem:[#allocation3 + $0x590] sm:$0xff] %vm73_vm0, %v1654_v18 }
 0x31d   :  { %2090 = vst.msk [vmem:[#allocation3 + $0x470] sm:$0xff] %vm760_vm2, %v1946_v31  ;;  %v3637_v63 = vpop.f32.mrb[56].mxu0 }
 0x31e   :  { %v3638_v39 = vadd.f32 %v10327_v34, %v3637_v63  ;;  %2732 = vrot.lane.b32.xlu0 %v10450_v54, %s7945_s17  ;;  %v3639_v53 = vpop.f32.mrb[57].mxu0  ;;  %v1433_v10 = vpop.permute.xlu1 %1432  ;;  %1717 = vst.msk [vmem:[#allocation3 + $0x578] sm:$0xff] %vm73_vm0, %v1653_v16 }
 0x31f   :  { %v4375_v44 = vld [vmem:[#allocation4 + $0xd8] sm:$0xff]  ;;  %1578 = vst.msk [vmem:[#allocation3 + $0x468] sm:$0xff] %vm1530_vm4, %v1433_v10 }
 0x320   :  { %v4407_v35 = vmax.f32 %v4342_v6, %v4375_v44  ;;  %v4023_v11 = vadd.f32 %v10089_v40, %v3638_v39  ;;  %v2331_v22 = vpop.permute.xlu0 %2330  ;;  %v3143_v20 = vld [vmem:[#allocation3 + $0x458] sm:$0xff]  ;;  %1067 = vrot.lane.b32.xlu1 %v10022_v38, %s7944_s7  ;;  %v10469_v40 = vld [vmem:[#allocation2 + $0x308] sm:$0xff]  ;;  %v3180_v6 = vld [vmem:[#allocation3 + $0x580] sm:$0xff] }
 0x321   :  { %2475 = vst.msk [vmem:[#allocation3 + $0x470] sm:$0xff] %vm1145_vm3, %v2331_v22  ;;  %3725 = vmatprep.mubr.f32.mxu0 %v3143_v20  ;;  %v10480_v38 = vld [vmem:[#allocation2 + $0x309] sm:$0xff]  ;;  %7272 = vmatprep.mubr.msk.f32.mxu1 %vm73_vm0, %v3180_v6 }
 0x322   :  { %4439 = vst.msk [vmem:[#allocation5 + $0x68] sm:$0xff] %vm73_vm0, %v4407_v35  ;;  %v4229_v46 = vmax.f32 %v4023_v11, 0.0  ;;  %1965 = vrot.lane.b32.xlu0 %v10099_v8, %s7941_s26  ;;  %3726 = vmatmul.mubr.f32.gmra.mrb[92].mxu0 %v3142_v59  ;;  %v665_v41 = vpop.permute.xlu1 %664  ;;  %v3183_v35 = vld [vmem:[#allocation3 + $0x598] sm:$0xff] }
 0x323   :  { %809 = vst.msk [vmem:[#allocation3 + $0x480] sm:$0xff] %vm760_vm2, %v665_v41  ;;  %7273 = vmatmul.mubr.msk.f32.gmra.mrb[58].mxu1 %vm73_vm0, %v3183_v35 }
 0x324   :  { %4293 = vst.msk [vmem:[#allocation4 + $0xe0] sm:$0xff] %vm73_vm0, %v4229_v46  ;;  %v2715_v45 = vpop.permute.xlu0 %2714  ;;  %1452 = vrot.lane.b32.xlu1 %v10407_v32, %s7945_s17 }
 0x325   :  { %2859 = vst.msk [vmem:[#allocation3 + $0x470] sm:$0xff] %vm1530_vm4, %v2715_v45 }
 0x326   :  { %2350 = vrot.lane.b32.xlu0 %v10469_v40, %s7944_s7  ;;  %v1050_v58 = vpop.permute.xlu1 %1049  ;;  %v3145_v32 = vld [vmem:[#allocation3 + $0x468] sm:$0xff] }
 0x327   :  { %1194 = vst.msk [vmem:[#allocation3 + $0x480] sm:$0xff] %vm1145_vm3, %v1050_v58  ;;  %v372_v58 = vld [vmem:[#allocation2 + $0x300] sm:$0xff] }
 0x328   :  { %v1948_v27 = vpop.permute.xlu0 %1947  ;;  %684 = vrot.lane.b32.xlu1 %v10383_v33, %s7941_s26  ;;  %v10505_v39 = vpop.f32.mrb[40].mxu1  ;;  %436 = vst.msk [vmem:[#allocation3 + $0x5a0] sm:$0xff] %vm73_vm0, %v372_v58 }
 0x329   :  { %2091 = vst.msk [vmem:[#allocation3 + $0x488] sm:$0xff] %vm760_vm2, %v1948_v27  ;;  %v3642_v3 = vpop.f32.mrb[58].mxu0  ;;  %v4470_v5 = vld [vmem:[#allocation5 + $0x60] ss:$2 sm:$0xff]  ;;  %v4502_v37 = vld [vmem:[#allocation5 + $0x61] ss:$2 sm:$0xff] }
 0x32a   :  { %v3643_v49 = vadd.f32 %v10327_v34, %v3642_v3  ;;  %2734 = vrot.lane.b32.xlu0 %v10480_v38, %s7945_s17  ;;  %v3644_v25 = vpop.f32.mrb[59].mxu0  ;;  %v4527_v30 = vmax.f32 %v4470_v5, %v4502_v37  ;;  %v1435_v31 = vpop.permute.xlu1 %1434  ;;  %v10541_v27 = vld [vmem:[#allocation2 + $0x320] sm:$0xff] }
 0x32b   :  { %1579 = vst.msk [vmem:[#allocation3 + $0x480] sm:$0xff] %vm1530_vm4, %v1435_v31 }
 0x32c   :  { %v4028_v21 = vadd.f32 %v10082_v42, %v3643_v49  ;;  %v2333_v15 = vpop.permute.xlu0 %2332  ;;  %v3146_v56 = vld [vmem:[#allocation3 + $0x470] sm:$0xff]  ;;  %v4550_v55 = vmul.f32 %v10076_v28, %v4527_v30  ;;  %1069 = vrot.lane.b32.xlu1 %v10054_v47, %s7944_s7  ;;  %v10498_v42 = vld [vmem:[#allocation2 + $0x318] sm:$0xff]  ;;  %v10510_v47 = vpop.f32.mrb[41].mxu1 }
 0x32d   :  { %2476 = vst.msk [vmem:[#allocation3 + $0x488] sm:$0xff] %vm1145_vm3, %v2333_v15  ;;  %3730 = vmatprep.mubr.f32.mxu0 %v3146_v56  ;;  %v371_v28 = vld [vmem:[#allocation2 + $0x2f0] sm:$0xff] }
 0x32e   :  { %v4230_v57 = vmax.f32 %v4028_v21, 0.0  ;;  %1967 = vrot.lane.b32.xlu0 %v10137_v60, %s7941_s26  ;;  %3731 = vmatmul.mubr.f32.gmra.mrb[94].mxu0 %v3145_v32  ;;  %v4573_v33 = vadd.f32 %v10094_v0, %v4550_v55  ;;  %435 = vst.msk [vmem:[#allocation3 + $0x588] sm:$0xff] %vm73_vm0, %v371_v28  ;;  %v667_v4 = vpop.permute.xlu1 %666  ;;  %v10514_v0 = vld [vmem:[#allocation2 + $0x319] sm:$0xff]  ;;  %v373_v28 = vld [vmem:[#allocation2 + $0x308] sm:$0xff] }
 0x32f   :  { %810 = vst.msk [vmem:[#allocation3 + $0x498] sm:$0xff] %vm760_vm2, %v667_v4  ;;  %v4343_v21 = vld [vmem:[#allocation4 + $0xe0] sm:$0xff] }
 0x330   :  { %4294 = vst.msk [vmem:[#allocation4 + $0xe8] sm:$0xff] %vm73_vm0, %v4230_v57  ;;  %v2717_v63 = vpop.permute.xlu0 %2716  ;;  %4630 = vst.msk [vmem:[#allocation6 + $0x71] sm:$0xff] %vm73_vm0, %v4573_v33  ;;  %1454 = vrot.lane.b32.xlu1 %v10435_v61, %s7945_s17 }
 0x331   :  { %2860 = vst.msk [vmem:[#allocation3 + $0x488] sm:$0xff] %vm1530_vm4, %v2717_v63 }
 0x332   :  { %2352 = vrot.lane.b32.xlu0 %v10498_v42, %s7944_s7  ;;  %v1052_v44 = vpop.permute.xlu1 %1051  ;;  %v3148_v61 = vld [vmem:[#allocation3 + $0x480] sm:$0xff]  ;;  %437 = vst.msk [vmem:[#allocation3 + $0x5b8] sm:$0xff] %vm73_vm0, %v373_v28 }
 0x333   :  { %1195 = vst.msk [vmem:[#allocation3 + $0x498] sm:$0xff] %vm1145_vm3, %v1052_v44 }
 0x334   :  { %v1950_v53 = vpop.permute.xlu0 %1949  ;;  %686 = vrot.lane.b32.xlu1 %v10418_v14, %s7941_s26 }
 0x335   :  { %2092 = vst.msk [vmem:[#allocation3 + $0x4a0] sm:$0xff] %vm760_vm2, %v1950_v53  ;;  %v3647_v59 = vpop.f32.mrb[60].mxu0 }
 0x336   :  { %v3648_v11 = vadd.f32 %v10327_v34, %v3647_v59  ;;  %2736 = vrot.lane.b32.xlu0 %v10514_v0, %s7945_s17  ;;  %v3649_v22 = vpop.f32.mrb[61].mxu0  ;;  %v1437_v41 = vpop.permute.xlu1 %1436  ;;  %v3186_v59 = vld [vmem:[#allocation3 + $0x5b0] sm:$0xff] }
 0x337   :  { %v10525_v20 = vld [vmem:[#allocation6 + $0x70] sm:$0xff]  ;;  %1580 = vst.msk [vmem:[#allocation3 + $0x498] sm:$0xff] %vm1530_vm4, %v1437_v41  ;;  %7275 = vmatprep.mubr.msk.f32.mxu1 %vm73_vm0, %v3186_v59  ;;  %v3189_v22 = vld [vmem:[#allocation3 + $0x5c8] sm:$0xff] }
 0x338   :  { %v10527_v10 = vld [vmem:[#allocation6 + $0x71] sm:$0xff]  ;;  %v4033_v46 = vadd.f32 %v10167_v51, %v3648_v11  ;;  %v2335_v16 = vpop.permute.xlu0 %2334  ;;  %v3149_v24 = vld [vmem:[#allocation3 + $0x488] sm:$0xff]  ;;  %4663 = vst.msk [vmem:[#allocation7 + $0xa8] sm:$0xff] %vm73_vm0, %v10525_v20  ;;  %v1655_v51 = vld [vmem:[#allocation2 + $0x319] sm:$0xff]  ;;  %1071 = vrot.lane.b32.xlu1 %v10099_v8, %s7944_s7  ;;  %7276 = vmatmul.mubr.msk.f32.gmra.mrb[60].mxu1 %vm73_vm0, %v3189_v22 }
 0x339   :  { %4982 = vst.msk [vmem:[#allocation7 + $0x98] sm:$0xff] %vm73_vm0, %v10527_v10  ;;  %v5286_v45 = vld [vmem:[#allocation6 + $0x72] sm:$0xff]  ;;  %3735 = vmatprep.mubr.f32.mxu0 %v3149_v24  ;;  %1719 = vst.msk [vmem:[#allocation3 + $0x5a8] sm:$0xff] %vm73_vm0, %v1655_v51  ;;  %v10552_v8 = vld [vmem:[#allocation2 + $0x321] sm:$0xff] }
 0x33a   :  { %2477 = vst.msk [vmem:[#allocation3 + $0x4a0] sm:$0xff] %vm1145_vm3, %v2335_v16  ;;  %v4231_v14 = vmax.f32 %v4033_v46, 0.0  ;;  %1969 = vrot.lane.b32.xlu0 %v10171_v12, %s7941_s26  ;;  %3736 = vmatmul.mubr.f32.gmra.mrb[96].mxu0 %v3148_v61  ;;  %v669_v5 = vpop.permute.xlu1 %668  ;;  %v2938_v59 = vld [vmem:[#allocation2 + $0x34a] sm:$0xff] }
 0x33b   :  { %5302 = vst.msk [vmem:[#allocation7 + $0x88] sm:$0xff] %vm73_vm0, %v5286_v45  ;;  %3002 = vst.msk [vmem:[#allocation3 + $0x5e0] sm:$0xff] %vm73_vm0, %v2938_v59 }
 0x33c   :  { %4295 = vst.msk [vmem:[#allocation4 + $0xf0] sm:$0xff] %vm73_vm0, %v4231_v14  ;;  %v2719_v3 = vpop.permute.xlu0 %2718  ;;  %1456 = vrot.lane.b32.xlu1 %v10469_v40, %s7945_s17 }
 0x33d   :  { %2861 = vst.msk [vmem:[#allocation3 + $0x4a0] sm:$0xff] %vm1530_vm4, %v2719_v3 }
 0x33e   :  { %811 = vst.msk [vmem:[#allocation3 + $0x4b0] sm:$0xff] %vm760_vm2, %v669_v5  ;;  %2354 = vrot.lane.b32.xlu0 %v10541_v27, %s7944_s7  ;;  %v1054_v49 = vpop.permute.xlu1 %1053  ;;  %v3151_v40 = vld [vmem:[#allocation3 + $0x498] sm:$0xff] }
 0x33f   :  { %1196 = vst.msk [vmem:[#allocation3 + $0x4b0] sm:$0xff] %vm1145_vm3, %v1054_v49  ;;  %v374_v5 = vld [vmem:[#allocation2 + $0x318] sm:$0xff] }
 0x340   :  { %v1952_v37 = vpop.permute.xlu0 %1951  ;;  %688 = vrot.lane.b32.xlu1 %v10450_v54, %s7941_s26  ;;  %v1656_v54 = vld [vmem:[#allocation2 + $0x321] sm:$0xff]  ;;  %v10572_v63 = vpop.f32.mrb[42].mxu1  ;;  %438 = vst.msk [vmem:[#allocation3 + $0x5d0] sm:$0xff] %vm73_vm0, %v374_v5 }
 0x341   :  { %2093 = vst.msk [vmem:[#allocation3 + $0x4b8] sm:$0xff] %vm760_vm2, %v1952_v37  ;;  %v3652_v25 = vpop.f32.mrb[62].mxu0  ;;  %v10576_v53 = vpop.f32.mrb[43].mxu1  ;;  %v5381_v5 = vld [vmem:[%s11926_s5 + $0xa0] sm:$0xff] }
 0x342   :  { %v3653_v30 = vadd.f32 %v10327_v34, %v3652_v25  ;;  %2738 = vrot.lane.b32.xlu0 %v10552_v8, %s7945_s17  ;;  %v3654_v32 = vpop.f32.mrb[63].mxu0  ;;  %v1439_v18 = vpop.permute.xlu1 %1438  ;;  %1720 = vst.msk [vmem:[#allocation3 + $0x5c0] sm:$0xff] %vm73_vm0, %v1656_v54  ;;  %v5362_v54 = vld [vmem:[%s11926_s5 + $0x8] sm:$0xff] }
 0x343   :  { %v4376_v15 = vld [vmem:[#allocation4 + $0xf0] sm:$0xff]  ;;  %1581 = vst.msk [vmem:[#allocation3 + $0x4b0] sm:$0xff] %vm1530_vm4, %v1439_v18 }
 0x344   :  { %v4408_v56 = vmax.f32 %v4343_v21, %v4376_v15  ;;  %v4038_v55 = vadd.f32 %v10160_v26, %v3653_v30  ;;  %v2337_v31 = vpop.permute.xlu0 %2336  ;;  %v3152_v57 = vld [vmem:[#allocation3 + $0x4a0] sm:$0xff]  ;;  %1073 = vrot.lane.b32.xlu1 %v10137_v60, %s7944_s7  ;;  %v10569_v26 = vld [vmem:[#allocation2 + $0x330] sm:$0xff] }
 0x345   :  { %2478 = vst.msk [vmem:[#allocation3 + $0x4b8] sm:$0xff] %vm1145_vm3, %v2337_v31  ;;  %3740 = vmatprep.mubr.f32.mxu0 %v3152_v57  ;;  %v2552_v60 = vld [vmem:[#allocation2 + $0x331] sm:$0xff]  ;;  %v5378_v31 = vld [vmem:[%s11926_s5 + $0x88] sm:$0xff] }
 0x346   :  { %4440 = vst.msk [vmem:[#allocation5 + $0x70] sm:$0xff] %vm73_vm0, %v4408_v56  ;;  %v4232_v33 = vmax.f32 %v4038_v55, 0.0  ;;  %1971 = vrot.lane.b32.xlu0 %v10203_v52, %s7941_s26  ;;  %3741 = vmatmul.mubr.f32.gmra.mrb[98].mxu0 %v3151_v40  ;;  %v671_v6 = vpop.permute.xlu1 %670 }
 0x347   :  { %812 = vst.msk [vmem:[#allocation3 + $0x4c8] sm:$0xff] %vm760_vm2, %v671_v6 }
 0x348   :  { %4296 = vst.msk [vmem:[#allocation4 + $0xf8] sm:$0xff] %vm73_vm0, %v4232_v33  ;;  %v2721_v4 = vpop.permute.xlu0 %2720  ;;  %1458 = vrot.lane.b32.xlu1 %v10498_v42, %s7945_s17  ;;  %v4344_v42 = vld [vmem:[#allocation4 + $0xe8] sm:$0xff]  ;;  %v5361_v33 = vld [vmem:[%s11926_s5] sm:$0xff] }
 0x349   :  { %2862 = vst.msk [vmem:[#allocation3 + $0x4b8] sm:$0xff] %vm1530_vm4, %v2721_v4 }
 0x34a   :  { %2356 = vrot.lane.b32.xlu0 %v10569_v26, %s7944_s7  ;;  %v1056_v35 = vpop.permute.xlu1 %1055  ;;  %v3154_v24 = vld [vmem:[#allocation3 + $0x4b0] sm:$0xff] }
 0x34b   :  { %1197 = vst.msk [vmem:[#allocation3 + $0x4c8] sm:$0xff] %vm1145_vm3, %v1056_v35 }
 0x34c   :  { %v1954_v44 = vpop.permute.xlu0 %1953  ;;  %690 = vrot.lane.b32.xlu1 %v10480_v38, %s7941_s26  ;;  %v1657_v38 = vld [vmem:[#allocation2 + $0x331] sm:$0xff] }
 0x34d   :  { %2094 = vst.msk [vmem:[#allocation3 + $0x4d0] sm:$0xff] %vm760_vm2, %v1954_v44  ;;  %v3657_v11 = vpop.f32.mrb[64].mxu0  ;;  %v7371_v44 = vpack.c.bf16 %v5362_v54, %v5361_v33 }
 0x34e   :  { %v3658_v61 = vadd.f32 %v10327_v34, %v3657_v11  ;;  %2740 = vrot.lane.b32.xlu0 %v2552_v60, %s7945_s17  ;;  %v3659_v46 = vpop.f32.mrb[65].mxu0  ;;  %v1441_v58 = vpop.permute.xlu1 %1440  ;;  %1721 = vst.msk [vmem:[#allocation3 + $0x5d8] sm:$0xff] %vm73_vm0, %v1657_v38  ;;  %v10633_v60 = vld [vmem:[%s11924_s3] ss:$0 sm:$0xff]  ;;  %v2170_v11 = vld [vmem:[#allocation2 + $0x348] sm:$0xff] }
 0x34f   :  { %v4377_v16 = vld [vmem:[#allocation4 + $0xf8] sm:$0xff]  ;;  %1582 = vst.msk [vmem:[#allocation3 + $0x4c8] sm:$0xff] %vm1530_vm4, %v1441_v58 }
 0x350   :  { %v4409_v45 = vmax.f32 %v4344_v42, %v4377_v16  ;;  %v4043_v41 = vadd.f32 %v10233_v62, %v3658_v61  ;;  %v2339_v14 = vpop.permute.xlu0 %2338  ;;  %v3155_v51 = vld [vmem:[#allocation3 + $0x4b8] sm:$0xff]  ;;  %1075 = vrot.lane.b32.xlu1 %v10171_v12, %s7944_s7  ;;  %v10644_v61 = vld [vmem:[%s11925_s4] ss:$0 sm:$0xff]  ;;  %v5379_v16 = vld [vmem:[%s11926_s5 + $0x90] sm:$0xff] }
 0x351   :  { %2479 = vst.msk [vmem:[#allocation3 + $0x4d0] sm:$0xff] %vm1145_vm3, %v2339_v14  ;;  %3745 = vmatprep.mubr.f32.mxu0 %v3155_v51  ;;  %v10600_v62 = vld [vmem:[#allocation2 + $0x338] sm:$0xff] }
 0x352   :  { %4441 = vst.msk [vmem:[#allocation5 + $0x78] sm:$0xff] %vm73_vm0, %v4409_v45  ;;  %v4233_v3 = vmax.f32 %v4043_v41, 0.0  ;;  %1973 = vrot.lane.b32.xlu0 %v10238_v2, %s7941_s26  ;;  %3746 = vmatmul.mubr.f32.gmra.mrb[100].mxu0 %v3154_v24  ;;  %v673_v49 = vpop.permute.xlu1 %672  ;;  %v2553_v12 = vld [vmem:[#allocation2 + $0x339] sm:$0xff]  ;;  %v5363_v41 = vld [vmem:[%s11926_s5 + $0x10] sm:$0xff] }
 0x353   :  { %813 = vst.msk [vmem:[#allocation3 + $0x4e0] sm:$0xff] %vm760_vm2, %v673_v49  ;;  %v1658_v42 = vld [vmem:[#allocation2 + $0x339] sm:$0xff]  ;;  %v2554_v49 = vld [vmem:[#allocation2 + $0x349] sm:$0xff] }
 0x354   :  { %4297 = vst.msk [vmem:[#allocation4 + $0x100] sm:$0xff] %vm73_vm0, %v4233_v3  ;;  %v2723_v37 = vpop.permute.xlu0 %2722  ;;  %1460 = vrot.lane.b32.xlu1 %v10541_v27, %s7945_s17  ;;  %v5377_v27 = vld [vmem:[%s11926_s5 + $0x80] sm:$0xff]  ;;  %v5380_v24 = vld [vmem:[%s11926_s5 + $0x98] sm:$0xff]  ;;  %1722 = vst.msk [vmem:[#allocation3 + $0x5f0] sm:$0xff] %vm73_vm0, %v1658_v42 }
 0x355   :  { %2863 = vst.msk [vmem:[#allocation3 + $0x4d0] sm:$0xff] %vm1530_vm4, %v2723_v37  ;;  %v7369_v18 = vpack.c.bf16 %v5378_v31, %v5377_v27  ;;  %v7373_v45 = vpack.c.bf16 %v5380_v24, %v5379_v16  ;;  %v5364_v14 = vld [vmem:[%s11926_s5 + $0x18] sm:$0xff]  ;;  %v5382_v37 = vld [vmem:[%s11926_s5 + $0xa8] sm:$0xff]  ;;  %v5383_v31 = vld [vmem:[%s11926_s5 + $0xb0] sm:$0xff] }
 0x356   :  { %2358 = vrot.lane.b32.xlu0 %v10600_v62, %s7944_s7  ;;  %v1058_v30 = vpop.permute.xlu1 %1057  ;;  %v3157_v57 = vld [vmem:[#allocation3 + $0x4c8] sm:$0xff] }
 0x357   :  { %1198 = vst.msk [vmem:[#allocation3 + $0x4e0] sm:$0xff] %vm1145_vm3, %v1058_v30  ;;  %7370 = vmatprep.subr.bf16.mxu1 %v7369_v18  ;;  %v5366_v30 = vld [vmem:[%s11926_s5 + $0x28] sm:$0xff] }
 0x358   :  { %v1956_v25 = vpop.permute.xlu0 %1955  ;;  %692 = vrot.lane.b32.xlu1 %v10514_v0, %s7941_s26  ;;  %7372 = vmatpush3.bf16.msra.mxu1 %v7371_v44  ;;  %v10667_v3 = vpop.f32.mrb[44].mxu1  ;;  %v5370_v16 = vld [vmem:[%s11926_s5 + $0x48] sm:$0xff] }
 0x359   :  { %2095 = vst.msk [vmem:[#allocation3 + $0x4e8] sm:$0xff] %vm760_vm2, %v1956_v25  ;;  %v3662_v32 = vpop.f32.mrb[66].mxu0  ;;  %v4472_v21 = vld [vmem:[#allocation5 + $0x70] ss:$2 sm:$0xff]  ;;  %v4504_v15 = vld [vmem:[#allocation5 + $0x71] ss:$2 sm:$0xff]  ;;  %7374 = vmatprep.subr.bf16.mxu1 %v7373_v45 }
 0x35a   :  { %v3663_v40 = vadd.f32 %v10327_v34, %v3662_v32  ;;  %2742 = vrot.lane.b32.xlu0 %v2553_v12, %s7945_s17  ;;  %v3664_v56 = vpop.f32.mrb[67].mxu0  ;;  %v4528_v55 = vmax.f32 %v4472_v21, %v4504_v15  ;;  %v1443_v35 = vpop.permute.xlu1 %1442  ;;  %v7377_v12 = vpack.c.bf16 %v5382_v37, %v5381_v5  ;;  %v5365_v25 = vld [vmem:[%s11926_s5 + $0x20] sm:$0xff]  ;;  %v5387_v45 = vld [vmem:[%s11926_s5 + $0xd0] sm:$0xff] }
 0x35b   :  { %1583 = vst.msk [vmem:[#allocation3 + $0x4e0] sm:$0xff] %vm1530_vm4, %v1443_v35  ;;  %v10671_v38 = vpop.f32.mrb[45].mxu1  ;;  %v3192_v21 = vld [vmem:[#allocation3 + $0x5e0] sm:$0xff]  ;;  %v7379_v15 = vpack.c.bf16 %v5366_v30, %v5365_v25  ;;  %v2171_v35 = vld [vmem:[#allocation2 + $0x350] sm:$0xff] }
 0x35c   :  { %v4048_v28 = vadd.f32 %v10226_v9, %v3663_v40  ;;  %v2341_v4 = vpop.permute.xlu0 %2340  ;;  %v3158_v6 = vld [vmem:[#allocation3 + $0x4d0] sm:$0xff]  ;;  %v4551_v0 = vmul.f32 %v10633_v60, %v4528_v55  ;;  %1077 = vrot.lane.b32.xlu1 %v10203_v52, %s7944_s7  ;;  %v7375_v52 = vpack.c.bf16 %v5364_v14, %v5363_v41  ;;  %7278 = vmatprep.mubr.msk.f32.mxu1 %vm73_vm0, %v3192_v21  ;;  %v5388_v41 = vld [vmem:[%s11926_s5 + $0xd8] sm:$0xff]  ;;  %v4672_v37 = vld [vmem:[#allocation6 + $0x1] sm:$0xff] }
 0x35d   :  { %2480 = vst.msk [vmem:[#allocation3 + $0x4e8] sm:$0xff] %vm1145_vm3, %v2341_v4  ;;  %3750 = vmatprep.mubr.f32.mxu0 %v3158_v6  ;;  %v2939_v9 = vld [vmem:[#allocation2 + $0x352] sm:$0xff] }
 0x35e   :  { %v4234_v22 = vmax.f32 %v4048_v28, 0.0  ;;  %1975 = vrot.lane.b32.xlu0 %v10278_v13, %s7941_s26  ;;  %3751 = vmatmul.mubr.f32.gmra.mrb[102].mxu0 %v3157_v57  ;;  %v4574_v46 = vadd.f32 %v10644_v61, %v4551_v0  ;;  %3003 = vst.msk [vmem:[#allocation3 + $0x5f8] sm:$0xff] %vm73_vm0, %v2939_v9  ;;  %v375_v13 = vld [vmem:[#allocation2 + $0x320] sm:$0xff]  ;;  %v675_v58 = vpop.permute.xlu1 %674  ;;  %v5384_v57 = vld [vmem:[%s11926_s5 + $0xb8] sm:$0xff]  ;;  %v5367_v0 = vld [vmem:[%s11926_s5 + $0x30] sm:$0xff] }
 0x35f   :  { %439 = vst.msk [vmem:[#allocation3 + $0x5e8] sm:$0xff] %vm73_vm0, %v375_v13  ;;  %7376 = vmatpush3.bf16.msra.mxu1 %v7375_v52  ;;  %v7381_v54 = vpack.c.bf16 %v5384_v57, %v5383_v31  ;;  %v5385_v9 = vld [vmem:[%s11926_s5 + $0xc0] sm:$0xff]  ;;  %v2555_v14 = vld [vmem:[#allocation2 + $0x351] sm:$0xff] }
 0x360   :  { %4298 = vst.msk [vmem:[#allocation4 + $0x108] sm:$0xff] %vm73_vm0, %v4234_v22  ;;  %v2725_v51 = vpop.permute.xlu0 %2724  ;;  %4631 = vst.msk [vmem:[#allocation6 + $0x81] sm:$0xff] %vm73_vm0, %v4574_v46  ;;  %1462 = vrot.lane.b32.xlu1 %v10569_v26, %s7945_s17  ;;  %7378 = vmatprep.subr.bf16.mxu1 %v7377_v12  ;;  %v5386_v22 = vld [vmem:[%s11926_s5 + $0xc8] sm:$0xff]  ;;  %v4640_v46 = vld [vmem:[#allocation6] sm:$0xff] }
 0x361   :  { %2864 = vst.msk [vmem:[#allocation3 + $0x4e8] sm:$0xff] %vm1530_vm4, %v2725_v51  ;;  %v7385_v42 = vpack.c.bf16 %v5386_v22, %v5385_v9  ;;  %v7389_v51 = vpack.c.bf16 %v5388_v41, %v5387_v45  ;;  %v5371_v52 = vld [vmem:[%s11926_s5 + $0x50] sm:$0xff]  ;;  %v4345_v12 = vld [vmem:[#allocation4 + $0x100] sm:$0xff] }
 0x362   :  { %814 = vst.msk [vmem:[#allocation3 + $0x4f8] sm:$0xff] %vm760_vm2, %v675_v58  ;;  %2360 = vrot.lane.b32.xlu0 %v2170_v11, %s7944_s7  ;;  %v1060_v40 = vpop.permute.xlu1 %1059  ;;  %v3160_v18 = vld [vmem:[#allocation3 + $0x4e0] sm:$0xff]  ;;  %v5372_v58 = vld [vmem:[%s11926_s5 + $0x58] sm:$0xff] }
 0x363   :  { %1199 = vst.msk [vmem:[#allocation3 + $0x4f8] sm:$0xff] %vm1145_vm3, %v1060_v40  ;;  %7380 = vmatpush3.bf16.msra.mxu1 %v7379_v15  ;;  %v5389_v15 = vld [vmem:[%s11926_s5 + $0xe0] sm:$0xff]  ;;  %v5390_v40 = vld [vmem:[%s11926_s5 + $0xe8] sm:$0xff] }
 0x364   :  { %v1958_v32 = vpop.permute.xlu0 %1957  ;;  %694 = vrot.lane.b32.xlu1 %v10552_v8, %s7941_s26  ;;  %7382 = vmatprep.subr.bf16.mxu1 %v7381_v54  ;;  %v5368_v8 = vld [vmem:[%s11926_s5 + $0x38] sm:$0xff]  ;;  %4656 = vst.msk [vmem:[#allocation7] sm:$0xff] %vm73_vm0, %v4640_v46  ;;  %v4768_v54 = vld [vmem:[#allocation6 + $0x2] sm:$0xff]  ;;  %v10799_v45 = vld [vmem:[%s11923_s2] ss:$0 sm:$0xff] }
 0x365   :  { %2096 = vst.msk [vmem:[#allocation3 + $0x500] sm:$0xff] %vm760_vm2, %v1958_v32  ;;  %v3667_v56 = vpop.f32.mrb[68].mxu0  ;;  %v3195_v26 = vld [vmem:[#allocation3 + $0x5f8] sm:$0xff]  ;;  %v7383_v11 = vpack.c.bf16 %v5368_v8, %v5367_v0 }
 0x366   :  { %v3668_v55 = vadd.f32 %v10327_v34, %v3667_v56  ;;  %2744 = vrot.lane.b32.xlu0 %v2554_v49, %s7945_s17  ;;  %v3669_v27 = vpop.f32.mrb[69].mxu0  ;;  %7279 = vmatmul.mubr.msk.f32.gmra.mrb[62].mxu1 %vm73_vm0, %v3195_v26  ;;  %v1445_v44 = vpop.permute.xlu1 %1444  ;;  %v7391_v49 = vpack.c.bf16 %v5372_v58, %v5371_v52  ;;  %v7393_v26 = vpack.c.bf16 %v5390_v40, %v5389_v15 }
 0x367   :  { %v10701_v33 = vld [vmem:[#allocation6 + $0x81] sm:$0xff]  ;;  %1584 = vst.msk [vmem:[#allocation3 + $0x4f8] sm:$0xff] %vm1530_vm4, %v1445_v44  ;;  %7384 = vmatpush3.bf16.msra.mxu1 %v7383_v11  ;;  %v5392_v44 = vld [vmem:[%s11926_s5 + $0xf8] sm:$0xff] }
 0x368   :  { %v4053_v28 = vadd.f32 %v10307_v23, %v3668_v55  ;;  %v2343_v4 = vpop.permute.xlu0 %2342  ;;  %v3161_v6 = vld [vmem:[#allocation3 + $0x4e8] sm:$0xff]  ;;  %4983 = vst.msk [vmem:[#allocation7 + $0xb0] sm:$0xff] %vm73_vm0, %v10701_v33  ;;  %1079 = vrot.lane.b32.xlu1 %v10238_v2, %s7944_s7  ;;  %7386 = vmatprep.subr.bf16.mxu1 %v7385_v42  ;;  %v5089_v42 = vld [vmem:[#allocation6 + $0x20] sm:$0xff] }
 0x369   :  { %2481 = vst.msk [vmem:[#allocation3 + $0x500] sm:$0xff] %vm1145_vm3, %v2343_v4  ;;  %3755 = vmatprep.mubr.f32.mxu0 %v3161_v6  ;;  %v5287_v59 = vld [vmem:[#allocation6 + $0x82] sm:$0xff]  ;;  %v4992_v6 = vld [vmem:[#allocation6 + $0x12] sm:$0xff] }
 0x36a   :  { %v4235_v23 = vmax.f32 %v4053_v28, 0.0  ;;  %1977 = vrot.lane.b32.xlu0 %v10311_v43, %s7941_s26  ;;  %3756 = vmatmul.mubr.f32.gmra.mrb[104].mxu0 %v3160_v18  ;;  %5303 = vst.msk [vmem:[#allocation7 + $0xa0] sm:$0xff] %vm73_vm0, %v5287_v59  ;;  %v5369_v43 = vld [vmem:[%s11926_s5 + $0x40] sm:$0xff]  ;;  %v677_v2 = vpop.permute.xlu1 %676  ;;  %v5374_v55 = vld [vmem:[%s11926_s5 + $0x68] sm:$0xff] }
 0x36b   :  { %v7387_v13 = vpack.c.bf16 %v5370_v16, %v5369_v43  ;;  %815 = vst.msk [vmem:[#allocation3 + $0x510] sm:$0xff] %vm760_vm2, %v677_v2  ;;  %v4864_v43 = vld [vmem:[#allocation6 + $0x10] sm:$0xff]  ;;  %v5185_v2 = vld [vmem:[#allocation6 + $0x21] sm:$0xff] }
 0x36c   :  { %4299 = vst.msk [vmem:[#allocation4 + $0x110] sm:$0xff] %vm73_vm0, %v4235_v23  ;;  %v2727_v24 = vpop.permute.xlu0 %2726  ;;  %1464 = vrot.lane.b32.xlu1 %v10600_v62, %s7945_s17  ;;  %v5375_v23 = vld [vmem:[%s11926_s5 + $0x70] sm:$0xff] }
 0x36d   :  { %2865 = vst.msk [vmem:[#allocation3 + $0x500] sm:$0xff] %vm1530_vm4, %v2727_v24  ;;  %7388 = vmatpush3.bf16.msra.mxu1 %v7387_v13 }
 0x36e   :  { %2362 = vrot.lane.b32.xlu0 %v2171_v35, %s7944_s7  ;;  %v1062_v25 = vpop.permute.xlu1 %1061  ;;  %7390 = vmatprep.subr.bf16.mxu1 %v7389_v51  ;;  %v3163_v21 = vld [vmem:[#allocation3 + $0x4f8] sm:$0xff]  ;;  %v4346_v51 = vld [vmem:[#allocation4 + $0x108] sm:$0xff] }
 0x36f   :  { %1200 = vst.msk [vmem:[#allocation3 + $0x510] sm:$0xff] %vm1145_vm3, %v1062_v25  ;;  %v5376_v35 = vld [vmem:[%s11926_s5 + $0x78] sm:$0xff] }
 0x370   :  { %v1960_v5 = vpop.permute.xlu0 %1959  ;;  %4704 = vrot.lane.b32.xlu1 %v4672_v37, %s7941_s26  ;;  %v10779_v8 = vpop.f32.mrb[46].mxu1  ;;  %v7399_v22 = vpack.c.bf16 %v5376_v35, %v5375_v23  ;;  %v5091_v23 = vld [vmem:[#allocation6 + $0x40] sm:$0xff] }
 0x371   :  { %2097 = vst.msk [vmem:[#allocation3 + $0x518] sm:$0xff] %vm760_vm2, %v1960_v5  ;;  %v3672_v30 = vpop.f32.mrb[70].mxu0  ;;  %7392 = vmatpush3.bf16.msra.mxu1 %v7391_v49  ;;  %v10788_v9 = vpop.f32.mrb[47].mxu1 }
 0x372   :  { %v3673_v62 = vadd.f32 %v10327_v34, %v3672_v30  ;;  %2746 = vrot.lane.b32.xlu0 %v2555_v14, %s7945_s17  ;;  %v3674_v32 = vpop.f32.mrb[71].mxu0  ;;  %v5373_v34 = vld [vmem:[%s11926_s5 + $0x60] sm:$0xff]  ;;  %v1447_v4 = vpop.permute.xlu1 %1446  ;;  %7394 = vmatprep.subr.bf16.mxu1 %v7393_v26 }
 0x373   :  { %v4378_v56 = vld [vmem:[#allocation4 + $0x110] sm:$0xff]  ;;  %v7395_v28 = vpack.c.bf16 %v5374_v55, %v5373_v34  ;;  %1585 = vst.msk [vmem:[#allocation3 + $0x510] sm:$0xff] %vm1530_vm4, %v1447_v4  ;;  %v4993_v30 = vld [vmem:[#allocation6 + $0x22] sm:$0xff] }
 0x374   :  { %v4410_v27 = vmax.f32 %v4345_v12, %v4378_v56  ;;  %v4058_v31 = vadd.f32 %v10301_v19, %v3673_v62  ;;  %v2345_v57 = vpop.permute.xlu0 %2344  ;;  %v3164_v18 = vld [vmem:[#allocation3 + $0x500] sm:$0xff]  ;;  %v5391_v19 = vld [vmem:[%s11926_s5 + $0xf0] sm:$0xff]  ;;  %4800 = vrot.lane.b32.xlu1 %v4768_v54, %s7944_s7 }
 0x375   :  { %2482 = vst.msk [vmem:[#allocation3 + $0x518] sm:$0xff] %vm1145_vm3, %v2345_v57  ;;  %3760 = vmatprep.mubr.f32.mxu0 %v3164_v18  ;;  %v7397_v59 = vpack.c.bf16 %v5392_v44, %v5391_v19  ;;  %7396 = vmatpush3.bf16.msra.mxu1 %v7395_v28  ;;  %v5090_v32 = vld [vmem:[#allocation6 + $0x30] sm:$0xff] }
 0x376   :  { %4442 = vst.msk [vmem:[#allocation5 + $0x80] sm:$0xff] %vm73_vm0, %v4410_v27  ;;  %v4236_v0 = vmax.f32 %v4058_v31, 0.0  ;;  %3761 = vmatmul.mubr.f32.gmra.mrb[106].mxu0 %v3163_v21  ;;  %5024 = vrot.lane.b32.xlu0 %v4992_v6, %s7941_s26  ;;  %v679_v46 = vpop.permute.xlu1 %678  ;;  %v5186_v56 = vld [vmem:[#allocation6 + $0x31] sm:$0xff] }
 0x377   :  { %7398 = vmatprep.subr.bf16.mxu1 %v7397_v59  ;;  %816 = vst.msk [vmem:[#allocation3 + $0x528] sm:$0xff] %vm760_vm2, %v679_v46 }
 0x378   :  { %4300 = vst.msk [vmem:[#allocation4 + $0x118] sm:$0xff] %vm73_vm0, %v4236_v0  ;;  %v2729_v11 = vpop.permute.xlu0 %2728  ;;  %4896 = vrot.lane.b32.xlu1 %v4864_v43, %s7945_s17  ;;  %v4994_v0 = vld [vmem:[#allocation6 + $0x32] sm:$0xff]  ;;  %v5187_v43 = vld [vmem:[#allocation6 + $0x41] sm:$0xff] }
 0x379   :  { %2866 = vst.msk [vmem:[#allocation3 + $0x518] sm:$0xff] %vm1530_vm4, %v2729_v11  ;;  %7400 = vmatpush3.bf16.msra.mxu1 %v7399_v22 }
 0x37a   :  { %5121 = vrot.lane.b32.xlu0 %v5089_v42, %s7944_s7  ;;  %v1064_v24 = vpop.permute.xlu1 %1063  ;;  %v3166_v58 = vld [vmem:[#allocation3 + $0x510] sm:$0xff] }
 0x37b   :  { %1201 = vst.msk [vmem:[#allocation3 + $0x528] sm:$0xff] %vm1145_vm3, %v1064_v24 }
 0x37c   :  { %v1962_v16 = vpop.permute.xlu0 %1961  ;;  %4706 = vrot.lane.b32.xlu1 %v9670_v29, %s7941_s26 }
 0x37d   :  { %2098 = vst.msk [vmem:[#allocation3 + $0x530] sm:$0xff] %vm760_vm2, %v1962_v16  ;;  %v3677_v13 = vpop.f32.mrb[72].mxu0 }
 0x37e   :  { %v3678_v41 = vadd.f32 %v10799_v45, %v3677_v13  ;;  %v3679_v14 = vpop.f32.mrb[73].mxu0  ;;  %5217 = vrot.lane.b32.xlu0 %v5185_v2, %s7945_s17  ;;  %v1449_v25 = vpop.permute.xlu1 %1448 }
 0x37f   :  { %v4379_v52 = vld [vmem:[#allocation4 + $0x118] sm:$0xff]  ;;  %1586 = vst.msk [vmem:[#allocation3 + $0x528] sm:$0xff] %vm1530_vm4, %v1449_v25 }
 0x380   :  { %v4411_v5 = vmax.f32 %v4346_v51, %v4379_v52  ;;  %v4063_v37 = vadd.f32 %v10376_v50, %v3678_v41  ;;  %v2347_v49 = vpop.permute.xlu0 %2346  ;;  %v3167_v12 = vld [vmem:[#allocation3 + $0x518] sm:$0xff]  ;;  %4802 = vrot.lane.b32.xlu1 %v4992_v6, %s7944_s7 }
 0x381   :  { %2483 = vst.msk [vmem:[#allocation3 + $0x530] sm:$0xff] %vm1145_vm3, %v2347_v49  ;;  %3765 = vmatprep.mubr.f32.mxu0 %v3167_v12  ;;  %v5092_v12 = vld [vmem:[#allocation6 + $0x50] sm:$0xff] }
 0x382   :  { %4443 = vst.msk [vmem:[#allocation5 + $0x88] sm:$0xff] %vm73_vm0, %v4411_v5  ;;  %v4237_v62 = vmax.f32 %v4063_v37, 0.0  ;;  %3766 = vmatmul.mubr.f32.gmra.mrb[108].mxu0 %v3166_v58  ;;  %5026 = vrot.lane.b32.xlu0 %v4993_v30, %s7941_s26  ;;  %v681_v50 = vpop.permute.xlu1 %680  ;;  %v4995_v5 = vld [vmem:[#allocation6 + $0x42] sm:$0xff] }
 0x383   :  { %817 = vst.msk [vmem:[#allocation3 + $0x540] sm:$0xff] %vm760_vm2, %v681_v50 }
 0x384   :  { %4301 = vst.msk [vmem:[#allocation4 + $0x120] sm:$0xff] %vm73_vm0, %v4237_v62  ;;  %v2731_v29 = vpop.permute.xlu0 %2730  ;;  %4898 = vrot.lane.b32.xlu1 %v5089_v42, %s7945_s17 }
 0x385   :  { %2867 = vst.msk [vmem:[#allocation3 + $0x530] sm:$0xff] %vm1530_vm4, %v2731_v29 }
 0x386   :  { %5123 = vrot.lane.b32.xlu0 %v5090_v32, %s7944_s7  ;;  %v1066_v15 = vpop.permute.xlu1 %1065  ;;  %v3169_v57 = vld [vmem:[#allocation3 + $0x528] sm:$0xff] }
 0x387   :  { %1202 = vst.msk [vmem:[#allocation3 + $0x540] sm:$0xff] %vm1145_vm3, %v1066_v15 }
 0x388   :  { %v1964_v21 = vpop.permute.xlu0 %1963  ;;  %4708 = vrot.lane.b32.xlu1 %v5185_v2, %s7941_s26  ;;  %v10831_v35 = vpop.f32.mrb[48].mxu1 }
 0x389   :  { %2099 = vst.msk [vmem:[#allocation3 + $0x548] sm:$0xff] %vm760_vm2, %v1964_v21  ;;  %v3682_v40 = vpop.f32.mrb[74].mxu0  ;;  %v4474_v26 = vld [vmem:[#allocation5 + $0x80] ss:$2 sm:$0xff]  ;;  %v4506_v34 = vld [vmem:[#allocation5 + $0x81] ss:$2 sm:$0xff] }
 0x38a   :  { %v3683_v55 = vadd.f32 %v10799_v45, %v3682_v40  ;;  %v3684_v27 = vpop.f32.mrb[75].mxu0  ;;  %5219 = vrot.lane.b32.xlu0 %v5186_v56, %s7945_s17  ;;  %v4529_v31 = vmax.f32 %v4474_v26, %v4506_v34  ;;  %v1451_v6 = vpop.permute.xlu1 %1450 }
 0x38b   :  { %1587 = vst.msk [vmem:[#allocation3 + $0x540] sm:$0xff] %vm1530_vm4, %v1451_v6  ;;  %v10835_v11 = vpop.f32.mrb[49].mxu1  ;;  %v4996_v27 = vld [vmem:[#allocation6 + $0x52] sm:$0xff] }
 0x38c   :  { %v4068_v18 = vadd.f32 %v10372_v48, %v3683_v55  ;;  %v2349_v54 = vpop.permute.xlu0 %2348  ;;  %v3170_v28 = vld [vmem:[#allocation3 + $0x530] sm:$0xff]  ;;  %v4552_v4 = vmul.f32 %v10633_v60, %v4529_v31  ;;  %4804 = vrot.lane.b32.xlu1 %v4993_v30, %s7944_s7 }
 0x38d   :  { %2484 = vst.msk [vmem:[#allocation3 + $0x548] sm:$0xff] %vm1145_vm3, %v2349_v54  ;;  %3770 = vmatprep.mubr.f32.mxu0 %v3170_v28  ;;  %v5093_v28 = vld [vmem:[#allocation6 + $0x60] sm:$0xff] }
 0x38e   :  { %v4238_v19 = vmax.f32 %v4068_v18, 0.0  ;;  %3771 = vmatmul.mubr.f32.gmra.mrb[110].mxu0 %v3169_v57  ;;  %5028 = vrot.lane.b32.xlu0 %v4994_v0, %s7941_s26  ;;  %v4575_v44 = vadd.f32 %v10644_v61, %v4552_v4  ;;  %v683_v59 = vpop.permute.xlu1 %682 }
 0x38f   :  { %818 = vst.msk [vmem:[#allocation3 + $0x558] sm:$0xff] %vm760_vm2, %v683_v59 }
 0x390   :  { %4302 = vst.msk [vmem:[#allocation4 + $0x128] sm:$0xff] %vm73_vm0, %v4238_v19  ;;  %v2733_v48 = vpop.permute.xlu0 %2732  ;;  %4632 = vst.msk [vmem:[#allocation6 + $0xb1] sm:$0xff] %vm73_vm0, %v4575_v44  ;;  %4900 = vrot.lane.b32.xlu1 %v5090_v32, %s7945_s17  ;;  %v4347_v32 = vld [vmem:[#allocation4 + $0x120] sm:$0xff] }
 0x391   :  { %2868 = vst.msk [vmem:[#allocation3 + $0x548] sm:$0xff] %vm1530_vm4, %v2733_v48 }
 0x392   :  { %5125 = vrot.lane.b32.xlu0 %v5091_v23, %s7944_s7  ;;  %v1068_v46 = vpop.permute.xlu1 %1067  ;;  %v3172_v13 = vld [vmem:[#allocation3 + $0x540] sm:$0xff] }
 0x393   :  { %1203 = vst.msk [vmem:[#allocation3 + $0x558] sm:$0xff] %vm1145_vm3, %v1068_v46 }
 0x394   :  { %v1966_v22 = vpop.permute.xlu0 %1965  ;;  %4710 = vrot.lane.b32.xlu1 %v5186_v56, %s7941_s26 }
 0x395   :  { %2100 = vst.msk [vmem:[#allocation3 + $0x560] sm:$0xff] %vm760_vm2, %v1966_v22  ;;  %v3687_v42 = vpop.f32.mrb[76].mxu0 }
 0x396   :  { %v3688_v16 = vadd.f32 %v10799_v45, %v3687_v42  ;;  %v3689_v24 = vpop.f32.mrb[77].mxu0  ;;  %5221 = vrot.lane.b32.xlu0 %v5187_v43, %s7945_s17  ;;  %v1453_v58 = vpop.permute.xlu1 %1452 }
 0x397   :  { %v10843_v2 = vld [vmem:[#allocation6 + $0xb0] sm:$0xff]  ;;  %1588 = vst.msk [vmem:[#allocation3 + $0x558] sm:$0xff] %vm1530_vm4, %v1453_v58  ;;  %v4348_v48 = vld [vmem:[#allocation4 + $0x128] sm:$0xff] }
 0x398   :  { %v4073_v41 = vadd.f32 %v10442_v36, %v3688_v16  ;;  %v2351_v14 = vpop.permute.xlu0 %2350  ;;  %v3173_v51 = vld [vmem:[#allocation3 + $0x548] sm:$0xff]  ;;  %v10846_v52 = vld [vmem:[#allocation6 + $0xb1] sm:$0xff]  ;;  %4665 = vst.msk [vmem:[#allocation7 + $0xd8] sm:$0xff] %vm73_vm0, %v10843_v2  ;;  %4806 = vrot.lane.b32.xlu1 %v4994_v0, %s7944_s7 }
 0x399   :  { %2485 = vst.msk [vmem:[#allocation3 + $0x560] sm:$0xff] %vm1145_vm3, %v2351_v14  ;;  %3775 = vmatprep.mubr.f32.mxu0 %v3173_v51  ;;  %v4997_v24 = vld [vmem:[#allocation6 + $0x62] sm:$0xff] }
 0x39a   :  { %4984 = vst.msk [vmem:[#allocation7 + $0xc8] sm:$0xff] %vm73_vm0, %v10846_v52  ;;  %v4239_v37 = vmax.f32 %v4073_v41, 0.0  ;;  %3776 = vmatmul.mubr.f32.gmra.mrb[112].mxu0 %v3172_v13  ;;  %5030 = vrot.lane.b32.xlu0 %v4995_v5, %s7941_s26  ;;  %v685_v49 = vpop.permute.xlu1 %684 }
 0x39b   :  { %819 = vst.msk [vmem:[#allocation3 + $0x570] sm:$0xff] %vm760_vm2, %v685_v49 }
 0x39c   :  { %4303 = vst.msk [vmem:[#allocation4 + $0x130] sm:$0xff] %vm73_vm0, %v4239_v37  ;;  %v2735_v36 = vpop.permute.xlu0 %2734  ;;  %4902 = vrot.lane.b32.xlu1 %v5091_v23, %s7945_s17 }
 0x39d   :  { %2869 = vst.msk [vmem:[#allocation3 + $0x560] sm:$0xff] %vm1530_vm4, %v2735_v36 }
 0x39e   :  { %5127 = vrot.lane.b32.xlu0 %v5092_v12, %s7944_s7  ;;  %v1070_v30 = vpop.permute.xlu1 %1069  ;;  %v3175_v15 = vld [vmem:[#allocation3 + $0x558] sm:$0xff] }
 0x39f   :  { %1204 = vst.msk [vmem:[#allocation3 + $0x570] sm:$0xff] %vm1145_vm3, %v1070_v30 }
 0x3a0   :  { %v1968_v25 = vpop.permute.xlu0 %1967  ;;  %4712 = vrot.lane.b32.xlu1 %v5187_v43, %s7941_s26  ;;  %v10873_v57 = vpop.f32.mrb[50].mxu1 }
 0x3a1   :  { %2101 = vst.msk [vmem:[#allocation3 + $0x578] sm:$0xff] %vm760_vm2, %v1968_v25  ;;  %v3692_v62 = vpop.f32.mrb[78].mxu0  ;;  %v10876_v18 = vpop.f32.mrb[51].mxu1 }
 0x3a2   :  { %v3693_v29 = vadd.f32 %v10799_v45, %v3692_v62  ;;  %v3694_v50 = vpop.f32.mrb[79].mxu0  ;;  %5223 = vrot.lane.b32.xlu0 %v10263_v7, %s7945_s17  ;;  %v1455_v55 = vpop.permute.xlu1 %1454 }
 0x3a3   :  { %v4380_v21 = vld [vmem:[#allocation4 + $0x130] sm:$0xff]  ;;  %1589 = vst.msk [vmem:[#allocation3 + $0x570] sm:$0xff] %vm1530_vm4, %v1455_v55 }
 0x3a4   :  { %v4412_v40 = vmax.f32 %v4347_v32, %v4380_v21  ;;  %v4078_v56 = vadd.f32 %v10438_v17, %v3693_v29  ;;  %v2353_v26 = vpop.permute.xlu0 %2352  ;;  %v3176_v34 = vld [vmem:[#allocation3 + $0x560] sm:$0xff]  ;;  %4808 = vrot.lane.b32.xlu1 %v4995_v5, %s7944_s7  ;;  %v4998_v32 = vld [vmem:[#allocation6 + $0x72] sm:$0xff] }
 0x3a5   :  { %2486 = vst.msk [vmem:[#allocation3 + $0x578] sm:$0xff] %vm1145_vm3, %v2353_v26  ;;  %3780 = vmatprep.mubr.f32.mxu0 %v3176_v34 }
 0x3a6   :  { %4444 = vst.msk [vmem:[#allocation5 + $0x90] sm:$0xff] %vm73_vm0, %v4412_v40  ;;  %v4240_v31 = vmax.f32 %v4078_v56, 0.0  ;;  %3781 = vmatmul.mubr.f32.gmra.mrb[114].mxu0 %v3175_v15  ;;  %5032 = vrot.lane.b32.xlu0 %v4996_v27, %s7941_s26  ;;  %v687_v54 = vpop.permute.xlu1 %686  ;;  %v5095_v40 = vld [vmem:[#allocation6 + $0x80] sm:$0xff] }
 0x3a7   :  { %820 = vst.msk [vmem:[#allocation3 + $0x588] sm:$0xff] %vm760_vm2, %v687_v54 }
 0x3a8   :  { %4304 = vst.msk [vmem:[#allocation4 + $0x138] sm:$0xff] %vm73_vm0, %v4240_v31  ;;  %v2737_v17 = vpop.permute.xlu0 %2736  ;;  %4904 = vrot.lane.b32.xlu1 %v5092_v12, %s7945_s17 }
 0x3a9   :  { %2870 = vst.msk [vmem:[#allocation3 + $0x578] sm:$0xff] %vm1530_vm4, %v2737_v17 }
 0x3aa   :  { %5129 = vrot.lane.b32.xlu0 %v5093_v28, %s7944_s7  ;;  %v1072_v6 = vpop.permute.xlu1 %1071  ;;  %v3178_v23 = vld [vmem:[#allocation3 + $0x570] sm:$0xff] }
 0x3ab   :  { %1205 = vst.msk [vmem:[#allocation3 + $0x588] sm:$0xff] %vm1145_vm3, %v1072_v6 }
 0x3ac   :  { %v1970_v4 = vpop.permute.xlu0 %1969  ;;  %4714 = vrot.lane.b32.xlu1 %v10263_v7, %s7941_s26 }
 0x3ad   :  { %2102 = vst.msk [vmem:[#allocation3 + $0x590] sm:$0xff] %vm760_vm2, %v1970_v4  ;;  %v3697_v0 = vpop.f32.mrb[80].mxu0 }
 0x3ae   :  { %v3698_v19 = vadd.f32 %v10799_v45, %v3697_v0  ;;  %v3699_v44 = vpop.f32.mrb[81].mxu0  ;;  %5225 = vrot.lane.b32.xlu0 %v10394_v1, %s7945_s17  ;;  %v1457_v16 = vpop.permute.xlu1 %1456 }
 0x3af   :  { %v4381_v59 = vld [vmem:[#allocation4 + $0x138] sm:$0xff]  ;;  %1590 = vst.msk [vmem:[#allocation3 + $0x588] sm:$0xff] %vm1530_vm4, %v1457_v16 }
 0x3b0   :  { %v4413_v22 = vmax.f32 %v4348_v48, %v4381_v59  ;;  %v4083_v46 = vadd.f32 %v10510_v47, %v3698_v19  ;;  %v2355_v42 = vpop.permute.xlu0 %2354  ;;  %v3179_v43 = vld [vmem:[#allocation3 + $0x578] sm:$0xff]  ;;  %4810 = vrot.lane.b32.xlu1 %v4996_v27, %s7944_s7  ;;  %v4648_v48 = vld [vmem:[#allocation6 + $0xa0] sm:$0xff] }
 0x3b1   :  { %2487 = vst.msk [vmem:[#allocation3 + $0x590] sm:$0xff] %vm1145_vm3, %v2355_v42  ;;  %3785 = vmatprep.mubr.f32.mxu0 %v3179_v43  ;;  %v4680_v42 = vld [vmem:[#allocation6 + $0xa1] sm:$0xff] }
 0x3b2   :  { %4445 = vst.msk [vmem:[#allocation5 + $0x98] sm:$0xff] %vm73_vm0, %v4413_v22  ;;  %v4241_v13 = vmax.f32 %v4083_v46, 0.0  ;;  %3786 = vmatmul.mubr.f32.gmra.mrb[116].mxu0 %v3178_v23  ;;  %5034 = vrot.lane.b32.xlu0 %v4997_v24, %s7941_s26  ;;  %v689_v47 = vpop.permute.xlu1 %688  ;;  %4664 = vst.msk [vmem:[#allocation7 + $0xc0] sm:$0xff] %vm73_vm0, %v4648_v48  ;;  %v5192_v22 = vld [vmem:[#allocation6 + $0x91] sm:$0xff] }
 0x3b3   :  { %821 = vst.msk [vmem:[#allocation3 + $0x5a0] sm:$0xff] %vm760_vm2, %v689_v47 }
 0x3b4   :  { %4305 = vst.msk [vmem:[#allocation4 + $0x140] sm:$0xff] %vm73_vm0, %v4241_v13  ;;  %v2739_v7 = vpop.permute.xlu0 %2738  ;;  %4906 = vrot.lane.b32.xlu1 %v5093_v28, %s7945_s17 }
 0x3b5   :  { %2871 = vst.msk [vmem:[#allocation3 + $0x590] sm:$0xff] %vm1530_vm4, %v2739_v7 }
 0x3b6   :  { %5131 = vrot.lane.b32.xlu0 %v10525_v20, %s7944_s7  ;;  %v1074_v14 = vpop.permute.xlu1 %1073  ;;  %v3181_v12 = vld [vmem:[#allocation3 + $0x588] sm:$0xff] }
 0x3b7   :  { %1206 = vst.msk [vmem:[#allocation3 + $0x5a0] sm:$0xff] %vm1145_vm3, %v1074_v14 }
 0x3b8   :  { %v1972_v41 = vpop.permute.xlu0 %1971  ;;  %4716 = vrot.lane.b32.xlu1 %v10394_v1, %s7941_s26  ;;  %v10918_v56 = vpop.f32.mrb[52].mxu1 }
 0x3b9   :  { %2103 = vst.msk [vmem:[#allocation3 + $0x5a8] sm:$0xff] %vm760_vm2, %v1972_v41  ;;  %v3702_v51 = vpop.f32.mrb[82].mxu0  ;;  %v4476_v58 = vld [vmem:[#allocation5 + $0x90] ss:$2 sm:$0xff]  ;;  %v4508_v5 = vld [vmem:[#allocation5 + $0x91] ss:$2 sm:$0xff] }
 0x3ba   :  { %v3703_v37 = vadd.f32 %v10799_v45, %v3702_v51  ;;  %v3704_v36 = vpop.f32.mrb[83].mxu0  ;;  %5227 = vrot.lane.b32.xlu0 %v10527_v10, %s7945_s17  ;;  %v4530_v49 = vmax.f32 %v4476_v58, %v4508_v5  ;;  %v1459_v50 = vpop.permute.xlu1 %1458 }
 0x3bb   :  { %1591 = vst.msk [vmem:[#allocation3 + $0x5a0] sm:$0xff] %vm1530_vm4, %v1459_v50  ;;  %v10922_v26 = vpop.f32.mrb[53].mxu1  ;;  %v4349_v7 = vld [vmem:[#allocation4 + $0x140] sm:$0xff] }
 0x3bc   :  { %v4088_v25 = vadd.f32 %v10505_v39, %v3703_v37  ;;  %v2357_v30 = vpop.permute.xlu0 %2356  ;;  %v3182_v62 = vld [vmem:[#allocation3 + $0x590] sm:$0xff]  ;;  %v4553_v29 = vmul.f32 %v10633_v60, %v4530_v49  ;;  %4812 = vrot.lane.b32.xlu1 %v4997_v24, %s7944_s7  ;;  %v4776_v37 = vld [vmem:[#allocation6 + $0xa2] sm:$0xff] }
 0x3bd   :  { %2488 = vst.msk [vmem:[#allocation3 + $0x5a8] sm:$0xff] %vm1145_vm3, %v2357_v30  ;;  %3790 = vmatprep.mubr.f32.mxu0 %v3182_v62  ;;  %v5000_v49 = vld [vmem:[#allocation6 + $0xb2] sm:$0xff] }
 0x3be   :  { %v4242_v21 = vmax.f32 %v4088_v25, 0.0  ;;  %3791 = vmatmul.mubr.f32.gmra.mrb[118].mxu0 %v3181_v12  ;;  %5036 = vrot.lane.b32.xlu0 %v4998_v32, %s7941_s26  ;;  %v4576_v1 = vadd.f32 %v10644_v61, %v4553_v29  ;;  %v691_v15 = vpop.permute.xlu1 %690 }
 0x3bf   :  { %822 = vst.msk [vmem:[#allocation3 + $0x5b8] sm:$0xff] %vm760_vm2, %v691_v15 }
 0x3c0   :  { %4306 = vst.msk [vmem:[#allocation4 + $0x148] sm:$0xff] %vm73_vm0, %v4242_v21  ;;  %v2741_v39 = vpop.permute.xlu0 %2740  ;;  %4633 = vst.msk [vmem:[#allocation6 + $0xc1] sm:$0xff] %vm73_vm0, %v4576_v1  ;;  %4908 = vrot.lane.b32.xlu1 %v10525_v20, %s7945_s17 }
 0x3c1   :  { %2872 = vst.msk [vmem:[#allocation3 + $0x5a8] sm:$0xff] %vm1530_vm4, %v2741_v39 }
 0x3c2   :  { %5133 = vrot.lane.b32.xlu0 %v5095_v40, %s7944_s7  ;;  %v1076_v55 = vpop.permute.xlu1 %1075  ;;  %v3184_v54 = vld [vmem:[#allocation3 + $0x5a0] sm:$0xff] }
 0x3c3   :  { %1207 = vst.msk [vmem:[#allocation3 + $0x5b8] sm:$0xff] %vm1145_vm3, %v1076_v55 }
 0x3c4   :  { %v1974_v34 = vpop.permute.xlu0 %1973  ;;  %4718 = vrot.lane.b32.xlu1 %v10527_v10, %s7941_s26  ;;  %v4999_v10 = vld [vmem:[#allocation6 + $0x82] sm:$0xff] }
 0x3c5   :  { %2104 = vst.msk [vmem:[#allocation3 + $0x5c0] sm:$0xff] %vm760_vm2, %v1974_v34  ;;  %v3707_v27 = vpop.f32.mrb[84].mxu0 }
 0x3c6   :  { %v3708_v31 = vadd.f32 %v10799_v45, %v3707_v27  ;;  %v3709_v17 = vpop.f32.mrb[85].mxu0  ;;  %5229 = vrot.lane.b32.xlu0 %v10701_v33, %s7945_s17  ;;  %v1461_v33 = vpop.permute.xlu1 %1460 }
 0x3c7   :  { %v10933_v28 = vld [vmem:[#allocation6 + $0xc0] sm:$0xff]  ;;  %1592 = vst.msk [vmem:[#allocation3 + $0x5b8] sm:$0xff] %vm1530_vm4, %v1461_v33  ;;  %v10966_v30 = vpop.f32.mrb[54].mxu1  ;;  %v4350_v39 = vld [vmem:[#allocation4 + $0x148] sm:$0xff] }
 0x3c8   :  { %v10935_v20 = vld [vmem:[#allocation6 + $0xc1] sm:$0xff]  ;;  %v4093_v4 = vadd.f32 %v10576_v53, %v3708_v31  ;;  %v2359_v6 = vpop.permute.xlu0 %2358  ;;  %4666 = vst.msk [vmem:[#allocation7 + $0xf0] sm:$0xff] %vm73_vm0, %v10933_v28  ;;  %4814 = vrot.lane.b32.xlu1 %v4998_v32, %s7944_s7  ;;  %v5096_v53 = vld [vmem:[#allocation6 + $0x90] sm:$0xff]  ;;  %v10971_v62 = vpop.f32.mrb[55].mxu1 }
 0x3c9   :  { %v3185_v0 = vld [vmem:[#allocation3 + $0x5a8] sm:$0xff]  ;;  %4985 = vst.msk [vmem:[#allocation7 + $0xe0] sm:$0xff] %vm73_vm0, %v10935_v20 }
 0x3ca   :  { %v5289_v19 = vld [vmem:[#allocation6 + $0xc2] sm:$0xff]  ;;  %2489 = vst.msk [vmem:[#allocation3 + $0x5c0] sm:$0xff] %vm1145_vm3, %v2359_v6  ;;  %3795 = vmatprep.mubr.f32.mxu0 %v3185_v0  ;;  %v4243_v44 = vmax.f32 %v4093_v4, 0.0  ;;  %5038 = vrot.lane.b32.xlu0 %v4999_v10, %s7941_s26  ;;  %v693_v23 = vpop.permute.xlu1 %692 }
 0x3cb   :  { %5305 = vst.msk [vmem:[#allocation7 + $0xd0] sm:$0xff] %vm73_vm0, %v5289_v19  ;;  %3796 = vmatmul.mubr.f32.gmra.mrb[120].mxu0 %v3184_v54  ;;  %v5001_v17 = vld [vmem:[#allocation6 + $0xc2] sm:$0xff] }
 0x3cc   :  { %4307 = vst.msk [vmem:[#allocation4 + $0x150] sm:$0xff] %vm73_vm0, %v4243_v44  ;;  %v2743_v59 = vpop.permute.xlu0 %2742  ;;  %4910 = vrot.lane.b32.xlu1 %v5095_v40, %s7945_s17 }
 0x3cd   :  { %2873 = vst.msk [vmem:[#allocation3 + $0x5c0] sm:$0xff] %vm1530_vm4, %v2743_v59 }
 0x3ce   :  { %823 = vst.msk [vmem:[#allocation3 + $0x5d0] sm:$0xff] %vm760_vm2, %v693_v23  ;;  %5135 = vrot.lane.b32.xlu0 %v5096_v53, %s7944_s7  ;;  %v1078_v43 = vpop.permute.xlu1 %1077  ;;  %v3187_v41 = vld [vmem:[#allocation3 + $0x5b8] sm:$0xff] }
 0x3cf   :  { %1208 = vst.msk [vmem:[#allocation3 + $0x5d0] sm:$0xff] %vm1145_vm3, %v1078_v43 }
 0x3d0   :  { %v1976_v46 = vpop.permute.xlu0 %1975  ;;  %4720 = vrot.lane.b32.xlu1 %v4680_v42, %s7941_s26 }
 0x3d1   :  { %2105 = vst.msk [vmem:[#allocation3 + $0x5d8] sm:$0xff] %vm760_vm2, %v1976_v46  ;;  %v3712_v16 = vpop.f32.mrb[86].mxu0 }
 0x3d2   :  { %v3713_v24 = vadd.f32 %v10799_v45, %v3712_v16  ;;  %v3714_v13 = vpop.f32.mrb[87].mxu0  ;;  %5231 = vrot.lane.b32.xlu0 %v5192_v22, %s7945_s17  ;;  %v1463_v36 = vpop.permute.xlu1 %1462 }
 0x3d3   :  { %v4382_v47 = vld [vmem:[#allocation4 + $0x150] sm:$0xff]  ;;  %1593 = vst.msk [vmem:[#allocation3 + $0x5d0] sm:$0xff] %vm1530_vm4, %v1463_v36 }
 0x3d4   :  { %v4414_v14 = vmax.f32 %v4349_v7, %v4382_v47  ;;  %v4098_v51 = vadd.f32 %v10572_v63, %v3713_v24  ;;  %v2361_v58 = vpop.permute.xlu0 %2360  ;;  %v3188_v5 = vld [vmem:[#allocation3 + $0x5c0] sm:$0xff]  ;;  %4816 = vrot.lane.b32.xlu1 %v4776_v37, %s7944_s7 }
 0x3d5   :  { %2490 = vst.msk [vmem:[#allocation3 + $0x5d8] sm:$0xff] %vm1145_vm3, %v2361_v58  ;;  %3800 = vmatprep.mubr.f32.mxu0 %v3188_v5 }
 0x3d6   :  { %4446 = vst.msk [vmem:[#allocation5 + $0xa0] sm:$0xff] %vm73_vm0, %v4414_v14  ;;  %v4244_v12 = vmax.f32 %v4098_v51, 0.0  ;;  %3801 = vmatmul.mubr.f32.gmra.mrb[122].mxu0 %v3187_v41  ;;  %5040 = vrot.lane.b32.xlu0 %v5000_v49, %s7941_s26  ;;  %v695_v25 = vpop.permute.xlu1 %694 }
 0x3d7   :  { %824 = vst.msk [vmem:[#allocation3 + $0x5e8] sm:$0xff] %vm760_vm2, %v695_v25 }
 0x3d8   :  { %4308 = vst.msk [vmem:[#allocation4 + $0x158] sm:$0xff] %vm73_vm0, %v4244_v12  ;;  %v2745_v63 = vpop.permute.xlu0 %2744  ;;  %4912 = vrot.lane.b32.xlu1 %v10843_v2, %s7945_s17 }
 0x3d9   :  { %2874 = vst.msk [vmem:[#allocation3 + $0x5d8] sm:$0xff] %vm1530_vm4, %v2745_v63 }
 0x3da   :  { %5137 = vrot.lane.b32.xlu0 %v10933_v28, %s7944_s7  ;;  %v1080_v50 = vpop.permute.xlu1 %1079  ;;  %v3190_v40 = vld [vmem:[#allocation3 + $0x5d0] sm:$0xff] }
 0x3db   :  { %1209 = vst.msk [vmem:[#allocation3 + $0x5e8] sm:$0xff] %vm1145_vm3, %v1080_v50 }
 0x3dc   :  { %v1978_v29 = vpop.permute.xlu0 %1977  ;;  %4722 = vrot.lane.b32.xlu1 %v10846_v52, %s7941_s26 }
 0x3dd   :  { %2106 = vst.msk [vmem:[#allocation3 + $0x5f0] sm:$0xff] %vm760_vm2, %v1978_v29  ;;  %v3717_v32 = vpop.f32.mrb[88].mxu0 }
 0x3de   :  { %v3718_v21 = vadd.f32 %v10799_v45, %v3717_v32  ;;  %v3719_v1 = vpop.f32.mrb[89].mxu0  ;;  %5233 = vrot.lane.b32.xlu0 %v10935_v20, %s7945_s17  ;;  %v1465_v31 = vpop.permute.xlu1 %1464 }
 0x3df   :  { %v4383_v15 = vld [vmem:[#allocation4 + $0x158] sm:$0xff]  ;;  %1594 = vst.msk [vmem:[#allocation3 + $0x5e8] sm:$0xff] %vm1530_vm4, %v1465_v31 }
 0x3e0   :  { %v4415_v2 = vmax.f32 %v4350_v39, %v4383_v15  ;;  %v4103_v34 = vadd.f32 %v10671_v38, %v3718_v21  ;;  %v2363_v55 = vpop.permute.xlu0 %2362  ;;  %v3191_v27 = vld [vmem:[#allocation3 + $0x5d8] sm:$0xff]  ;;  %4818 = vrot.lane.b32.xlu1 %v5000_v49, %s7944_s7 }
 0x3e1   :  { %2491 = vst.msk [vmem:[#allocation3 + $0x5f0] sm:$0xff] %vm1145_vm3, %v2363_v55  ;;  %3805 = vmatprep.mubr.f32.mxu0 %v3191_v27 }
 0x3e2   :  { %4447 = vst.msk [vmem:[#allocation5 + $0xa8] sm:$0xff] %vm73_vm0, %v4415_v2  ;;  %v4245_v54 = vmax.f32 %v4103_v34, 0.0  ;;  %3806 = vmatmul.mubr.f32.gmra.mrb[124].mxu0 %v3190_v40  ;;  %5042 = vrot.lane.b32.xlu0 %v5001_v17, %s7941_s26  ;;  %v4705_v52 = vpop.permute.xlu1 %4704 }
 0x3e3   :  { %4752 = vst.msk [vmem:[#allocation7] sm:$0xff] %vm760_vm2, %v4705_v52 }
 0x3e4   :  { %4309 = vst.msk [vmem:[#allocation4 + $0x160] sm:$0xff] %vm73_vm0, %v4245_v54  ;;  %v2747_v38 = vpop.permute.xlu0 %2746  ;;  %4914 = vrot.lane.b32.xlu1 %v10933_v28, %s7945_s17 }
 0x3e5   :  { %2875 = vst.msk [vmem:[#allocation3 + $0x5f0] sm:$0xff] %vm1530_vm4, %v2747_v38 }
 0x3e6   :  { %v4801_v6 = vpop.permute.xlu1 %4800  ;;  %v3193_v48 = vld [vmem:[#allocation3 + $0x5e8] sm:$0xff] }
 0x3e7   :  { %4848 = vst.msk [vmem:[#allocation7] sm:$0xff] %vm1145_vm3, %v4801_v6 }
 0x3e8   :  { %v5025_v4 = vpop.permute.xlu0 %5024  ;;  %4724 = vrot.lane.b32.xlu1 %v10935_v20, %s7941_s26 }
 0x3e9   :  { %5072 = vst.msk [vmem:[#allocation7 + $0x8] sm:$0xff] %vm760_vm2, %v5025_v4  ;;  %v3722_v0 = vpop.f32.mrb[90].mxu0  ;;  %v4478_v19 = vld [vmem:[#allocation5 + $0xa0] ss:$2 sm:$0xff]  ;;  %v4510_v33 = vld [vmem:[#allocation5 + $0xa1] ss:$2 sm:$0xff] }
 0x3ea   :  { %v3723_v10 = vadd.f32 %v10799_v45, %v3722_v0  ;;  %v3724_v44 = vpop.f32.mrb[91].mxu0  ;;  %v4531_v53 = vmax.f32 %v4478_v19, %v4510_v33  ;;  %v4897_v46 = vpop.permute.xlu1 %4896 }
 0x3eb   :  { %4944 = vst.msk [vmem:[#allocation7] sm:$0xff] %vm1530_vm4, %v4897_v46  ;;  %v4351_v39 = vld [vmem:[#allocation4 + $0x160] sm:$0xff] }
 0x3ec   :  { %v4108_v59 = vadd.f32 %v10667_v3, %v3723_v10  ;;  %v5122_v28 = vpop.permute.xlu0 %5121  ;;  %v3194_v23 = vld [vmem:[#allocation3 + $0x5f0] sm:$0xff]  ;;  %v4554_v22 = vmul.f32 %v10633_v60, %v4531_v53  ;;  %4820 = vrot.lane.b32.xlu1 %v5001_v17, %s7944_s7  ;;  %v11007_v3 = vpop.f32.mrb[56].mxu1 }
 0x3ed   :  { %5169 = vst.msk [vmem:[#allocation7 + $0x8] sm:$0xff] %vm1145_vm3, %v5122_v28  ;;  %3810 = vmatprep.mubr.f32.mxu0 %v3194_v23  ;;  %v11010_v16 = vpop.f32.mrb[57].mxu1 }
 0x3ee   :  { %v4246_v42 = vmax.f32 %v4108_v59, 0.0  ;;  %3811 = vmatmul.mubr.f32.gmra.mrb[126].mxu0 %v3193_v48  ;;  %v4577_v43 = vadd.f32 %v10644_v61, %v4554_v22  ;;  %v4707_v60 = vpop.permute.xlu1 %4706 }
 0x3ef   :  { %4753 = vst.msk [vmem:[#allocation7 + $0x18] sm:$0xff] %vm760_vm2, %v4707_v60 }
 0x3f0   :  { %4310 = vst.msk [vmem:[#allocation4 + $0x168] sm:$0xff] %vm73_vm0, %v4246_v42  ;;  %v5218_v20 = vpop.permute.xlu0 %5217  ;;  %4634 = vst.msk [vmem:[#allocation6 + $0xd1] sm:$0xff] %vm73_vm0, %v4577_v43 }
 0x3f1   :  { %5265 = vst.msk [vmem:[#allocation7 + $0x8] sm:$0xff] %vm1530_vm4, %v5218_v20 }
 0x3f2   :  { %v4803_v13 = vpop.permute.xlu1 %4802  ;;  %v5313_v49 = vld [vmem:[#allocation7] sm:$0xff] }
 0x3f3   :  { %4849 = vst.msk [vmem:[#allocation7 + $0x18] sm:$0xff] %vm1145_vm3, %v4803_v13 }
 0x3f4   :  { %v5027_v24 = vpop.permute.xlu0 %5026 }
 0x3f5   :  { %5073 = vst.msk [vmem:[#allocation7 + $0x20] sm:$0xff] %vm760_vm2, %v5027_v24  ;;  %v3727_v61 = vpop.f32.mrb[92].mxu0 }
 0x3f6   :  { %v3728_v7 = vadd.f32 %v10799_v45, %v3727_v61  ;;  %v3729_v47 = vpop.f32.mrb[93].mxu0  ;;  %v4899_v36 = vpop.permute.xlu1 %4898 }
 0x3f7   :  { %v5098_v41 = vld [vmem:[#allocation6 + $0xd0] sm:$0xff]  ;;  %4945 = vst.msk [vmem:[#allocation7 + $0x18] sm:$0xff] %vm1530_vm4, %v4899_v36  ;;  %v4352_v10 = vld [vmem:[#allocation4 + $0x168] sm:$0xff] }
 0x3f8   :  { %v5194_v14 = vld [vmem:[#allocation6 + $0xd1] sm:$0xff]  ;;  %v4113_v51 = vadd.f32 %v10788_v9, %v3728_v7  ;;  %5139 = vrot.lane.b32.xlu0 %v5098_v41, %s7944_s7  ;;  %v5124_v58 = vpop.permute.xlu0 %5123  ;;  %4916 = vrot.lane.b32.xlu1 %v5098_v41, %s7945_s17  ;;  %v5314_v5 = vld [vmem:[#allocation7 + $0x8] sm:$0xff]  ;;  %4667 = vst.msk [vmem:[#allocation7 + $0x108] sm:$0xff] %vm73_vm0, %v5098_v41 }
 0x3f9   :  { %4986 = vst.msk [vmem:[#allocation7 + $0xf8] sm:$0xff] %vm73_vm0, %v5194_v14  ;;  %v5290_v37 = vld [vmem:[#allocation6 + $0xd2] sm:$0xff]  ;;  %5516 = vmatprep.mubr.f32.mxu1 %v5314_v5 }
 0x3fa   :  { %5170 = vst.msk [vmem:[#allocation7 + $0x20] sm:$0xff] %vm1145_vm3, %v5124_v58  ;;  %v4247_v12 = vmax.f32 %v4113_v51, 0.0  ;;  %5517 = vmatmul.mubr.f32.vlgmr.msra.gmra.mrb[64].mxu1 %v5313_v49  ;;  %v4709_v63 = vpop.permute.xlu1 %4708  ;;  %v5002_v25 = vld [vmem:[#allocation6 + $0xd2] sm:$0xff]  ;;  %v11061_v58 = vld [vmem:[%s11924_s3] ss:$0 sm:$0xff] }
 0x3fb   :  { %5306 = vst.msk [vmem:[#allocation7 + $0xe8] sm:$0xff] %vm73_vm0, %v5290_v37 }
 0x3fc   :  { %4311 = vst.msk [vmem:[#allocation4 + $0x170] sm:$0xff] %vm73_vm0, %v4247_v12  ;;  %5235 = vrot.lane.b32.xlu0 %v5194_v14, %s7945_s17  ;;  %v5220_v9 = vpop.permute.xlu0 %5219  ;;  %4726 = vrot.lane.b32.xlu1 %v5194_v14, %s7941_s26 }
 0x3fd   :  { %5266 = vst.msk [vmem:[#allocation7 + $0x20] sm:$0xff] %vm1530_vm4, %v5220_v9 }
 0x3fe   :  { %4754 = vst.msk [vmem:[#allocation7 + $0x30] sm:$0xff] %vm760_vm2, %v4709_v63  ;;  %v4805_v32 = vpop.permute.xlu1 %4804  ;;  %v5316_v31 = vld [vmem:[#allocation7 + $0x18] sm:$0xff] }
 0x3ff   :  { %4850 = vst.msk [vmem:[#allocation7 + $0x30] sm:$0xff] %vm1145_vm3, %v4805_v32 }
 0x400   :  { %5044 = vrot.lane.b32.xlu0 %v5002_v25, %s7941_s26  ;;  %v5029_v29 = vpop.permute.xlu0 %5028  ;;  %4822 = vrot.lane.b32.xlu1 %v5002_v25, %s7944_s7 }
 0x401   :  { %5074 = vst.msk [vmem:[#allocation7 + $0x38] sm:$0xff] %vm760_vm2, %v5029_v29  ;;  %v3732_v50 = vpop.f32.mrb[94].mxu0 }
 0x402   :  { %v3733_v21 = vadd.f32 %v10799_v45, %v3732_v50  ;;  %v3734_v1 = vpop.f32.mrb[95].mxu0  ;;  %v4901_v27 = vpop.permute.xlu1 %4900 }
 0x403   :  { %v4384_v15 = vld [vmem:[#allocation4 + $0x170] sm:$0xff]  ;;  %4946 = vst.msk [vmem:[#allocation7 + $0x30] sm:$0xff] %vm1530_vm4, %v4901_v27 }
 0x404   :  { %v4416_v40 = vmax.f32 %v4351_v39, %v4384_v15  ;;  %v4118_v2 = vadd.f32 %v10779_v8, %v3733_v21  ;;  %v5126_v34 = vpop.permute.xlu0 %5125  ;;  %v5317_v55 = vld [vmem:[#allocation7 + $0x20] sm:$0xff]  ;;  %v11039_v8 = vpop.f32.mrb[58].mxu1 }
 0x405   :  { %5171 = vst.msk [vmem:[#allocation7 + $0x38] sm:$0xff] %vm1145_vm3, %v5126_v34  ;;  %5521 = vmatprep.mubr.f32.mxu1 %v5317_v55  ;;  %v11042_v52 = vpop.f32.mrb[59].mxu1 }
 0x406   :  { %4448 = vst.msk [vmem:[#allocation5 + $0xb0] sm:$0xff] %vm73_vm0, %v4416_v40  ;;  %v4248_v17 = vmax.f32 %v4118_v2, 0.0  ;;  %5522 = vmatmul.mubr.f32.gmra.mrb[66].mxu1 %v5316_v31  ;;  %v4711_v38 = vpop.permute.xlu1 %4710 }
 0x407   :  { %4755 = vst.msk [vmem:[#allocation7 + $0x48] sm:$0xff] %vm760_vm2, %v4711_v38 }
 0x408   :  { %4312 = vst.msk [vmem:[#allocation4 + $0x178] sm:$0xff] %vm73_vm0, %v4248_v17  ;;  %v5222_v54 = vpop.permute.xlu0 %5221 }
 0x409   :  { %5267 = vst.msk [vmem:[#allocation7 + $0x38] sm:$0xff] %vm1530_vm4, %v5222_v54 }
 0x40a   :  { %v4807_v0 = vpop.permute.xlu1 %4806  ;;  %v5319_v22 = vld [vmem:[#allocation7 + $0x30] sm:$0xff] }
 0x40b   :  { %4851 = vst.msk [vmem:[#allocation7 + $0x48] sm:$0xff] %vm1145_vm3, %v4807_v0  ;;  %v11075_v25 = vpop.f32.mrb[60].mxu1 }
 0x40c   :  { %v5031_v4 = vpop.permute.xlu0 %5030  ;;  %v11078_v29 = vpop.f32.mrb[61].mxu1 }
 0x40d   :  { %5075 = vst.msk [vmem:[#allocation7 + $0x50] sm:$0xff] %vm760_vm2, %v5031_v4  ;;  %v3737_v6 = vpop.f32.mrb[96].mxu0 }
 0x40e   :  { %v3738_v19 = vadd.f32 %v10799_v45, %v3737_v6  ;;  %v3739_v33 = vpop.f32.mrb[97].mxu0  ;;  %v4903_v23 = vpop.permute.xlu1 %4902 }
 0x40f   :  { %v4385_v44 = vld [vmem:[#allocation4 + $0x178] sm:$0xff]  ;;  %4947 = vst.msk [vmem:[#allocation7 + $0x48] sm:$0xff] %vm1530_vm4, %v4903_v23 }
 0x410   :  { %v4417_v53 = vmax.f32 %v4352_v10, %v4385_v44  ;;  %v4123_v48 = vadd.f32 %v10835_v11, %v3738_v19  ;;  %v5128_v59 = vpop.permute.xlu0 %5127  ;;  %v5320_v28 = vld [vmem:[#allocation7 + $0x38] sm:$0xff] }
 0x411   :  { %5172 = vst.msk [vmem:[#allocation7 + $0x50] sm:$0xff] %vm1145_vm3, %v5128_v59  ;;  %5526 = vmatprep.mubr.f32.mxu1 %v5320_v28 }
 0x412   :  { %4449 = vst.msk [vmem:[#allocation5 + $0xb8] sm:$0xff] %vm73_vm0, %v4417_v53  ;;  %v4249_v46 = vmax.f32 %v4123_v48, 0.0  ;;  %5527 = vmatmul.mubr.f32.gmra.mrb[68].mxu1 %v5319_v22  ;;  %v4713_v43 = vpop.permute.xlu1 %4712 }
 0x413   :  { %4756 = vst.msk [vmem:[#allocation7 + $0x60] sm:$0xff] %vm760_vm2, %v4713_v43 }
 0x414   :  { %4313 = vst.msk [vmem:[#allocation4 + $0x180] sm:$0xff] %vm73_vm0, %v4249_v46  ;;  %v5224_v42 = vpop.permute.xlu0 %5223 }
 0x415   :  { %5268 = vst.msk [vmem:[#allocation7 + $0x50] sm:$0xff] %vm1530_vm4, %v5224_v42 }
 0x416   :  { %v4809_v60 = vpop.permute.xlu1 %4808  ;;  %v5322_v36 = vld [vmem:[#allocation7 + $0x48] sm:$0xff] }
 0x417   :  { %4852 = vst.msk [vmem:[#allocation7 + $0x60] sm:$0xff] %vm1145_vm3, %v4809_v60 }
 0x418   :  { %v5033_v11 = vpop.permute.xlu0 %5032 }
 0x419   :  { %5076 = vst.msk [vmem:[#allocation7 + $0x68] sm:$0xff] %vm760_vm2, %v5033_v11  ;;  %v3742_v20 = vpop.f32.mrb[98].mxu0  ;;  %v4480_v24 = vld [vmem:[#allocation5 + $0xb0] ss:$2 sm:$0xff]  ;;  %v4512_v61 = vld [vmem:[#allocation5 + $0xb1] ss:$2 sm:$0xff] }
 0x41a   :  { %v3743_v13 = vadd.f32 %v10799_v45, %v3742_v20  ;;  %v3744_v7 = vpop.f32.mrb[99].mxu0  ;;  %v4532_v47 = vmax.f32 %v4480_v24, %v4512_v61  ;;  %v4905_v37 = vpop.permute.xlu1 %4904  ;;  %v11116_v24 = vld [vmem:[%s11923_s2] ss:$0 sm:$0xff] }
 0x41b   :  { %4948 = vst.msk [vmem:[#allocation7 + $0x60] sm:$0xff] %vm1530_vm4, %v4905_v37  ;;  %v4353_v10 = vld [vmem:[#allocation4 + $0x180] sm:$0xff] }
 0x41c   :  { %v4128_v41 = vadd.f32 %v10831_v35, %v3743_v13  ;;  %v5130_v14 = vpop.permute.xlu0 %5129  ;;  %v5323_v51 = vld [vmem:[#allocation7 + $0x50] sm:$0xff]  ;;  %v4555_v5 = vmul.f32 %v11061_v58, %v4532_v47  ;;  %v11069_v35 = vld [vmem:[%s11925_s4] ss:$0 sm:$0xff] }
 0x41d   :  { %5173 = vst.msk [vmem:[#allocation7 + $0x68] sm:$0xff] %vm1145_vm3, %v5130_v14  ;;  %5531 = vmatprep.mubr.f32.mxu1 %v5323_v51 }
 0x41e   :  { %v4250_v49 = vmax.f32 %v4128_v41, 0.0  ;;  %5532 = vmatmul.mubr.f32.gmra.mrb[70].mxu1 %v5322_v36  ;;  %v4578_v12 = vadd.f32 %v11069_v35, %v4555_v5  ;;  %v4715_v63 = vpop.permute.xlu1 %4714 }
 0x41f   :  { %4757 = vst.msk [vmem:[#allocation7 + $0x78] sm:$0xff] %vm760_vm2, %v4715_v63 }
 0x420   :  { %4314 = vst.msk [vmem:[#allocation4 + $0x188] sm:$0xff] %vm73_vm0, %v4250_v49  ;;  %v5226_v9 = vpop.permute.xlu0 %5225  ;;  %4635 = vst.msk [vmem:[#allocation6 + $0xe1] sm:$0xff] %vm73_vm0, %v4578_v12 }
 0x421   :  { %5269 = vst.msk [vmem:[#allocation7 + $0x68] sm:$0xff] %vm1530_vm4, %v5226_v9 }
 0x422   :  { %v4811_v21 = vpop.permute.xlu1 %4810  ;;  %v5325_v17 = vld [vmem:[#allocation7 + $0x60] sm:$0xff] }
 0x423   :  { %4853 = vst.msk [vmem:[#allocation7 + $0x78] sm:$0xff] %vm1145_vm3, %v4811_v21 }
 0x424   :  { %v5035_v50 = vpop.permute.xlu0 %5034 }
 0x425   :  { %5077 = vst.msk [vmem:[#allocation7 + $0x80] sm:$0xff] %vm760_vm2, %v5035_v50  ;;  %v3747_v32 = vpop.f32.mrb[100].mxu0 }
 0x426   :  { %v3748_v1 = vadd.f32 %v10799_v45, %v3747_v32  ;;  %v3749_v39 = vpop.f32.mrb[101].mxu0  ;;  %v4907_v31 = vpop.permute.xlu1 %4906 }
 0x427   :  { %v5099_v15 = vld [vmem:[#allocation6 + $0xe0] sm:$0xff]  ;;  %4949 = vst.msk [vmem:[#allocation7 + $0x78] sm:$0xff] %vm1530_vm4, %v4907_v31  ;;  %v4354_v7 = vld [vmem:[#allocation4 + $0x188] sm:$0xff] }
 0x428   :  { %v5195_v40 = vld [vmem:[#allocation6 + $0xe1] sm:$0xff]  ;;  %v4133_v2 = vadd.f32 %v10876_v18, %v3748_v1  ;;  %5141 = vrot.lane.b32.xlu0 %v5099_v15, %s7944_s7  ;;  %v5132_v34 = vpop.permute.xlu0 %5131  ;;  %4918 = vrot.lane.b32.xlu1 %v5099_v15, %s7945_s17  ;;  %4668 = vst.msk [vmem:[#allocation7 + $0x120] sm:$0xff] %vm73_vm0, %v5099_v15 }
 0x429   :  { %v5326_v55 = vld [vmem:[#allocation7 + $0x68] sm:$0xff]  ;;  %4987 = vst.msk [vmem:[#allocation7 + $0x110] sm:$0xff] %vm73_vm0, %v5195_v40 }
 0x42a   :  { %v5003_v27 = vld [vmem:[#allocation6 + $0xe2] sm:$0xff]  ;;  %5174 = vst.msk [vmem:[#allocation7 + $0x80] sm:$0xff] %vm1145_vm3, %v5132_v34  ;;  %5536 = vmatprep.mubr.f32.mxu1 %v5326_v55  ;;  %v4251_v54 = vmax.f32 %v4133_v2, 0.0  ;;  %v4717_v38 = vpop.permute.xlu1 %4716 }
 0x42b   :  { %5307 = vst.msk [vmem:[#allocation7 + $0x100] sm:$0xff] %vm73_vm0, %v5003_v27  ;;  %5537 = vmatmul.mubr.f32.gmra.mrb[72].mxu1 %v5325_v17 }
 0x42c   :  { %4315 = vst.msk [vmem:[#allocation4 + $0x190] sm:$0xff] %vm73_vm0, %v4251_v54  ;;  %5237 = vrot.lane.b32.xlu0 %v5195_v40, %s7945_s17  ;;  %v5228_v18 = vpop.permute.xlu0 %5227  ;;  %4728 = vrot.lane.b32.xlu1 %v5195_v40, %s7941_s26 }
 0x42d   :  { %5270 = vst.msk [vmem:[#allocation7 + $0x80] sm:$0xff] %vm1530_vm4, %v5228_v18 }
 0x42e   :  { %4758 = vst.msk [vmem:[#allocation7 + $0x90] sm:$0xff] %vm760_vm2, %v4717_v38  ;;  %v4813_v0 = vpop.permute.xlu1 %4812  ;;  %v5328_v22 = vld [vmem:[#allocation7 + $0x78] sm:$0xff] }
 0x42f   :  { %4854 = vst.msk [vmem:[#allocation7 + $0x90] sm:$0xff] %vm1145_vm3, %v4813_v0 }
 0x430   :  { %5046 = vrot.lane.b32.xlu0 %v5003_v27, %s7941_s26  ;;  %v5037_v4 = vpop.permute.xlu0 %5036  ;;  %4824 = vrot.lane.b32.xlu1 %v5003_v27, %s7944_s7 }
 0x431   :  { %5078 = vst.msk [vmem:[#allocation7 + $0x98] sm:$0xff] %vm760_vm2, %v5037_v4  ;;  %v3752_v6 = vpop.f32.mrb[102].mxu0 }
 0x432   :  { %v3753_v19 = vadd.f32 %v10799_v45, %v3752_v6  ;;  %v3754_v33 = vpop.f32.mrb[103].mxu0  ;;  %v4909_v23 = vpop.permute.xlu1 %4908 }
 0x433   :  { %v4386_v44 = vld [vmem:[#allocation4 + $0x190] sm:$0xff]  ;;  %4950 = vst.msk [vmem:[#allocation7 + $0x90] sm:$0xff] %vm1530_vm4, %v4909_v23 }
 0x434   :  { %v4418_v53 = vmax.f32 %v4353_v10, %v4386_v44  ;;  %v4138_v48 = vadd.f32 %v10873_v57, %v3753_v19  ;;  %v5134_v59 = vpop.permute.xlu0 %5133  ;;  %v5329_v28 = vld [vmem:[#allocation7 + $0x80] sm:$0xff] }
 0x435   :  { %5175 = vst.msk [vmem:[#allocation7 + $0x98] sm:$0xff] %vm1145_vm3, %v5134_v59  ;;  %5541 = vmatprep.mubr.f32.mxu1 %v5329_v28 }
 0x436   :  { %4450 = vst.msk [vmem:[#allocation5 + $0xc0] sm:$0xff] %vm73_vm0, %v4418_v53  ;;  %v4252_v46 = vmax.f32 %v4138_v48, 0.0  ;;  %5542 = vmatmul.mubr.f32.gmra.mrb[74].mxu1 %v5328_v22  ;;  %v4719_v42 = vpop.permute.xlu1 %4718 }
 0x437   :  { %4759 = vst.msk [vmem:[#allocation7 + $0xa8] sm:$0xff] %vm760_vm2, %v4719_v42 }
 0x438   :  { %4316 = vst.msk [vmem:[#allocation4 + $0x198] sm:$0xff] %vm73_vm0, %v4252_v46  ;;  %v5230_v45 = vpop.permute.xlu0 %5229 }
 0x439   :  { %5271 = vst.msk [vmem:[#allocation7 + $0x98] sm:$0xff] %vm1530_vm4, %v5230_v45  ;;  %v11107_v57 = vpop.f32.mrb[62].mxu1 }
 0x43a   :  { %v11110_v43 = vpop.f32.mrb[63].mxu1  ;;  %v4815_v60 = vpop.permute.xlu1 %4814  ;;  %v5331_v36 = vld [vmem:[#allocation7 + $0x90] sm:$0xff] }
 0x43b   :  { %4855 = vst.msk [vmem:[#allocation7 + $0xa8] sm:$0xff] %vm1145_vm3, %v4815_v60 }
 0x43c   :  { %v5039_v11 = vpop.permute.xlu0 %5038 }
 0x43d   :  { %5079 = vst.msk [vmem:[#allocation7 + $0xb0] sm:$0xff] %vm760_vm2, %v5039_v11  ;;  %v3757_v20 = vpop.f32.mrb[104].mxu0 }
 0x43e   :  { %v3758_v61 = vadd.f32 %v11116_v24, %v3757_v20  ;;  %v3759_v13 = vpop.f32.mrb[105].mxu0  ;;  %v4911_v37 = vpop.permute.xlu1 %4910 }
 0x43f   :  { %v4387_v47 = vld [vmem:[#allocation4 + $0x198] sm:$0xff]  ;;  %4951 = vst.msk [vmem:[#allocation7 + $0xa8] sm:$0xff] %vm1530_vm4, %v4911_v37 }
 0x440   :  { %v4419_v41 = vmax.f32 %v4354_v7, %v4387_v47  ;;  %v4143_v14 = vadd.f32 %v10922_v26, %v3758_v61  ;;  %v5136_v51 = vpop.permute.xlu0 %5135  ;;  %v5332_v5 = vld [vmem:[#allocation7 + $0x98] sm:$0xff] }
 0x441   :  { %5176 = vst.msk [vmem:[#allocation7 + $0xb0] sm:$0xff] %vm1145_vm3, %v5136_v51  ;;  %5546 = vmatprep.mubr.f32.mxu1 %v5332_v5 }
 0x442   :  { %4451 = vst.msk [vmem:[#allocation5 + $0xc8] sm:$0xff] %vm73_vm0, %v4419_v41  ;;  %v4253_v49 = vmax.f32 %v4143_v14, 0.0  ;;  %5547 = vmatmul.mubr.f32.gmra.mrb[76].mxu1 %v5331_v36  ;;  %v4721_v9 = vpop.permute.xlu1 %4720 }
 0x443   :  { %4760 = vst.msk [vmem:[#allocation7 + $0xc0] sm:$0xff] %vm760_vm2, %v4721_v9 }
 0x444   :  { %4317 = vst.msk [vmem:[#allocation4 + $0x1a0] sm:$0xff] %vm73_vm0, %v4253_v49  ;;  %v5232_v12 = vpop.permute.xlu0 %5231 }
 0x445   :  { %5272 = vst.msk [vmem:[#allocation7 + $0xb0] sm:$0xff] %vm1530_vm4, %v5232_v12 }
 0x446   :  { %v4817_v50 = vpop.permute.xlu1 %4816  ;;  %v5334_v31 = vld [vmem:[#allocation7 + $0xa8] sm:$0xff] }
 0x447   :  { %4856 = vst.msk [vmem:[#allocation7 + $0xc0] sm:$0xff] %vm1145_vm3, %v4817_v50 }
 0x448   :  { %v5041_v26 = vpop.permute.xlu0 %5040 }
 0x449   :  { %5080 = vst.msk [vmem:[#allocation7 + $0xc8] sm:$0xff] %vm760_vm2, %v5041_v26  ;;  %v3762_v63 = vpop.f32.mrb[106].mxu0  ;;  %v4482_v32 = vld [vmem:[#allocation5 + $0xc0] ss:$2 sm:$0xff]  ;;  %v4514_v21 = vld [vmem:[#allocation5 + $0xc1] ss:$2 sm:$0xff] }
 0x44a   :  { %v3763_v1 = vadd.f32 %v11116_v24, %v3762_v63  ;;  %v3764_v39 = vpop.f32.mrb[107].mxu0  ;;  %v4533_v15 = vmax.f32 %v4482_v32, %v4514_v21  ;;  %v4913_v27 = vpop.permute.xlu1 %4912 }
 0x44b   :  { %4952 = vst.msk [vmem:[#allocation7 + $0xc0] sm:$0xff] %vm1530_vm4, %v4913_v27  ;;  %v4355_v11 = vld [vmem:[#allocation4 + $0x1a0] sm:$0xff] }
 0x44c   :  { %v4148_v40 = vadd.f32 %v10918_v56, %v3763_v1  ;;  %v5138_v2 = vpop.permute.xlu0 %5137  ;;  %v5335_v34 = vld [vmem:[#allocation7 + $0xb0] sm:$0xff]  ;;  %v4556_v55 = vmul.f32 %v11061_v58, %v4533_v15 }
 0x44d   :  { %5177 = vst.msk [vmem:[#allocation7 + $0xc8] sm:$0xff] %vm1145_vm3, %v5138_v2  ;;  %5551 = vmatprep.mubr.f32.mxu1 %v5335_v34 }
 0x44e   :  { %v4254_v17 = vmax.f32 %v4148_v40, 0.0  ;;  %5552 = vmatmul.mubr.f32.gmra.mrb[78].mxu1 %v5334_v31  ;;  %v4579_v54 = vadd.f32 %v11069_v35, %v4556_v55  ;;  %v4723_v56 = vpop.permute.xlu1 %4722 }
 0x44f   :  { %4761 = vst.msk [vmem:[#allocation7 + $0xd8] sm:$0xff] %vm760_vm2, %v4723_v56 }
 0x450   :  { %4318 = vst.msk [vmem:[#allocation4 + $0x1a8] sm:$0xff] %vm73_vm0, %v4254_v17  ;;  %v5234_v18 = vpop.permute.xlu0 %5233  ;;  %4636 = vst.msk [vmem:[#allocation6 + $0xf1] sm:$0xff] %vm73_vm0, %v4579_v54 }
 0x451   :  { %5273 = vst.msk [vmem:[#allocation7 + $0xc8] sm:$0xff] %vm1530_vm4, %v5234_v18 }
 0x452   :  { %v4819_v6 = vpop.permute.xlu1 %4818  ;;  %v5337_v28 = vld [vmem:[#allocation7 + $0xc0] sm:$0xff] }
 0x453   :  { %4857 = vst.msk [vmem:[#allocation7 + $0xd8] sm:$0xff] %vm1145_vm3, %v4819_v6 }
 0x454   :  { %v5043_v38 = vpop.permute.xlu0 %5042 }
 0x455   :  { %5081 = vst.msk [vmem:[#allocation7 + $0xe0] sm:$0xff] %vm760_vm2, %v5043_v38  ;;  %v3767_v4 = vpop.f32.mrb[108].mxu0 }
 0x456   :  { %v3768_v0 = vadd.f32 %v11116_v24, %v3767_v4  ;;  %v3769_v19 = vpop.f32.mrb[109].mxu0  ;;  %v4915_v59 = vpop.permute.xlu1 %4914 }
 0x457   :  { %v5100_v33 = vld [vmem:[#allocation6 + $0xf0] sm:$0xff]  ;;  %4953 = vst.msk [vmem:[#allocation7 + $0xd8] sm:$0xff] %vm1530_vm4, %v4915_v59  ;;  %v4356_v37 = vld [vmem:[#allocation4 + $0x1a8] sm:$0xff] }
 0x458   :  { %v5196_v10 = vld [vmem:[#allocation6 + $0xf1] sm:$0xff]  ;;  %v4153_v44 = vadd.f32 %v10971_v62, %v3768_v0  ;;  %5143 = vrot.lane.b32.xlu0 %v5100_v33, %s7944_s7  ;;  %4920 = vrot.lane.b32.xlu1 %v5100_v33, %s7945_s17  ;;  %v5338_v53 = vld [vmem:[#allocation7 + $0xc8] sm:$0xff]  ;;  %4669 = vst.msk [vmem:[#allocation7 + $0x138] sm:$0xff] %vm73_vm0, %v5100_v33 }
 0x459   :  { %v5004_v48 = vld [vmem:[#allocation6 + $0xf2] sm:$0xff]  ;;  %4988 = vst.msk [vmem:[#allocation7 + $0x128] sm:$0xff] %vm73_vm0, %v5196_v10  ;;  %5556 = vmatprep.mubr.f32.mxu1 %v5338_v53 }
 0x45a   :  { %5308 = vst.msk [vmem:[#allocation7 + $0x118] sm:$0xff] %vm73_vm0, %v5004_v48  ;;  %v4255_v23 = vmax.f32 %v4153_v44, 0.0  ;;  %5557 = vmatmul.mubr.f32.gmra.mrb[80].mxu1 %v5337_v28  ;;  %v4725_v62 = vpop.permute.xlu1 %4724 }
 0x45b   :  { %4762 = vst.msk [vmem:[#allocation7 + $0xf0] sm:$0xff] %vm760_vm2, %v4725_v62 }
 0x45c   :  { %4319 = vst.msk [vmem:[#allocation4 + $0x1b0] sm:$0xff] %vm73_vm0, %v4255_v23  ;;  %5239 = vrot.lane.b32.xlu0 %v5196_v10, %s7945_s17  ;;  %4730 = vrot.lane.b32.xlu1 %v5196_v10, %s7941_s26 }
 0x45e   :  { %v4821_v46 = vpop.permute.xlu1 %4820  ;;  %v5340_v32 = vld [vmem:[#allocation7 + $0xd8] sm:$0xff] }
 0x45f   :  { %4858 = vst.msk [vmem:[#allocation7 + $0xf0] sm:$0xff] %vm1145_vm3, %v4821_v46 }
 0x460   :  { %5048 = vrot.lane.b32.xlu0 %v5004_v48, %s7941_s26  ;;  %4826 = vrot.lane.b32.xlu1 %v5004_v48, %s7944_s7 }
 0x461   :  { %v3772_v22 = vpop.f32.mrb[110].mxu0 }
 0x462   :  { %v3773_v45 = vadd.f32 %v11116_v24, %v3772_v22  ;;  %v3774_v42 = vpop.f32.mrb[111].mxu0 }
 0x463   :  { %v4388_v20 = vld [vmem:[#allocation4 + $0x1b0] sm:$0xff] }
 0x464   :  { %v4420_v60 = vmax.f32 %v4355_v11, %v4388_v20  ;;  %v4158_v61 = vadd.f32 %v10966_v30, %v3773_v45 }
 0x466   :  { %4452 = vst.msk [vmem:[#allocation5 + $0xd0] sm:$0xff] %vm73_vm0, %v4420_v60  ;;  %v4256_v13 = vmax.f32 %v4158_v61, 0.0 }
 0x468   :  { %4320 = vst.msk [vmem:[#allocation4 + $0x1b8] sm:$0xff] %vm73_vm0, %v4256_v13 }
 0x46a   :  { %v5140_v7 = vpop.permute.xlu0 %5139  ;;  %v4917_v47 = vpop.permute.xlu1 %4916 }
 0x46b   :  { %5178 = vst.msk [vmem:[#allocation7 + $0xe0] sm:$0xff] %vm1145_vm3, %v5140_v7 }
 0x46c   :  { %4954 = vst.msk [vmem:[#allocation7 + $0xf0] sm:$0xff] %vm1530_vm4, %v4917_v47 }
 0x46d   :  { %v3777_v41 = vpop.f32.mrb[112].mxu0 }
 0x46e   :  { %v3778_v14 = vadd.f32 %v11116_v24, %v3777_v41  ;;  %v3779_v51 = vpop.f32.mrb[113].mxu0  ;;  %v5236_v5 = vpop.permute.xlu0 %5235 }
 0x46f   :  { %v4389_v36 = vld [vmem:[#allocation4 + $0x1b8] sm:$0xff]  ;;  %5274 = vst.msk [vmem:[#allocation7 + $0xe0] sm:$0xff] %vm1530_vm4, %v5236_v5  ;;  %v4727_v30 = vpop.permute.xlu1 %4726 }
 0x470   :  { %v4421_v49 = vmax.f32 %v4356_v37, %v4389_v36  ;;  %4763 = vst.msk [vmem:[#allocation7 + $0x108] sm:$0xff] %vm760_vm2, %v4727_v30  ;;  %v4163_v12 = vadd.f32 %v11010_v16, %v3778_v14 }
 0x472   :  { %4453 = vst.msk [vmem:[#allocation5 + $0xd8] sm:$0xff] %vm73_vm0, %v4421_v49  ;;  %v4257_v9 = vmax.f32 %v4163_v12, 0.0  ;;  %v5045_v26 = vpop.permute.xlu0 %5044 }
 0x473   :  { %5082 = vst.msk [vmem:[#allocation7 + $0xf8] sm:$0xff] %vm760_vm2, %v5045_v26  ;;  %v4823_v63 = vpop.permute.xlu1 %4822  ;;  %v5343_v7 = vld [vmem:[#allocation7 + $0xf0] sm:$0xff] }
 0x474   :  { %4321 = vst.msk [vmem:[#allocation4 + $0x1c0] sm:$0xff] %vm73_vm0, %v4257_v9 }
 0x475   :  { %4859 = vst.msk [vmem:[#allocation7 + $0x108] sm:$0xff] %vm1145_vm3, %v4823_v63 }
 0x476   :  { %v5341_v50 = vld [vmem:[#allocation7 + $0xe0] sm:$0xff] }
 0x477   :  { %5561 = vmatprep.mubr.f32.mxu1 %v5341_v50 }
 0x478   :  { %5562 = vmatmul.mubr.f32.gmra.mrb[82].mxu1 %v5340_v32 }
 0x479   :  { %v3782_v21 = vpop.f32.mrb[114].mxu0  ;;  %v4484_v1 = vld [vmem:[#allocation5 + $0xd0] ss:$2 sm:$0xff]  ;;  %v4516_v39 = vld [vmem:[#allocation5 + $0xd1] ss:$2 sm:$0xff] }
 0x47a   :  { %v3783_v16 = vadd.f32 %v11116_v24, %v3782_v21  ;;  %v3784_v15 = vpop.f32.mrb[115].mxu0  ;;  %v4534_v40 = vmax.f32 %v4484_v1, %v4516_v39  ;;  %v5393_v21 = vld [vmem:[%s11926_s5 + $0x100] sm:$0xff]  ;;  %v5394_v1 = vld [vmem:[%s11926_s5 + $0x108] sm:$0xff] }
 0x47b   :  { %v4357_v19 = vld [vmem:[#allocation4 + $0x1c0] sm:$0xff]  ;;  %v7401_v39 = vpack.c.bf16 %v5394_v1, %v5393_v21 }
 0x47c   :  { %v4168_v2 = vadd.f32 %v11007_v3, %v3783_v16  ;;  %v4557_v34 = vmul.f32 %v11061_v58, %v4534_v40 }
 0x47d   :  { %7402 = vmatprep.subr.bf16.mxu1 %v7401_v39 }
 0x47e   :  { %v4258_v55 = vmax.f32 %v4168_v2, 0.0  ;;  %v4580_v27 = vadd.f32 %v11069_v35, %v4557_v34  ;;  %7404 = vmatpush3.bf16.msra.mxu1 %v7401_v39 }
 0x480   :  { %4322 = vst.msk [vmem:[#allocation4 + $0x1c8] sm:$0xff] %vm73_vm0, %v4258_v55  ;;  %4637 = vst.msk [vmem:[#allocation6 + $0x101] sm:$0xff] %vm73_vm0, %v4580_v27 }
 0x485   :  { %v3787_v31 = vpop.f32.mrb[116].mxu0 }
 0x486   :  { %v3788_v17 = vadd.f32 %v11116_v24, %v3787_v31  ;;  %v3789_v54 = vpop.f32.mrb[117].mxu0 }
 0x487   :  { %v5101_v18 = vld [vmem:[#allocation6 + $0x100] sm:$0xff]  ;;  %v4358_v46 = vld [vmem:[#allocation4 + $0x1c8] sm:$0xff] }
 0x488   :  { %v5197_v56 = vld [vmem:[#allocation6 + $0x101] sm:$0xff]  ;;  %v4173_v38 = vadd.f32 %v11042_v52, %v3788_v17  ;;  %5145 = vrot.lane.b32.xlu0 %v5101_v18, %s7944_s7  ;;  %4922 = vrot.lane.b32.xlu1 %v5101_v18, %s7945_s17  ;;  %4670 = vst.msk [vmem:[#allocation7 + $0x150] sm:$0xff] %vm73_vm0, %v5101_v18 }
 0x489   :  { %v5005_v3 = vld [vmem:[#allocation6 + $0x102] sm:$0xff]  ;;  %4989 = vst.msk [vmem:[#allocation7 + $0x140] sm:$0xff] %vm73_vm0, %v5197_v56 }
 0x48a   :  { %5309 = vst.msk [vmem:[#allocation7 + $0x130] sm:$0xff] %vm73_vm0, %v5005_v3  ;;  %v4259_v4 = vmax.f32 %v4173_v38, 0.0 }
 0x48c   :  { %4323 = vst.msk [vmem:[#allocation4 + $0x1d0] sm:$0xff] %vm73_vm0, %v4259_v4  ;;  %5241 = vrot.lane.b32.xlu0 %v5197_v56, %s7945_s17  ;;  %4732 = vrot.lane.b32.xlu1 %v5197_v56, %s7941_s26 }
 0x490   :  { %5050 = vrot.lane.b32.xlu0 %v5005_v3, %s7941_s26  ;;  %4828 = vrot.lane.b32.xlu1 %v5005_v3, %s7944_s7 }
 0x491   :  { %v3792_v52 = vpop.f32.mrb[118].mxu0 }
 0x492   :  { %v3793_v6 = vadd.f32 %v11116_v24, %v3792_v52  ;;  %v3794_v0 = vpop.f32.mrb[119].mxu0 }
 0x493   :  { %v4390_v33 = vld [vmem:[#allocation4 + $0x1d0] sm:$0xff] }
 0x494   :  { %v4422_v10 = vmax.f32 %v4357_v19, %v4390_v33  ;;  %v4178_v44 = vadd.f32 %v11039_v8, %v3793_v6 }
 0x496   :  { %4454 = vst.msk [vmem:[#allocation5 + $0xe0] sm:$0xff] %vm73_vm0, %v4422_v10  ;;  %v4260_v53 = vmax.f32 %v4178_v44, 0.0 }
 0x498   :  { %4324 = vst.msk [vmem:[#allocation4 + $0x1d8] sm:$0xff] %vm73_vm0, %v4260_v53 }
 0x49a   :  { %v5142_v48 = vpop.permute.xlu0 %5141  ;;  %v4919_v59 = vpop.permute.xlu1 %4918 }
 0x49b   :  { %5179 = vst.msk [vmem:[#allocation7 + $0xf8] sm:$0xff] %vm1145_vm3, %v5142_v48 }
 0x49c   :  { %4955 = vst.msk [vmem:[#allocation7 + $0x108] sm:$0xff] %vm1530_vm4, %v4919_v59 }
 0x49e   :  { %v3797_v28 = vpop.f32.mrb[120].mxu0  ;;  %v5238_v22 = vpop.permute.xlu0 %5237 }
 0x49f   :  { %v3798_v23 = vadd.f32 %v11116_v24, %v3797_v28  ;;  %v3799_v62 = vpop.f32.mrb[121].mxu0  ;;  %v4391_v45 = vld [vmem:[#allocation4 + $0x1d8] sm:$0xff]  ;;  %5275 = vst.msk [vmem:[#allocation7 + $0xf8] sm:$0xff] %vm1530_vm4, %v5238_v22  ;;  %v4729_v8 = vpop.permute.xlu1 %4728 }
 0x4a0   :  { %v4423_v42 = vmax.f32 %v4358_v46, %v4391_v45  ;;  %4764 = vst.msk [vmem:[#allocation7 + $0x120] sm:$0xff] %vm760_vm2, %v4729_v8 }
 0x4a1   :  { %v4183_v11 = vadd.f32 %v11078_v29, %v3798_v23 }
 0x4a2   :  { %4455 = vst.msk [vmem:[#allocation5 + $0xe8] sm:$0xff] %vm73_vm0, %v4423_v42  ;;  %v5047_v60 = vpop.permute.xlu0 %5046 }
 0x4a3   :  { %v4261_v20 = vmax.f32 %v4183_v11, 0.0  ;;  %5083 = vst.msk [vmem:[#allocation7 + $0x110] sm:$0xff] %vm760_vm2, %v5047_v60  ;;  %v4825_v61 = vpop.permute.xlu1 %4824  ;;  %v5346_v53 = vld [vmem:[#allocation7 + $0x108] sm:$0xff] }
 0x4a4   :  { %4860 = vst.msk [vmem:[#allocation7 + $0x120] sm:$0xff] %vm1145_vm3, %v4825_v61 }
 0x4a5   :  { %4325 = vst.msk [vmem:[#allocation4 + $0x1e0] sm:$0xff] %vm73_vm0, %v4261_v20 }
 0x4a6   :  { %v5344_v13 = vld [vmem:[#allocation7 + $0xf8] sm:$0xff] }
 0x4a7   :  { %5566 = vmatprep.mubr.f32.mxu1 %v5344_v13 }
 0x4a8   :  { %5567 = vmatmul.mubr.f32.gmra.mrb[84].mxu1 %v5343_v7 }
 0x4a9   :  { %v3802_v47 = vpop.f32.mrb[122].mxu0  ;;  %v4486_v41 = vld [vmem:[#allocation5 + $0xe0] ss:$2 sm:$0xff]  ;;  %v4518_v14 = vld [vmem:[#allocation5 + $0xe1] ss:$2 sm:$0xff] }
 0x4aa   :  { %v3803_v29 = vadd.f32 %v11116_v24, %v3802_v47  ;;  %v3804_v51 = vpop.f32.mrb[123].mxu0  ;;  %v4535_v5 = vmax.f32 %v4486_v41, %v4518_v14  ;;  %v5200_v47 = vld [vmem:[#allocation6 + $0x131] sm:$0xff] }
 0x4ac   :  { %v4188_v37 = vadd.f32 %v11075_v25, %v3803_v29  ;;  %v4558_v36 = vmul.f32 %v11061_v58, %v4535_v5  ;;  %v4359_v2 = vld [vmem:[#allocation4 + $0x1e0] sm:$0xff] }
 0x4ae   :  { %v4262_v30 = vmax.f32 %v4188_v37, 0.0  ;;  %v4581_v49 = vadd.f32 %v11069_v35, %v4558_v36  ;;  %v5288_v36 = vld [vmem:[#allocation6 + $0x92] sm:$0xff] }
 0x4af   :  { %5304 = vst.msk [vmem:[#allocation7 + $0xb8] sm:$0xff] %vm73_vm0, %v5288_v36 }
 0x4b0   :  { %4326 = vst.msk [vmem:[#allocation4 + $0x1e8] sm:$0xff] %vm73_vm0, %v4262_v30  ;;  %4638 = vst.msk [vmem:[#allocation6 + $0x111] sm:$0xff] %vm73_vm0, %v4581_v49 }
 0x4b5   :  { %v3807_v12 = vpop.f32.mrb[124].mxu0 }
 0x4b6   :  { %v3808_v9 = vadd.f32 %v11116_v24, %v3807_v12  ;;  %v3809_v26 = vpop.f32.mrb[125].mxu0 }
 0x4b7   :  { %v5102_v63 = vld [vmem:[#allocation6 + $0x110] sm:$0xff]  ;;  %v4360_v4 = vld [vmem:[#allocation4 + $0x1e8] sm:$0xff] }
 0x4b8   :  { %v5198_v50 = vld [vmem:[#allocation6 + $0x111] sm:$0xff]  ;;  %v4193_v32 = vadd.f32 %v11110_v43, %v3808_v9  ;;  %5147 = vrot.lane.b32.xlu0 %v5102_v63, %s7944_s7  ;;  %4924 = vrot.lane.b32.xlu1 %v5102_v63, %s7945_s17  ;;  %4671 = vst.msk [vmem:[#allocation7 + $0x168] sm:$0xff] %vm73_vm0, %v5102_v63 }
 0x4b9   :  { %v5006_v25 = vld [vmem:[#allocation6 + $0x112] sm:$0xff]  ;;  %4990 = vst.msk [vmem:[#allocation7 + $0x158] sm:$0xff] %vm73_vm0, %v5198_v50 }
 0x4ba   :  { %5310 = vst.msk [vmem:[#allocation7 + $0x148] sm:$0xff] %vm73_vm0, %v5006_v25  ;;  %v4263_v43 = vmax.f32 %v4193_v32, 0.0 }
 0x4bc   :  { %4327 = vst.msk [vmem:[#allocation4 + $0x1f0] sm:$0xff] %vm73_vm0, %v4263_v43  ;;  %5243 = vrot.lane.b32.xlu0 %v5198_v50, %s7945_s17  ;;  %4734 = vrot.lane.b32.xlu1 %v5198_v50, %s7941_s26 }
 0x4c0   :  { %5052 = vrot.lane.b32.xlu0 %v5006_v25, %s7941_s26  ;;  %4830 = vrot.lane.b32.xlu1 %v5006_v25, %s7944_s7  ;;  %v5296_v25 = vld [vmem:[#allocation6 + $0x132] sm:$0xff] }
 0x4c1   :  { %v3812_v16 = vpop.f32.mrb[126].mxu0  ;;  %5312 = vst.msk [vmem:[#allocation7 + $0x178] sm:$0xff] %vm73_vm0, %v5296_v25 }
 0x4c2   :  { %v3813_v15 = vadd.f32 %v11116_v24, %v3812_v16  ;;  %v3814_v40 = vpop.f32.mrb[127].mxu0  ;;  %v5395_v24 = vld [vmem:[%s11926_s5 + $0x110] sm:$0xff] }
 0x4c3   :  { %v4392_v34 = vld [vmem:[#allocation4 + $0x1f0] sm:$0xff] }
 0x4c4   :  { %v4424_v55 = vmax.f32 %v4359_v2, %v4392_v34  ;;  %v4198_v27 = vadd.f32 %v11107_v57, %v3813_v15  ;;  %v5396_v57 = vld [vmem:[%s11926_s5 + $0x118] sm:$0xff] }
 0x4c5   :  { %v7405_v3 = vpack.c.bf16 %v5396_v57, %v5395_v24 }
 0x4c6   :  { %4456 = vst.msk [vmem:[#allocation5 + $0xf0] sm:$0xff] %vm73_vm0, %v4424_v55  ;;  %v4264_v31 = vmax.f32 %v4198_v27, 0.0 }
 0x4c7   :  { %7406 = vmatprep.subr.bf16.mxu1 %v7405_v3 }
 0x4c8   :  { %4328 = vst.msk [vmem:[#allocation4 + $0x1f8] sm:$0xff] %vm73_vm0, %v4264_v31  ;;  %7408 = vmatpush3.bf16.msra.mxu1 %v7405_v3 }
 0x4ca   :  { %v5144_v17 = vpop.permute.xlu0 %5143  ;;  %v4921_v54 = vpop.permute.xlu1 %4920 }
 0x4cb   :  { %5180 = vst.msk [vmem:[#allocation7 + $0x110] sm:$0xff] %vm1145_vm3, %v5144_v17 }
 0x4cc   :  { %4956 = vst.msk [vmem:[#allocation7 + $0x120] sm:$0xff] %vm1530_vm4, %v4921_v54 }
 0x4cd   :  { %v7074_v18 = vpop.f32.mrb[64].mxu1 }
 0x4ce   :  { %v5240_v56 = vpop.permute.xlu0 %5239  ;;  %v7075_v38 = vpop.f32.mrb[65].mxu1 }
 0x4cf   :  { %v4393_v52 = vld [vmem:[#allocation4 + $0x1f8] sm:$0xff]  ;;  %5276 = vst.msk [vmem:[#allocation7 + $0x110] sm:$0xff] %vm1530_vm4, %v5240_v56  ;;  %v11239_v6 = vadd.f32 %v7075_v38, %v7074_v18  ;;  %v4731_v0 = vpop.permute.xlu1 %4730 }
 0x4d0   :  { %v4425_v19 = vmax.f32 %v4360_v4, %v4393_v52  ;;  %4765 = vst.msk [vmem:[#allocation7 + $0x138] sm:$0xff] %vm760_vm2, %v4731_v0 }
 0x4d2   :  { %4457 = vst.msk [vmem:[#allocation5 + $0xf8] sm:$0xff] %vm73_vm0, %v4425_v19  ;;  %v5049_v33 = vpop.permute.xlu0 %5048 }
 0x4d3   :  { %5084 = vst.msk [vmem:[#allocation7 + $0x128] sm:$0xff] %vm760_vm2, %v5049_v33  ;;  %v4827_v10 = vpop.permute.xlu1 %4826  ;;  %v5349_v26 = vld [vmem:[#allocation7 + $0x120] sm:$0xff] }
 0x4d4   :  { %4861 = vst.msk [vmem:[#allocation7 + $0x138] sm:$0xff] %vm1145_vm3, %v4827_v10 }
 0x4d6   :  { %v5347_v44 = vld [vmem:[#allocation7 + $0x110] sm:$0xff] }
 0x4d7   :  { %5571 = vmatprep.mubr.f32.mxu1 %v5347_v44 }
 0x4d8   :  { %5572 = vmatmul.mubr.f32.gmra.mrb[86].mxu1 %v5346_v53 }
 0x4d9   :  { %v7077_v48 = vpop.f32.mrb[66].mxu1  ;;  %v4488_v59 = vld [vmem:[#allocation5 + $0xf0] ss:$2 sm:$0xff]  ;;  %v4520_v28 = vld [vmem:[#allocation5 + $0xf1] ss:$2 sm:$0xff] }
 0x4da   :  { %v7078_v23 = vpop.f32.mrb[67].mxu1  ;;  %v4536_v62 = vmax.f32 %v4488_v59, %v4520_v28  ;;  %v5315_v28 = vld [vmem:[#allocation7 + $0x10] sm:$0xff] }
 0x4db   :  { %v11245_v22 = vadd.f32 %v7078_v23, %v7077_v48  ;;  %v5318_v23 = vld [vmem:[#allocation7 + $0x28] sm:$0xff] }
 0x4dc   :  { %v4559_v46 = vmul.f32 %v11061_v58, %v4536_v62  ;;  %v5321_v62 = vld [vmem:[#allocation7 + $0x40] sm:$0xff] }
 0x4de   :  { %v4582_v45 = vadd.f32 %v11069_v35, %v4559_v46  ;;  %v5104_v35 = vld [vmem:[#allocation6 + $0x130] sm:$0xff] }
 0x4e0   :  { %4639 = vst.msk [vmem:[#allocation6 + $0x121] sm:$0xff] %vm73_vm0, %v4582_v45  ;;  %v5324_v45 = vld [vmem:[#allocation7 + $0x58] sm:$0xff] }
 0x4e5   :  { %v7080_v8 = vpop.f32.mrb[68].mxu1 }
 0x4e6   :  { %v7081_v42 = vpop.f32.mrb[69].mxu1 }
 0x4e7   :  { %v11250_v11 = vadd.f32 %v7081_v42, %v7080_v8  ;;  %v5103_v20 = vld [vmem:[#allocation6 + $0x120] sm:$0xff]  ;;  %v5327_v42 = vld [vmem:[#allocation7 + $0x70] sm:$0xff] }
 0x4e8   :  { %v5199_v60 = vld [vmem:[#allocation6 + $0x121] sm:$0xff]  ;;  %5149 = vrot.lane.b32.xlu0 %v5103_v20, %s7944_s7  ;;  %4926 = vrot.lane.b32.xlu1 %v5103_v20, %s7945_s17 }
 0x4e9   :  { %v5007_v61 = vld [vmem:[#allocation6 + $0x122] sm:$0xff]  ;;  %4991 = vst.msk [vmem:[#allocation7 + $0x170] sm:$0xff] %vm73_vm0, %v5199_v60 }
 0x4ea   :  { %5311 = vst.msk [vmem:[#allocation7 + $0x160] sm:$0xff] %vm73_vm0, %v5007_v61 }
 0x4ec   :  { %5245 = vrot.lane.b32.xlu0 %v5199_v60, %s7945_s17  ;;  %v5330_v60 = vld [vmem:[#allocation7 + $0x88] sm:$0xff] }
 0x4f0   :  { %5054 = vrot.lane.b32.xlu0 %v5007_v61, %s7941_s26  ;;  %v5333_v61 = vld [vmem:[#allocation7 + $0xa0] sm:$0xff] }
 0x4f1   :  { %v7083_v58 = vpop.f32.mrb[70].mxu1 }
 0x4f2   :  { %v7084_v13 = vpop.f32.mrb[71].mxu1 }
 0x4f3   :  { %v11258_v7 = vadd.f32 %v7084_v13, %v7083_v58  ;;  %v5336_v58 = vld [vmem:[#allocation7 + $0xb8] sm:$0xff]  ;;  %v5342_v13 = vld [vmem:[#allocation7 + $0xe8] sm:$0xff] }
 0x4f4   :  { %5151 = vrot.lane.b32.xlu0 %v5104_v35, %s7944_s7  ;;  %v5339_v35 = vld [vmem:[#allocation7 + $0xd0] sm:$0xff] }
 0x4f8   :  { %5247 = vrot.lane.b32.xlu0 %v5200_v47, %s7945_s17  ;;  %v5345_v47 = vld [vmem:[#allocation7 + $0x100] sm:$0xff] }
 0x4fa   :  { %v5146_v41 = vpop.permute.xlu0 %5145  ;;  %v4923_v14 = vpop.permute.xlu1 %4922 }
 0x4fb   :  { %5181 = vst.msk [vmem:[#allocation7 + $0x128] sm:$0xff] %vm1145_vm3, %v5146_v41  ;;  %v5348_v41 = vld [vmem:[#allocation7 + $0x118] sm:$0xff] }
 0x4fc   :  { %4957 = vst.msk [vmem:[#allocation7 + $0x138] sm:$0xff] %vm1530_vm4, %v4923_v14  ;;  %v5351_v14 = vld [vmem:[#allocation7 + $0x130] sm:$0xff] }
 0x4fe   :  { %v7086_v29 = vpop.f32.mrb[72].mxu1  ;;  %v5242_v51 = vpop.permute.xlu0 %5241 }
 0x4ff   :  { %v4733_v5 = vpop.permute.xlu1 %4732  ;;  %5277 = vst.msk [vmem:[#allocation7 + $0x128] sm:$0xff] %vm1530_vm4, %v5242_v51  ;;  %v7087_v37 = vpop.f32.mrb[73].mxu1  ;;  %v5357_v51 = vld [vmem:[#allocation7 + $0x160] sm:$0xff] }
 0x500   :  { %4766 = vst.msk [vmem:[#allocation7 + $0x150] sm:$0xff] %vm760_vm2, %v4733_v5  ;;  %v11266_v30 = vadd.f32 %v7087_v37, %v7086_v29  ;;  %v5354_v29 = vld [vmem:[#allocation7 + $0x148] sm:$0xff]  ;;  %v5360_v5 = vld [vmem:[#allocation7 + $0x178] sm:$0xff] }
 0x502   :  { %v5051_v49 = vpop.permute.xlu0 %5050 }
 0x503   :  { %v4829_v12 = vpop.permute.xlu1 %4828  ;;  %5085 = vst.msk [vmem:[#allocation7 + $0x140] sm:$0xff] %vm760_vm2, %v5051_v49  ;;  %v5352_v57 = vld [vmem:[#allocation7 + $0x138] sm:$0xff] }
 0x504   :  { %4862 = vst.msk [vmem:[#allocation7 + $0x150] sm:$0xff] %vm1145_vm3, %v4829_v12 }
 0x506   :  { %v5350_v9 = vld [vmem:[#allocation7 + $0x128] sm:$0xff] }
 0x507   :  { %5576 = vmatprep.mubr.f32.mxu1 %v5350_v9  ;;  %v5887_v9 = vld [vmem:[#allocation15 + $0x18] sm:$0xff] }
 0x508   :  { %5577 = vmatmul.mubr.f32.gmra.mrb[88].mxu1 %v5349_v26  ;;  %v5891_v26 = vld [vmem:[#allocation15 + $0x38] sm:$0xff] }
 0x509   :  { %v7089_v63 = vpop.f32.mrb[74].mxu1  ;;  %v7537_v25 = vpack.c.bf16 %v5891_v26, %v5887_v9  ;;  %v5884_v26 = vld [vmem:[#allocation15] sm:$0xff] }
 0x50a   :  { %v7090_v50 = vpop.f32.mrb[75].mxu1 }
 0x50b   :  { %v11271_v32 = vadd.f32 %v7090_v50, %v7089_v63  ;;  %v5886_v63 = vld [vmem:[#allocation15 + $0x10] sm:$0xff]  ;;  %7538 = vmatprep.subr.bf16.mxu0 %v7537_v25 }
 0x515   :  { %v7092_v21 = vpop.f32.mrb[76].mxu1 }
 0x516   :  { %v7093_v1 = vpop.f32.mrb[77].mxu1 }
 0x517   :  { %v11274_v39 = vadd.f32 %v7093_v1, %v7092_v21  ;;  %v5890_v21 = vld [vmem:[#allocation15 + $0x30] sm:$0xff] }
 0x521   :  { %v7095_v43 = vpop.f32.mrb[78].mxu1 }
 0x522   :  { %v7096_v16 = vpop.f32.mrb[79].mxu1 }
 0x523   :  { %v11276_v15 = vadd.f32 %v7096_v16, %v7095_v43  ;;  %v7539_v43 = vpack.c.bf16 %v5890_v21, %v5886_v63  ;;  %v5895_v16 = vld [vmem:[#allocation15 + $0x58] sm:$0xff]  ;;  %v5888_v63 = vld [vmem:[#allocation15 + $0x20] sm:$0xff]  ;;  %v5893_v21 = vld [vmem:[#allocation15 + $0x48] sm:$0xff] }
 0x524   :  { %v7411_v25 = vpack.c.bf16 %v5888_v63, %v5884_v26  ;;  %v5924_v26 = vld [vmem:[#allocation15 + $0x140] sm:$0xff] }
 0x525   :  { %7540 = vmatpush1.bf16.msra.mxu0 %v7539_v43  ;;  %v5897_v43 = vld [vmem:[#allocation15 + $0x68] sm:$0xff]  ;;  %v5928_v63 = vld [vmem:[#allocation15 + $0x160] sm:$0xff] }
 0x52a   :  { %v5148_v40 = vpop.permute.xlu0 %5147  ;;  %v4925_v2 = vpop.permute.xlu1 %4924 }
 0x52b   :  { %5182 = vst.msk [vmem:[#allocation7 + $0x140] sm:$0xff] %vm1145_vm3, %v5148_v40  ;;  %v5899_v40 = vld [vmem:[#allocation15 + $0x78] sm:$0xff] }
 0x52c   :  { %4958 = vst.msk [vmem:[#allocation7 + $0x150] sm:$0xff] %vm1530_vm4, %v4925_v2  ;;  %v5894_v2 = vld [vmem:[#allocation15 + $0x50] sm:$0xff] }
 0x52d   :  { %v7098_v34 = vpop.f32.mrb[80].mxu1 }
 0x52e   :  { %v5244_v55 = vpop.permute.xlu0 %5243  ;;  %v4735_v27 = vpop.permute.xlu1 %4734 }
 0x52f   :  { %5278 = vst.msk [vmem:[#allocation7 + $0x140] sm:$0xff] %vm1530_vm4, %v5244_v55  ;;  %v7099_v31 = vpop.f32.mrb[81].mxu1  ;;  %v5898_v55 = vld [vmem:[#allocation15 + $0x70] sm:$0xff] }
 0x530   :  { %4767 = vst.msk [vmem:[#allocation7 + $0x168] sm:$0xff] %vm760_vm2, %v4735_v27  ;;  %v11282_v17 = vadd.f32 %v7099_v31, %v7098_v34  ;;  %v7541_v34 = vpack.c.bf16 %v5899_v40, %v5895_v16  ;;  %v7543_v27 = vpack.c.bf16 %v5898_v55, %v5894_v2  ;;  %v5903_v31 = vld [vmem:[#allocation15 + $0x98] sm:$0xff]  ;;  %v5892_v16 = vld [vmem:[#allocation15 + $0x40] sm:$0xff]  ;;  %v7413_v2 = vpack.c.bf16 %v5897_v43, %v5893_v21  ;;  %v5901_v55 = vld [vmem:[#allocation15 + $0x88] sm:$0xff] }
 0x531   :  { %v7431_v43 = vpack.c.bf16 %v5928_v63, %v5924_v26 }
 0x532   :  { %v5053_v54 = vpop.permute.xlu0 %5052  ;;  %v4831_v18 = vpop.permute.xlu1 %4830  ;;  %7542 = vmatprep.subr.bf16.mxu0 %v7541_v34  ;;  %v5896_v34 = vld [vmem:[#allocation15 + $0x60] sm:$0xff] }
 0x533   :  { %5086 = vst.msk [vmem:[#allocation7 + $0x158] sm:$0xff] %vm760_vm2, %v5053_v54  ;;  %v5355_v44 = vld [vmem:[#allocation7 + $0x150] sm:$0xff]  ;;  %7544 = vmatpush1.bf16.msra.mxu0 %v7543_v27  ;;  %v5907_v54 = vld [vmem:[#allocation15 + $0xb8] sm:$0xff]  ;;  %v5905_v27 = vld [vmem:[#allocation15 + $0xa8] sm:$0xff] }
 0x534   :  { %4863 = vst.msk [vmem:[#allocation7 + $0x168] sm:$0xff] %vm1145_vm3, %v4831_v18  ;;  %v5902_v18 = vld [vmem:[#allocation15 + $0x90] sm:$0xff] }
 0x536   :  { %v5353_v24 = vld [vmem:[#allocation7 + $0x140] sm:$0xff] }
 0x537   :  { %5581 = vmatprep.mubr.f32.mxu1 %v5353_v24  ;;  %v7545_v24 = vpack.c.bf16 %v5907_v54, %v5903_v31  ;;  %v5951_v31 = vld [vmem:[#allocation15 + $0x218] sm:$0xff] }
 0x538   :  { %5582 = vmatmul.mubr.f32.gmra.mrb[90].mxu1 %v5352_v57  ;;  %v5906_v57 = vld [vmem:[#allocation15 + $0xb0] sm:$0xff]  ;;  %v5955_v54 = vld [vmem:[#allocation15 + $0x238] sm:$0xff] }
 0x539   :  { %7546 = vmatprep.subr.bf16.mxu0 %v7545_v24  ;;  %v7417_v24 = vpack.c.bf16 %v5905_v27, %v5901_v55  ;;  %v5945_v55 = vld [vmem:[#allocation15 + $0x1e8] sm:$0xff] }
 0x54b   :  { %v7101_v56 = vpop.f32.mrb[82].mxu1 }
 0x54c   :  { %v7102_v38 = vpop.f32.mrb[83].mxu1 }
 0x54d   :  { %v11286_v3 = vadd.f32 %v7102_v38, %v7101_v56  ;;  %v5911_v56 = vld [vmem:[#allocation15 + $0xd8] sm:$0xff] }
 0x54e   :  { %v5915_v38 = vld [vmem:[#allocation15 + $0xf8] sm:$0xff] }
 0x55a   :  { %v5150_v4 = vpop.permute.xlu0 %5149  ;;  %v4927_v52 = vpop.permute.xlu1 %4926 }
 0x55b   :  { %5183 = vst.msk [vmem:[#allocation7 + $0x158] sm:$0xff] %vm1145_vm3, %v5150_v4  ;;  %v7547_v4 = vpack.c.bf16 %v5906_v57, %v5902_v18  ;;  %v7415_v18 = vpack.c.bf16 %v5896_v34, %v5892_v16  ;;  %v5900_v57 = vld [vmem:[#allocation15 + $0x80] sm:$0xff]  ;;  %v5941_v34 = vld [vmem:[#allocation15 + $0x1c8] sm:$0xff] }
 0x55c   :  { %4959 = vst.msk [vmem:[#allocation7 + $0x168] sm:$0xff] %vm1530_vm4, %v4927_v52  ;;  %v7549_v52 = vpack.c.bf16 %v5915_v38, %v5911_v56  ;;  %v5904_v56 = vld [vmem:[#allocation15 + $0xa0] sm:$0xff] }
 0x55d   :  { %7548 = vmatpush1.bf16.msra.mxu0 %v7547_v4  ;;  %v5909_v4 = vld [vmem:[#allocation15 + $0xc8] sm:$0xff] }
 0x55e   :  { %v5246_v0 = vpop.permute.xlu0 %5245  ;;  %7550 = vmatprep.subr.bf16.mxu0 %v7549_v52  ;;  %v5913_v52 = vld [vmem:[#allocation15 + $0xe8] sm:$0xff] }
 0x55f   :  { %5279 = vst.msk [vmem:[#allocation7 + $0x158] sm:$0xff] %vm1530_vm4, %v5246_v0  ;;  %v5910_v0 = vld [vmem:[#allocation15 + $0xd0] sm:$0xff] }
 0x562   :  { %v5055_v19 = vpop.permute.xlu0 %5054 }
 0x563   :  { %5087 = vst.msk [vmem:[#allocation7 + $0x170] sm:$0xff] %vm760_vm2, %v5055_v19  ;;  %v5358_v59 = vld [vmem:[#allocation7 + $0x168] sm:$0xff]  ;;  %v5914_v19 = vld [vmem:[#allocation15 + $0xf0] sm:$0xff] }
 0x566   :  { %v5152_v33 = vpop.permute.xlu0 %5151  ;;  %v5356_v10 = vld [vmem:[#allocation7 + $0x158] sm:$0xff] }
 0x567   :  { %5184 = vst.msk [vmem:[#allocation7 + $0x170] sm:$0xff] %vm1145_vm3, %v5152_v33  ;;  %5586 = vmatprep.mubr.f32.mxu1 %v5356_v10  ;;  %v7551_v33 = vpack.c.bf16 %v5914_v19, %v5910_v0  ;;  %v5919_v10 = vld [vmem:[#allocation15 + $0x118] sm:$0xff]  ;;  %v7569_v0 = vpack.c.bf16 %v5955_v54, %v5951_v31  ;;  %v5950_v19 = vld [vmem:[#allocation15 + $0x210] sm:$0xff]  ;;  %v7437_v31 = vpack.c.bf16 %v5945_v55, %v5941_v34  ;;  %v5940_v54 = vld [vmem:[#allocation15 + $0x1c0] sm:$0xff] }
 0x568   :  { %5587 = vmatmul.mubr.f32.gmra.mrb[92].mxu1 %v5355_v44  ;;  %v5923_v44 = vld [vmem:[#allocation15 + $0x138] sm:$0xff] }
 0x569   :  { %7552 = vmatpush1.bf16.msra.mxu0 %v7551_v33  ;;  %v5954_v33 = vld [vmem:[#allocation15 + $0x230] sm:$0xff] }
 0x56a   :  { %v5248_v53 = vpop.permute.xlu0 %5247 }
 0x56b   :  { %5280 = vst.msk [vmem:[#allocation7 + $0x170] sm:$0xff] %vm1530_vm4, %v5248_v53  ;;  %v5918_v53 = vld [vmem:[#allocation15 + $0x110] sm:$0xff] }
 0x572   :  { %v5359_v48 = vld [vmem:[#allocation7 + $0x170] sm:$0xff] }
 0x573   :  { %5591 = vmatprep.mubr.f32.mxu1 %v5359_v48  ;;  %v7553_v48 = vpack.c.bf16 %v5923_v44, %v5919_v10  ;;  %v7419_v10 = vpack.c.bf16 %v5904_v56, %v5900_v57  ;;  %v5959_v44 = vld [vmem:[#allocation15 + $0x258] sm:$0xff]  ;;  %v5953_v57 = vld [vmem:[#allocation15 + $0x228] sm:$0xff] }
 0x574   :  { %5592 = vmatmul.mubr.f32.gmra.mrb[94].mxu1 %v5358_v59  ;;  %v5922_v59 = vld [vmem:[#allocation15 + $0x130] sm:$0xff] }
 0x575   :  { %7289 = vmatprep.mubr.msk.f32.mxu1 %vm73_vm0, %v5315_v28  ;;  %v5927_v28 = vld [vmem:[#allocation15 + $0x158] sm:$0xff]  ;;  %7554 = vmatprep.subr.bf16.mxu0 %v7553_v48  ;;  %v7421_v48 = vpack.c.bf16 %v5913_v52, %v5909_v4  ;;  %v5948_v4 = vld [vmem:[#allocation15 + $0x200] sm:$0xff] }
 0x576   :  { %v5952_v52 = vld [vmem:[#allocation15 + $0x220] sm:$0xff] }
 0x578   :  { %7290 = vmatmul.mubr.msk.f32.vlgmr.msra.gmra.mrb[96].mxu1 %vm73_vm0, %v5318_v23  ;;  %v5931_v23 = vld [vmem:[#allocation15 + $0x178] sm:$0xff] }
 0x579   :  { %7292 = vmatprep.mubr.msk.f32.mxu1 %vm73_vm0, %v5321_v62  ;;  %v7555_v62 = vpack.c.bf16 %v5922_v59, %v5918_v53  ;;  %v5963_v53 = vld [vmem:[#allocation15 + $0x278] sm:$0xff]  ;;  %v5908_v59 = vld [vmem:[#allocation15 + $0xc0] sm:$0xff] }
 0x57b   :  { %v7104_v46 = vpop.f32.mrb[84].mxu1  ;;  %7556 = vmatpush1.bf16.msra.mxu0 %v7555_v62  ;;  %v5917_v62 = vld [vmem:[#allocation15 + $0x108] sm:$0xff] }
 0x57c   :  { %v7105_v8 = vpop.f32.mrb[85].mxu1  ;;  %7293 = vmatmul.mubr.msk.f32.gmra.mrb[98].mxu1 %vm73_vm0, %v5324_v45  ;;  %v5926_v45 = vld [vmem:[#allocation15 + $0x150] sm:$0xff] }
 0x57d   :  { %v11298_v20 = vadd.f32 %v7105_v8, %v7104_v46  ;;  %7295 = vmatprep.mubr.msk.f32.mxu1 %vm73_vm0, %v5327_v42  ;;  %v7557_v46 = vpack.c.bf16 %v5931_v23, %v5927_v28  ;;  %v5930_v8 = vld [vmem:[#allocation15 + $0x170] sm:$0xff]  ;;  %v5935_v42 = vld [vmem:[#allocation15 + $0x198] sm:$0xff]  ;;  %v5912_v28 = vld [vmem:[#allocation15 + $0xe0] sm:$0xff]  ;;  %v7571_v23 = vpack.c.bf16 %v5954_v33, %v5950_v19  ;;  %v7443_v33 = vpack.c.bf16 %v5952_v52, %v5948_v4 }
 0x57e   :  { %v5961_v19 = vld [vmem:[#allocation15 + $0x268] sm:$0xff] }
 0x57f   :  { %7558 = vmatprep.subr.bf16.mxu0 %v7557_v46  ;;  %v5921_v46 = vld [vmem:[#allocation15 + $0x128] sm:$0xff] }
 0x580   :  { %7296 = vmatmul.mubr.msk.f32.gmra.mrb[100].mxu1 %vm73_vm0, %v5330_v60 }
 0x581   :  { %7298 = vmatprep.mubr.msk.f32.mxu1 %vm73_vm0, %v5333_v61  ;;  %v5939_v61 = vld [vmem:[#allocation15 + $0x1b8] sm:$0xff] }
 0x584   :  { %7299 = vmatmul.mubr.msk.f32.gmra.mrb[102].mxu1 %vm73_vm0, %v5336_v58 }
 0x585   :  { %7301 = vmatprep.mubr.msk.f32.mxu1 %vm73_vm0, %v5339_v35  ;;  %v7559_v35 = vpack.c.bf16 %v5930_v8, %v5926_v45  ;;  %v7573_v45 = vpack.c.bf16 %v5963_v53, %v5959_v44  ;;  %v5958_v8 = vld [vmem:[#allocation15 + $0x250] sm:$0xff]  ;;  %v5956_v44 = vld [vmem:[#allocation15 + $0x240] sm:$0xff] }
 0x586   :  { %v5960_v53 = vld [vmem:[#allocation15 + $0x260] sm:$0xff] }
 0x587   :  { %7560 = vmatpush1.bf16.msra.mxu0 %v7559_v35  ;;  %v5916_v35 = vld [vmem:[#allocation15 + $0x100] sm:$0xff] }
 0x588   :  { %7302 = vmatmul.mubr.msk.f32.gmra.mrb[104].mxu1 %vm73_vm0, %v5342_v13 }
 0x589   :  { %7304 = vmatprep.mubr.msk.f32.mxu1 %vm73_vm0, %v5345_v47  ;;  %v7561_v47 = vpack.c.bf16 %v5939_v61, %v5935_v42  ;;  %v5962_v42 = vld [vmem:[#allocation15 + $0x270] sm:$0xff]  ;;  %v5967_v61 = vld [vmem:[#allocation15 + $0x298] sm:$0xff] }
 0x58b   :  { %7562 = vmatprep.subr.bf16.mxu0 %v7561_v47  ;;  %v5920_v47 = vld [vmem:[#allocation15 + $0x120] sm:$0xff] }
 0x58c   :  { %7305 = vmatmul.mubr.msk.f32.gmra.mrb[106].mxu1 %vm73_vm0, %v5348_v41  ;;  %v5934_v41 = vld [vmem:[#allocation15 + $0x190] sm:$0xff] }
 0x58d   :  { %7307 = vmatprep.mubr.msk.f32.mxu1 %vm73_vm0, %v5351_v14  ;;  %v5938_v14 = vld [vmem:[#allocation15 + $0x1b0] sm:$0xff] }
 0x590   :  { %7308 = vmatmul.mubr.msk.f32.gmra.mrb[108].mxu1 %vm73_vm0, %v5354_v29  ;;  %v5943_v29 = vld [vmem:[#allocation15 + $0x1d8] sm:$0xff] }
 0x591   :  { %7310 = vmatprep.mubr.msk.f32.mxu1 %vm73_vm0, %v5357_v51  ;;  %v5947_v51 = vld [vmem:[#allocation15 + $0x1f8] sm:$0xff] }
 0x592   :  { %v7565_v40 = vpack.c.bf16 %v5947_v51, %v5943_v29  ;;  %v5925_v29 = vld [vmem:[#allocation15 + $0x148] sm:$0xff] }
 0x593   :  { %v5929_v51 = vld [vmem:[#allocation15 + $0x168] sm:$0xff] }
 0x594   :  { %7311 = vmatmul.mubr.msk.f32.gmra.mrb[110].mxu1 %vm73_vm0, %v5360_v5  ;;  %v5885_v5 = vld [vmem:[#allocation15 + $0x8] sm:$0xff] }
 0x5ab   :  { %v7107_v37 = vpop.f32.mrb[86].mxu1 }
 0x5ac   :  { %v7108_v36 = vpop.f32.mrb[87].mxu1 }
 0x5ad   :  { %v11312_v49 = vadd.f32 %v7108_v36, %v7107_v37  ;;  %v5889_v37 = vld [vmem:[#allocation15 + $0x28] sm:$0xff]  ;;  %v5942_v36 = vld [vmem:[#allocation15 + $0x1d0] sm:$0xff] }
 0x5ae   :  { %v7409_v9 = vpack.c.bf16 %v5889_v37, %v5885_v5  ;;  %v5966_v37 = vld [vmem:[#allocation15 + $0x290] sm:$0xff] }
 0x5b0   :  { %7410 = vmatprep.subr.bf16.mxu1 %v7409_v9  ;;  %v7429_v9 = vpack.c.bf16 %v5929_v51, %v5925_v29 }
 0x5b1   :  { %7412 = vmatpush1.bf16.msra.mxu1 %v7411_v25  ;;  %v5937_v25 = vld [vmem:[#allocation15 + $0x1a8] sm:$0xff] }
 0x5b2   :  { %7414 = vmatprep.subr.bf16.mxu1 %v7413_v2  ;;  %v5936_v2 = vld [vmem:[#allocation15 + $0x1a0] sm:$0xff] }
 0x5b5   :  { %7416 = vmatpush1.bf16.msra.mxu1 %v7415_v18  ;;  %v5944_v18 = vld [vmem:[#allocation15 + $0x1e0] sm:$0xff] }
 0x5b6   :  { %7418 = vmatprep.subr.bf16.mxu1 %v7417_v24  ;;  %v5949_v24 = vld [vmem:[#allocation15 + $0x208] sm:$0xff]  ;;  %v7439_v56 = vpack.c.bf16 %v5944_v18, %v5940_v54 }
 0x5b9   :  { %7420 = vmatpush1.bf16.msra.mxu1 %v7419_v10 }
 0x5ba   :  { %7422 = vmatprep.subr.bf16.mxu1 %v7421_v48  ;;  %v7447_v48 = vpack.c.bf16 %v5960_v53, %v5956_v44 }
 0x5db   :  { %v7110_v12 = vpop.f32.mrb[88].mxu1 }
 0x5dc   :  { %v7111_v50 = vpop.f32.mrb[89].mxu1 }
 0x5dd   :  { %v11314_v1 = vadd.f32 %v7111_v50, %v7110_v12  ;;  %v5946_v12 = vld [vmem:[#allocation15 + $0x1f0] sm:$0xff]  ;;  %v7563_v50 = vpack.c.bf16 %v5938_v14, %v5934_v41  ;;  %v5971_v41 = vld [vmem:[#allocation15 + $0x2b8] sm:$0xff]  ;;  %v7575_v14 = vpack.c.bf16 %v5962_v42, %v5958_v8 }
 0x5de   :  { %v7567_v38 = vpack.c.bf16 %v5946_v12, %v5942_v36  ;;  %v7577_v5 = vpack.c.bf16 %v5971_v41, %v5967_v61  ;;  %v5970_v36 = vld [vmem:[#allocation15 + $0x2b0] sm:$0xff]  ;;  %v7427_v12 = vpack.c.bf16 %v5920_v47, %v5916_v35 }
 0x5df   :  { %7564 = vmatpush1.bf16.msra.mxu0 %v7563_v50  ;;  %v5933_v50 = vld [vmem:[#allocation15 + $0x188] sm:$0xff]  ;;  %v7579_v21 = vpack.c.bf16 %v5970_v36, %v5966_v37 }
 0x5e0   :  { %7566 = vmatprep.subr.bf16.mxu0 %v7565_v40  ;;  %v7433_v16 = vpack.c.bf16 %v5937_v25, %v5933_v50  ;;  %v5932_v40 = vld [vmem:[#allocation15 + $0x180] sm:$0xff] }
 0x5e1   :  { %v7435_v27 = vpack.c.bf16 %v5936_v2, %v5932_v40 }
 0x5e3   :  { %7568 = vmatpush1.bf16.msra.mxu0 %v7567_v38  ;;  %v7441_v38 = vpack.c.bf16 %v5953_v57, %v5949_v24 }
 0x5e4   :  { %7570 = vmatprep.subr.bf16.mxu0 %v7569_v0  ;;  %v5957_v0 = vld [vmem:[#allocation15 + $0x248] sm:$0xff] }
 0x5e5   :  { %v7445_v10 = vpack.c.bf16 %v5961_v19, %v5957_v0 }
 0x5e7   :  { %7572 = vmatpush1.bf16.msra.mxu0 %v7571_v23 }
 0x5e8   :  { %7574 = vmatprep.subr.bf16.mxu0 %v7573_v45  ;;  %v11323_v45 = vld [vmem:[%s11927_s6] ss:$0 sm:$0xff] }
 0x5e9   :  { %v5524_v42 = vadd.f32 %v11245_v22, %v11323_v45  ;;  %v5519_v61 = vadd.f32 %v11239_v6, %v11323_v45  ;;  %v5564_v54 = vadd.f32 %v11286_v3, %v11323_v45  ;;  %v5574_v3 = vadd.f32 %v11312_v49, %v11323_v45 }
 0x5eb   :  { %7576 = vmatpush1.bf16.msra.mxu0 %v7575_v14  ;;  %v5534_v14 = vadd.f32 %v11258_v7, %v11323_v45  ;;  %v5539_v7 = vadd.f32 %v11266_v30, %v11323_v45 }
 0x5ec   :  { %7578 = vmatprep.subr.bf16.mxu0 %v7577_v5  ;;  %v5529_v5 = vadd.f32 %v11250_v11, %v11323_v45 }
 0x5ef   :  { %7580 = vmatpush1.bf16.msra.mxu0 %v7579_v21  ;;  %v5554_v21 = vadd.f32 %v11276_v15, %v11323_v45 }
 0x60b   :  { %v7113_v60 = vpop.f32.mrb[90].mxu1 }
 0x60c   :  { %v7114_v58 = vpop.f32.mrb[91].mxu1 }
 0x60d   :  { %v11316_v13 = vadd.f32 %v7114_v58, %v7113_v60  ;;  %v7423_v60 = vpack.c.bf16 %v5912_v28, %v5908_v59  ;;  %v7425_v58 = vpack.c.bf16 %v5921_v46, %v5917_v62 }
 0x60f   :  { %7424 = vmatpush1.bf16.msra.mxu1 %v7423_v60  ;;  %v5584_v49 = vadd.f32 %v11316_v13, %v11323_v45 }
 0x610   :  { %7426 = vmatprep.subr.bf16.mxu1 %v7425_v58 }
 0x613   :  { %7428 = vmatpush1.bf16.msra.mxu1 %v7427_v12  ;;  %v5544_v12 = vadd.f32 %v11271_v32, %v11323_v45  ;;  %v5549_v32 = vadd.f32 %v11274_v39, %v11323_v45  ;;  %v5559_v39 = vadd.f32 %v11282_v17, %v11323_v45  ;;  %v5569_v17 = vadd.f32 %v11298_v20, %v11323_v45 }
 0x614   :  { %7430 = vmatprep.subr.bf16.mxu1 %v7429_v9  ;;  %v5579_v20 = vadd.f32 %v11314_v1, %v11323_v45 }
 0x617   :  { %7432 = vmatpush1.bf16.msra.mxu1 %v7431_v43 }
 0x618   :  { %7434 = vmatprep.subr.bf16.mxu1 %v7433_v16 }
 0x61b   :  { %7436 = vmatpush1.bf16.msra.mxu1 %v7435_v27 }
 0x61c   :  { %7438 = vmatprep.subr.bf16.mxu1 %v7437_v31 }
 0x61f   :  { %7440 = vmatpush1.bf16.msra.mxu1 %v7439_v56 }
 0x620   :  { %7442 = vmatprep.subr.bf16.mxu1 %v7441_v38 }
 0x623   :  { %7444 = vmatpush1.bf16.msra.mxu1 %v7443_v33 }
 0x624   :  { %7446 = vmatprep.subr.bf16.mxu1 %v7445_v10 }
 0x627   :  { %7448 = vmatpush1.bf16.msra.mxu1 %v7447_v48 }
 0x63b   :  { %v7116_v59 = vpop.f32.mrb[92].mxu1 }
 0x63c   :  { %v7117_v28 = vpop.f32.mrb[93].mxu1 }
 0x63d   :  { %v11318_v23 = vadd.f32 %v7117_v28, %v7116_v59 }
 0x63f   :  { %v5589_v1 = vadd.f32 %v11318_v23, %v11323_v45 }
 0x647   :  { %v7119_v62 = vpop.f32.mrb[94].mxu1 }
 0x648   :  { %v7120_v46 = vpop.f32.mrb[95].mxu1 }
 0x649   :  { %v11325_v8 = vadd.f32 %v7120_v46, %v7119_v62 }
 0x64b   :  { %v7291_v60 = vpop.f32.mrb[96].mxu1  ;;  %v5594_v13 = vadd.f32 %v11325_v8, %v11323_v45 }
 0x64c   :  { %v5669_v58 = vadd.f32 %v7291_v60, %v5524_v42  ;;  %v5663_v35 = vpop.f32.mrb[97].mxu1 }
 0x64d   :  { %v5664_v47 = vadd.f32 %v5663_v35, %v5519_v61 }
 0x64e   :  { %v5743_v41 = vmax.f32 %v5669_v58, 0.0 }
 0x64f   :  { %v5742_v29 = vmax.f32 %v5664_v47, 0.0  ;;  %v7294_v51 = vpop.f32.mrb[98].mxu1 }
 0x650   :  { %5759 = vst.msk [vmem:[#allocation8 + $0x8] sm:$0xff] %vm73_vm0, %v5743_v41  ;;  %v5679_v37 = vadd.f32 %v7294_v51, %v5534_v14  ;;  %v5673_v22 = vpop.f32.mrb[99].mxu1 }
 0x651   :  { %5758 = vst.msk [vmem:[#allocation8] sm:$0xff] %vm73_vm0, %v5742_v29  ;;  %v5674_v36 = vadd.f32 %v5673_v22, %v5529_v5 }
 0x652   :  { %v5745_v6 = vmax.f32 %v5679_v37, 0.0 }
 0x653   :  { %v5744_v9 = vmax.f32 %v5674_v36, 0.0  ;;  %v7297_v26 = vpop.f32.mrb[100].mxu1 }
 0x654   :  { %5761 = vst.msk [vmem:[#allocation8 + $0x18] sm:$0xff] %vm73_vm0, %v5745_v6  ;;  %v5689_v63 = vadd.f32 %v7297_v26, %v5544_v12  ;;  %v5683_v11 = vpop.f32.mrb[101].mxu1 }
 0x655   :  { %5760 = vst.msk [vmem:[#allocation8 + $0x10] sm:$0xff] %vm73_vm0, %v5744_v9  ;;  %v5684_v50 = vadd.f32 %v5683_v11, %v5539_v7 }
 0x656   :  { %v5747_v25 = vmax.f32 %v5689_v63, 0.0 }
 0x657   :  { %v5746_v43 = vmax.f32 %v5684_v50, 0.0  ;;  %v7300_v16 = vpop.f32.mrb[102].mxu1 }
 0x658   :  { %v5774_v40 = vld [vmem:[#allocation8] ss:$2 sm:$0xff]  ;;  %v5790_v2 = vld [vmem:[#allocation8 + $0x1] ss:$2 sm:$0xff]  ;;  %5763 = vst.msk [vmem:[#allocation8 + $0x28] sm:$0xff] %vm73_vm0, %v5747_v25  ;;  %v5699_v30 = vadd.f32 %v7300_v16, %v5554_v21  ;;  %v5693_v34 = vpop.f32.mrb[103].mxu1 }
 0x659   :  { %v5805_v55 = vmax.f32 %v5774_v40, %v5790_v2  ;;  %5762 = vst.msk [vmem:[#allocation8 + $0x20] sm:$0xff] %vm73_vm0, %v5746_v43  ;;  %v5694_v27 = vadd.f32 %v5693_v34, %v5549_v32  ;;  %v5965_v43 = vld [vmem:[#allocation15 + $0x288] sm:$0xff]  ;;  %v5964_v40 = vld [vmem:[#allocation15 + $0x280] sm:$0xff] }
 0x65a   :  { %v5749_v31 = vmax.f32 %v5699_v30, 0.0  ;;  %v5969_v16 = vld [vmem:[#allocation15 + $0x2a8] sm:$0xff]  ;;  %v5968_v2 = vld [vmem:[#allocation15 + $0x2a0] sm:$0xff] }
 0x65b   :  { %5813 = vst.msk [vmem:[#allocation9] sm:$0xff] %vm73_vm0, %v5805_v55  ;;  %v5748_v15 = vmax.f32 %v5694_v27, 0.0  ;;  %v7303_v18 = vpop.f32.mrb[104].mxu1  ;;  %v7449_v32 = vpack.c.bf16 %v5969_v16, %v5965_v43  ;;  %v7451_v30 = vpack.c.bf16 %v5968_v2, %v5964_v40  ;;  %v5973_v34 = vld [vmem:[#allocation15 + $0x2c8] sm:$0xff]  ;;  %v5975_v27 = vld [vmem:[#allocation15 + $0x2d8] sm:$0xff]  ;;  %v5988_v43 = vld [vmem:[#allocation15 + $0x340] sm:$0xff] }
 0x65c   :  { %v5776_v24 = vld [vmem:[#allocation8 + $0x10] ss:$2 sm:$0xff]  ;;  %v5792_v57 = vld [vmem:[#allocation8 + $0x11] ss:$2 sm:$0xff]  ;;  %5765 = vst.msk [vmem:[#allocation8 + $0x38] sm:$0xff] %vm73_vm0, %v5749_v31  ;;  %v5709_v56 = vadd.f32 %v7303_v18, %v5564_v54  ;;  %v5703_v38 = vpop.f32.mrb[105].mxu1 }
 0x65d   :  { %v5806_v4 = vmax.f32 %v5776_v24, %v5792_v57  ;;  %5764 = vst.msk [vmem:[#allocation8 + $0x30] sm:$0xff] %vm73_vm0, %v5748_v15  ;;  %v5704_v52 = vadd.f32 %v5703_v38, %v5559_v39  ;;  %7450 = vmatprep.subr.bf16.mxu1 %v7449_v32  ;;  %v5977_v55 = vld [vmem:[#allocation15 + $0x2e8] sm:$0xff]  ;;  %v5979_v18 = vld [vmem:[#allocation15 + $0x2f8] sm:$0xff]  ;;  %v5972_v39 = vld [vmem:[#allocation15 + $0x2c0] sm:$0xff] }
 0x65e   :  { %v5751_v0 = vmax.f32 %v5709_v56, 0.0  ;;  %7452 = vmatpush1.bf16.msra.mxu1 %v7451_v30  ;;  %v7453_v15 = vpack.c.bf16 %v5977_v55, %v5973_v34  ;;  %v5976_v24 = vld [vmem:[#allocation15 + $0x2e0] sm:$0xff]  ;;  %v7581_v38 = vpack.c.bf16 %v5979_v18, %v5975_v27  ;;  %v5990_v32 = vld [vmem:[#allocation15 + $0x350] sm:$0xff]  ;;  %v5997_v30 = vld [vmem:[#allocation15 + $0x388] sm:$0xff] }
 0x65f   :  { %5814 = vst.msk [vmem:[#allocation9 + $0x8] sm:$0xff] %vm73_vm0, %v5806_v4  ;;  %v5750_v19 = vmax.f32 %v5704_v52, 0.0  ;;  %v7306_v33 = vpop.f32.mrb[106].mxu1  ;;  %v7455_v4 = vpack.c.bf16 %v5976_v24, %v5972_v39  ;;  %v5974_v52 = vld [vmem:[#allocation15 + $0x2d0] sm:$0xff]  ;;  %v5992_v16 = vld [vmem:[#allocation15 + $0x360] sm:$0xff]  ;;  %v6001_v34 = vld [vmem:[#allocation15 + $0x3a8] sm:$0xff] }
 0x660   :  { %v5778_v10 = vld [vmem:[#allocation8 + $0x20] ss:$2 sm:$0xff]  ;;  %v5794_v44 = vld [vmem:[#allocation8 + $0x21] ss:$2 sm:$0xff]  ;;  %5767 = vst.msk [vmem:[#allocation8 + $0x48] sm:$0xff] %vm73_vm0, %v5751_v0  ;;  %v5719_v53 = vadd.f32 %v7306_v33, %v5574_v3  ;;  %v5713_v48 = vpop.f32.mrb[107].mxu1  ;;  %7454 = vmatprep.subr.bf16.mxu1 %v7453_v15  ;;  %7582 = vmatprep.subr.bf16.mxu0 %v7581_v38  ;;  %v7463_v40 = vpack.c.bf16 %v5992_v16, %v5988_v43 }
 0x661   :  { %v5807_v59 = vmax.f32 %v5778_v10, %v5794_v44  ;;  %5766 = vst.msk [vmem:[#allocation8 + $0x40] sm:$0xff] %vm73_vm0, %v5750_v19  ;;  %v5714_v28 = vadd.f32 %v5713_v48, %v5569_v17  ;;  %v5978_v0 = vld [vmem:[#allocation15 + $0x2f0] sm:$0xff]  ;;  %v7465_v27 = vpack.c.bf16 %v6001_v34, %v5997_v30  ;;  %v5996_v15 = vld [vmem:[#allocation15 + $0x380] sm:$0xff]  ;;  %v6005_v38 = vld [vmem:[#allocation15 + $0x3c8] sm:$0xff] }
 0x662   :  { %v5753_v62 = vmax.f32 %v5719_v53, 0.0  ;;  %v7583_v17 = vpack.c.bf16 %v5978_v0, %v5974_v52  ;;  %7456 = vmatpush1.bf16.msra.mxu1 %v7455_v4  ;;  %v5994_v2 = vld [vmem:[#allocation15 + $0x370] sm:$0xff]  ;;  %v6000_v39 = vld [vmem:[#allocation15 + $0x3a0] sm:$0xff]  ;;  %v6009_v4 = vld [vmem:[#allocation15 + $0x3e8] sm:$0xff] }
 0x663   :  { %5815 = vst.msk [vmem:[#allocation9 + $0x10] sm:$0xff] %vm73_vm0, %v5807_v59  ;;  %v5752_v46 = vmax.f32 %v5714_v28, 0.0  ;;  %v7309_v42 = vpop.f32.mrb[108].mxu1  ;;  %v7591_v55 = vpack.c.bf16 %v5994_v2, %v5990_v32  ;;  %v5998_v24 = vld [vmem:[#allocation15 + $0x390] sm:$0xff]  ;;  %v6007_v52 = vld [vmem:[#allocation15 + $0x3d8] sm:$0xff]  ;;  %v6020_v43 = vld [vmem:[#allocation15 + $0x440] sm:$0xff] }
 0x664   :  { %v5780_v60 = vld [vmem:[#allocation8 + $0x30] ss:$2 sm:$0xff]  ;;  %v5796_v61 = vld [vmem:[#allocation8 + $0x31] ss:$2 sm:$0xff]  ;;  %5769 = vst.msk [vmem:[#allocation8 + $0x58] sm:$0xff] %vm73_vm0, %v5753_v62  ;;  %v5729_v58 = vadd.f32 %v7309_v42, %v5584_v49  ;;  %v5723_v35 = vpop.f32.mrb[109].mxu1  ;;  %7584 = vmatpush1.bf16.msra.mxu0 %v7583_v17 }
 0x665   :  { %v5808_v47 = vmax.f32 %v5780_v60, %v5796_v61  ;;  %5768 = vst.msk [vmem:[#allocation8 + $0x50] sm:$0xff] %vm73_vm0, %v5752_v46  ;;  %v5724_v41 = vadd.f32 %v5723_v35, %v5579_v20  ;;  %v6008_v17 = vld [vmem:[#allocation15 + $0x3e0] sm:$0xff]  ;;  %v6022_v32 = vld [vmem:[#allocation15 + $0x450] sm:$0xff]  ;;  %v6029_v2 = vld [vmem:[#allocation15 + $0x488] sm:$0xff] }
 0x666   :  { %v5755_v14 = vmax.f32 %v5729_v58, 0.0  ;;  %v6024_v16 = vld [vmem:[#allocation15 + $0x460] sm:$0xff] }
 0x667   :  { %5816 = vst.msk [vmem:[#allocation9 + $0x18] sm:$0xff] %vm73_vm0, %v5808_v47  ;;  %v5754_v29 = vmax.f32 %v5724_v41, 0.0  ;;  %v7312_v51 = vpop.f32.mrb[110].mxu1 }
 0x668   :  { %v5782_v5 = vld [vmem:[#allocation8 + $0x40] ss:$2 sm:$0xff]  ;;  %v5798_v37 = vld [vmem:[#allocation8 + $0x41] ss:$2 sm:$0xff]  ;;  %5771 = vst.msk [vmem:[#allocation8 + $0x68] sm:$0xff] %vm73_vm0, %v5755_v14  ;;  %v5739_v22 = vadd.f32 %v7312_v51, %v5594_v13  ;;  %v5733_v36 = vpop.f32.mrb[111].mxu1 }
 0x669   :  { %v5809_v6 = vmax.f32 %v5782_v5, %v5798_v37  ;;  %5770 = vst.msk [vmem:[#allocation8 + $0x60] sm:$0xff] %vm73_vm0, %v5754_v29  ;;  %v5734_v12 = vadd.f32 %v5733_v36, %v5589_v1  ;;  %v5981_v29 = vld [vmem:[#allocation15 + $0x308] sm:$0xff]  ;;  %v5983_v1 = vld [vmem:[#allocation15 + $0x318] sm:$0xff]  ;;  %v5984_v36 = vld [vmem:[#allocation15 + $0x320] sm:$0xff] }
 0x66a   :  { %v5757_v9 = vmax.f32 %v5739_v22, 0.0  ;;  %v5985_v51 = vld [vmem:[#allocation15 + $0x328] sm:$0xff]  ;;  %v5987_v37 = vld [vmem:[#allocation15 + $0x338] sm:$0xff]  ;;  %v5980_v22 = vld [vmem:[#allocation15 + $0x300] sm:$0xff] }
 0x66b   :  { %5817 = vst.msk [vmem:[#allocation9 + $0x20] sm:$0xff] %vm73_vm0, %v5809_v6  ;;  %v5756_v8 = vmax.f32 %v5734_v12, 0.0  ;;  %v7457_v5 = vpack.c.bf16 %v5985_v51, %v5981_v29  ;;  %v7585_v12 = vpack.c.bf16 %v5987_v37, %v5983_v1 }
 0x66c   :  { %v5784_v26 = vld [vmem:[#allocation8 + $0x50] ss:$2 sm:$0xff]  ;;  %v5800_v7 = vld [vmem:[#allocation8 + $0x51] ss:$2 sm:$0xff]  ;;  %5773 = vst.msk [vmem:[#allocation8 + $0x78] sm:$0xff] %vm73_vm0, %v5757_v9  ;;  %v7459_v9 = vpack.c.bf16 %v5984_v36, %v5980_v22 }
 0x66d   :  { %v5810_v63 = vmax.f32 %v5784_v26, %v5800_v7  ;;  %5772 = vst.msk [vmem:[#allocation8 + $0x70] sm:$0xff] %vm73_vm0, %v5756_v8  ;;  %v5982_v8 = vld [vmem:[#allocation15 + $0x310] sm:$0xff]  ;;  %v5989_v7 = vld [vmem:[#allocation15 + $0x348] sm:$0xff]  ;;  %7458 = vmatprep.subr.bf16.mxu1 %v7457_v5  ;;  %7586 = vmatprep.subr.bf16.mxu0 %v7585_v12  ;;  %v6012_v22 = vld [vmem:[#allocation15 + $0x400] sm:$0xff] }
 0x66e   :  { %v5845_v31 = vld [vmem:[#allocation9 + $0x2] ss:$8 sm:$0xf]  ;;  %v5849_v54 = vld [vmem:[#allocation9 + $0x6] ss:$8 sm:$0xf]  ;;  %7460 = vmatpush1.bf16.msra.mxu1 %v7459_v9 }
 0x66f   :  { %5818 = vst.msk [vmem:[#allocation9 + $0x28] sm:$0xff] %vm73_vm0, %v5810_v63  ;;  %v5831_v57 = vld [vmem:[#allocation9 + $0x1] ss:$8 sm:$0xf] }
 0x670   :  { %v5786_v23 = vld [vmem:[#allocation8 + $0x60] ss:$2 sm:$0xff]  ;;  %v5802_v45 = vld [vmem:[#allocation8 + $0x61] ss:$2 sm:$0xff]  ;;  %v6016_v36 = vld [vmem:[#allocation15 + $0x420] sm:$0xff] }
 0x671   :  { %v5811_v11 = vmax.f32 %v5786_v23, %v5802_v45  ;;  %v5835_v56 = vld [vmem:[#allocation9 + $0x5] ss:$8 sm:$0xf]  ;;  %v5859_v33 = vld [vmem:[#allocation9 + $0x3] ss:$8 sm:$0xf] }
 0x672   :  { %v5863_v59 = vld [vmem:[#allocation9 + $0x7] ss:$8 sm:$0xf]  ;;  %v5821_v28 = vld [vmem:[#allocation9] ss:$8 sm:$0xf] }
 0x673   :  { %5819 = vst.msk [vmem:[#allocation9 + $0x30] sm:$0xff] %vm73_vm0, %v5811_v11  ;;  %v5825_v62 = vld [vmem:[#allocation9 + $0x4] ss:$8 sm:$0xf] }
 0x674   :  { %v5788_v50 = vld [vmem:[#allocation8 + $0x70] ss:$2 sm:$0xff]  ;;  %v5804_v25 = vld [vmem:[#allocation8 + $0x71] ss:$2 sm:$0xff]  ;;  %v5986_v26 = vld [vmem:[#allocation15 + $0x330] sm:$0xff] }
 0x675   :  { %v5812_v21 = vmax.f32 %v5788_v50, %v5804_v25  ;;  %v7587_v63 = vpack.c.bf16 %v5986_v26, %v5982_v8  ;;  %v5993_v23 = vld [vmem:[#allocation15 + $0x368] sm:$0xff]  ;;  %v5991_v45 = vld [vmem:[#allocation15 + $0x358] sm:$0xff]  ;;  %v6014_v12 = vld [vmem:[#allocation15 + $0x410] sm:$0xff] }
 0x676   :  { %v5995_v11 = vld [vmem:[#allocation15 + $0x378] sm:$0xff]  ;;  %v7461_v25 = vpack.c.bf16 %v5993_v23, %v5989_v7  ;;  %v6018_v9 = vld [vmem:[#allocation15 + $0x430] sm:$0xff]  ;;  %v6021_v7 = vld [vmem:[#allocation15 + $0x448] sm:$0xff] }
 0x677   :  { %5820 = vst.msk [vmem:[#allocation9 + $0x38] sm:$0xff] %vm73_vm0, %v5812_v21  ;;  %v7589_v21 = vpack.c.bf16 %v5995_v11, %v5991_v45  ;;  %7588 = vmatpush1.bf16.msra.mxu0 %v7587_v63  ;;  %v6025_v63 = vld [vmem:[#allocation15 + $0x468] sm:$0xff]  ;;  %v6023_v23 = vld [vmem:[#allocation15 + $0x458] sm:$0xff] }
 0x678   :  { %7462 = vmatprep.subr.bf16.mxu1 %v7461_v25  ;;  %v6027_v45 = vld [vmem:[#allocation15 + $0x478] sm:$0xff]  ;;  %v7603_v25 = vpack.c.bf16 %v6018_v9, %v6014_v12  ;;  %v7477_v34 = vpack.c.bf16 %v6025_v63, %v6021_v7  ;;  %v6061_v7 = vld [vmem:[#allocation15 + $0x588] sm:$0xff] }
 0x679   :  { %7590 = vmatprep.subr.bf16.mxu0 %v7589_v21  ;;  %7464 = vmatpush1.bf16.msra.mxu1 %v7463_v40  ;;  %v6026_v40 = vld [vmem:[#allocation15 + $0x470] sm:$0xff]  ;;  %v6065_v63 = vld [vmem:[#allocation15 + $0x5a8] sm:$0xff] }
 0x67a   :  { %7466 = vmatprep.subr.bf16.mxu1 %v7465_v27  ;;  %v6033_v27 = vld [vmem:[#allocation15 + $0x4a8] sm:$0xff] }
 0x67b   :  { %7592 = vmatpush1.bf16.msra.mxu0 %v7591_v55  ;;  %v7605_v55 = vpack.c.bf16 %v6027_v45, %v6023_v23  ;;  %v6063_v23 = vld [vmem:[#allocation15 + $0x598] sm:$0xff] }
 0x67c   :  { %v6067_v45 = vld [vmem:[#allocation15 + $0x5b8] sm:$0xff] }
 0x67e   :  { %v5846_v3 = vld [vmem:[#allocation9 + $0x2] ss:$8 sm:$0xf0]  ;;  %v5850_v19 = vld [vmem:[#allocation9 + $0x6] ss:$8 sm:$0xf0] }
 0x67f   :  { %v5847_v10 = vor.u32 %v5846_v3, %v5845_v31  ;;  %v5851_v44 = vor.u32 %v5850_v19, %v5849_v54  ;;  %v5832_v53 = vld [vmem:[#allocation9 + $0x1] ss:$8 sm:$0xf0]  ;;  %v5836_v48 = vld [vmem:[#allocation9 + $0x5] ss:$8 sm:$0xf0]  ;;  %v7469_v3 = vpack.c.bf16 %v6009_v4, %v6005_v38 }
 0x680   :  { %v5833_v49 = vor.u32 %v5832_v53, %v5831_v57  ;;  %v5837_v46 = vor.u32 %v5836_v48, %v5835_v56  ;;  %v5860_v42 = vld [vmem:[#allocation9 + $0x3] ss:$8 sm:$0xf0]  ;;  %v5864_v20 = vld [vmem:[#allocation9 + $0x7] ss:$8 sm:$0xf0]  ;;  %v7467_v56 = vpack.c.bf16 %v6000_v39, %v5996_v15  ;;  %v7479_v15 = vpack.c.bf16 %v6024_v16, %v6020_v43 }
 0x681   :  { %v5852_v60 = vmax.f32 %v5847_v10, %v5851_v44  ;;  %v5861_v61 = vor.u32 %v5860_v42, %v5859_v33  ;;  %v5822_v58 = vld [vmem:[#allocation9] ss:$8 sm:$0xf0]  ;;  %v5826_v35 = vld [vmem:[#allocation9 + $0x4] ss:$8 sm:$0xf0]  ;;  %v5865_v41 = vor.u32 %v5864_v20, %v5863_v59  ;;  %v7497_v16 = vpack.c.bf16 %v6065_v63, %v6061_v7 }
 0x682   :  { %v5838_v47 = vmax.f32 %v5833_v49, %v5837_v46  ;;  %v5823_v14 = vor.u32 %v5822_v58, %v5821_v28  ;;  %v5827_v13 = vor.u32 %v5826_v35, %v5825_v62  ;;  %v5999_v31 = vld [vmem:[#allocation15 + $0x398] sm:$0xff]  ;;  %v6002_v57 = vld [vmem:[#allocation15 + $0x3b0] sm:$0xff]  ;;  %v6004_v33 = vld [vmem:[#allocation15 + $0x3c0] sm:$0xff]  ;;  %7468 = vmatpush1.bf16.msra.mxu1 %v7467_v56  ;;  %v6142_v35 = vlaneseq }
 0x683   :  { %5854 = vrot.lane.b32.xlu1 %v5852_v60, %s7944_s7  ;;  %v5866_v50 = vmax.f32 %v5861_v61, %v5865_v41  ;;  %v6003_v54 = vld [vmem:[#allocation15 + $0x3b8] sm:$0xff]  ;;  %v7595_v0 = vpack.c.bf16 %v6002_v57, %v5998_v24  ;;  %v6006_v44 = vld [vmem:[#allocation15 + $0x3d0] sm:$0xff]  ;;  %v7471_v48 = vpack.c.bf16 %v6008_v17, %v6004_v33  ;;  %7470 = vmatprep.subr.bf16.mxu1 %v7469_v3  ;;  %v6013_v28 = vld [vmem:[#allocation15 + $0x408] sm:$0xff] }
 0x684   :  { %5840 = vrot.lane.b32.xlu0 %v5838_v47, %s7941_s26  ;;  %v5828_v6 = vmax.f32 %v5823_v14, %v5827_v13  ;;  %v7593_v18 = vpack.c.bf16 %v6003_v54, %v5999_v31  ;;  %v6011_v19 = vld [vmem:[#allocation15 + $0x3f8] sm:$0xff]  ;;  %v6010_v53 = vld [vmem:[#allocation15 + $0x3f0] sm:$0xff]  ;;  %v6017_v62 = vld [vmem:[#allocation15 + $0x428] sm:$0xff]  ;;  %v7946_v47 = vmov 1983009808   ;;  %v11390_v1 = vshrl.u32 %v6142_v35, 7 }
 0x685   :  { %v7597_v10 = vpack.c.bf16 %v6011_v19, %v6007_v52  ;;  %v7599_v59 = vpack.c.bf16 %v6010_v53, %v6006_v44  ;;  %v6015_v49 = vld [vmem:[#allocation15 + $0x418] sm:$0xff]  ;;  %v7473_v46 = vpack.c.bf16 %v6017_v62, %v6013_v28  ;;  %v6165_v41 = vunpack.c.l.s4 %v7946_v47  ;;  %v6028_v39 = vld [vmem:[#allocation15 + $0x480] sm:$0xff]  ;;  %v6030_v38 = vld [vmem:[#allocation15 + $0x490] sm:$0xff] }
 0x686   :  { %5829 = vst.msk [vmem:[#allocation10] sm:$0xff] %vm73_vm0, %v5828_v6  ;;  %7594 = vmatprep.subr.bf16.mxu0 %v7593_v18  ;;  %v6019_v42 = vld [vmem:[#allocation15 + $0x438] sm:$0xff]  ;;  %7472 = vmatpush1.bf16.msra.mxu1 %v7471_v48  ;;  %v7607_v18 = vpack.c.bf16 %v6026_v40, %v6022_v32  ;;  %v6032_v24 = vld [vmem:[#allocation15 + $0x4a0] sm:$0xff]  ;;  %v7481_v57 = vpack.c.bf16 %v6033_v27, %v6029_v2  ;;  %v6034_v4 = vld [vmem:[#allocation15 + $0x4b0] sm:$0xff] }
 0x687   :  { %7596 = vmatpush1.bf16.msra.mxu0 %v7595_v0  ;;  %v7601_v20 = vpack.c.bf16 %v6019_v42, %v6015_v49  ;;  %7474 = vmatprep.subr.bf16.mxu1 %v7473_v46  ;;  %v6166_v5 = vunpack.c.0.s8 %v6165_v41  ;;  %v6031_v31 = vld [vmem:[#allocation15 + $0x498] sm:$0xff]  ;;  %v6037_v52 = vld [vmem:[#allocation15 + $0x4c8] sm:$0xff]  ;;  %v7483_v33 = vpack.c.bf16 %v6032_v24, %v6028_v39  ;;  %v7611_v17 = vpack.c.bf16 %v6034_v4, %v6030_v38  ;;  %v6040_v44 = vld [vmem:[#allocation15 + $0x4e0] sm:$0xff] }
 0x688   :  { %5868 = vrot.lane.b32.xlu0 %v5866_v50, %s7945_s17  ;;  %7598 = vmatprep.subr.bf16.mxu0 %v7597_v10  ;;  %v7475_v50 = vpack.c.bf16 %v6016_v36, %v6012_v22  ;;  %v6035_v54 = vld [vmem:[#allocation15 + $0x4b8] sm:$0xff]  ;;  %v6041_v0 = vld [vmem:[#allocation15 + $0x4e8] sm:$0xff]  ;;  %v6036_v10 = vld [vmem:[#allocation15 + $0x4c0] sm:$0xff]  ;;  %v7625_v32 = vpack.c.bf16 %v6067_v45, %v6063_v23 }
 0x689   :  { %v6169_v37 = vsub.s32 %v6166_v5, %v11390_v1  ;;  %v7609_v56 = vpack.c.bf16 %v6035_v54, %v6031_v31  ;;  %v6039_v3 = vld [vmem:[#allocation15 + $0x4d8] sm:$0xff]  ;;  %v7485_v53 = vpack.c.bf16 %v6041_v0, %v6037_v52  ;;  %v6042_v28 = vld [vmem:[#allocation15 + $0x4f0] sm:$0xff]  ;;  %v6045_v62 = vld [vmem:[#allocation15 + $0x508] sm:$0xff] }
 0x68a   :  { %v6043_v19 = vld [vmem:[#allocation15 + $0x4f8] sm:$0xff]  ;;  %v6049_v49 = vld [vmem:[#allocation15 + $0x528] sm:$0xff]  ;;  %v6046_v41 = vld [vmem:[#allocation15 + $0x510] sm:$0xff] }
 0x68b   :  { %7600 = vmatpush1.bf16.msra.mxu0 %v7599_v59  ;;  %v7613_v48 = vpack.c.bf16 %v6043_v19, %v6039_v3  ;;  %v6038_v59 = vld [vmem:[#allocation15 + $0x4d0] sm:$0xff]  ;;  %v6047_v46 = vld [vmem:[#allocation15 + $0x518] sm:$0xff]  ;;  %v7489_v35 = vpack.c.bf16 %v6049_v49, %v6045_v62  ;;  %v6052_v36 = vld [vmem:[#allocation15 + $0x540] sm:$0xff] }
 0x68c   :  { %7602 = vmatprep.subr.bf16.mxu0 %v7601_v20  ;;  %v6051_v42 = vld [vmem:[#allocation15 + $0x538] sm:$0xff]  ;;  %v7487_v20 = vpack.c.bf16 %v6040_v44, %v6036_v10  ;;  %v6064_v43 = vld [vmem:[#allocation15 + $0x5a0] sm:$0xff]  ;;  %v6062_v40 = vld [vmem:[#allocation15 + $0x590] sm:$0xff] }
 0x68d   :  { %v7617_v47 = vpack.c.bf16 %v6051_v42, %v6047_v46  ;;  %v6059_v5 = vld [vmem:[#allocation15 + $0x578] sm:$0xff]  ;;  %v6066_v2 = vld [vmem:[#allocation15 + $0x5b0] sm:$0xff]  ;;  %v6077_v38 = vld [vmem:[#allocation15 + $0x608] sm:$0xff] }
 0x68e   :  { %v6075_v27 = vld [vmem:[#allocation15 + $0x5f8] sm:$0xff]  ;;  %v7627_v54 = vpack.c.bf16 %v6066_v2, %v6062_v40  ;;  %v6081_v4 = vld [vmem:[#allocation15 + $0x628] sm:$0xff] }
 0x68f   :  { %v6079_v52 = vld [vmem:[#allocation15 + $0x618] sm:$0xff]  ;;  %v7505_v10 = vpack.c.bf16 %v6081_v4, %v6077_v38  ;;  %v6109_v40 = vld [vmem:[#allocation15 + $0x708] sm:$0xff] }
 0x690   :  { %v6083_v0 = vld [vmem:[#allocation15 + $0x638] sm:$0xff]  ;;  %v6113_v2 = vld [vmem:[#allocation15 + $0x728] sm:$0xff] }
 0x691   :  { %v7633_v44 = vpack.c.bf16 %v6083_v0, %v6079_v52  ;;  %v6087_v62 = vld [vmem:[#allocation15 + $0x658] sm:$0xff] }
 0x692   :  { %v6091_v49 = vld [vmem:[#allocation15 + $0x678] sm:$0xff] }
 0x693   :  { %v6103_v7 = vld [vmem:[#allocation15 + $0x6d8] sm:$0xff] }
 0x694   :  { %v6107_v63 = vld [vmem:[#allocation15 + $0x6f8] sm:$0xff] }
 0x695   :  { %v6119_v38 = vld [vmem:[#allocation15 + $0x758] sm:$0xff] }
 0x696   :  { %v6123_v4 = vld [vmem:[#allocation15 + $0x778] sm:$0xff] }
 0x6f5   :  { %v5855_v60 = vpop.permute.xlu1 %5854 }
 0x6f6   :  { %v5841_v61 = vpop.permute.xlu0 %5840 }
 0x6f7   :  { %5843 = vst.msk [vmem:[#allocation10] sm:$0xff] %vm760_vm2, %v5841_v61  ;;  %v6044_v61 = vld [vmem:[#allocation15 + $0x500] sm:$0xff] }
 0x6f8   :  { %5857 = vst.msk [vmem:[#allocation10] sm:$0xff] %vm1145_vm3, %v5855_v60  ;;  %v7615_v60 = vpack.c.bf16 %v6042_v28, %v6038_v59  ;;  %v6085_v59 = vld [vmem:[#allocation15 + $0x648] sm:$0xff] }
 0x6f9   :  { %v6089_v28 = vld [vmem:[#allocation15 + $0x668] sm:$0xff] }
 0x6fa   :  { %v5869_v58 = vpop.permute.xlu0 %5868 }
 0x6fb   :  { %5871 = vst.msk [vmem:[#allocation10] sm:$0xff] %vm1530_vm4, %v5869_v58  ;;  %v6048_v58 = vld [vmem:[#allocation15 + $0x520] sm:$0xff] }
 0x702   :  { %v5872_v14 = vld [vmem:[#allocation10] ss:$4 sm:$0x3]  ;;  %v5875_v13 = vld [vmem:[#allocation10 + $0x1] ss:$4 sm:$0x3] }
 0x703   :  { %5873 = vst [vmem:[#allocation11] sm:$0x3] %v5872_v14  ;;  %5876 = vst [vmem:[#allocation11 + $0x2] sm:$0x3] %v5875_v13  ;;  %v6050_v14 = vld [vmem:[#allocation15 + $0x530] sm:$0xff]  ;;  %v6053_v13 = vld [vmem:[#allocation15 + $0x548] sm:$0xff] }
 0x704   :  { %v5878_v29 = vld [vmem:[#allocation10 + $0x2] ss:$4 sm:$0x3]  ;;  %v5881_v51 = vld [vmem:[#allocation10 + $0x3] ss:$4 sm:$0x3]  ;;  %v7619_v22 = vpack.c.bf16 %v6050_v14, %v6046_v41 }
 0x705   :  { %5879 = vst [vmem:[#allocation11 + $0x4] sm:$0x3] %v5878_v29  ;;  %5882 = vst [vmem:[#allocation11 + $0x6] sm:$0x3] %v5881_v51  ;;  %v6057_v29 = vld [vmem:[#allocation15 + $0x568] sm:$0xff]  ;;  %v6055_v51 = vld [vmem:[#allocation15 + $0x558] sm:$0xff] }
 0x706   :  { %v7493_v12 = vpack.c.bf16 %v6057_v29, %v6053_v13  ;;  %v7621_v9 = vpack.c.bf16 %v6059_v5, %v6055_v51  ;;  %v6093_v41 = vld [vmem:[#allocation15 + $0x688] sm:$0xff]  ;;  %v6095_v13 = vld [vmem:[#allocation15 + $0x698] sm:$0xff] }
 0x707   :  { %v6097_v14 = vld [vmem:[#allocation15 + $0x6a8] sm:$0xff]  ;;  %v6099_v29 = vld [vmem:[#allocation15 + $0x6b8] sm:$0xff] }
 0x70c   :  { %v5883_v6 = vld [vmem:[#allocation11] sm:$0xff] }
 0x70d   :  { %v6170_v8 = vrot.slane %v5883_v6, %v6169_v37  ;;  %v6163_v26 = vcombine.high %v5883_v6, %v5883_v6  ;;  %v6056_v6 = vld [vmem:[#allocation15 + $0x560] sm:$0xff] }
 0x70f   :  { %v6178_v11 = vcombine.high %v6170_v8, %v6170_v8  ;;  %v11393_v21 = vrot.slane %v6163_v26, %v6169_v37  ;;  %v7491_v37 = vpack.c.bf16 %v6048_v58, %v6044_v61  ;;  %v6058_v26 = vld [vmem:[#allocation15 + $0x570] sm:$0xff]  ;;  %v7509_v61 = vpack.c.bf16 %v6089_v28, %v6085_v59  ;;  %v6127_v59 = vld [vmem:[#allocation15 + $0x798] sm:$0xff] }
 0x710   :  { %v7637_v58 = vpack.c.bf16 %v6091_v49, %v6087_v62  ;;  %v6131_v28 = vld [vmem:[#allocation15 + $0x7b8] sm:$0xff] }
 0x711   :  { %6248 = vmatprep.mubr.f32.mxu1 %v6178_v11  ;;  %6390 = vmatprep.mubr.f32.mxu0 %v6178_v11  ;;  %v6179_v30 = vcombine.high %v11393_v21, %v11393_v21  ;;  %v7495_v11 = vpack.c.bf16 %v6056_v6, %v6052_v36  ;;  %v7513_v36 = vpack.c.bf16 %v6097_v14, %v6093_v41  ;;  %v6135_v41 = vld [vmem:[#allocation15 + $0x7d8] sm:$0xff] }
 0x712   :  { %6249 = vmatmul.mubr.f32.vlgmr.msra.gmra.mrb[112].mxu1 %v6170_v8  ;;  %6391 = vmatmul.mubr.f32.vlgmr.msra.gmra.mrb[128].mxu0 %v6170_v8  ;;  %v6054_v8 = vld [vmem:[#allocation15 + $0x550] sm:$0xff]  ;;  %v7641_v6 = vpack.c.bf16 %v6099_v29, %v6095_v13  ;;  %v6139_v14 = vld [vmem:[#allocation15 + $0x7f8] sm:$0xff] }
 0x713   :  { %7476 = vmatpush1.bf16.msra.mxu1 %v7475_v50  ;;  %7604 = vmatpush1.bf16.msra.mxu0 %v7603_v25  ;;  %v7623_v50 = vpack.c.bf16 %v6058_v26, %v6054_v8  ;;  %v6060_v25 = vld [vmem:[#allocation15 + $0x580] sm:$0xff]  ;;  %v6101_v8 = vld [vmem:[#allocation15 + $0x6c8] sm:$0xff] }
 0x714   :  { %6319 = vmatprep.mubr.f32.mxu1 %v6179_v30  ;;  %6461 = vmatprep.mubr.f32.mxu0 %v6179_v30  ;;  %v6069_v30 = vld [vmem:[#allocation15 + $0x5c8] sm:$0xff]  ;;  %v7499_v31 = vpack.c.bf16 %v6064_v43, %v6060_v25  ;;  %v7645_v43 = vpack.c.bf16 %v6107_v63, %v6103_v7  ;;  %v6472_v63 = vld [vmem:[%s11930_s9] sm:$0xff] }
 0x715   :  { %7478 = vmatprep.subr.bf16.mxu1 %v7477_v34  ;;  %7606 = vmatprep.subr.bf16.mxu0 %v7605_v55  ;;  %v6073_v34 = vld [vmem:[#allocation15 + $0x5e8] sm:$0xff]  ;;  %v6071_v55 = vld [vmem:[#allocation15 + $0x5d8] sm:$0xff] }
 0x716   :  { %v7501_v39 = vpack.c.bf16 %v6073_v34, %v6069_v30  ;;  %v7629_v24 = vpack.c.bf16 %v6075_v27, %v6071_v55  ;;  %v6105_v26 = vld [vmem:[#allocation15 + $0x6e8] sm:$0xff]  ;;  %v6111_v30 = vld [vmem:[#allocation15 + $0x718] sm:$0xff] }
 0x717   :  { %7480 = vmatpush1.bf16.msra.mxu1 %v7479_v15  ;;  %7608 = vmatpush1.bf16.msra.mxu0 %v7607_v18  ;;  %v6068_v15 = vld [vmem:[#allocation15 + $0x5c0] sm:$0xff]  ;;  %v7517_v25 = vpack.c.bf16 %v6105_v26, %v6101_v8  ;;  %v6115_v34 = vld [vmem:[#allocation15 + $0x738] sm:$0xff] }
 0x718   :  { %7482 = vmatprep.subr.bf16.mxu1 %v7481_v57  ;;  %7610 = vmatprep.subr.bf16.mxu0 %v7609_v56  ;;  %v6072_v18 = vld [vmem:[#allocation15 + $0x5e0] sm:$0xff]  ;;  %v6070_v57 = vld [vmem:[#allocation15 + $0x5d0] sm:$0xff] }
 0x719   :  { %v6074_v56 = vld [vmem:[#allocation15 + $0x5f0] sm:$0xff]  ;;  %v7503_v3 = vpack.c.bf16 %v6072_v18, %v6068_v15  ;;  %v7521_v15 = vpack.c.bf16 %v6113_v2, %v6109_v40  ;;  %v7649_v18 = vpack.c.bf16 %v6115_v34, %v6111_v30  ;;  %v6483_v40 = vld [vmem:[%s11930_s9 + $0x58] sm:$0xff] }
 0x71a   :  { %v7631_v19 = vpack.c.bf16 %v6074_v56, %v6070_v57  ;;  %v6117_v57 = vld [vmem:[#allocation15 + $0x748] sm:$0xff]  ;;  %v6480_v34 = vld [vmem:[%s11930_s9 + $0x40] sm:$0xff] }
 0x71b   :  { %7484 = vmatpush1.bf16.msra.mxu1 %v7483_v33  ;;  %7612 = vmatpush1.bf16.msra.mxu0 %v7611_v17  ;;  %v6076_v33 = vld [vmem:[#allocation15 + $0x600] sm:$0xff]  ;;  %v6121_v56 = vld [vmem:[#allocation15 + $0x768] sm:$0xff] }
 0x71c   :  { %7486 = vmatprep.subr.bf16.mxu1 %v7485_v53  ;;  %7614 = vmatprep.subr.bf16.mxu0 %v7613_v48  ;;  %v6080_v17 = vld [vmem:[#allocation15 + $0x620] sm:$0xff]  ;;  %v6078_v53 = vld [vmem:[#allocation15 + $0x610] sm:$0xff] }
 0x71d   :  { %v6082_v48 = vld [vmem:[#allocation15 + $0x630] sm:$0xff]  ;;  %v7507_v46 = vpack.c.bf16 %v6080_v17, %v6076_v33  ;;  %v7525_v33 = vpack.c.bf16 %v6121_v56, %v6117_v57  ;;  %v7653_v17 = vpack.c.bf16 %v6123_v4, %v6119_v38  ;;  %v6490_v4 = vld [vmem:[%s11930_s9 + $0x90] sm:$0xff] }
 0x71e   :  { %v7635_v42 = vpack.c.bf16 %v6082_v48, %v6078_v53  ;;  %v6125_v53 = vld [vmem:[#allocation15 + $0x788] sm:$0xff]  ;;  %v6488_v38 = vld [vmem:[%s11930_s9 + $0x80] sm:$0xff] }
 0x71f   :  { %7488 = vmatpush1.bf16.msra.mxu1 %v7487_v20  ;;  %7616 = vmatpush1.bf16.msra.mxu0 %v7615_v60  ;;  %v6084_v20 = vld [vmem:[#allocation15 + $0x640] sm:$0xff]  ;;  %v6129_v48 = vld [vmem:[#allocation15 + $0x7a8] sm:$0xff] }
 0x720   :  { %7490 = vmatprep.subr.bf16.mxu1 %v7489_v35  ;;  %7618 = vmatprep.subr.bf16.mxu0 %v7617_v47  ;;  %v6088_v60 = vld [vmem:[#allocation15 + $0x660] sm:$0xff]  ;;  %v6086_v35 = vld [vmem:[#allocation15 + $0x650] sm:$0xff] }
 0x721   :  { %v6090_v47 = vld [vmem:[#allocation15 + $0x670] sm:$0xff]  ;;  %v7511_v51 = vpack.c.bf16 %v6088_v60, %v6084_v20  ;;  %v7529_v20 = vpack.c.bf16 %v6129_v48, %v6125_v53  ;;  %v7657_v60 = vpack.c.bf16 %v6131_v28, %v6127_v59  ;;  %v6498_v28 = vld [vmem:[%s11930_s9 + $0xd0] sm:$0xff] }
 0x722   :  { %v7639_v5 = vpack.c.bf16 %v6090_v47, %v6086_v35  ;;  %v6133_v35 = vld [vmem:[#allocation15 + $0x7c8] sm:$0xff]  ;;  %v6496_v59 = vld [vmem:[%s11930_s9 + $0xc0] sm:$0xff] }
 0x723   :  { %7492 = vmatpush1.bf16.msra.mxu1 %v7491_v37  ;;  %7620 = vmatpush1.bf16.msra.mxu0 %v7619_v22  ;;  %v6092_v37 = vld [vmem:[#allocation15 + $0x680] sm:$0xff]  ;;  %v6137_v47 = vld [vmem:[#allocation15 + $0x7e8] sm:$0xff] }
 0x724   :  { %7494 = vmatprep.subr.bf16.mxu1 %v7493_v12  ;;  %7622 = vmatprep.subr.bf16.mxu0 %v7621_v9  ;;  %v6096_v22 = vld [vmem:[#allocation15 + $0x6a0] sm:$0xff]  ;;  %v6094_v12 = vld [vmem:[#allocation15 + $0x690] sm:$0xff] }
 0x725   :  { %v6098_v9 = vld [vmem:[#allocation15 + $0x6b0] sm:$0xff]  ;;  %v7515_v23 = vpack.c.bf16 %v6096_v22, %v6092_v37  ;;  %v7661_v37 = vpack.c.bf16 %v6139_v14, %v6135_v41  ;;  %v6136_v22 = vld [vmem:[#allocation15 + $0x7e0] sm:$0xff] }
 0x726   :  { %v7643_v45 = vpack.c.bf16 %v6098_v9, %v6094_v12  ;;  %v6473_v12 = vld [vmem:[%s11930_s9 + $0x8] sm:$0xff]  ;;  %v6475_v9 = vld [vmem:[%s11930_s9 + $0x18] sm:$0xff]  ;;  %v6504_v41 = vld [vmem:[%s11930_s9 + $0x100] sm:$0xff] }
 0x727   :  { %7496 = vmatpush1.bf16.msra.mxu1 %v7495_v11  ;;  %7624 = vmatpush1.bf16.msra.mxu0 %v7623_v50  ;;  %v6100_v11 = vld [vmem:[#allocation15 + $0x6c0] sm:$0xff]  ;;  %v7665_v7 = vpack.c.bf16 %v6475_v9, %v6473_v12 }
 0x728   :  { %7498 = vmatprep.subr.bf16.mxu1 %v7497_v16  ;;  %7626 = vmatprep.subr.bf16.mxu0 %v7625_v32  ;;  %v6104_v50 = vld [vmem:[#allocation15 + $0x6e0] sm:$0xff]  ;;  %v6102_v16 = vld [vmem:[#allocation15 + $0x6d0] sm:$0xff] }
 0x729   :  { %v6106_v32 = vld [vmem:[#allocation15 + $0x6f0] sm:$0xff]  ;;  %v7519_v55 = vpack.c.bf16 %v6104_v50, %v6100_v11  ;;  %v6479_v11 = vld [vmem:[%s11930_s9 + $0x38] sm:$0xff]  ;;  %v6506_v14 = vld [vmem:[%s11930_s9 + $0x110] sm:$0xff] }
 0x72a   :  { %v7647_v27 = vpack.c.bf16 %v6106_v32, %v6102_v16  ;;  %v6478_v16 = vld [vmem:[%s11930_s9 + $0x30] sm:$0xff]  ;;  %v6481_v32 = vld [vmem:[%s11930_s9 + $0x48] sm:$0xff] }
 0x72b   :  { %7500 = vmatpush1.bf16.msra.mxu1 %v7499_v31  ;;  %7628 = vmatpush1.bf16.msra.mxu0 %v7627_v54  ;;  %v6108_v31 = vld [vmem:[#allocation15 + $0x700] sm:$0xff]  ;;  %v7673_v30 = vpack.c.bf16 %v6483_v40, %v6481_v32  ;;  %v6520_v40 = vld [vmem:[%s11930_s9 + $0x180] sm:$0xff] }
 0x72c   :  { %7502 = vmatprep.subr.bf16.mxu1 %v7501_v39  ;;  %7630 = vmatprep.subr.bf16.mxu0 %v7629_v24  ;;  %v6112_v54 = vld [vmem:[#allocation15 + $0x720] sm:$0xff]  ;;  %v6110_v39 = vld [vmem:[#allocation15 + $0x710] sm:$0xff] }
 0x72d   :  { %v6114_v24 = vld [vmem:[#allocation15 + $0x730] sm:$0xff]  ;;  %v7523_v52 = vpack.c.bf16 %v6112_v54, %v6108_v31 }
 0x72e   :  { %v7651_v0 = vpack.c.bf16 %v6114_v24, %v6110_v39  ;;  %v6489_v39 = vld [vmem:[%s11930_s9 + $0x88] sm:$0xff]  ;;  %v6491_v24 = vld [vmem:[%s11930_s9 + $0x98] sm:$0xff] }
 0x72f   :  { %7504 = vmatpush1.bf16.msra.mxu1 %v7503_v3  ;;  %7632 = vmatpush1.bf16.msra.mxu0 %v7631_v19  ;;  %v6116_v3 = vld [vmem:[#allocation15 + $0x740] sm:$0xff]  ;;  %v7681_v56 = vpack.c.bf16 %v6491_v24, %v6489_v39  ;;  %v6528_v24 = vld [vmem:[%s11930_s9 + $0x1c0] sm:$0xff] }
 0x730   :  { %7506 = vmatprep.subr.bf16.mxu1 %v7505_v10  ;;  %7634 = vmatprep.subr.bf16.mxu0 %v7633_v44  ;;  %v6120_v19 = vld [vmem:[#allocation15 + $0x760] sm:$0xff]  ;;  %v6118_v10 = vld [vmem:[#allocation15 + $0x750] sm:$0xff] }
 0x731   :  { %v6122_v44 = vld [vmem:[#allocation15 + $0x770] sm:$0xff]  ;;  %v7527_v62 = vpack.c.bf16 %v6120_v19, %v6116_v3  ;;  %v7683_v3 = vpack.c.bf16 %v6490_v4, %v6488_v38  ;;  %v6533_v38 = vld [vmem:[%s11930_s9 + $0x1e8] sm:$0xff]  ;;  %v6535_v4 = vld [vmem:[%s11930_s9 + $0x1f8] sm:$0xff] }
 0x732   :  { %v7655_v49 = vpack.c.bf16 %v6122_v44, %v6118_v10  ;;  %v6497_v10 = vld [vmem:[%s11930_s9 + $0xc8] sm:$0xff]  ;;  %v6499_v44 = vld [vmem:[%s11930_s9 + $0xd8] sm:$0xff] }
 0x733   :  { %7508 = vmatpush1.bf16.msra.mxu1 %v7507_v46  ;;  %7636 = vmatpush1.bf16.msra.mxu0 %v7635_v42  ;;  %v6124_v46 = vld [vmem:[#allocation15 + $0x780] sm:$0xff]  ;;  %v7689_v48 = vpack.c.bf16 %v6499_v44, %v6497_v10  ;;  %v6772_v44 = vld [vmem:[%s11932_s11 + $0x80] sm:$0xff] }
 0x734   :  { %7510 = vmatprep.subr.bf16.mxu1 %v7509_v61  ;;  %7638 = vmatprep.subr.bf16.mxu0 %v7637_v58  ;;  %v6128_v42 = vld [vmem:[#allocation15 + $0x7a0] sm:$0xff]  ;;  %v6126_v61 = vld [vmem:[#allocation15 + $0x790] sm:$0xff] }
 0x735   :  { %v6130_v58 = vld [vmem:[#allocation15 + $0x7b0] sm:$0xff]  ;;  %v7531_v13 = vpack.c.bf16 %v6128_v42, %v6124_v46  ;;  %v7691_v46 = vpack.c.bf16 %v6498_v28, %v6496_v59  ;;  %v6757_v28 = vld [vmem:[%s11932_s11 + $0x8] sm:$0xff] }
 0x736   :  { %v7659_v29 = vpack.c.bf16 %v6130_v58, %v6126_v61  ;;  %v6505_v61 = vld [vmem:[%s11930_s9 + $0x108] sm:$0xff]  ;;  %v6507_v58 = vld [vmem:[%s11930_s9 + $0x118] sm:$0xff] }
 0x737   :  { %7512 = vmatpush1.bf16.msra.mxu1 %v7511_v51  ;;  %7640 = vmatpush1.bf16.msra.mxu0 %v7639_v5  ;;  %v6132_v51 = vld [vmem:[#allocation15 + $0x7c0] sm:$0xff]  ;;  %v7533_v5 = vpack.c.bf16 %v6137_v47, %v6133_v35  ;;  %v7697_v47 = vpack.c.bf16 %v6507_v58, %v6505_v61  ;;  %v6776_v61 = vld [vmem:[%s11932_s11 + $0xa0] sm:$0xff]  ;;  %v6777_v58 = vld [vmem:[%s11932_s11 + $0xa8] sm:$0xff] }
 0x738   :  { %7514 = vmatprep.subr.bf16.mxu1 %v7513_v36  ;;  %7642 = vmatprep.subr.bf16.mxu0 %v7641_v6  ;;  %v6134_v36 = vld [vmem:[#allocation15 + $0x7d0] sm:$0xff]  ;;  %v7535_v8 = vpack.c.bf16 %v6136_v22, %v6132_v51  ;;  %v7699_v51 = vpack.c.bf16 %v6506_v14, %v6504_v41  ;;  %v6510_v22 = vld [vmem:[%s11930_s9 + $0x130] sm:$0xff]  ;;  %v6761_v14 = vld [vmem:[%s11932_s11 + $0x28] sm:$0xff] }
 0x739   :  { %v6138_v6 = vld [vmem:[#allocation15 + $0x7f0] sm:$0xff] }
 0x73a   :  { %v7663_v26 = vpack.c.bf16 %v6138_v6, %v6134_v36  ;;  %v6513_v36 = vld [vmem:[%s11930_s9 + $0x148] sm:$0xff]  ;;  %v6515_v6 = vld [vmem:[%s11930_s9 + $0x158] sm:$0xff]  ;;  %v6760_v41 = vld [vmem:[%s11932_s11 + $0x20] sm:$0xff] }
 0x73b   :  { %7516 = vmatpush1.bf16.msra.mxu1 %v7515_v23  ;;  %7644 = vmatpush1.bf16.msra.mxu0 %v7643_v45  ;;  %v6474_v23 = vld [vmem:[%s11930_s9 + $0x10] sm:$0xff]  ;;  %v6477_v45 = vld [vmem:[%s11930_s9 + $0x28] sm:$0xff]  ;;  %v7705_v9 = vpack.c.bf16 %v6515_v6, %v6513_v36  ;;  %v6780_v36 = vld [vmem:[%s11932_s11 + $0xc0] sm:$0xff] }
 0x73c   :  { %7518 = vmatprep.subr.bf16.mxu1 %v7517_v25  ;;  %7646 = vmatprep.subr.bf16.mxu0 %v7645_v43  ;;  %v7667_v50 = vpack.c.bf16 %v6474_v23, %v6472_v63  ;;  %v7669_v25 = vpack.c.bf16 %v6479_v11, %v6477_v45  ;;  %v6476_v43 = vld [vmem:[%s11930_s9 + $0x20] sm:$0xff]  ;;  %v6519_v63 = vld [vmem:[%s11930_s9 + $0x178] sm:$0xff]  ;;  %v6781_v6 = vld [vmem:[%s11932_s11 + $0xc8] sm:$0xff] }
 0x73d   :  { %v7671_v2 = vpack.c.bf16 %v6478_v16, %v6476_v43  ;;  %v6516_v11 = vld [vmem:[%s11930_s9 + $0x160] sm:$0xff]  ;;  %v6523_v43 = vld [vmem:[%s11930_s9 + $0x198] sm:$0xff] }
 0x73f   :  { %7520 = vmatpush1.bf16.msra.mxu1 %v7519_v55  ;;  %7648 = vmatpush1.bf16.msra.mxu0 %v7647_v27  ;;  %v6482_v55 = vld [vmem:[%s11930_s9 + $0x50] sm:$0xff]  ;;  %v6485_v27 = vld [vmem:[%s11930_s9 + $0x68] sm:$0xff] }
 0x740   :  { %7522 = vmatprep.subr.bf16.mxu1 %v7521_v15  ;;  %7650 = vmatprep.subr.bf16.mxu0 %v7649_v18  ;;  %v7675_v31 = vpack.c.bf16 %v6482_v55, %v6480_v34  ;;  %v6484_v15 = vld [vmem:[%s11930_s9 + $0x60] sm:$0xff]  ;;  %v6486_v18 = vld [vmem:[%s11930_s9 + $0x70] sm:$0xff]  ;;  %v6527_v34 = vld [vmem:[%s11930_s9 + $0x1b8] sm:$0xff] }
 0x741   :  { %v7679_v57 = vpack.c.bf16 %v6486_v18, %v6484_v15  ;;  %v6531_v15 = vld [vmem:[%s11930_s9 + $0x1d8] sm:$0xff] }
 0x743   :  { %7524 = vmatpush1.bf16.msra.mxu1 %v7523_v52  ;;  %7652 = vmatpush1.bf16.msra.mxu0 %v7651_v0  ;;  %v6493_v52 = vld [vmem:[%s11930_s9 + $0xa8] sm:$0xff]  ;;  %v6495_v0 = vld [vmem:[%s11930_s9 + $0xb8] sm:$0xff] }
 0x744   :  { %7526 = vmatprep.subr.bf16.mxu1 %v7525_v33  ;;  %7654 = vmatprep.subr.bf16.mxu0 %v7653_v17  ;;  %v7685_v19 = vpack.c.bf16 %v6495_v0, %v6493_v52  ;;  %v6492_v33 = vld [vmem:[%s11930_s9 + $0xa0] sm:$0xff]  ;;  %v6494_v17 = vld [vmem:[%s11930_s9 + $0xb0] sm:$0xff]  ;;  %v7725_v52 = vpack.c.bf16 %v6535_v4, %v6533_v38  ;;  %v6541_v4 = vld [vmem:[%s11930_s9 + $0x228] sm:$0xff] }
 0x745   :  { %v7687_v53 = vpack.c.bf16 %v6494_v17, %v6492_v33  ;;  %v6532_v0 = vld [vmem:[%s11930_s9 + $0x1e0] sm:$0xff]  ;;  %v6537_v33 = vld [vmem:[%s11930_s9 + $0x208] sm:$0xff]  ;;  %v6539_v17 = vld [vmem:[%s11930_s9 + $0x218] sm:$0xff] }
 0x746   :  { %v7729_v10 = vpack.c.bf16 %v6539_v17, %v6537_v33  ;;  %v6540_v17 = vld [vmem:[%s11930_s9 + $0x220] sm:$0xff] }
 0x747   :  { %7528 = vmatpush1.bf16.msra.mxu1 %v7527_v62  ;;  %7656 = vmatpush1.bf16.msra.mxu0 %v7655_v49  ;;  %v6501_v62 = vld [vmem:[%s11930_s9 + $0xe8] sm:$0xff]  ;;  %v6503_v49 = vld [vmem:[%s11930_s9 + $0xf8] sm:$0xff] }
 0x748   :  { %7530 = vmatprep.subr.bf16.mxu1 %v7529_v20  ;;  %7658 = vmatprep.subr.bf16.mxu0 %v7657_v60  ;;  %v7693_v42 = vpack.c.bf16 %v6503_v49, %v6501_v62  ;;  %v6500_v20 = vld [vmem:[%s11930_s9 + $0xe0] sm:$0xff]  ;;  %v6502_v60 = vld [vmem:[%s11930_s9 + $0xf0] sm:$0xff]  ;;  %v6775_v49 = vld [vmem:[%s11932_s11 + $0x98] sm:$0xff] }
 0x749   :  { %v7695_v35 = vpack.c.bf16 %v6502_v60, %v6500_v20  ;;  %v6774_v62 = vld [vmem:[%s11932_s11 + $0x90] sm:$0xff]  ;;  %v6759_v60 = vld [vmem:[%s11932_s11 + $0x18] sm:$0xff] }
 0x74a   :  { %v6758_v20 = vld [vmem:[%s11932_s11 + $0x10] sm:$0xff] }
 0x74b   :  { %7532 = vmatpush1.bf16.msra.mxu1 %v7531_v13  ;;  %7660 = vmatpush1.bf16.msra.mxu0 %v7659_v29  ;;  %v6509_v13 = vld [vmem:[%s11930_s9 + $0x128] sm:$0xff]  ;;  %v6511_v29 = vld [vmem:[%s11930_s9 + $0x138] sm:$0xff] }
 0x74c   :  { %7534 = vmatprep.subr.bf16.mxu1 %v7533_v5  ;;  %7662 = vmatprep.subr.bf16.mxu0 %v7661_v37  ;;  %v7701_v5 = vpack.c.bf16 %v6511_v29, %v6509_v13  ;;  %v6508_v37 = vld [vmem:[%s11930_s9 + $0x120] sm:$0xff]  ;;  %v6778_v13 = vld [vmem:[%s11932_s11 + $0xb0] sm:$0xff]  ;;  %v6779_v29 = vld [vmem:[%s11932_s11 + $0xb8] sm:$0xff] }
 0x74d   :  { %v7703_v12 = vpack.c.bf16 %v6510_v22, %v6508_v37  ;;  %v6762_v37 = vld [vmem:[%s11932_s11 + $0x30] sm:$0xff]  ;;  %v6763_v22 = vld [vmem:[%s11932_s11 + $0x38] sm:$0xff] }
 0x74f   :  { %7536 = vmatpush1.bf16.msra.mxu1 %v7535_v8  ;;  %7664 = vmatpush1.bf16.msra.mxu0 %v7663_v26  ;;  %v6512_v8 = vld [vmem:[%s11930_s9 + $0x140] sm:$0xff]  ;;  %v6514_v26 = vld [vmem:[%s11930_s9 + $0x150] sm:$0xff] }
 0x750   :  { %7666 = vmatprep.subr.bf16.mxu1 %v7665_v7  ;;  %v6517_v7 = vld [vmem:[%s11930_s9 + $0x168] sm:$0xff]  ;;  %v7707_v23 = vpack.c.bf16 %v6514_v26, %v6512_v8  ;;  %v6764_v8 = vld [vmem:[%s11932_s11 + $0x40] sm:$0xff] }
 0x751   :  { %v7709_v45 = vpack.c.bf16 %v6519_v63, %v6517_v7  ;;  %v6765_v26 = vld [vmem:[%s11932_s11 + $0x48] sm:$0xff]  ;;  %v6782_v7 = vld [vmem:[%s11932_s11 + $0xd0] sm:$0xff]  ;;  %v6783_v63 = vld [vmem:[%s11932_s11 + $0xd8] sm:$0xff] }
 0x752   :  { %6320 = vmatmul.mubr.f32.vlgmr.msra.gmra.mrb[112].mxu1 %v11393_v21  ;;  %6462 = vmatmul.mubr.f32.vlgmr.msra.gmra.mrb[128].mxu0 %v11393_v21  ;;  %v6487_v21 = vld [vmem:[%s11930_s9 + $0x78] sm:$0xff] }
 0x753   :  { %7668 = vmatpush1.bf16.msra.mxu1 %v7667_v50  ;;  %v7677_v54 = vpack.c.bf16 %v6487_v21, %v6485_v27  ;;  %v6518_v50 = vld [vmem:[%s11930_s9 + $0x170] sm:$0xff]  ;;  %v6524_v21 = vld [vmem:[%s11930_s9 + $0x1a0] sm:$0xff] }
 0x754   :  { %7670 = vmatprep.subr.bf16.mxu1 %v7669_v25  ;;  %v6521_v25 = vld [vmem:[%s11930_s9 + $0x188] sm:$0xff]  ;;  %v7711_v16 = vpack.c.bf16 %v6518_v50, %v6516_v11  ;;  %v6766_v11 = vld [vmem:[%s11932_s11 + $0x50] sm:$0xff]  ;;  %v6767_v50 = vld [vmem:[%s11932_s11 + $0x58] sm:$0xff] }
 0x755   :  { %v7713_v32 = vpack.c.bf16 %v6523_v43, %v6521_v25  ;;  %v6784_v25 = vld [vmem:[%s11932_s11 + $0xe0] sm:$0xff]  ;;  %v6785_v43 = vld [vmem:[%s11932_s11 + $0xe8] sm:$0xff] }
 0x757   :  { %7672 = vmatpush1.bf16.msra.mxu1 %v7671_v2  ;;  %v6522_v2 = vld [vmem:[%s11930_s9 + $0x190] sm:$0xff] }
 0x758   :  { %7674 = vmatprep.subr.bf16.mxu1 %v7673_v30  ;;  %v6525_v30 = vld [vmem:[%s11930_s9 + $0x1a8] sm:$0xff]  ;;  %v7715_v55 = vpack.c.bf16 %v6522_v2, %v6520_v40  ;;  %v6144_v40 = vsub.s32 0, %v11390_v1  ;;  %v11679_v2 = vld [vmem:[%s11929_s8] sm:$0xf] }
 0x759   :  { %v7717_v27 = vpack.c.bf16 %v6527_v34, %v6525_v30  ;;  %v6148_v30 = vsub.s32 1, %v11390_v1  ;;  %v6156_v34 = vsub.s32 3, %v11390_v1 }
 0x75b   :  { %7676 = vmatpush1.bf16.msra.mxu1 %v7675_v31  ;;  %v6526_v31 = vld [vmem:[%s11930_s9 + $0x1b0] sm:$0xff] }
 0x75c   :  { %7678 = vmatprep.subr.bf16.mxu1 %v7677_v54  ;;  %v6529_v54 = vld [vmem:[%s11930_s9 + $0x1c8] sm:$0xff]  ;;  %v7719_v18 = vpack.c.bf16 %v6526_v31, %v6524_v21  ;;  %v6157_v21 = vrot.slane %v11679_v2, %v6156_v34 }
 0x75d   :  { %v7721_v39 = vpack.c.bf16 %v6531_v15, %v6529_v54 }
 0x75f   :  { %7680 = vmatpush1.bf16.msra.mxu1 %v7679_v57  ;;  %v6530_v57 = vld [vmem:[%s11930_s9 + $0x1d0] sm:$0xff] }
 0x760   :  { %7682 = vmatprep.subr.bf16.mxu1 %v7681_v56  ;;  %v7723_v56 = vpack.c.bf16 %v6530_v57, %v6528_v24  ;;  %v6536_v24 = vld [vmem:[%s11930_s9 + $0x200] sm:$0xff]  ;;  %v6538_v57 = vld [vmem:[%s11930_s9 + $0x210] sm:$0xff] }
 0x763   :  { %7684 = vmatpush1.bf16.msra.mxu1 %v7683_v3  ;;  %v6534_v3 = vld [vmem:[%s11930_s9 + $0x1f0] sm:$0xff] }
 0x764   :  { %7686 = vmatprep.subr.bf16.mxu1 %v7685_v19  ;;  %v7727_v19 = vpack.c.bf16 %v6534_v3, %v6532_v0  ;;  %v7731_v3 = vpack.c.bf16 %v6538_v57, %v6536_v24  ;;  %v6572_v24 = vld [vmem:[%s11930_s9 + $0x320] sm:$0xff]  ;;  %v6574_v57 = vld [vmem:[%s11930_s9 + $0x330] sm:$0xff] }
 0x767   :  { %7688 = vmatpush1.bf16.msra.mxu1 %v7687_v53  ;;  %v6773_v53 = vld [vmem:[%s11932_s11 + $0x88] sm:$0xff] }
 0x768   :  { %7690 = vmatprep.subr.bf16.mxu1 %v7689_v48  ;;  %v6756_v48 = vld [vmem:[%s11932_s11] sm:$0xff]  ;;  %v7793_v59 = vpack.c.bf16 %v6773_v53, %v6772_v44  ;;  %v6545_v53 = vld [vmem:[%s11930_s9 + $0x248] sm:$0xff] }
 0x76a   :  { %7794 = vmatprep.subr.bf16.mxu0 %v7793_v59 }
 0x76b   :  { %7692 = vmatpush1.bf16.msra.mxu1 %v7691_v46  ;;  %v7795_v46 = vpack.c.bf16 %v6757_v28, %v6756_v48  ;;  %v6547_v48 = vld [vmem:[%s11930_s9 + $0x258] sm:$0xff] }
 0x76c   :  { %7694 = vmatprep.subr.bf16.mxu1 %v7693_v42  ;;  %v7797_v42 = vpack.c.bf16 %v6775_v49, %v6774_v62  ;;  %v7737_v28 = vpack.c.bf16 %v6547_v48, %v6545_v53  ;;  %v6544_v62 = vld [vmem:[%s11930_s9 + $0x240] sm:$0xff]  ;;  %v6546_v49 = vld [vmem:[%s11930_s9 + $0x250] sm:$0xff]  ;;  %v6585_v48 = vld [vmem:[%s11930_s9 + $0x388] sm:$0xff] }
 0x76d   :  { %7796 = vmatpush3.bf16.msra.mxu0 %v7795_v46  ;;  %v6549_v46 = vld [vmem:[%s11930_s9 + $0x268] sm:$0xff]  ;;  %v6582_v53 = vld [vmem:[%s11930_s9 + $0x370] sm:$0xff] }
 0x76e   :  { %7798 = vmatprep.subr.bf16.mxu0 %v7797_v42  ;;  %v6551_v42 = vld [vmem:[%s11930_s9 + $0x278] sm:$0xff] }
 0x76f   :  { %7696 = vmatpush1.bf16.msra.mxu1 %v7695_v35  ;;  %v7799_v35 = vpack.c.bf16 %v6759_v60, %v6758_v20  ;;  %v7739_v20 = vpack.c.bf16 %v6546_v49, %v6544_v62  ;;  %v7741_v60 = vpack.c.bf16 %v6551_v42, %v6549_v46  ;;  %v6584_v49 = vld [vmem:[%s11930_s9 + $0x380] sm:$0xff]  ;;  %v6586_v46 = vld [vmem:[%s11930_s9 + $0x390] sm:$0xff]  ;;  %v6589_v42 = vld [vmem:[%s11930_s9 + $0x3a8] sm:$0xff] }
 0x770   :  { %7698 = vmatprep.subr.bf16.mxu1 %v7697_v47  ;;  %v7801_v47 = vpack.c.bf16 %v6777_v58, %v6776_v61  ;;  %v6548_v61 = vld [vmem:[%s11930_s9 + $0x260] sm:$0xff]  ;;  %v6550_v58 = vld [vmem:[%s11930_s9 + $0x270] sm:$0xff] }
 0x771   :  { %7800 = vmatpush3.bf16.msra.mxu0 %v7799_v35  ;;  %v6553_v35 = vld [vmem:[%s11930_s9 + $0x288] sm:$0xff] }
 0x772   :  { %7802 = vmatprep.subr.bf16.mxu0 %v7801_v47  ;;  %v6555_v47 = vld [vmem:[%s11930_s9 + $0x298] sm:$0xff] }
 0x773   :  { %7700 = vmatpush1.bf16.msra.mxu1 %v7699_v51  ;;  %v7803_v51 = vpack.c.bf16 %v6761_v14, %v6760_v41  ;;  %v7743_v41 = vpack.c.bf16 %v6550_v58, %v6548_v61  ;;  %v7745_v14 = vpack.c.bf16 %v6555_v47, %v6553_v35  ;;  %v6588_v58 = vld [vmem:[%s11930_s9 + $0x3a0] sm:$0xff]  ;;  %v6590_v35 = vld [vmem:[%s11930_s9 + $0x3b0] sm:$0xff]  ;;  %v6593_v47 = vld [vmem:[%s11930_s9 + $0x3c8] sm:$0xff] }
 0x774   :  { %7702 = vmatprep.subr.bf16.mxu1 %v7701_v5  ;;  %v7805_v5 = vpack.c.bf16 %v6779_v29, %v6778_v13  ;;  %v6552_v13 = vld [vmem:[%s11930_s9 + $0x280] sm:$0xff]  ;;  %v6554_v29 = vld [vmem:[%s11930_s9 + $0x290] sm:$0xff] }
 0x775   :  { %7804 = vmatpush3.bf16.msra.mxu0 %v7803_v51  ;;  %v6557_v51 = vld [vmem:[%s11930_s9 + $0x2a8] sm:$0xff] }
 0x776   :  { %7806 = vmatprep.subr.bf16.mxu0 %v7805_v5  ;;  %v6559_v5 = vld [vmem:[%s11930_s9 + $0x2b8] sm:$0xff] }
 0x777   :  { %7704 = vmatpush1.bf16.msra.mxu1 %v7703_v12  ;;  %v7807_v12 = vpack.c.bf16 %v6763_v22, %v6762_v37  ;;  %v7747_v37 = vpack.c.bf16 %v6554_v29, %v6552_v13  ;;  %v7749_v22 = vpack.c.bf16 %v6559_v5, %v6557_v51  ;;  %v6152_v13 = vsub.s32 2, %v11390_v1  ;;  %v6592_v51 = vld [vmem:[%s11930_s9 + $0x3c0] sm:$0xff]  ;;  %v6594_v5 = vld [vmem:[%s11930_s9 + $0x3d0] sm:$0xff] }
 0x778   :  { %7706 = vmatprep.subr.bf16.mxu1 %v7705_v9  ;;  %v7809_v9 = vpack.c.bf16 %v6781_v6, %v6780_v36  ;;  %v6556_v36 = vld [vmem:[%s11930_s9 + $0x2a0] sm:$0xff]  ;;  %v6558_v6 = vld [vmem:[%s11930_s9 + $0x2b0] sm:$0xff] }
 0x779   :  { %7808 = vmatpush3.bf16.msra.mxu0 %v7807_v12  ;;  %v6561_v12 = vld [vmem:[%s11930_s9 + $0x2c8] sm:$0xff] }
 0x77a   :  { %7810 = vmatprep.subr.bf16.mxu0 %v7809_v9  ;;  %v6563_v9 = vld [vmem:[%s11930_s9 + $0x2d8] sm:$0xff] }
 0x77b   :  { %7708 = vmatpush1.bf16.msra.mxu1 %v7707_v23  ;;  %v7811_v23 = vpack.c.bf16 %v6765_v26, %v6764_v8  ;;  %v7751_v8 = vpack.c.bf16 %v6558_v6, %v6556_v36  ;;  %v7753_v26 = vpack.c.bf16 %v6563_v9, %v6561_v12  ;;  %v7787_v36 = vpack.c.bf16 %v6594_v5, %v6592_v51  ;;  %v6596_v9 = vld [vmem:[%s11930_s9 + $0x3e0] sm:$0xff] }
 0x77c   :  { %7710 = vmatprep.subr.bf16.mxu1 %v7709_v45  ;;  %v7813_v45 = vpack.c.bf16 %v6783_v63, %v6782_v7  ;;  %v6560_v7 = vld [vmem:[%s11930_s9 + $0x2c0] sm:$0xff]  ;;  %v6562_v63 = vld [vmem:[%s11930_s9 + $0x2d0] sm:$0xff]  ;;  %v6153_v6 = vrot.slane %v11679_v2, %v6152_v13 }
 0x77d   :  { %7812 = vmatpush3.bf16.msra.mxu0 %v7811_v23  ;;  %v6565_v23 = vld [vmem:[%s11930_s9 + $0x2e8] sm:$0xff] }
 0x77e   :  { %7814 = vmatprep.subr.bf16.mxu0 %v7813_v45  ;;  %v6567_v45 = vld [vmem:[%s11930_s9 + $0x2f8] sm:$0xff] }
 0x77f   :  { %7712 = vmatpush1.bf16.msra.mxu1 %v7711_v16  ;;  %v7815_v16 = vpack.c.bf16 %v6767_v50, %v6766_v11  ;;  %v7755_v11 = vpack.c.bf16 %v6562_v63, %v6560_v7  ;;  %v7757_v50 = vpack.c.bf16 %v6567_v45, %v6565_v23  ;;  %v6769_v23 = vld [vmem:[%s11932_s11 + $0x68] sm:$0xff] }
 0x780   :  { %7714 = vmatprep.subr.bf16.mxu1 %v7713_v32  ;;  %v7817_v32 = vpack.c.bf16 %v6785_v43, %v6784_v25  ;;  %v6564_v25 = vld [vmem:[%s11930_s9 + $0x2e0] sm:$0xff]  ;;  %v6566_v43 = vld [vmem:[%s11930_s9 + $0x2f0] sm:$0xff] }
 0x781   :  { %7816 = vmatpush3.bf16.msra.mxu0 %v7815_v16  ;;  %v6569_v16 = vld [vmem:[%s11930_s9 + $0x308] sm:$0xff]  ;;  %v7759_v34 = vpack.c.bf16 %v6566_v43, %v6564_v25  ;;  %v6770_v25 = vld [vmem:[%s11932_s11 + $0x70] sm:$0xff]  ;;  %v6771_v43 = vld [vmem:[%s11932_s11 + $0x78] sm:$0xff] }
 0x782   :  { %7818 = vmatprep.subr.bf16.mxu0 %v7817_v32  ;;  %v6571_v32 = vld [vmem:[%s11930_s9 + $0x318] sm:$0xff] }
 0x783   :  { %7716 = vmatpush1.bf16.msra.mxu1 %v7715_v55  ;;  %v6145_v55 = vrot.slane %v11679_v2, %v6144_v40 }
 0x784   :  { %7718 = vmatprep.subr.bf16.mxu1 %v7717_v27  ;;  %v6149_v27 = vrot.slane %v11679_v2, %v6148_v30  ;;  %v6768_v2 = vld [vmem:[%s11932_s11 + $0x60] sm:$0xff] }
 0x785   :  { %v7819_v45 = vpack.c.bf16 %v6769_v23, %v6768_v2 }
 0x787   :  { %7720 = vmatpush1.bf16.msra.mxu1 %v7719_v18  ;;  %7820 = vmatpush3.bf16.msra.mxu0 %v7819_v45 }
 0x788   :  { %7722 = vmatprep.subr.bf16.mxu1 %v7721_v39 }
 0x78b   :  { %7724 = vmatpush1.bf16.msra.mxu1 %v7723_v56 }
 0x78c   :  { %7726 = vmatprep.subr.bf16.mxu1 %v7725_v52  ;;  %v6543_v52 = vld [vmem:[%s11930_s9 + $0x238] sm:$0xff] }
 0x78d   :  { %v7733_v33 = vpack.c.bf16 %v6543_v52, %v6541_v4  ;;  %v7767_v4 = vpack.c.bf16 %v6574_v57, %v6572_v24  ;;  %v6973_v57 = vld [vmem:[%s11933_s12] ss:$0 sm:$0xff] }
 0x78f   :  { %7728 = vmatpush1.bf16.msra.mxu1 %v7727_v19 }
 0x790   :  { %7730 = vmatprep.subr.bf16.mxu1 %v7729_v10  ;;  %v6542_v10 = vld [vmem:[%s11930_s9 + $0x230] sm:$0xff] }
 0x791   :  { %v7735_v59 = vpack.c.bf16 %v6542_v10, %v6540_v17 }
 0x825   :  { %v6321_v31 = vpop.f32.mrb[112].mxu1  ;;  %v11690_v54 = vpop.f32.mrb[128].mxu0 }
 0x826   :  { %v7825_v15 = vadd.f32 %v6321_v31, %v6145_v55  ;;  %v6323_v18 = vpop.f32.mrb[113].mxu1  ;;  %v6465_v39 = vpop.f32.mrb[129].mxu0  ;;  %v7761_v55 = vpack.c.bf16 %v6571_v32, %v6569_v16  ;;  %v6573_v31 = vld [vmem:[%s11930_s9 + $0x328] sm:$0xff]  ;;  %v7827_v7 = vadd.f32 %v11690_v54, %v6153_v6  ;;  %v6787_v54 = vld [vmem:[%s11932_s11 + $0xf8] sm:$0xff]  ;;  %v7823_v16 = vpack.c.bf16 %v6771_v43, %v6770_v25  ;;  %v6600_v32 = vld [vmem:[%s11931_s10] sm:$0x3] }
 0x827   :  { %v7826_v56 = vadd.f32 %v6323_v18, %v6149_v27  ;;  %v7828_v38 = vadd.f32 %v6465_v39, %v6157_v21  ;;  %v6568_v27 = vld [vmem:[%s11930_s9 + $0x300] sm:$0xff]  ;;  %v6570_v21 = vld [vmem:[%s11930_s9 + $0x310] sm:$0xff]  ;;  %s7947_s10 = smov [#allocation17]  }
 0x828   :  { %v6468_v19 = vmax.f32 %v7825_v15, 0.0  ;;  %v6575_v15 = vld [vmem:[%s11930_s9 + $0x338] sm:$0xff]  ;;  %v7763_v18 = vpack.c.bf16 %v6570_v21, %v6568_v27  ;;  %v6470_v63 = vmax.f32 %v7827_v7, 0.0  ;;  %s6879_s14 = sshll.u32 %s7947_s10, 4  ;;  %s6880_s14 = int_to_ptr.vmem [resolvable:$true] %s6879_s14 }
 0x829   :  { %v6469_v0 = vmax.f32 %v7826_v56, 0.0  ;;  %v6471_v44 = vmax.f32 %v7828_v38, 0.0  ;;  %v7765_v39 = vpack.c.bf16 %v6575_v15, %v6573_v31  ;;  %v6577_v56 = vld [vmem:[%s11930_s9 + $0x348] sm:$0xff]  ;;  %v6579_v38 = vld [vmem:[%s11930_s9 + $0x358] sm:$0xff]  ;;  %s7908_s15 = scalar_lea.vmem %s6880_s14, 32  ;;  %p7913_p3 = scmp.lt.s32.totalorder %s6880_s14, %s6880_s14 }
 0x82a   :  { %v7769_v52 = vpack.c.bf16 %v6579_v38, %v6577_v56  ;;  %p7909_p2 = scmp.ne.s32.totalorder %s6880_s14, %s7908_s15  ;;  %p7914_p4 = scmp.lt.s32.totalorder %s7908_s15, %s7908_s15 }
 0x82b   :  { %6676 = vmatprep.mubr.f32.mxu1 %v6469_v0  ;;  %v6576_v0 = vld [vmem:[%s11930_s9 + $0x340] sm:$0xff] }
 0x82c   :  { %6677 = vmatmul.mubr.f32.vlgmr.msra.gmra.mrb[114].mxu1 %v6468_v19  ;;  %v6581_v19 = vld [vmem:[%s11930_s9 + $0x368] sm:$0xff]  ;;  %p7915_p5 = por %p7914_p4, %p7913_p3 }
 0x82d   :  { %7732 = vmatpush1.bf16.msra.mxu1 %v7731_v3  ;;  %6747 = vmatprep.mubr.f32.mxu1 %v6471_v44  ;;  %v6578_v3 = vld [vmem:[%s11930_s9 + $0x350] sm:$0xff]  ;;  %v6580_v44 = vld [vmem:[%s11930_s9 + $0x360] sm:$0xff] }
 0x82e   :  { %7734 = vmatprep.subr.bf16.mxu1 %v7733_v33  ;;  %v6583_v33 = vld [vmem:[%s11930_s9 + $0x378] sm:$0xff]  ;;  %v7771_v17 = vpack.c.bf16 %v6578_v3, %v6576_v0  ;;  %p7916_p6 = pnand %p7915_p5, %p7909_p2 }
 0x82f   :  { %v7773_v10 = vpack.c.bf16 %v6583_v33, %v6581_v19 }
 0x831   :  { %7736 = vmatpush1.bf16.msra.mxu1 %v7735_v59  ;;  %v6587_v59 = vld [vmem:[%s11930_s9 + $0x398] sm:$0xff] }
 0x832   :  { %7738 = vmatprep.subr.bf16.mxu1 %v7737_v28  ;;  %v7775_v28 = vpack.c.bf16 %v6582_v53, %v6580_v44  ;;  %v7777_v62 = vpack.c.bf16 %v6587_v59, %v6585_v48 }
 0x835   :  { %7740 = vmatpush1.bf16.msra.mxu1 %v7739_v20  ;;  %v6591_v20 = vld [vmem:[%s11930_s9 + $0x3b8] sm:$0xff] }
 0x836   :  { %7742 = vmatprep.subr.bf16.mxu1 %v7741_v60  ;;  %v7779_v60 = vpack.c.bf16 %v6586_v46, %v6584_v49  ;;  %v7781_v61 = vpack.c.bf16 %v6591_v20, %v6589_v42 }
 0x839   :  { %7744 = vmatpush1.bf16.msra.mxu1 %v7743_v41  ;;  %v6595_v41 = vld [vmem:[%s11930_s9 + $0x3d8] sm:$0xff] }
 0x83a   :  { %7746 = vmatprep.subr.bf16.mxu1 %v7745_v14  ;;  %v7783_v14 = vpack.c.bf16 %v6590_v35, %v6588_v58  ;;  %v7785_v29 = vpack.c.bf16 %v6595_v41, %v6593_v47 }
 0x83d   :  { %7748 = vmatpush1.bf16.msra.mxu1 %v7747_v37  ;;  %v6597_v37 = vld [vmem:[%s11930_s9 + $0x3e8] sm:$0xff] }
 0x83e   :  { %7750 = vmatprep.subr.bf16.mxu1 %v7749_v22  ;;  %v6599_v22 = vld [vmem:[%s11930_s9 + $0x3f8] sm:$0xff] }
 0x83f   :  { %v7789_v12 = vpack.c.bf16 %v6599_v22, %v6597_v37 }
 0x841   :  { %7752 = vmatpush1.bf16.msra.mxu1 %v7751_v8  ;;  %v6598_v8 = vld [vmem:[%s11930_s9 + $0x3f0] sm:$0xff] }
 0x842   :  { %7754 = vmatprep.subr.bf16.mxu1 %v7753_v26  ;;  %v7791_v26 = vpack.c.bf16 %v6598_v8, %v6596_v9 }
 0x845   :  { %7756 = vmatpush1.bf16.msra.mxu1 %v7755_v11  ;;  %v6786_v11 = vld [vmem:[%s11932_s11 + $0xf0] sm:$0xff] }
 0x846   :  { %7758 = vmatprep.subr.bf16.mxu1 %v7757_v50  ;;  %v7821_v50 = vpack.c.bf16 %v6787_v54, %v6786_v11 }
 0x848   :  { %7822 = vmatprep.subr.bf16.mxu0 %v7821_v50 }
 0x849   :  { %7760 = vmatpush1.bf16.msra.mxu1 %v7759_v34  ;;  %7824 = vmatpush3.bf16.msra.mxu0 %v7823_v16  ;;  %v6605_v34 = vrot.slane %v6600_v32, %v6144_v40 }
 0x84a   :  { %7762 = vmatprep.subr.bf16.mxu1 %v7761_v55  ;;  %v6609_v55 = vrot.slane %v6600_v32, %v6148_v30 }
 0x84d   :  { %7764 = vmatpush1.bf16.msra.mxu1 %v7763_v18 }
 0x84e   :  { %7766 = vmatprep.subr.bf16.mxu1 %v7765_v39 }
 0x851   :  { %7768 = vmatpush1.bf16.msra.mxu1 %v7767_v4 }
 0x852   :  { %7770 = vmatprep.subr.bf16.mxu1 %v7769_v52 }
 0x855   :  { %7772 = vmatpush1.bf16.msra.mxu1 %v7771_v17 }
 0x856   :  { %7774 = vmatprep.subr.bf16.mxu1 %v7773_v10 }
 0x859   :  { %7776 = vmatpush1.bf16.msra.mxu1 %v7775_v28 }
 0x85a   :  { %7778 = vmatprep.subr.bf16.mxu1 %v7777_v62 }
 0x85d   :  { %7780 = vmatpush1.bf16.msra.mxu1 %v7779_v60 }
 0x85e   :  { %7782 = vmatprep.subr.bf16.mxu1 %v7781_v61 }
 0x861   :  { %7784 = vmatpush1.bf16.msra.mxu1 %v7783_v14 }
 0x862   :  { %7786 = vmatprep.subr.bf16.mxu1 %v7785_v29 }
 0x865   :  { %7788 = vmatpush1.bf16.msra.mxu1 %v7787_v36 }
 0x866   :  { %7790 = vmatprep.subr.bf16.mxu1 %v7789_v12 }
 0x869   :  { %7792 = vmatpush1.bf16.msra.mxu1 %v7791_v26 }
 0x86c   :  { %6748 = vmatmul.mubr.f32.vlgmr.msra.gmra.mrb[114].mxu1 %v6470_v63 }
 0x93f   :  { %v6749_v27 = vpop.f32.mrb[114].mxu1 }
 0x940   :  { %v7829_v21 = vadd.f32 %v6749_v27, %v6605_v34  ;;  %v6751_v31 = vpop.f32.mrb[115].mxu1 }
 0x941   :  { %v7830_v15 = vadd.f32 %v6751_v31, %v6609_v55 }
 0x942   :  { %v6754_v39 = vmax.f32 %v7829_v21, 0.0 }
 0x943   :  { %v6755_v18 = vmax.f32 %v7830_v15, 0.0 }
 0x945   :  { %6859 = vmatprep.mubr.f32.mxu0 %v6755_v18 }
 0x946   :  { %6860 = vmatmul.mubr.f32.vlgmr.msra.gmra.mrb[130].mxu0 %v6754_v39 }
 0xa19   :  { %v7174_v24 = vpop.f32.mrb[130].mxu0 }
 0xa1a   :  { %v7175_v56 = vpop.f32.mrb[131].mxu0 }
 0xa1b   :  { %v7176_v38 = vadd.f32 %v7175_v56, %v7174_v24 }
 0xa1d   :  { %v6862_v4 = vadd.f32 %v7176_v38, %v6973_v57 }
 0xa1f   :  { %v6865_v40 = vsub.f32 0.0, %v6862_v4 }
 0xa21   :  { %v6866_v52 = vmul.f32 1.442695, %v6865_v40 }
 0xa23   :  { %7850 = vpow2.f32 %v6866_v52 }
 0xa2d   :  { %v7851_v1 = vpop.eup %7850 }
 0xa2e   :  { %v6868_v30 = vadd.f32 1.0, %v7851_v1 }
 0xa30   :  { %7852 = vrcp.f32 %v6868_v30 }
 0xa3a   :  { %v7853_v0 = vpop.eup %7852 }
 0xa3b   :  { %6872 = vst.msk [vmem:[#allocation17] sm:$0x3] %vm6871_vm5, %v7853_v0 }
 0xa3c   :  { %7919 = shalt.err (!%p7916_p6)
}
 0xa3d   :  { %s7920_s16 = scalar_lea.hbm %s11934_s13, 32 }
 0xa3e   :  { %p7921_p7 = scmp.ne.s32.totalorder %s11934_s13, %s7920_s16  ;;  %p7924_p8 = scmp.lt.u32.totalorder %s7920_s16, %s11934_s13 }
 0xa40   :  { %p7926_p9 = pnand %p7924_p8, %p7921_p7 }
 0xa42   :  { %7929 = shalt.err (!%p7926_p9)
}
 0xa43   :  { %6882 = dma.vmem_to_hbm [thread:$0]  %s6880_s14, 32, %s11934_s13, [#allocation14]  }
 0xa44   :  { %7934 = dma.done.wait [#allocation14], 32  }
 0xa45   :  { %7935 = vsyncadd [#allocation14], 4294967264 }
 0xa46   :  { %6886 = vsyncpa [#allocation13], 1 }
 0xa47   :  { %6887 = vsyncpa [#allocation16], 1 }
 0xa48   :  { %6888 = vsyncpa [#allocation14], 1 }

</bundles_post_ra>
